<compile_context>
chip_gen: v5e
topology: v5e:2x2
jax: 0.10.0
libtpu: 0.0.40
codegen_flags: <defaults>
</compile_context>

<pallas_src>
import math
from functools import partial

import jax
import jax.numpy as jnp
from jax.experimental import pallas as pl
from jax.experimental.pallas import tpu as pltpu


# ----------------------------------------------------------------------------
# Pallas kernel: one grid step = one batch element b, ALL (t, h) at once.
#   q_ref:[Nq, T*C]  k_ref/v_ref:[Nk, T*C]   (bf16, lane-dense)
#   bias_ref:[H, Nq, Nk]                     (bf16, mask already folded in)
#   o_ref:[Nq, T*C]                          (bf16, one lane-dense store)
# ----------------------------------------------------------------------------
def _edge_attn_kernel(q_ref, k_ref, v_ref, bias_ref, o_ref, *, t, heads):
    nq, tc = q_ref.shape
    nk = k_ref.shape[0]
    th = t * heads
    dh = tc // th

    # [N, T*C] -> [T*H, N, Dh]: VMEM-local head/time split (tiny tiles), so the
    # batched dots see leading batch dims and the DMA stays lane-dense.
    def split(ref, n):
        return jnp.transpose(ref[...].reshape(n, th, dh), (1, 0, 2))

    q = split(q_ref, nq)            # [TH, Nq, Dh] bf16 (scale pre-folded in Wq)
    k = split(k_ref, nk)            # [TH, Nk, Dh]
    v = split(v_ref, nk)            # [TH, Nk, Dh]

    # One batched QK^T over the fused (t, h) axis ('bqd,bkd->bqk' pattern).
    s = jax.lax.dot_general(
        q, k, (((2,), (2,)), ((0,), (0,))),
        preferred_element_type=jnp.float32)              # [TH, Nq, Nk] f32

    # edge bias (+ mask, already folded in), broadcast over T; f32 softmax.
    s = s.reshape(t, heads, nq, nk) + bias_ref[...][None].astype(jnp.float32)
    s = s - jnp.max(s, axis=-1, keepdims=True)
    p = jnp.exp(s)
    denom = jnp.sum(p, axis=-1, keepdims=True)
    p = p * pl.reciprocal(denom, approx=True)            # EUP path
    # TODO(synk): fully-masked query rows currently yield a uniform average over
    # keys; zero those rows explicitly if real data can contain isolated nodes.
    p = p.reshape(th, nq, nk)

    # One batched P@V over the fused (t, h) axis ('bqk,bkd->bqd' pattern).
    out = jax.lax.dot_general(
        p.astype(v.dtype), v, (((2,), (1,)), ((0,), (0,))),
        preferred_element_type=jnp.float32)              # [TH, Nq, Dh] f32

    # [TH, Nq, Dh] -> [Nq, T*C] and ONE full-width (unmasked) store.
    out = out.astype(o_ref.dtype)
    o_ref[...] = jnp.transpose(out, (1, 0, 2)).reshape(nq, tc)


def edge_masked_attention(q, k, v, bias, heads):
    """q:[B,Nq,T,C] k,v:[B,Nk,T,C] (bf16)  bias:[B,H,Nq,Nk] (bf16) -> [B,Nq,T,C] bf16."""
    B, Nq, T, C = q.shape
    Nk = k.shape[1]
    H = heads
    TC = T * C

    # free contiguous merges (no relayout): [B,N,T,C] -> [B,N,T*C]
    q2 = q.reshape(B, Nq, TC)
    k2 = k.reshape(B, Nk, TC)
    v2 = v.reshape(B, Nk, TC)

    kernel = partial(_edge_attn_kernel, t=T, heads=H)
    out = pl.pallas_call(
        kernel,
        out_shape=jax.ShapeDtypeStruct((B, Nq, TC), jnp.bfloat16),
        grid=(B,),
        in_specs=[
            pl.BlockSpec((None, Nq, TC), lambda b: (b, 0, 0)),
            pl.BlockSpec((None, Nk, TC), lambda b: (b, 0, 0)),
            pl.BlockSpec((None, Nk, TC), lambda b: (b, 0, 0)),
            pl.BlockSpec((None, H, Nq, Nk), lambda b: (b, 0, 0, 0)),
        ],
        out_specs=pl.BlockSpec((None, Nq, TC), lambda b: (b, 0, 0)),
        compiler_params=pltpu.CompilerParams(
            dimension_semantics=("parallel",)   # B>=2 keeps both v7x TCs busy
        ),
    )(q2, k2, v2, bias)
    return out.reshape(B, Nq, T, C)


# ----------------------------------------------------------------------------
# Plain-JAX glue: adjacency masks / distance edge attrs (get_adj_mask1 analog),
# linear projections, residuals, layer norms.
# ----------------------------------------------------------------------------
def _sq_cdist(a, b):
    # squared pairwise distances (no sqrt): a:[B,N,2], b:[B,M,2] -> [B,N,M]
    d = a[:, :, None, :] - b[:, None, :, :]
    return jnp.sum(d * d, axis=-1)


def _dist_edge_attr(x1, x2):
    # matches get_dist_edge_attr: x2[:, None, :, :] - x1[:, :, None, :]
    return x2[:, None, :, :] - x1[:, :, None, :]


def get_adj_mask(lane_pos, agent_pos):
    # inputs assumed already dense/padded (pad_sequence equivalent done outside).
    AL_mask = _sq_cdist(lane_pos, agent_pos) <= 10.0 ** 2
    LL_mask = _sq_cdist(lane_pos, lane_pos) <= 50.0 ** 2
    LA_mask = _sq_cdist(agent_pos, lane_pos) <= 10.0 ** 2
    AA_mask = _sq_cdist(agent_pos, agent_pos) <= 100.0 ** 2
    AL_dist = _dist_edge_attr(lane_pos, agent_pos)
    LL_dist = _dist_edge_attr(lane_pos, lane_pos)
    LA_dist = _dist_edge_attr(agent_pos, lane_pos)
    AA_dist = _dist_edge_attr(agent_pos, agent_pos)
    return ([AL_mask, LL_mask, LA_mask, AA_mask],
            [AL_dist, LL_dist, LA_dist, AA_dist])


def _layernorm(x, g, b, eps=1e-5):
    mu = jnp.mean(x, axis=-1, keepdims=True)
    var = jnp.mean((x - mu) ** 2, axis=-1, keepdims=True)
    return (x - mu) * jax.lax.rsqrt(var + eps) * g + b


def attention_block_edge(p, q_feat, k_feat, v_feat, mask, dist, heads):
    """q_feat:[B,Nq,T,C] k_feat/v_feat:[B,Nk,T,C] mask:[B,Nq,Nk] bool dist:[B,Nq,Nk,2]."""
    B, Nq, T, C = q_feat.shape
    H = heads
    scale = 1.0 / math.sqrt(C // H)

    # 1/sqrt(Dh) folded into the Q projection (no in-kernel multiply).
    q = jnp.einsum("bntc,cd->bntd", q_feat, p["Wq"] * scale) + p["bq"] * scale
    k = jnp.einsum("bntc,cd->bntd", k_feat, p["Wk"]) + p["bk"]
    v = jnp.einsum("bntc,cd->bntd", v_feat, p["Wv"]) + p["bv"]

    # kernel ingests the native [B,N,T,C] layout in bf16 — no transposes.
    q = q.astype(jnp.bfloat16)
    k = k.astype(jnp.bfloat16)
    v = v.astype(jnp.bfloat16)

    # relative-position edge bias per head: [B,Nq,Nk,2]@[2,H] -> [B,H,Nq,Nk];
    # fold the adjacency mask in and ship as bf16 (half the DMA bytes).
    edge_bias = (jnp.einsum("bqke,eh->bqkh", dist, p["We"]) + p["be"]).transpose(0, 3, 1, 2)
    bias = jnp.where(mask[:, None, :, :], edge_bias, jnp.float32(-1e30)).astype(jnp.bfloat16)

    attn = edge_masked_attention(q, k, v, bias, H)        # [B,Nq,T,C] bf16

    out = jnp.einsum("bntc,cd->bntd", attn, p["Wo"].astype(jnp.bfloat16),
                     preferred_element_type=jnp.float32) + p["bo"]
    x = _layernorm(q_feat + out, p["ln1_g"], p["ln1_b"])

    ffn = jnp.einsum("bntc,cd->bntd", x, p["W1"]) + p["b1"]
    ffn = jax.nn.relu(ffn)
    ffn = jnp.einsum("bntc,cd->bntd", ffn, p["W2"]) + p["b2"]
    x = _layernorm(x + ffn, p["ln2_g"], p["ln2_b"])
    return x


def fusionnet_forward(params, lane_pos, agent_pos, agent_features, lane_features,
                      heads, num_layers):
    masks, dists = get_adj_mask(lane_pos, agent_pos)
    for i in range(num_layers):
        lane_features = attention_block_edge(
            params["AL"][i], lane_features, agent_features, agent_features,
            masks[0], dists[0], heads)
        lane_features = attention_block_edge(
            params["LL"][i], lane_features, lane_features, lane_features,
            masks[1], dists[1], heads)
        agent_features = attention_block_edge(
            params["LA"][i], agent_features, lane_features, lane_features,
            masks[2], dists[2], heads)
        agent_features = attention_block_edge(
            params["AA"][i], agent_features, agent_features, agent_features,
            masks[3], dists[3], heads)
    return agent_features


# ----------------------------------------------------------------------------
# Deterministic parameter initialization (synthetic; no checkpoint load).
# ----------------------------------------------------------------------------
def _init_block_params(key, C, H):
    ks = jax.random.split(key, 7)

    def lin(k, fi, fo):
        return jax.random.normal(k, (fi, fo), jnp.float32) / jnp.sqrt(float(fi))

    return {
        "Wq": lin(ks[0], C, C), "bq": jnp.zeros((C,), jnp.float32),
        "Wk": lin(ks[1], C, C), "bk": jnp.zeros((C,), jnp.float32),
        "Wv": lin(ks[2], C, C), "bv": jnp.zeros((C,), jnp.float32),
        "Wo": lin(ks[3], C, C), "bo": jnp.zeros((C,), jnp.float32),
        "We": lin(ks[4], 2, H), "be": jnp.zeros((H,), jnp.float32),
        "W1": lin(ks[5], C, C), "b1": jnp.zeros((C,), jnp.float32),
        "W2": lin(ks[6], C, C), "b2": jnp.zeros((C,), jnp.float32),
        "ln1_g": jnp.ones((C,), jnp.float32), "ln1_b": jnp.zeros((C,), jnp.float32),
        "ln2_g": jnp.ones((C,), jnp.float32), "ln2_b": jnp.zeros((C,), jnp.float32),
    }


def init_fusionnet_params(key, C, H, num_layers):
    params = {"AL": [], "LL": [], "LA": [], "AA": []}
    for name in ("AL", "LL", "LA", "AA"):
        for _ in range(num_layers):
            key, sub = jax.random.split(key)
            params[name].append(_init_block_params(sub, C, H))
    return params


# ----------------------------------------------------------------------------
if __name__ == "__main__":
    B = 2          # batch (>= 2 parallel grid steps -> feeds both v7x TCs)
    A = 4          # agents
    L = 8          # lane nodes
    T = 4          # num_historical_steps
    hidden = 32
    heads = 4
    layers = 2

    key = jax.random.PRNGKey(0)
    k1, k2, k3, k4, kp = jax.random.split(key, 5)

    # positions kept small so that distance thresholds are satisfied
    # (avoids fully-masked rows, matching typical data regime)
    agent_pos = jax.random.uniform(k1, (B, A, 2), jnp.float32, minval=-3.0, maxval=3.0)
    lane_pos = jax.random.uniform(k2, (B, L, 2), jnp.float32, minval=-3.0, maxval=3.0)
    agent_features = jax.random.normal(k3, (B, A, T, hidden), jnp.float32)
    lane_features = jax.random.normal(k4, (B, L, T, hidden), jnp.float32)

    params = init_fusionnet_params(kp, hidden, heads, layers)

    fwd = jax.jit(partial(fusionnet_forward, heads=heads, num_layers=layers))
    out = fwd(params, lane_pos, agent_pos, agent_features, lane_features)
    out = jax.block_until_ready(out)

    assert out.shape == (B, A, T, hidden)
    assert jnp.all(jnp.isfinite(out))
    print("KERNEL_OK")
</pallas_src>

<mosaic_0001>
module attributes {stable_mosaic.version = 11 : i64} {
  func.func @_edge_attn_kernel(%arg0: i32, %arg1: memref<1x8x128xbf16, #tpu.memory_space<vmem>>, %arg2: memref<1x4x128xbf16, #tpu.memory_space<vmem>>, %arg3: memref<1x4x128xbf16, #tpu.memory_space<vmem>>, %arg4: memref<1x4x8x4xbf16, #tpu.memory_space<vmem>>, %arg5: memref<1x8x128xbf16, #tpu.memory_space<vmem>>) attributes {dimension_semantics = [#tpu.dimension_semantics<parallel>], iteration_bounds = array<i64: 2>, scalar_prefetch = 0 : i64, scratch_operands = 0 : i64, tpu.core_type = #tpu.core_type<tc>, window_params = [{transform_indices = @transform_0, window_bounds = array<i64: 1, 8, 128>}, {transform_indices = @transform_1, window_bounds = array<i64: 1, 4, 128>}, {transform_indices = @transform_2, window_bounds = array<i64: 1, 4, 128>}, {transform_indices = @transform_3, window_bounds = array<i64: 1, 4, 8, 4>}, {transform_indices = @transform_4, window_bounds = array<i64: 1, 8, 128>}]} {
    %c0 = arith.constant 0 : index
    %c0_0 = arith.constant 0 : index
    %c0_1 = arith.constant 0 : index
    %0 = vector.load %arg1[%c0, %c0_0, %c0_1] : memref<1x8x128xbf16, #tpu.memory_space<vmem>>, vector<1x8x128xbf16>
    %1 = vector.shape_cast %0 : vector<1x8x128xbf16> to vector<8x128xbf16>
    %2 = vector.shape_cast %1 : vector<8x128xbf16> to vector<8x16x8xbf16>
    %3 = tpu.transpose %2, [1, 0, 2] : vector<8x16x8xbf16> -> vector<16x8x8xbf16>
    %c0_2 = arith.constant 0 : index
    %c0_3 = arith.constant 0 : index
    %c0_4 = arith.constant 0 : index
    %4 = vector.load %arg2[%c0_2, %c0_3, %c0_4] : memref<1x4x128xbf16, #tpu.memory_space<vmem>>, vector<1x4x128xbf16>
    %5 = vector.shape_cast %4 : vector<1x4x128xbf16> to vector<4x128xbf16>
    %6 = vector.shape_cast %5 : vector<4x128xbf16> to vector<4x16x8xbf16>
    %7 = tpu.transpose %6, [1, 0, 2] : vector<4x16x8xbf16> -> vector<16x4x8xbf16>
    %c0_5 = arith.constant 0 : index
    %c0_6 = arith.constant 0 : index
    %c0_7 = arith.constant 0 : index
    %8 = vector.load %arg3[%c0_5, %c0_6, %c0_7] : memref<1x4x128xbf16, #tpu.memory_space<vmem>>, vector<1x4x128xbf16>
    %9 = vector.shape_cast %8 : vector<1x4x128xbf16> to vector<4x128xbf16>
    %10 = vector.shape_cast %9 : vector<4x128xbf16> to vector<4x16x8xbf16>
    %11 = tpu.transpose %10, [1, 0, 2] : vector<4x16x8xbf16> -> vector<16x4x8xbf16>
    %cst = arith.constant dense<0.000000e+00> : vector<16x8x4xf32>
    %12 = tpu.matmul %3, %7, %cst {dimension_numbers = #tpu.dot_dimension_numbers<[2], [2], [1], [1], [0, 0, 0, 1, 1, 1], [0], [0]>} : vector<16x8x8xbf16>, vector<16x4x8xbf16>, vector<16x8x4xf32> -> vector<16x8x4xf32>
    %13 = vector.shape_cast %12 : vector<16x8x4xf32> to vector<4x4x8x4xf32>
    %c0_8 = arith.constant 0 : index
    %c0_9 = arith.constant 0 : index
    %c0_10 = arith.constant 0 : index
    %c0_11 = arith.constant 0 : index
    %14 = vector.load %arg4[%c0_8, %c0_9, %c0_10, %c0_11] : memref<1x4x8x4xbf16, #tpu.memory_space<vmem>>, vector<1x4x8x4xbf16>
    %15 = vector.shape_cast %14 : vector<1x4x8x4xbf16> to vector<4x8x4xbf16>
    %16 = vector.shape_cast %15 : vector<4x8x4xbf16> to vector<1x4x8x4xbf16>
    %17 = arith.extf %16 : vector<1x4x8x4xbf16> to vector<1x4x8x4xf32>
    %18 = vector.broadcast %17 : vector<1x4x8x4xf32> to vector<4x4x8x4xf32>
    %19 = arith.addf %13, %18 : vector<4x4x8x4xf32>
    %cst_12 = arith.constant dense<0xFF800000> : vector<4x4x8xf32>
    %20 = vector.multi_reduction <maximumf>, %19, %cst_12 [3] : vector<4x4x8x4xf32> to vector<4x4x8xf32>
    %21 = vector.shape_cast %20 : vector<4x4x8xf32> to vector<4x4x8x1xf32>
    %22 = vector.broadcast %21 : vector<4x4x8x1xf32> to vector<4x4x8x4xf32>
    %23 = arith.subf %19, %22 : vector<4x4x8x4xf32>
    %24 = math.exp %23 : vector<4x4x8x4xf32>
    %cst_13 = arith.constant dense<0.000000e+00> : vector<4x4x8xf32>
    %25 = vector.multi_reduction <add>, %24, %cst_13 [3] : vector<4x4x8x4xf32> to vector<4x4x8xf32>
    %26 = vector.shape_cast %25 : vector<4x4x8xf32> to vector<4x4x8x1xf32>
    %27 = tpu.reciprocal %26 {approx = true} : vector<4x4x8x1xf32> -> vector<4x4x8x1xf32>
    %28 = vector.broadcast %27 : vector<4x4x8x1xf32> to vector<4x4x8x4xf32>
    %29 = arith.mulf %24, %28 : vector<4x4x8x4xf32>
    %30 = vector.shape_cast %29 : vector<4x4x8x4xf32> to vector<16x8x4xf32>
    %31 = arith.truncf %30 : vector<16x8x4xf32> to vector<16x8x4xbf16>
    %cst_14 = arith.constant dense<0.000000e+00> : vector<16x8x8xf32>
    %32 = tpu.matmul %31, %11, %cst_14 {dimension_numbers = #tpu.dot_dimension_numbers<[2], [1], [1], [2], [0, 0, 0, 1, 1, 2], [0], [0]>} : vector<16x8x4xbf16>, vector<16x4x8xbf16>, vector<16x8x8xf32> -> vector<16x8x8xf32>
    %33 = arith.truncf %32 : vector<16x8x8xf32> to vector<16x8x8xbf16>
    %34 = tpu.transpose %33, [1, 0, 2] : vector<16x8x8xbf16> -> vector<8x16x8xbf16>
    %35 = vector.shape_cast %34 : vector<8x16x8xbf16> to vector<8x128xbf16>
    %c0_15 = arith.constant 0 : index
    %c0_16 = arith.constant 0 : index
    %c0_17 = arith.constant 0 : index
    %36 = vector.load %arg5[%c0_15, %c0_16, %c0_17] : memref<1x8x128xbf16, #tpu.memory_space<vmem>>, vector<1x8x128xbf16>
    %37 = vector.shape_cast %36 : vector<1x8x128xbf16> to vector<8x128xbf16>
    %38 = vector.shape_cast %35 : vector<8x128xbf16> to vector<1x8x128xbf16>
    tpu.vector_store %arg5[%c0_15, %c0_16, %c0_17], %38 {strides = array<i32>} : memref<1x8x128xbf16, #tpu.memory_space<vmem>>, vector<1x8x128xbf16>,
    return
  }
  func.func @transform_0(%arg0: i32) -> (i32, i32, i32) {
    %c0_i32 = arith.constant 0 : i32
    %c0_i32_0 = arith.constant 0 : i32
    %c0_i32_1 = arith.constant 0 : i32
    return %arg0, %c0_i32, %c0_i32_0 : i32, i32, i32
  }
  func.func @transform_1(%arg0: i32) -> (i32, i32, i32) {
    %c0_i32 = arith.constant 0 : i32
    %c0_i32_0 = arith.constant 0 : i32
    %c0_i32_1 = arith.constant 0 : i32
    return %arg0, %c0_i32, %c0_i32_0 : i32, i32, i32
  }
  func.func @transform_2(%arg0: i32) -> (i32, i32, i32) {
    %c0_i32 = arith.constant 0 : i32
    %c0_i32_0 = arith.constant 0 : i32
    %c0_i32_1 = arith.constant 0 : i32
    return %arg0, %c0_i32, %c0_i32_0 : i32, i32, i32
  }
  func.func @transform_3(%arg0: i32) -> (i32, i32, i32, i32) {
    %c0_i32 = arith.constant 0 : i32
    %c0_i32_0 = arith.constant 0 : i32
    %c0_i32_1 = arith.constant 0 : i32
    %c0_i32_2 = arith.constant 0 : i32
    return %arg0, %c0_i32, %c0_i32_0, %c0_i32_1 : i32, i32, i32, i32
  }
  func.func @transform_4(%arg0: i32) -> (i32, i32, i32) {
    %c0_i32 = arith.constant 0 : i32
    %c0_i32_0 = arith.constant 0 : i32
    %c0_i32_1 = arith.constant 0 : i32
    return %arg0, %c0_i32, %c0_i32_0 : i32, i32, i32
  }
}

module attributes {stable_mosaic.version = 11 : i64} {
  func.func @_edge_attn_kernel(%arg0: i32, %arg1: memref<1x8x128xbf16, #tpu.memory_space<vmem>>, %arg2: memref<1x8x128xbf16, #tpu.memory_space<vmem>>, %arg3: memref<1x8x128xbf16, #tpu.memory_space<vmem>>, %arg4: memref<1x4x8x8xbf16, #tpu.memory_space<vmem>>, %arg5: memref<1x8x128xbf16, #tpu.memory_space<vmem>>) attributes {dimension_semantics = [#tpu.dimension_semantics<parallel>], iteration_bounds = array<i64: 2>, scalar_prefetch = 0 : i64, scratch_operands = 0 : i64, tpu.core_type = #tpu.core_type<tc>, window_params = [{transform_indices = @transform_0, window_bounds = array<i64: 1, 8, 128>}, {transform_indices = @transform_1, window_bounds = array<i64: 1, 8, 128>}, {transform_indices = @transform_2, window_bounds = array<i64: 1, 8, 128>}, {transform_indices = @transform_3, window_bounds = array<i64: 1, 4, 8, 8>}, {transform_indices = @transform_4, window_bounds = array<i64: 1, 8, 128>}]} {
    %c0 = arith.constant 0 : index
    %c0_0 = arith.constant 0 : index
    %c0_1 = arith.constant 0 : index
    %0 = vector.load %arg1[%c0, %c0_0, %c0_1] : memref<1x8x128xbf16, #tpu.memory_space<vmem>>, vector<1x8x128xbf16>
    %1 = vector.shape_cast %0 : vector<1x8x128xbf16> to vector<8x128xbf16>
    %2 = vector.shape_cast %1 : vector<8x128xbf16> to vector<8x16x8xbf16>
    %3 = tpu.transpose %2, [1, 0, 2] : vector<8x16x8xbf16> -> vector<16x8x8xbf16>
    %c0_2 = arith.constant 0 : index
    %c0_3 = arith.constant 0 : index
    %c0_4 = arith.constant 0 : index
    %4 = vector.load %arg2[%c0_2, %c0_3, %c0_4] : memref<1x8x128xbf16, #tpu.memory_space<vmem>>, vector<1x8x128xbf16>
    %5 = vector.shape_cast %4 : vector<1x8x128xbf16> to vector<8x128xbf16>
    %6 = vector.shape_cast %5 : vector<8x128xbf16> to vector<8x16x8xbf16>
    %7 = tpu.transpose %6, [1, 0, 2] : vector<8x16x8xbf16> -> vector<16x8x8xbf16>
    %c0_5 = arith.constant 0 : index
    %c0_6 = arith.constant 0 : index
    %c0_7 = arith.constant 0 : index
    %8 = vector.load %arg3[%c0_5, %c0_6, %c0_7] : memref<1x8x128xbf16, #tpu.memory_space<vmem>>, vector<1x8x128xbf16>
    %9 = vector.shape_cast %8 : vector<1x8x128xbf16> to vector<8x128xbf16>
    %10 = vector.shape_cast %9 : vector<8x128xbf16> to vector<8x16x8xbf16>
    %11 = tpu.transpose %10, [1, 0, 2] : vector<8x16x8xbf16> -> vector<16x8x8xbf16>
    %cst = arith.constant dense<0.000000e+00> : vector<16x8x8xf32>
    %12 = tpu.matmul %3, %7, %cst {dimension_numbers = #tpu.dot_dimension_numbers<[2], [2], [1], [1], [0, 0, 0, 1, 1, 1], [0], [0]>} : vector<16x8x8xbf16>, vector<16x8x8xbf16>, vector<16x8x8xf32> -> vector<16x8x8xf32>
    %13 = vector.shape_cast %12 : vector<16x8x8xf32> to vector<4x4x8x8xf32>
    %c0_8 = arith.constant 0 : index
    %c0_9 = arith.constant 0 : index
    %c0_10 = arith.constant 0 : index
    %c0_11 = arith.constant 0 : index
    %14 = vector.load %arg4[%c0_8, %c0_9, %c0_10, %c0_11] : memref<1x4x8x8xbf16, #tpu.memory_space<vmem>>, vector<1x4x8x8xbf16>
    %15 = vector.shape_cast %14 : vector<1x4x8x8xbf16> to vector<4x8x8xbf16>
    %16 = vector.shape_cast %15 : vector<4x8x8xbf16> to vector<1x4x8x8xbf16>
    %17 = arith.extf %16 : vector<1x4x8x8xbf16> to vector<1x4x8x8xf32>
    %18 = vector.broadcast %17 : vector<1x4x8x8xf32> to vector<4x4x8x8xf32>
    %19 = arith.addf %13, %18 : vector<4x4x8x8xf32>
    %cst_12 = arith.constant dense<0xFF800000> : vector<4x4x8xf32>
    %20 = vector.multi_reduction <maximumf>, %19, %cst_12 [3] : vector<4x4x8x8xf32> to vector<4x4x8xf32>
    %21 = vector.shape_cast %20 : vector<4x4x8xf32> to vector<4x4x8x1xf32>
    %22 = vector.broadcast %21 : vector<4x4x8x1xf32> to vector<4x4x8x8xf32>
    %23 = arith.subf %19, %22 : vector<4x4x8x8xf32>
    %24 = math.exp %23 : vector<4x4x8x8xf32>
    %cst_13 = arith.constant dense<0.000000e+00> : vector<4x4x8xf32>
    %25 = vector.multi_reduction <add>, %24, %cst_13 [3] : vector<4x4x8x8xf32> to vector<4x4x8xf32>
    %26 = vector.shape_cast %25 : vector<4x4x8xf32> to vector<4x4x8x1xf32>
    %27 = tpu.reciprocal %26 {approx = true} : vector<4x4x8x1xf32> -> vector<4x4x8x1xf32>
    %28 = vector.broadcast %27 : vector<4x4x8x1xf32> to vector<4x4x8x8xf32>
    %29 = arith.mulf %24, %28 : vector<4x4x8x8xf32>
    %30 = vector.shape_cast %29 : vector<4x4x8x8xf32> to vector<16x8x8xf32>
    %31 = arith.truncf %30 : vector<16x8x8xf32> to vector<16x8x8xbf16>
    %cst_14 = arith.constant dense<0.000000e+00> : vector<16x8x8xf32>
    %32 = tpu.matmul %31, %11, %cst_14 {dimension_numbers = #tpu.dot_dimension_numbers<[2], [1], [1], [2], [0, 0, 0, 1, 1, 2], [0], [0]>} : vector<16x8x8xbf16>, vector<16x8x8xbf16>, vector<16x8x8xf32> -> vector<16x8x8xf32>
    %33 = arith.truncf %32 : vector<16x8x8xf32> to vector<16x8x8xbf16>
    %34 = tpu.transpose %33, [1, 0, 2] : vector<16x8x8xbf16> -> vector<8x16x8xbf16>
    %35 = vector.shape_cast %34 : vector<8x16x8xbf16> to vector<8x128xbf16>
    %c0_15 = arith.constant 0 : index
    %c0_16 = arith.constant 0 : index
    %c0_17 = arith.constant 0 : index
    %36 = vector.load %arg5[%c0_15, %c0_16, %c0_17] : memref<1x8x128xbf16, #tpu.memory_space<vmem>>, vector<1x8x128xbf16>
    %37 = vector.shape_cast %36 : vector<1x8x128xbf16> to vector<8x128xbf16>
    %38 = vector.shape_cast %35 : vector<8x128xbf16> to vector<1x8x128xbf16>
    tpu.vector_store %arg5[%c0_15, %c0_16, %c0_17], %38 {strides = array<i32>} : memref<1x8x128xbf16, #tpu.memory_space<vmem>>, vector<1x8x128xbf16>,
    return
  }
  func.func @transform_0(%arg0: i32) -> (i32, i32, i32) {
    %c0_i32 = arith.constant 0 : i32
    %c0_i32_0 = arith.constant 0 : i32
    %c0_i32_1 = arith.constant 0 : i32
    return %arg0, %c0_i32, %c0_i32_0 : i32, i32, i32
  }
  func.func @transform_1(%arg0: i32) -> (i32, i32, i32) {
    %c0_i32 = arith.constant 0 : i32
    %c0_i32_0 = arith.constant 0 : i32
    %c0_i32_1 = arith.constant 0 : i32
    return %arg0, %c0_i32, %c0_i32_0 : i32, i32, i32
  }
  func.func @transform_2(%arg0: i32) -> (i32, i32, i32) {
    %c0_i32 = arith.constant 0 : i32
    %c0_i32_0 = arith.constant 0 : i32
    %c0_i32_1 = arith.constant 0 : i32
    return %arg0, %c0_i32, %c0_i32_0 : i32, i32, i32
  }
  func.func @transform_3(%arg0: i32) -> (i32, i32, i32, i32) {
    %c0_i32 = arith.constant 0 : i32
    %c0_i32_0 = arith.constant 0 : i32
    %c0_i32_1 = arith.constant 0 : i32
    %c0_i32_2 = arith.constant 0 : i32
    return %arg0, %c0_i32, %c0_i32_0, %c0_i32_1 : i32, i32, i32, i32
  }
  func.func @transform_4(%arg0: i32) -> (i32, i32, i32) {
    %c0_i32 = arith.constant 0 : i32
    %c0_i32_0 = arith.constant 0 : i32
    %c0_i32_1 = arith.constant 0 : i32
    return %arg0, %c0_i32, %c0_i32_0 : i32, i32, i32
  }
}

module attributes {stable_mosaic.version = 11 : i64} {
  func.func @_edge_attn_kernel(%arg0: i32, %arg1: memref<1x4x128xbf16, #tpu.memory_space<vmem>>, %arg2: memref<1x8x128xbf16, #tpu.memory_space<vmem>>, %arg3: memref<1x8x128xbf16, #tpu.memory_space<vmem>>, %arg4: memref<1x4x4x8xbf16, #tpu.memory_space<vmem>>, %arg5: memref<1x4x128xbf16, #tpu.memory_space<vmem>>) attributes {dimension_semantics = [#tpu.dimension_semantics<parallel>], iteration_bounds = array<i64: 2>, scalar_prefetch = 0 : i64, scratch_operands = 0 : i64, tpu.core_type = #tpu.core_type<tc>, window_params = [{transform_indices = @transform_0, window_bounds = array<i64: 1, 4, 128>}, {transform_indices = @transform_1, window_bounds = array<i64: 1, 8, 128>}, {transform_indices = @transform_2, window_bounds = array<i64: 1, 8, 128>}, {transform_indices = @transform_3, window_bounds = array<i64: 1, 4, 4, 8>}, {transform_indices = @transform_4, window_bounds = array<i64: 1, 4, 128>}]} {
    %c0 = arith.constant 0 : index
    %c0_0 = arith.constant 0 : index
    %c0_1 = arith.constant 0 : index
    %0 = vector.load %arg1[%c0, %c0_0, %c0_1] : memref<1x4x128xbf16, #tpu.memory_space<vmem>>, vector<1x4x128xbf16>
    %1 = vector.shape_cast %0 : vector<1x4x128xbf16> to vector<4x128xbf16>
    %2 = vector.shape_cast %1 : vector<4x128xbf16> to vector<4x16x8xbf16>
    %3 = tpu.transpose %2, [1, 0, 2] : vector<4x16x8xbf16> -> vector<16x4x8xbf16>
    %c0_2 = arith.constant 0 : index
    %c0_3 = arith.constant 0 : index
    %c0_4 = arith.constant 0 : index
    %4 = vector.load %arg2[%c0_2, %c0_3, %c0_4] : memref<1x8x128xbf16, #tpu.memory_space<vmem>>, vector<1x8x128xbf16>
    %5 = vector.shape_cast %4 : vector<1x8x128xbf16> to vector<8x128xbf16>
    %6 = vector.shape_cast %5 : vector<8x128xbf16> to vector<8x16x8xbf16>
    %7 = tpu.transpose %6, [1, 0, 2] : vector<8x16x8xbf16> -> vector<16x8x8xbf16>
    %c0_5 = arith.constant 0 : index
    %c0_6 = arith.constant 0 : index
    %c0_7 = arith.constant 0 : index
    %8 = vector.load %arg3[%c0_5, %c0_6, %c0_7] : memref<1x8x128xbf16, #tpu.memory_space<vmem>>, vector<1x8x128xbf16>
    %9 = vector.shape_cast %8 : vector<1x8x128xbf16> to vector<8x128xbf16>
    %10 = vector.shape_cast %9 : vector<8x128xbf16> to vector<8x16x8xbf16>
    %11 = tpu.transpose %10, [1, 0, 2] : vector<8x16x8xbf16> -> vector<16x8x8xbf16>
    %cst = arith.constant dense<0.000000e+00> : vector<16x4x8xf32>
    %12 = tpu.matmul %3, %7, %cst {dimension_numbers = #tpu.dot_dimension_numbers<[2], [2], [1], [1], [0, 0, 0, 1, 1, 1], [0], [0]>} : vector<16x4x8xbf16>, vector<16x8x8xbf16>, vector<16x4x8xf32> -> vector<16x4x8xf32>
    %13 = vector.shape_cast %12 : vector<16x4x8xf32> to vector<4x4x4x8xf32>
    %c0_8 = arith.constant 0 : index
    %c0_9 = arith.constant 0 : index
    %c0_10 = arith.constant 0 : index
    %c0_11 = arith.constant 0 : index
    %14 = vector.load %arg4[%c0_8, %c0_9, %c0_10, %c0_11] : memref<1x4x4x8xbf16, #tpu.memory_space<vmem>>, vector<1x4x4x8xbf16>
    %15 = vector.shape_cast %14 : vector<1x4x4x8xbf16> to vector<4x4x8xbf16>
    %16 = vector.shape_cast %15 : vector<4x4x8xbf16> to vector<1x4x4x8xbf16>
    %17 = arith.extf %16 : vector<1x4x4x8xbf16> to vector<1x4x4x8xf32>
    %18 = vector.broadcast %17 : vector<1x4x4x8xf32> to vector<4x4x4x8xf32>
    %19 = arith.addf %13, %18 : vector<4x4x4x8xf32>
    %cst_12 = arith.constant dense<0xFF800000> : vector<4x4x4xf32>
    %20 = vector.multi_reduction <maximumf>, %19, %cst_12 [3] : vector<4x4x4x8xf32> to vector<4x4x4xf32>
    %21 = vector.shape_cast %20 : vector<4x4x4xf32> to vector<4x4x4x1xf32>
    %22 = vector.broadcast %21 : vector<4x4x4x1xf32> to vector<4x4x4x8xf32>
    %23 = arith.subf %19, %22 : vector<4x4x4x8xf32>
    %24 = math.exp %23 : vector<4x4x4x8xf32>
    %cst_13 = arith.constant dense<0.000000e+00> : vector<4x4x4xf32>
    %25 = vector.multi_reduction <add>, %24, %cst_13 [3] : vector<4x4x4x8xf32> to vector<4x4x4xf32>
    %26 = vector.shape_cast %25 : vector<4x4x4xf32> to vector<4x4x4x1xf32>
    %27 = tpu.reciprocal %26 {approx = true} : vector<4x4x4x1xf32> -> vector<4x4x4x1xf32>
    %28 = vector.broadcast %27 : vector<4x4x4x1xf32> to vector<4x4x4x8xf32>
    %29 = arith.mulf %24, %28 : vector<4x4x4x8xf32>
    %30 = vector.shape_cast %29 : vector<4x4x4x8xf32> to vector<16x4x8xf32>
    %31 = arith.truncf %30 : vector<16x4x8xf32> to vector<16x4x8xbf16>
    %cst_14 = arith.constant dense<0.000000e+00> : vector<16x4x8xf32>
    %32 = tpu.matmul %31, %11, %cst_14 {dimension_numbers = #tpu.dot_dimension_numbers<[2], [1], [1], [2], [0, 0, 0, 1, 1, 2], [0], [0]>} : vector<16x4x8xbf16>, vector<16x8x8xbf16>, vector<16x4x8xf32> -> vector<16x4x8xf32>
    %33 = arith.truncf %32 : vector<16x4x8xf32> to vector<16x4x8xbf16>
    %34 = tpu.transpose %33, [1, 0, 2] : vector<16x4x8xbf16> -> vector<4x16x8xbf16>
    %35 = vector.shape_cast %34 : vector<4x16x8xbf16> to vector<4x128xbf16>
    %c0_15 = arith.constant 0 : index
    %c0_16 = arith.constant 0 : index
    %c0_17 = arith.constant 0 : index
    %36 = vector.load %arg5[%c0_15, %c0_16, %c0_17] : memref<1x4x128xbf16, #tpu.memory_space<vmem>>, vector<1x4x128xbf16>
    %37 = vector.shape_cast %36 : vector<1x4x128xbf16> to vector<4x128xbf16>
    %38 = vector.shape_cast %35 : vector<4x128xbf16> to vector<1x4x128xbf16>
    tpu.vector_store %arg5[%c0_15, %c0_16, %c0_17], %38 {strides = array<i32>} : memref<1x4x128xbf16, #tpu.memory_space<vmem>>, vector<1x4x128xbf16>,
    return
  }
  func.func @transform_0(%arg0: i32) -> (i32, i32, i32) {
    %c0_i32 = arith.constant 0 : i32
    %c0_i32_0 = arith.constant 0 : i32
    %c0_i32_1 = arith.constant 0 : i32
    return %arg0, %c0_i32, %c0_i32_0 : i32, i32, i32
  }
  func.func @transform_1(%arg0: i32) -> (i32, i32, i32) {
    %c0_i32 = arith.constant 0 : i32
    %c0_i32_0 = arith.constant 0 : i32
    %c0_i32_1 = arith.constant 0 : i32
    return %arg0, %c0_i32, %c0_i32_0 : i32, i32, i32
  }
  func.func @transform_2(%arg0: i32) -> (i32, i32, i32) {
    %c0_i32 = arith.constant 0 : i32
    %c0_i32_0 = arith.constant 0 : i32
    %c0_i32_1 = arith.constant 0 : i32
    return %arg0, %c0_i32, %c0_i32_0 : i32, i32, i32
  }
  func.func @transform_3(%arg0: i32) -> (i32, i32, i32, i32) {
    %c0_i32 = arith.constant 0 : i32
    %c0_i32_0 = arith.constant 0 : i32
    %c0_i32_1 = arith.constant 0 : i32
    %c0_i32_2 = arith.constant 0 : i32
    return %arg0, %c0_i32, %c0_i32_0, %c0_i32_1 : i32, i32, i32, i32
  }
  func.func @transform_4(%arg0: i32) -> (i32, i32, i32) {
    %c0_i32 = arith.constant 0 : i32
    %c0_i32_0 = arith.constant 0 : i32
    %c0_i32_1 = arith.constant 0 : i32
    return %arg0, %c0_i32, %c0_i32_0 : i32, i32, i32
  }
}

module attributes {stable_mosaic.version = 11 : i64} {
  func.func @_edge_attn_kernel(%arg0: i32, %arg1: memref<1x4x128xbf16, #tpu.memory_space<vmem>>, %arg2: memref<1x4x128xbf16, #tpu.memory_space<vmem>>, %arg3: memref<1x4x128xbf16, #tpu.memory_space<vmem>>, %arg4: memref<1x4x4x4xbf16, #tpu.memory_space<vmem>>, %arg5: memref<1x4x128xbf16, #tpu.memory_space<vmem>>) attributes {dimension_semantics = [#tpu.dimension_semantics<parallel>], iteration_bounds = array<i64: 2>, scalar_prefetch = 0 : i64, scratch_operands = 0 : i64, tpu.core_type = #tpu.core_type<tc>, window_params = [{transform_indices = @transform_0, window_bounds = array<i64: 1, 4, 128>}, {transform_indices = @transform_1, window_bounds = array<i64: 1, 4, 128>}, {transform_indices = @transform_2, window_bounds = array<i64: 1, 4, 128>}, {transform_indices = @transform_3, window_bounds = array<i64: 1, 4, 4, 4>}, {transform_indices = @transform_4, window_bounds = array<i64: 1, 4, 128>}]} {
    %c0 = arith.constant 0 : index
    %c0_0 = arith.constant 0 : index
    %c0_1 = arith.constant 0 : index
    %0 = vector.load %arg1[%c0, %c0_0, %c0_1] : memref<1x4x128xbf16, #tpu.memory_space<vmem>>, vector<1x4x128xbf16>
    %1 = vector.shape_cast %0 : vector<1x4x128xbf16> to vector<4x128xbf16>
    %2 = vector.shape_cast %1 : vector<4x128xbf16> to vector<4x16x8xbf16>
    %3 = tpu.transpose %2, [1, 0, 2] : vector<4x16x8xbf16> -> vector<16x4x8xbf16>
    %c0_2 = arith.constant 0 : index
    %c0_3 = arith.constant 0 : index
    %c0_4 = arith.constant 0 : index
    %4 = vector.load %arg2[%c0_2, %c0_3, %c0_4] : memref<1x4x128xbf16, #tpu.memory_space<vmem>>, vector<1x4x128xbf16>
    %5 = vector.shape_cast %4 : vector<1x4x128xbf16> to vector<4x128xbf16>
    %6 = vector.shape_cast %5 : vector<4x128xbf16> to vector<4x16x8xbf16>
    %7 = tpu.transpose %6, [1, 0, 2] : vector<4x16x8xbf16> -> vector<16x4x8xbf16>
    %c0_5 = arith.constant 0 : index
    %c0_6 = arith.constant 0 : index
    %c0_7 = arith.constant 0 : index
    %8 = vector.load %arg3[%c0_5, %c0_6, %c0_7] : memref<1x4x128xbf16, #tpu.memory_space<vmem>>, vector<1x4x128xbf16>
    %9 = vector.shape_cast %8 : vector<1x4x128xbf16> to vector<4x128xbf16>
    %10 = vector.shape_cast %9 : vector<4x128xbf16> to vector<4x16x8xbf16>
    %11 = tpu.transpose %10, [1, 0, 2] : vector<4x16x8xbf16> -> vector<16x4x8xbf16>
    %cst = arith.constant dense<0.000000e+00> : vector<16x4x4xf32>
    %12 = tpu.matmul %3, %7, %cst {dimension_numbers = #tpu.dot_dimension_numbers<[2], [2], [1], [1], [0, 0, 0, 1, 1, 1], [0], [0]>} : vector<16x4x8xbf16>, vector<16x4x8xbf16>, vector<16x4x4xf32> -> vector<16x4x4xf32>
    %13 = vector.shape_cast %12 : vector<16x4x4xf32> to vector<4x4x4x4xf32>
    %c0_8 = arith.constant 0 : index
    %c0_9 = arith.constant 0 : index
    %c0_10 = arith.constant 0 : index
    %c0_11 = arith.constant 0 : index
    %14 = vector.load %arg4[%c0_8, %c0_9, %c0_10, %c0_11] : memref<1x4x4x4xbf16, #tpu.memory_space<vmem>>, vector<1x4x4x4xbf16>
    %15 = vector.shape_cast %14 : vector<1x4x4x4xbf16> to vector<4x4x4xbf16>
    %16 = vector.shape_cast %15 : vector<4x4x4xbf16> to vector<1x4x4x4xbf16>
    %17 = arith.extf %16 : vector<1x4x4x4xbf16> to vector<1x4x4x4xf32>
    %18 = vector.broadcast %17 : vector<1x4x4x4xf32> to vector<4x4x4x4xf32>
    %19 = arith.addf %13, %18 : vector<4x4x4x4xf32>
    %cst_12 = arith.constant dense<0xFF800000> : vector<4x4x4xf32>
    %20 = vector.multi_reduction <maximumf>, %19, %cst_12 [3] : vector<4x4x4x4xf32> to vector<4x4x4xf32>
    %21 = vector.shape_cast %20 : vector<4x4x4xf32> to vector<4x4x4x1xf32>
    %22 = vector.broadcast %21 : vector<4x4x4x1xf32> to vector<4x4x4x4xf32>
    %23 = arith.subf %19, %22 : vector<4x4x4x4xf32>
    %24 = math.exp %23 : vector<4x4x4x4xf32>
    %cst_13 = arith.constant dense<0.000000e+00> : vector<4x4x4xf32>
    %25 = vector.multi_reduction <add>, %24, %cst_13 [3] : vector<4x4x4x4xf32> to vector<4x4x4xf32>
    %26 = vector.shape_cast %25 : vector<4x4x4xf32> to vector<4x4x4x1xf32>
    %27 = tpu.reciprocal %26 {approx = true} : vector<4x4x4x1xf32> -> vector<4x4x4x1xf32>
    %28 = vector.broadcast %27 : vector<4x4x4x1xf32> to vector<4x4x4x4xf32>
    %29 = arith.mulf %24, %28 : vector<4x4x4x4xf32>
    %30 = vector.shape_cast %29 : vector<4x4x4x4xf32> to vector<16x4x4xf32>
    %31 = arith.truncf %30 : vector<16x4x4xf32> to vector<16x4x4xbf16>
    %cst_14 = arith.constant dense<0.000000e+00> : vector<16x4x8xf32>
    %32 = tpu.matmul %31, %11, %cst_14 {dimension_numbers = #tpu.dot_dimension_numbers<[2], [1], [1], [2], [0, 0, 0, 1, 1, 2], [0], [0]>} : vector<16x4x4xbf16>, vector<16x4x8xbf16>, vector<16x4x8xf32> -> vector<16x4x8xf32>
    %33 = arith.truncf %32 : vector<16x4x8xf32> to vector<16x4x8xbf16>
    %34 = tpu.transpose %33, [1, 0, 2] : vector<16x4x8xbf16> -> vector<4x16x8xbf16>
    %35 = vector.shape_cast %34 : vector<4x16x8xbf16> to vector<4x128xbf16>
    %c0_15 = arith.constant 0 : index
    %c0_16 = arith.constant 0 : index
    %c0_17 = arith.constant 0 : index
    %36 = vector.load %arg5[%c0_15, %c0_16, %c0_17] : memref<1x4x128xbf16, #tpu.memory_space<vmem>>, vector<1x4x128xbf16>
    %37 = vector.shape_cast %36 : vector<1x4x128xbf16> to vector<4x128xbf16>
    %38 = vector.shape_cast %35 : vector<4x128xbf16> to vector<1x4x128xbf16>
    tpu.vector_store %arg5[%c0_15, %c0_16, %c0_17], %38 {strides = array<i32>} : memref<1x4x128xbf16, #tpu.memory_space<vmem>>, vector<1x4x128xbf16>,
    return
  }
  func.func @transform_0(%arg0: i32) -> (i32, i32, i32) {
    %c0_i32 = arith.constant 0 : i32
    %c0_i32_0 = arith.constant 0 : i32
    %c0_i32_1 = arith.constant 0 : i32
    return %arg0, %c0_i32, %c0_i32_0 : i32, i32, i32
  }
  func.func @transform_1(%arg0: i32) -> (i32, i32, i32) {
    %c0_i32 = arith.constant 0 : i32
    %c0_i32_0 = arith.constant 0 : i32
    %c0_i32_1 = arith.constant 0 : i32
    return %arg0, %c0_i32, %c0_i32_0 : i32, i32, i32
  }
  func.func @transform_2(%arg0: i32) -> (i32, i32, i32) {
    %c0_i32 = arith.constant 0 : i32
    %c0_i32_0 = arith.constant 0 : i32
    %c0_i32_1 = arith.constant 0 : i32
    return %arg0, %c0_i32, %c0_i32_0 : i32, i32, i32
  }
  func.func @transform_3(%arg0: i32) -> (i32, i32, i32, i32) {
    %c0_i32 = arith.constant 0 : i32
    %c0_i32_0 = arith.constant 0 : i32
    %c0_i32_1 = arith.constant 0 : i32
    %c0_i32_2 = arith.constant 0 : i32
    return %arg0, %c0_i32, %c0_i32_0, %c0_i32_1 : i32, i32, i32, i32
  }
  func.func @transform_4(%arg0: i32) -> (i32, i32, i32) {
    %c0_i32 = arith.constant 0 : i32
    %c0_i32_0 = arith.constant 0 : i32
    %c0_i32_1 = arith.constant 0 : i32
    return %arg0, %c0_i32, %c0_i32_0 : i32, i32, i32
  }
}

</mosaic_0001>

<bundles_post_ra>
// kernel: fusionnet_forward.8
= control target key start
LH: loop header
LB: loop body
LE: loop exit
PB: predicated region body
PF: predicated region fallthrough
CT: control target
= control target key end

     0   :  { %s2775_s15 = smov 0   ;;  %s3530_s0 = inlined_call_operand.vmem [shape: bf16[2,8,128], index: 0, kind: input, shape index: {}]   ;;  %s3531_s1 = inlined_call_operand.vmem [shape: bf16[2,4,128], index: 1, kind: input, shape index: {}]   ;;  %s3532_s2 = inlined_call_operand.vmem [shape: bf16[2,4,128], index: 2, kind: input, shape index: {}]   ;;  %s3533_s3 = inlined_call_operand.vmem [shape: bf16[2,4,8,4], index: 3, kind: input, shape index: {}]   ;;  %s3534_s4 = inlined_call_operand.vmem [shape: bf16[2,8,128], index: 4, kind: output, shape index: {}]  }
   0x1 LB: > { %s2581_s16 = sadd.s32 4294967295, %s2731_s15   ;;  %p2585_p0 = scmp.ge.s32.totalorder %s2731_s15, 1  ;;  %s2731_s15 = sphi %s2775_s15, %s14_s15  }
   0x2   : > { %p189_p1 = scmp.lt.s32.totalorder %s2731_s15, 3 }
   0x4   : > { %p190_p2 = pnand %p2585_p0, %p189_p1 }
   0x5   : > { %p226_p3 = scmp.lt.s32.totalorder (!%p190_p2), %s2581_s16, 1  ;;  %s2733_s21 = smov (!%p190_p2), 120  }
   0x6   : > { %193 = sbr.rel (%p190_p2) target bundleno = 980 (0x3d4), region = 36  ;;  %s2734_s22 = smov (!%p190_p2), 96  }
   0x7   : > { %s2735_s23 = smov (!%p190_p2), 72   ;;  %s2736_s28 = smov (!%p190_p2), 80  }
   0x8   : > { %s2737_s29 = smov (!%p190_p2), 88   ;;  %s2738_s30 = smov (!%p190_p2), 112  }
   0x9   : > { %s2739_s5 = smov (!%p190_p2), 104   ;;  %s2740_s6 = smov (!%p190_p2), 32  }
   0xa   : > { %s2741_s7 = smov (!%p190_p2), 64   ;;  %s2742_s8 = smov (!%p190_p2), 24  }
   0xb   : > { %s3536_s16 = smov (!%p226_p3, %s2581_s16), 1  ;;  %s2743_s9 = smov 56   ;;  %v2748_v7 = vmov 1983009808   ;;  %vm296_vm0 = vcmask 1047556   ;;  %vm1206_vm1 = vcmask 64512  }
   0xc   : > { %s2586_s17 = sshll.u32 %s3536_s16, 2  ;;  %s2587_s24 = sshll.u32 %s3536_s16, 1  ;;  %v299_v8 = vunpack.c.l.s4 %v2748_v7  ;;  %v2749_v15 = vmov 1934713408   ;;  %vm1535_vm2 = vcmask 31744   ;;  %vm1731_vm3 = vcmask 1041408  }
   0xd   : > { %s229_s20 = scalar_lea.vmem %s3530_s0, %s2586_s17  ;;  %s233_s27 = scalar_lea.vmem %s3531_s1, %s2587_s24  ;;  %v313_v16 = vunpack.c.l.s4 %v2749_v15  ;;  %vm2448_vm4 = vcmask 130048   ;;  %vm2451_vm5 = vcmask 195584   ;;  %vm2454_vm6 = vcmask 261120  }
   0xe   : > { %v2791_v0 = vld [vmem:[%s229_s20] sm:$0xf]  ;;  %s2744_s10 = smov 8   ;;  %s2745_s11 = smov 16   ;;  %v2845_v11 = vunpack.c.0.s8 %v299_v8  ;;  %vm2457_vm7 = vcmask 326656   ;;  %vm2460_vm8 = vcmask 392192  }
   0xf   : > { %250 = vrot.lane.b32.xlu1 %v2791_v0, %s2733_s21  ;;  %259 = vrot.lane.b32.xlu0 %v2791_v0, %s2734_s22  ;;  %v632_v1 = vld [vmem:[%s233_s27] sm:$0x3]  ;;  %s2746_s12 = smov 48   ;;  %s2747_s13 = smov 40   ;;  %v2852_v24 = vunpack.c.0.s8 %v313_v16  ;;  %vm2463_vm9 = vcmask 457728   ;;  %vm2466_vm10 = vcmask 523264  }
  0x10   : > { %268 = vrot.lane.b32.xlu2 %v2791_v0, %s2735_s23  ;;  %s237_s19 = scalar_lea.vmem %s3532_s2, %s2587_s24  ;;  %s2626_s20 = sshll.u32 %s3536_s16, 4  ;;  %vm2469_vm11 = vcmask 588800   ;;  %vm2472_vm12 = vcmask 654336   ;;  %vm2475_vm13 = vcmask 719872   ;;  %vm2478_vm14 = vcmask 785408  }
  0x11   : > { %s242_s26 = scalar_lea.vmem %s3533_s3, %s2626_s20  ;;  %vm2481_vm15 = vcmask 850944  }
  0x17   : > { %265 = vrot.lane.b32.xlu1 %v2791_v0, %s2736_s28  ;;  %262 = vrot.lane.b32.xlu0 %v2791_v0, %s2737_s29 }
  0x18   : > { %637 = vrot.lane.b32.xlu2 %v632_v1, %s2738_s30 }
  0x1f   : > { %253 = vrot.lane.b32.xlu1 %v2791_v0, %s2738_s30  ;;  %640 = vrot.lane.b32.xlu0 %v632_v1, %s2739_s5 }
  0x20   : > { %256 = vrot.lane.b32.xlu2 %v2791_v0, %s2739_s5 }
  0x27   : > { %649 = vrot.lane.b32.xlu1 %v632_v1, %s2736_s28  ;;  %634 = vrot.lane.b32.xlu0 %v632_v1, %s2733_s21 }
  0x28   : > { %652 = vrot.lane.b32.xlu2 %v632_v1, %s2735_s23 }
  0x2f   : > { %646 = vrot.lane.b32.xlu1 %v632_v1, %s2737_s29  ;;  %643 = vrot.lane.b32.xlu0 %v632_v1, %s2734_s22 }
  0x30   : > { %283 = vrot.lane.b32.xlu2 %v2791_v0, %s2740_s6 }
  0x37   : > { %271 = vrot.lane.b32.xlu1 %v2791_v0, %s2741_s7  ;;  %286 = vrot.lane.b32.xlu0 %v2791_v0, %s2742_s8 }
  0x38   : > { %274 = vrot.lane.b32.xlu2 %v2791_v0, %s2743_s9 }
  0x3f   : > { %292 = vrot.lane.b32.xlu1 %v2791_v0, %s2744_s10  ;;  %289 = vrot.lane.b32.xlu0 %v2791_v0, %s2745_s11 }
  0x40   : > { %661 = vrot.lane.b32.xlu2 %v632_v1, %s2746_s12 }
  0x47   : > { %277 = vrot.lane.b32.xlu1 %v2791_v0, %s2746_s12  ;;  %664 = vrot.lane.b32.xlu0 %v632_v1, %s2747_s13 }
  0x48   : > { %280 = vrot.lane.b32.xlu2 %v2791_v0, %s2747_s13 }
  0x4f   : > { %658 = vrot.lane.b32.xlu1 %v632_v1, %s2743_s9  ;;  %655 = vrot.lane.b32.xlu0 %v632_v1, %s2741_s7 }
  0x50   : > { %673 = vrot.lane.b32.xlu2 %v632_v1, %s2745_s11 }
  0x57   : > { %676 = vrot.lane.b32.xlu0 %v632_v1, %s2744_s10  ;;  %667 = vrot.lane.b32.xlu1 %v632_v1, %s2740_s6 }
  0x58   : > { %670 = vrot.lane.b32.xlu2 %v632_v1, %s2742_s8 }
  0x6a   : > { %v269_v2 = vpop.permute.xlu2 %268 }
  0x6b   : > { %v330_v4 = vrot.slane %v269_v2, 4 }
  0x72   : > { %v638_v3 = vpop.permute.xlu2 %637 }
  0x73   : > { %v679_v13 = vrot.slane %v638_v3, 4 }
  0x75   : > { %v680_v21 = vsel %vm296_vm0, %v679_v13, %v632_v1 }
  0x76   : > { %v2856_v27 = vperm.slane %v680_v21, %v2852_v24 }
  0x78   : > { %v685_v38 = vrot.slane %v2856_v27, 4  ;;  %v747_v45 = vshrl.u32 %v2856_v27, 16 }
  0x7a   : > { %v257_v5 = vpop.permute.xlu2 %256  ;;  %v2874_v50 = vsel %vm296_vm0, 0, %v685_v38 }
  0x7b   : > { %v331_v10 = vsel %vm296_vm0, %v330_v4, %v257_v5 }
  0x7c   : > { %v335_v12 = vperm.slane %v331_v10, %v2845_v11 }
  0x7e   : > { %v336_v20 = vrot.slane %v335_v12, 4 }
  0x81   : > { %v251_v6 = vpop.permute.xlu1 %250  ;;  %v260_v9 = vpop.permute.xlu0 %259 }
  0x82   : > { %v295_v14 = vrot.slane %v260_v9, 4  ;;  %v2860_v31 = vpop.permute.xlu2 %652 }
  0x83   : > { %v703_v51 = vrot.slane %v2860_v31, 4 }
  0x84   : > { %v297_v22 = vsel %vm296_vm0, %v295_v14, %v2791_v0 }
  0x85   : > { %v301_v28 = vperm.slane %v297_v22, %v2845_v11 }
  0x87   : > { %v310_v39 = vrot.slane %v301_v28, 4 }
  0x89   : > { %v266_v17 = vpop.permute.xlu1 %265  ;;  %v263_v18 = vpop.permute.xlu0 %262 }
  0x8a   : > { %v324_v19 = vrot.slane %v263_v18, 4  ;;  %v302_v26 = vrot.slane %v266_v17, 4  ;;  %v2878_v56 = vpop.permute.xlu2 %283 }
  0x8c   : > { %v325_v23 = vsel %vm296_vm0, %v324_v19, %v251_v6 }
  0x8d   : > { %v329_v25 = vperm.slane %v325_v23, %v2845_v11 }
  0x8f   : > { %v337_v29 = vsel %vm296_vm0, %v336_v20, %v329_v25  ;;  %v338_v30 = vrot.slane %v329_v25, 4  ;;  %v755_v25 = vshrl.u32 %v2874_v50, 16 }
  0x90   : > { %v343_v33 = vperm.slane %v337_v29, %v2852_v24 }
  0x91   : > { %v339_v32 = vsel %vm296_vm0, %v335_v12, %v338_v30  ;;  %v254_v34 = vpop.permute.xlu1 %253  ;;  %v641_v35 = vpop.permute.xlu0 %640 }
  0x92   : > { %v347_v36 = vperm.slane %v339_v32, %v2852_v24  ;;  %v303_v37 = vsel %vm296_vm0, %v302_v26, %v254_v34  ;;  %v348_v42 = vrot.slane %v343_v33, 4  ;;  %v413_v48 = vshrl.u32 %v343_v33, 16 }
  0x93   : > { %v307_v40 = vperm.slane %v303_v37, %v2845_v11  ;;  %v687_v60 = vrot.slane %v641_v35, 4 }
  0x94   : > { %v350_v41 = vrot.slane %v347_v36, 4  ;;  %v349_v57 = vsel %vm296_vm0, 0, %v348_v42  ;;  %v429_v58 = vshrl.u32 %v347_v36, 16 }
  0x95   : > { %v308_v43 = vrot.slane %v307_v40, 4  ;;  %v311_v44 = vsel %vm296_vm0, %v307_v40, %v310_v39  ;;  %v421_v7 = vshrl.u32 %v349_v57, 16  ;;  %v275_v39 = vpop.permute.xlu2 %274 }
  0x96   : > { %v319_v46 = vperm.slane %v311_v44, %v2852_v24  ;;  %v351_v47 = vsel %vm296_vm0, 0, %v350_v41 }
  0x97   : > { %v309_v49 = vsel %vm296_vm0, %v308_v43, %v301_v28  ;;  %v437_v59 = vshrl.u32 %v351_v47, 16 }
  0x98   : > { %v315_v52 = vperm.slane %v309_v49, %v2852_v24  ;;  %v322_v53 = vrot.slane %v319_v46, 4  ;;  %v426_v54 = vpack.i.b16 %v347_v36, %v319_v46  ;;  %v428_v55 = vshrl.u32 %v319_v46, 16 }
  0x99   : > { %v650_v61 = vpop.permute.xlu1 %649  ;;  %v635_v62 = vpop.permute.xlu0 %634 }
  0x9a   : > { %v320_v63 = vrot.slane %v315_v52, 4  ;;  %v323_v0 = vsel %vm296_vm0, 0, %v322_v53  ;;  %v410_v1 = vpack.i.b16 %v343_v33, %v315_v52  ;;  %v412_v2 = vshrl.u32 %v315_v52, 16 }
  0x9b   : > { %v430_v3 = vpack.i.b16 %v429_v58, %v428_v55  ;;  %v434_v4 = vpack.i.b16 %v351_v47, %v323_v0  ;;  %v436_v5 = vshrl.u32 %v323_v0, 16  ;;  %v472_v6 = vrot.slane %v426_v54, 4 }
  0x9c   : > { %v321_v8 = vsel %vm296_vm0, 0, %v320_v63  ;;  %v414_v9 = vpack.i.b16 %v413_v48, %v412_v2  ;;  %v688_v10 = vsel %vm296_vm0, %v687_v60, %v635_v62  ;;  %v695_v17 = vrot.slane %v650_v61, 4 }
  0x9d   : > { %v418_v12 = vpack.i.b16 %v349_v57, %v321_v8  ;;  %v420_v13 = vshrl.u32 %v321_v8, 16  ;;  %v438_v14 = vpack.i.b16 %v437_v59, %v436_v5  ;;  %v478_v15 = vrot.slane %v434_v4, 4 }
  0x9e   : > { %v500_v16 = vrot.slane %v430_v3, 4  ;;  %v692_v18 = vperm.slane %v688_v10, %v2852_v24  ;;  %v473_v19 = vsel %vm296_vm0, %v472_v6, %v410_v1  ;;  %v352_v33 = vrot.slane %v2878_v56, 4 }
  0x9f   : > { %v422_v20 = vpack.i.b16 %v421_v7, %v420_v13  ;;  %v506_v21 = vrot.slane %v438_v14, 4  ;;  %v477_v22 = vperm.slane %v473_v19, %v2845_v11  ;;  %v479_v23 = vsel %vm296_vm0, %v478_v15, %v418_v12  ;;  %v2928_v19 = vpop.permute.xlu2 %661 }
  0xa0   : > { %v693_v26 = vrot.slane %v692_v18, 4  ;;  %v748_v28 = vshrl.u32 %v692_v18, 16  ;;  %v483_v29 = vperm.slane %v479_v23, %v2845_v11  ;;  %v745_v30 = vpack.i.b16 %v692_v18, %v2856_v27 }
  0xa1   : > { %v647_v31 = vpop.permute.xlu1 %646  ;;  %v644_v32 = vpop.permute.xlu0 %643  ;;  %v501_v34 = vsel %vm296_vm0, %v500_v16, %v414_v9  ;;  %v507_v35 = vsel %vm296_vm0, %v506_v21, %v422_v20  ;;  %v486_v40 = vrot.slane %v477_v22, 4 }
  0xa2   : > { %v694_v36 = vsel %vm296_vm0, 0, %v693_v26  ;;  %v704_v37 = vsel %vm296_vm0, %v703_v51, %v647_v31  ;;  %v696_v38 = vsel %vm296_vm0, %v695_v17, %v644_v32  ;;  %v749_v44 = vpack.i.b16 %v748_v28, %v747_v45 }
  0xa3   : > { %v753_v41 = vpack.i.b16 %v694_v36, %v2874_v50  ;;  %v756_v42 = vshrl.u32 %v694_v36, 16  ;;  %v708_v27 = vperm.slane %v704_v37, %v2852_v24  ;;  %v700_v43 = vperm.slane %v696_v38, %v2852_v24 }
  0xa4   : > { %v484_v46 = vrot.slane %v483_v29, 4  ;;  %v2901_v47 = vperm.slane %v501_v34, %v2845_v11  ;;  %v2904_v48 = vperm.slane %v507_v35, %v2845_v11  ;;  %v2908_v56 = vsel %vm296_vm0, %v483_v29, %v486_v40 }
  0xa5   : > { %v807_v49 = vrot.slane %v753_v41, 4  ;;  %v709_v51 = vrot.slane %v708_v27, 4  ;;  %v764_v52 = vshrl.u32 %v708_v27, 16  ;;  %v701_v53 = vrot.slane %v700_v43, 4 }
  0xa6   : > { %v763_v54 = vshrl.u32 %v700_v43, 16  ;;  %v757_v50 = vpack.i.b16 %v756_v42, %v755_v25  ;;  %v485_v55 = vsel %vm296_vm0, %v484_v46, %v477_v22  ;;  %v761_v58 = vpack.i.b16 %v708_v27, %v700_v43 }
  0xa7   : > { %v710_v45 = vsel %vm296_vm0, 0, %v709_v51  ;;  %v702_v57 = vsel %vm296_vm0, 0, %v701_v53  ;;  %v808_v59 = vsel %vm296_vm0, %v807_v49, %v745_v30  ;;  %v2914_v63 = vperm.slane %v485_v55, %v2852_v24 }
  0xa8   : > { %v772_v60 = vshrl.u32 %v710_v45, 16  ;;  %v769_v61 = vpack.i.b16 %v710_v45, %v702_v57  ;;  %v771_v62 = vshrl.u32 %v702_v57, 16  ;;  %v765_v0 = vpack.i.b16 %v764_v52, %v763_v54 }
  0xa9   : > { %v272_v1 = vpop.permute.xlu1 %271  ;;  %v287_v2 = vpop.permute.xlu0 %286  ;;  %v812_v3 = vperm.slane %v808_v59, %v2852_v24  ;;  %v815_v4 = vrot.slane %v757_v50, 4  ;;  %v512_v5 = vrot.slane %v2904_v48, 4  ;;  %v514_v9 = vrot.slane %v2901_v47, 4 }
  0xaa   : > { %v823_v6 = vrot.slane %v769_v61, 4  ;;  %v353_v7 = vsel %vm296_vm0, %v352_v33, %v272_v1  ;;  %v380_v8 = vrot.slane %v287_v2, 4  ;;  %v773_v10 = vpack.i.b16 %v772_v60, %v771_v62 }
  0xab   : > { %v2921_v12 = vperm.slane %v353_v7, %v2845_v11  ;;  %v816_v13 = vsel %vm296_vm0, %v815_v4, %v749_v44  ;;  %v813_v14 = vrot.slane %v812_v3, 4  ;;  %v874_v17 = vshrl.u32 %v812_v3, 16 }
  0xac   : > { %v820_v15 = vperm.slane %v816_v13, %v2852_v24  ;;  %v381_v16 = vsel %vm296_vm0, %v380_v8, %v275_v39  ;;  %v513_v18 = vsel %vm296_vm0, %v512_v5, %v2901_v47  ;;  %v824_v23 = vsel %vm296_vm0, %v823_v6, %v761_v58 }
  0xad   : > { %v2931_v20 = vperm.slane %v381_v16, %v2845_v11  ;;  %v814_v21 = vsel %vm296_vm0, 0, %v813_v14  ;;  %v519_v22 = vperm.slane %v513_v18, %v2852_v24  ;;  %v366_v25 = vrot.slane %v2921_v12, 4 }
  0xae   : > { %v873_v26 = vpack.i.b16 %v820_v15, %v812_v3  ;;  %v875_v28 = vshrl.u32 %v820_v15, 16  ;;  %v821_v29 = vrot.slane %v820_v15, 4  ;;  %v880_v31 = vshrl.u32 %v814_v21, 16  ;;  %v281_v3 = vpop.permute.xlu2 %280 }
  0xaf   : > { %v394_v30 = vrot.slane %v2931_v20, 4  ;;  %v586_v32 = vpack.i.b16 %v519_v22, %v2914_v63  ;;  %v831_v33 = vrot.slane %v773_v10, 4  ;;  %v828_v37 = vperm.slane %v824_v23, %v2852_v24 }
  0xb0   : > { %v1211_v34 = vsel %vm1206_vm1, %v873_v26, 0  ;;  %v876_v35 = vpack.i.b16 %v875_v28, %v874_v17  ;;  %v822_v36 = vsel %vm296_vm0, 0, %v821_v29  ;;  %v587_v27 = vshrl.u32 %v2914_v63, 16 }
  0xb1   : > { %1220 = vmatpush.bf16.xpose.msra.mxu0 %v1211_v34  ;;  %v879_v38 = vpack.i.b16 %v822_v36, %v814_v21  ;;  %v293_v39 = vpop.permute.xlu1 %292  ;;  %v881_v40 = vshrl.u32 %v822_v36, 16  ;;  %v290_v41 = vpop.permute.xlu0 %289  ;;  %v832_v42 = vsel %vm296_vm0, %v831_v33, %v765_v0  ;;  %v588_v49 = vshrl.u32 %v519_v22, 16 }
  0xb2   : > { %v1230_v43 = vsel %vm1206_vm1, %v876_v35, 0  ;;  %v386_v44 = vrot.slane %v293_v39, 4  ;;  %v836_v46 = vperm.slane %v832_v42, %v2852_v24  ;;  %v358_v53 = vrot.slane %v290_v41, 4 }
  0xb3   : > { %1239 = vmatpush.bf16.xpose.msra.mxu1 %v1230_v43  ;;  %v1249_v51 = vsel %vm1206_vm1, %v879_v38, 0  ;;  %v882_v52 = vpack.i.b16 %v881_v40, %v880_v31  ;;  %v496_v54 = vrot.slane %v2914_v63, 4  ;;  %v524_v55 = vrot.slane %v519_v22, 4 }
  0xb4   : > { %1258 = vmatpush.bf16.xpose.msra.mxu2 %v1249_v51  ;;  %v885_v50 = vpack.i.b16 %v836_v46, %v828_v37  ;;  %v886_v45 = vshrl.u32 %v828_v37, 16  ;;  %v887_v57 = vshrl.u32 %v836_v46, 16  ;;  %v829_v60 = vrot.slane %v828_v37, 4 }
  0xb5   : > { %v1268_v58 = vsel %vm1206_vm1, %v882_v52, 0  ;;  %v497_v59 = vsel %vm296_vm0, 0, %v496_v54  ;;  %v837_v61 = vrot.slane %v836_v46, 4  ;;  %v589_v0 = vpack.i.b16 %v588_v49, %v587_v27 }
  0xb6   : > { %1277 = vmatpush.bf16.xpose.msra.mxu3 %v1268_v58  ;;  %v1287_v62 = vsel %vm1206_vm1, %v885_v50, 0  ;;  %v525_v1 = vsel %vm296_vm0, 0, %v524_v55  ;;  %v888_v2 = vpack.i.b16 %v887_v57, %v886_v45  ;;  %v830_v63 = vsel %vm296_vm0, 0, %v829_v60  ;;  %v674_v55 = vpop.permute.xlu2 %673 }
  0xb7   : > { %v838_v4 = vsel %vm296_vm0, 0, %v837_v61  ;;  %v593_v5 = vshrl.u32 %v497_v59, 16  ;;  %v594_v6 = vshrl.u32 %v525_v1, 16  ;;  %v892_v10 = vshrl.u32 %v830_v63, 16 }
  0xb8   : > { %2592 = vmatmul.msk.bf16.vlgmr.msra.gmra.mxu0 %vm1206_vm1, %v586_v32  ;;  %v1306_v7 = vsel %vm1206_vm1, %v888_v2, 0  ;;  %v891_v8 = vpack.i.b16 %v838_v4, %v830_v63  ;;  %v893_v13 = vshrl.u32 %v838_v4, 16  ;;  %v592_v14 = vpack.i.b16 %v525_v1, %v497_v59  ;;  %v3012_v2 = vld [vmem:[%s237_s19] sm:$0x3] }
  0xb9   : > { %1296 = vmatpush.bf16.xpose.msrb.mxu0 %v1287_v62  ;;  %v278_v15 = vpop.permute.xlu1 %277  ;;  %v2956_v16 = vpop.permute.xlu0 %664  ;;  %v387_v17 = vsel %vm296_vm0, %v386_v44, %v281_v3  ;;  %v2961_v18 = vperm.slane %v2908_v56, %v2852_v24  ;;  %v515_v21 = vsel %vm296_vm0, %v2904_v48, %v514_v9  ;;  %v595_v28 = vpack.i.b16 %v594_v6, %v593_v5 }
  0xba   : > { %2593 = vmatmul.msk.bf16.vlgmr.msra.gmra.mxu1 %vm1206_vm1, %v589_v0  ;;  %v1325_v22 = vsel %vm1206_vm1, %v891_v8, 0  ;;  %v359_v23 = vsel %vm296_vm0, %v358_v53, %v278_v15  ;;  %v894_v26 = vpack.i.b16 %v893_v13, %v892_v10  ;;  %v391_v56 = vperm.slane %v387_v17, %v2845_v11  ;;  %924 = vrot.lane.b32.xlu0 %v3012_v2, %s2738_s30 }
  0xbb   : > { %1315 = vmatpush.bf16.xpose.msrb.mxu1 %v1306_v7  ;;  %2594 = vmatmul.msk.bf16.vlgmr.msra.gmra.mxu2 %vm1206_vm1, %v592_v14  ;;  %v363_v29 = vperm.slane %v359_v23, %v2845_v11  ;;  %v2974_v31 = vperm.slane %v515_v21, %v2852_v24  ;;  %v711_v47 = vrot.slane %v2928_v19, 4  ;;  %v719_v9 = vrot.slane %v2956_v16, 4 }
  0xbc   : > { %1334 = vmatpush.bf16.xpose.msrb.mxu2 %v1325_v22  ;;  %v1344_v48 = vsel %vm1206_vm1, %v894_v26, 0  ;;  %v498_v32 = vrot.slane %v2961_v18, 4  ;;  %v392_v35 = vrot.slane %v391_v56, 4  ;;  %v395_v36 = vsel %vm296_vm0, %v391_v56, %v394_v30  ;;  %927 = vrot.lane.b32.xlu1 %v3012_v2, %s2739_s5 }
  0xbd   : > { %2595 = vmatmul.msk.bf16.vlgmr.msra.gmra.mxu3 %vm1206_vm1, %v595_v28  ;;  %v364_v33 = vrot.slane %v363_v29, 4  ;;  %v367_v34 = vsel %vm296_vm0, %v363_v29, %v366_v25  ;;  %v403_v37 = vperm.slane %v395_v36, %v2852_v24  ;;  %v598_v38 = vpack.i.b16 %v2974_v31, %v2961_v18  ;;  %939 = vrot.lane.b32.xlu2 %v3012_v2, %s2735_s23 }
  0xbe   : > { %v375_v19 = vperm.slane %v367_v34, %v2852_v24  ;;  %1353 = vmatpush.bf16.xpose.msrb.mxu3 %v1344_v48  ;;  %v599_v39 = vshrl.u32 %v2961_v18, 16  ;;  %v393_v25 = vsel %vm296_vm0, %v392_v35, %v2931_v20  ;;  %v600_v41 = vshrl.u32 %v2974_v31, 16 }
  0xbf   : > { %v365_v40 = vsel %vm296_vm0, %v364_v33, %v2921_v12  ;;  %v2998_v30 = vsel %vm296_vm0, 0, %v498_v32  ;;  %v399_v44 = vperm.slane %v393_v25, %v2852_v24  ;;  %v406_v46 = vrot.slane %v403_v37, 4 }
  0xc0   : > { %v371_v42 = vperm.slane %v365_v40, %v2852_v24  ;;  %v378_v27 = vrot.slane %v375_v19, 4  ;;  %v460_v43 = vshrl.u32 %v375_v19, 16  ;;  %v458_v49 = vpack.i.b16 %v403_v37, %v375_v19 }
  0xc1   : > { %v461_v51 = vshrl.u32 %v403_v37, 16  ;;  %v526_v52 = vrot.slane %v2974_v31, 4  ;;  %v404_v54 = vrot.slane %v399_v44, 4  ;;  %v656_v50 = vpop.permute.xlu0 %655  ;;  %v407_v57 = vsel %vm296_vm0, 0, %v406_v46  ;;  %v659_v60 = vpop.permute.xlu1 %658 }
  0xc2   : > { %v376_v12 = vrot.slane %v371_v42, 4  ;;  %v379_v20 = vsel %vm296_vm0, 0, %v378_v27  ;;  %v444_v53 = vshrl.u32 %v371_v42, 16  ;;  %v442_v58 = vpack.i.b16 %v399_v44, %v371_v42  ;;  %921 = vrot.lane.b32.xlu0 %v3012_v2, %s2733_s21 }
  0xc3   : > { %v468_v45 = vshrl.u32 %v379_v20, 16  ;;  %v445_v59 = vshrl.u32 %v399_v44, 16  ;;  %v405_v62 = vsel %vm296_vm0, 0, %v404_v54  ;;  %v462_v0 = vpack.i.b16 %v461_v51, %v460_v43 }
  0xc4   : > { %v377_v61 = vsel %vm296_vm0, 0, %v376_v12  ;;  %v466_v1 = vpack.i.b16 %v407_v57, %v379_v20  ;;  %v453_v5 = vshrl.u32 %v405_v62, 16  ;;  %v469_v6 = vshrl.u32 %v407_v57, 16  ;;  %933 = vrot.lane.b32.xlu1 %v3012_v2, %s2737_s29 }
  0xc5   : > { %v452_v3 = vshrl.u32 %v377_v61, 16  ;;  %v446_v63 = vpack.i.b16 %v445_v59, %v444_v53  ;;  %v450_v4 = vpack.i.b16 %v405_v62, %v377_v61  ;;  %v528_v7 = vrot.slane %v458_v49, 4  ;;  %948 = vrot.lane.b32.xlu2 %v3012_v2, %s2746_s12 }
  0xc6   : > { %v534_v8 = vrot.slane %v466_v1, 4  ;;  %v556_v10 = vrot.slane %v462_v0, 4  ;;  %v720_v13 = vsel %vm296_vm0, %v719_v9, %v659_v60  ;;  %v712_v14 = vsel %vm296_vm0, %v711_v47, %v656_v50 }
  0xc7   : > { %v601_v15 = vpack.i.b16 %v600_v41, %v599_v39  ;;  %v527_v16 = vsel %vm296_vm0, 0, %v526_v52  ;;  %v454_v17 = vpack.i.b16 %v453_v5, %v452_v3  ;;  %v470_v18 = vpack.i.b16 %v469_v6, %v468_v45  ;;  %v671_v39 = vpop.permute.xlu2 %670 }
  0xc8   : > { %v529_v21 = vsel %vm296_vm0, %v528_v7, %v442_v58  ;;  %v535_v22 = vsel %vm296_vm0, %v534_v8, %v450_v4  ;;  %2596 = vmatmul.msk.bf16.vlgmr.msrb.gmra.mxu0 %vm1206_vm1, %v598_v38  ;;  %v557_v23 = vsel %vm296_vm0, %v556_v10, %v446_v63  ;;  %v724_v26 = vperm.slane %v720_v13, %v2852_v24 }
  0xc9   : > { %v727_v28 = vrot.slane %v674_v55, 4  ;;  %v3029_v29 = vperm.slane %v529_v21, %v2845_v11  ;;  %v562_v56 = vrot.slane %v470_v18, 4  ;;  %v716_v31 = vperm.slane %v712_v14, %v2852_v24  ;;  %v677_v48 = vpop.permute.xlu0 %676  ;;  %v668_v35 = vpop.permute.xlu1 %667 }
  0xca   : > { %2597 = vmatmul.msk.bf16.vlgmr.msrb.gmra.mxu1 %vm1206_vm1, %v601_v15  ;;  %v604_v47 = vpack.i.b16 %v527_v16, %v2998_v30  ;;  %v3035_v9 = vperm.slane %v535_v22, %v2845_v11  ;;  %v725_v32 = vrot.slane %v724_v26, 4  ;;  %v605_v33 = vshrl.u32 %v2998_v30, 16  ;;  %936 = vrot.lane.b32.xlu0 %v3012_v2, %s2736_s28 }
  0xcb   : > { %v606_v34 = vshrl.u32 %v527_v16, 16  ;;  %v563_v36 = vsel %vm296_vm0, %v562_v56, %v454_v17  ;;  %v780_v19 = vshrl.u32 %v724_v26, 16  ;;  %v717_v37 = vrot.slane %v716_v31, 4 }
  0xcc   : > { %v779_v38 = vshrl.u32 %v716_v31, 16  ;;  %2598 = vmatmul.msk.bf16.vlgmr.msrb.gmra.mxu2 %vm1206_vm1, %v604_v47  ;;  %v3041_v40 = vperm.slane %v563_v36, %v2845_v11  ;;  %v726_v25 = vsel %vm296_vm0, 0, %v725_v32  ;;  %v735_v42 = vrot.slane %v677_v48, 4  ;;  %951 = vrot.lane.b32.xlu1 %v3012_v2, %s2747_s13 }
  0xcd   : > { %v607_v41 = vpack.i.b16 %v606_v34, %v605_v33  ;;  %v788_v30 = vshrl.u32 %v726_v25, 16  ;;  %v718_v27 = vsel %vm296_vm0, 0, %v717_v37  ;;  %v777_v43 = vpack.i.b16 %v724_v26, %v716_v31 }
  0xce   : > { %v728_v44 = vsel %vm296_vm0, %v727_v28, %v668_v35  ;;  %v785_v46 = vpack.i.b16 %v726_v25, %v718_v27  ;;  %v787_v49 = vshrl.u32 %v718_v27, 16  ;;  %v736_v51 = vsel %vm296_vm0, %v735_v42, %v671_v39 }
  0xcf   : > { %2599 = vmatmul.msk.bf16.vlgmr.msrb.gmra.mxu3 %vm1206_vm1, %v607_v41  ;;  %v732_v52 = vperm.slane %v728_v44, %v2852_v24  ;;  %v3056_v12 = vperm.slane %v557_v23, %v2845_v11  ;;  %v781_v20 = vpack.i.b16 %v780_v19, %v779_v38  ;;  %v740_v53 = vperm.slane %v736_v51, %v2852_v24 }
  0xd0   : > { %v540_v54 = vrot.slane %v3035_v9, 4  ;;  %v789_v50 = vpack.i.b16 %v788_v30, %v787_v49  ;;  %v839_v55 = vrot.slane %v785_v46, 4  ;;  %v568_v57 = vrot.slane %v3041_v40, 4 }
  0xd1   : > { %v733_v45 = vrot.slane %v732_v52, 4  ;;  %v741_v58 = vrot.slane %v740_v53, 4  ;;  %v796_v59 = vshrl.u32 %v740_v53, 16  ;;  %v795_v60 = vshrl.u32 %v732_v52, 16 }
  0xd2   : > { %v541_v61 = vsel %vm296_vm0, %v540_v54, %v3029_v29  ;;  %v847_v62 = vrot.slane %v789_v50, 4  ;;  %v840_v1 = vsel %vm296_vm0, %v839_v55, %v777_v43  ;;  %v793_v4 = vpack.i.b16 %v740_v53, %v732_v52  ;;  %930 = vrot.lane.b32.xlu0 %v3012_v2, %s2734_s22 }
  0xd3   : > { %v734_v0 = vsel %vm296_vm0, 0, %v733_v45  ;;  %v3066_v3 = vperm.slane %v541_v61, %v2852_v24  ;;  %v742_v63 = vsel %vm296_vm0, 0, %v741_v58  ;;  %v844_v6 = vperm.slane %v840_v1, %v2852_v24 }
  0xd4   : > { %v803_v5 = vshrl.u32 %v734_v0, 16  ;;  %v804_v7 = vshrl.u32 %v742_v63, 16  ;;  %v801_v8 = vpack.i.b16 %v742_v63, %v734_v0  ;;  %v848_v10 = vsel %vm296_vm0, %v847_v62, %v781_v20  ;;  %945 = vrot.lane.b32.xlu1 %v3012_v2, %s2743_s9 }
  0xd5   : > { %v569_v13 = vsel %vm296_vm0, %v568_v57, %v3056_v12  ;;  %v797_v14 = vpack.i.b16 %v796_v59, %v795_v60  ;;  %v852_v15 = vperm.slane %v848_v10, %v2852_v24  ;;  %v898_v16 = vshrl.u32 %v844_v6, 16 }
  0xd6   : > { %v845_v17 = vrot.slane %v844_v6, 4  ;;  %v805_v18 = vpack.i.b16 %v804_v7, %v803_v5  ;;  %v855_v21 = vrot.slane %v801_v8, 4  ;;  %v575_v22 = vperm.slane %v569_v13, %v2852_v24 }
  0xd7   : > { %v552_v23 = vrot.slane %v3066_v3, 4  ;;  %v897_v26 = vpack.i.b16 %v852_v15, %v844_v6  ;;  %v899_v28 = vshrl.u32 %v852_v15, 16  ;;  %v853_v31 = vrot.slane %v852_v15, 4 }
  0xd8   : > { %v846_v56 = vsel %vm296_vm0, 0, %v845_v17  ;;  %v542_v47 = vrot.slane %v3029_v29, 4  ;;  %v863_v48 = vrot.slane %v805_v18, 4  ;;  %v611_v36 = vshrl.u32 %v3066_v3, 16 }
  0xd9   : > { %v904_v32 = vshrl.u32 %v846_v56, 16  ;;  %v1363_v33 = vsel %vm1206_vm1, %v897_v26, 0  ;;  %v900_v34 = vpack.i.b16 %v899_v28, %v898_v16  ;;  %v854_v35 = vsel %vm296_vm0, 0, %v853_v31  ;;  %v2628_v31 = vld [vmem:[%s242_s26] sm:$0xff]  }
  0xda   : > { %1372 = vmatpush.bf16.xpose.msra.mxu0 %v1363_v33  ;;  %v903_v19 = vpack.i.b16 %v854_v35, %v846_v56  ;;  %v905_v37 = vshrl.u32 %v854_v35, 16  ;;  %v553_v38 = vsel %vm296_vm0, 0, %v552_v23  ;;  %v580_v39 = vrot.slane %v575_v22, 4  ;;  %942 = vrot.lane.b32.xlu0 %v3012_v2, %s2741_s7 }
  0xdb   : > { %v1382_v25 = vsel %vm1206_vm1, %v900_v34, 0  ;;  %v612_v41 = vshrl.u32 %v575_v22, 16  ;;  %v856_v29 = vsel %vm296_vm0, %v855_v21, %v793_v4  ;;  %v864_v42 = vsel %vm296_vm0, %v863_v48, %v797_v14 }
  0xdc   : > { %1391 = vmatpush.bf16.xpose.msra.mxu1 %v1382_v25  ;;  %v1401_v30 = vsel %vm1206_vm1, %v903_v19, 0  ;;  %v906_v27 = vpack.i.b16 %v905_v37, %v904_v32  ;;  %v581_v43 = vsel %vm296_vm0, 0, %v580_v39  ;;  %v860_v44 = vperm.slane %v856_v29, %v2852_v24  ;;  %v2635_v19 = vld [vmem:[%s242_s26 + $0x8] sm:$0xff]  }
  0xdd   : > { %1410 = vmatpush.bf16.xpose.msra.mxu2 %v1401_v30  ;;  %v610_v46 = vpack.i.b16 %v575_v22, %v3066_v3  ;;  %v617_v49 = vshrl.u32 %v553_v38, 16  ;;  %v618_v51 = vshrl.u32 %v581_v43, 16  ;;  %v868_v52 = vperm.slane %v864_v42, %v2852_v24 }
  0xde   : > { %v1420_v20 = vsel %vm1206_vm1, %v906_v27, 0  ;;  %v910_v53 = vshrl.u32 %v860_v44, 16  ;;  %v861_v54 = vrot.slane %v860_v44, 4  ;;  %v570_v50 = vrot.slane %v3056_v12, 4 }
  0xdf   : > { %1429 = vmatpush.bf16.xpose.msra.mxu3 %v1420_v20  ;;  %v613_v55 = vpack.i.b16 %v612_v41, %v611_v36  ;;  %v909_v45 = vpack.i.b16 %v868_v52, %v860_v44  ;;  %v911_v57 = vshrl.u32 %v868_v52, 16  ;;  %v869_v58 = vrot.slane %v868_v52, 4 }
  0xe0   : > { %v616_v59 = vpack.i.b16 %v581_v43, %v553_v38  ;;  %v862_v60 = vsel %vm296_vm0, 0, %v861_v54  ;;  %v543_v61 = vsel %vm296_vm0, %v3035_v9, %v542_v47  ;;  %v619_v12 = vpack.i.b16 %v618_v51, %v617_v49 }
  0xe1   : > { %2600 = vmatmul.msk.bf16.vlgmr.msra.gmra.mxu0 %vm1206_vm1, %v610_v46  ;;  %v1439_v62 = vsel %vm1206_vm1, %v909_v45, 0  ;;  %v912_v0 = vpack.i.b16 %v911_v57, %v910_v53  ;;  %v870_v1 = vsel %vm296_vm0, 0, %v869_v58  ;;  %v916_v3 = vshrl.u32 %v862_v60, 16 }
  0xe2   : > { %1448 = vmatpush.bf16.xpose.msrb.mxu0 %v1439_v62  ;;  %v915_v63 = vpack.i.b16 %v870_v1, %v862_v60  ;;  %v917_v4 = vshrl.u32 %v870_v1, 16  ;;  %v571_v5 = vsel %vm296_vm0, %v3041_v40, %v570_v50  ;;  %v551_v8 = vperm.slane %v543_v61, %v2852_v24 }
  0xe3   : > { %2601 = vmatmul.msk.bf16.vlgmr.msra.gmra.mxu1 %vm1206_vm1, %v613_v55  ;;  %v1458_v6 = vsel %vm1206_vm1, %v912_v0, 0  ;;  %v579_v10 = vperm.slane %v571_v5, %v2852_v24  ;;  %v3128_v47 = vunpack.c.l.bf16 %v2628_v31  ;;  %v3133_v35 = vunpack.c.h.bf16 %v2628_v31 }
  0xe4   : > { %2602 = vmatmul.msk.bf16.vlgmr.msra.gmra.mxu2 %vm1206_vm1, %v616_v59  ;;  %1467 = vmatpush.bf16.xpose.msrb.mxu1 %v1458_v6  ;;  %v1477_v9 = vsel %vm1206_vm1, %v915_v63, 0  ;;  %v918_v7 = vpack.i.b16 %v917_v4, %v916_v3  ;;  %v554_v13 = vrot.slane %v551_v8, 4  ;;  %v623_v15 = vshrl.u32 %v551_v8, 16 }
  0xe5   : > { %1486 = vmatpush.bf16.xpose.msrb.mxu2 %v1477_v9  ;;  %v582_v14 = vrot.slane %v579_v10, 4  ;;  %v624_v16 = vshrl.u32 %v579_v10, 16  ;;  %v622_v21 = vpack.i.b16 %v579_v10, %v551_v8  ;;  %v3137_v37 = vunpack.c.l.bf16 %v2635_v19 }
  0xe6   : > { %2603 = vmatmul.msk.bf16.vlgmr.msra.gmra.mxu3 %vm1206_vm1, %v619_v12  ;;  %v1496_v40 = vsel %vm1206_vm1, %v918_v7, 0  ;;  %v555_v17 = vsel %vm296_vm0, 0, %v554_v13  ;;  %v3142_v41 = vunpack.c.h.bf16 %v2635_v19 }
  0xe7   : > { %1505 = vmatpush.bf16.xpose.msrb.mxu3 %v1496_v40  ;;  %v583_v18 = vsel %vm296_vm0, 0, %v582_v14  ;;  %v629_v22 = vshrl.u32 %v555_v17, 16  ;;  %v625_v26 = vpack.i.b16 %v624_v16, %v623_v15 }
  0xe8   : > { %v630_v23 = vshrl.u32 %v583_v18, 16  ;;  %v628_v28 = vpack.i.b16 %v583_v18, %v555_v17 }
  0xea   : > { %v631_v56 = vpack.i.b16 %v630_v23, %v629_v22 }
  0xf1   : > { %2604 = vmatmul.msk.bf16.vlgmr.msrb.gmra.mxu0 %vm1206_vm1, %v622_v21 }
  0xf3   : > { %2605 = vmatmul.msk.bf16.vlgmr.msrb.gmra.mxu1 %vm1206_vm1, %v625_v26 }
  0xf4   : > { %2606 = vmatmul.msk.bf16.vlgmr.msrb.gmra.mxu2 %vm1206_vm1, %v628_v28 }
  0xf6   : > { %2607 = vmatmul.msk.bf16.vlgmr.msrb.gmra.mxu3 %vm1206_vm1, %v631_v56 }
 0x117   : > { %v940_v5 = vpop.permute.xlu2 %939 }
 0x118   : > { %v990_v7 = vrot.slane %v940_v5, 4 }
 0x12c   : > { %v925_v34 = vpop.permute.xlu0 %924 }
 0x12d   : > { %v966_v29 = vrot.slane %v925_v34, 4 }
 0x12e   : > { %v928_v39 = vpop.permute.xlu1 %927 }
 0x12f   : > { %v974_v42 = vrot.slane %v928_v39, 4  ;;  %v967_v20 = vsel %vm296_vm0, %v966_v29, %v3012_v2 }
 0x130   : > { %v971_v50 = vperm.slane %v967_v20, %v2852_v24 }
 0x132   : > { %v972_v0 = vrot.slane %v971_v50, 4  ;;  %v1034_v26 = vshrl.u32 %v971_v50, 16 }
 0x134   : > { %v922_v49 = vpop.permute.xlu0 %921  ;;  %v973_v63 = vsel %vm296_vm0, 0, %v972_v0 }
 0x135   : > { %v1222_v48 = vpop.f32.mrf.mxu0  ;;  %v975_v53 = vsel %vm296_vm0, %v974_v42, %v922_v49  ;;  %v1042_v13 = vshrl.u32 %v973_v63, 16 }
 0x136   : > { %v3131_v32 = vadd.f32 %v3128_v47, %v1222_v48  ;;  %v979_v55 = vperm.slane %v975_v53, %v2852_v24  ;;  %v934_v8 = vpop.permute.xlu1 %933 }
 0x137   : > { %v1241_v33 = vpop.f32.mrf.mxu1  ;;  %v991_v15 = vsel %vm296_vm0, %v990_v7, %v934_v8 }
 0x138   : > { %v1536_v36 = vsel %vm1535_vm2, %v3131_v32, -inf  ;;  %v3140_v38 = vadd.f32 %v3133_v35, %v1241_v33  ;;  %v980_v1 = vrot.slane %v979_v55, 4  ;;  %v995_v17 = vperm.slane %v991_v15, %v2852_v24 }
 0x139   : > { %1537 = vmax.xlane.f32.xlu2 %v1536_v36  ;;  %v1035_v48 = vshrl.u32 %v979_v55, 16  ;;  %v1032_v42 = vpack.i.b16 %v979_v55, %v971_v50 }
 0x13a   : > { %v1539_v46 = vsel %vm1535_vm2, %v3140_v38, -inf  ;;  %v981_v4 = vsel %vm296_vm0, 0, %v980_v1  ;;  %v996_v28 = vrot.slane %v995_v17, 4  ;;  %v1051_v20 = vshrl.u32 %v995_v17, 16 }
 0x13b   : > { %v1043_v14 = vshrl.u32 %v981_v4, 16  ;;  %v1040_v33 = vpack.i.b16 %v981_v4, %v973_v63 }
 0x13c   : > { %v937_v3 = vpop.permute.xlu0 %936  ;;  %v997_v39 = vsel %vm296_vm0, 0, %v996_v28 }
 0x13d   : > { %v1224_v25 = vpop.f32.mrf.mxu0  ;;  %v982_v9 = vrot.slane %v937_v3, 4  ;;  %v1044_v34 = vpack.i.b16 %v1043_v14, %v1042_v13 }
 0x13e   : > { %v1260_v30 = vpop.f32.mrf.mxu2 }
 0x13f   : > { %v3145_v27 = vadd.f32 %v3137_v37, %v1260_v30  ;;  %v1243_v43 = vpop.f32.mrf.mxu1  ;;  %v1036_v30 = vpack.i.b16 %v1035_v48, %v1034_v26 }
 0x140   : > { %v1279_v44 = vpop.f32.mrf.mxu3  ;;  %v1094_v43 = vrot.slane %v1040_v33, 4 }
 0x141   : > { %v3150_v51 = vadd.f32 %v3142_v41, %v1279_v44  ;;  %1540 = vmax.xlane.f32.xlu2 %v1539_v46  ;;  %v1542_v52 = vsel %vm1535_vm2, %v3145_v27, -inf  ;;  %v1102_v44 = vrot.slane %v1044_v34, 4  ;;  %v1059_v46 = vshrl.u32 %v997_v39, 16 }
 0x142   : > { %1543 = vmax.xlane.f32.xlu0 %v1542_v52 }
 0x143   : > { %v1545_v54 = vsel %vm1535_vm2, %v3150_v51, -inf }
 0x144   : > { %1546 = vmax.xlane.f32.xlu1 %v1545_v54  ;;  %v931_v18 = vpop.permute.xlu0 %930 }
 0x145   : > { %v1298_v45 = vpop.f32.mrf.mxu0  ;;  %v983_v21 = vsel %vm296_vm0, %v982_v9, %v931_v18 }
 0x146   : > { %v3162_v57 = vadd.f32 %v3128_v47, %v1298_v45  ;;  %v1262_v58 = vpop.f32.mrf.mxu2  ;;  %v987_v56 = vperm.slane %v983_v21, %v2852_v24  ;;  %v1095_v45 = vsel %vm296_vm0, %v1094_v43, %v1032_v42 }
 0x147   : > { %v1317_v59 = vpop.f32.mrf.mxu1  ;;  %v1103_v58 = vsel %vm296_vm0, %v1102_v44, %v1036_v30 }
 0x148   : > { %v3165_v60 = vadd.f32 %v3133_v35, %v1317_v59  ;;  %v1281_v61 = vpop.f32.mrf.mxu3  ;;  %v1548_v62 = vsel %vm1535_vm2, %v3162_v57, -inf  ;;  %v988_v36 = vrot.slane %v987_v56, 4  ;;  %v1050_v53 = vshrl.u32 %v987_v56, 16 }
 0x149   : > { %1549 = vmax.xlane.f32.xlu2 %v1548_v62  ;;  %v1099_v61 = vperm.slane %v1095_v45, %v2852_v24  ;;  %v1107_v62 = vperm.slane %v1103_v58, %v2852_v24  ;;  %v1048_v0 = vpack.i.b16 %v995_v17, %v987_v56 }
 0x14a   : > { %v1551_v12 = vsel %vm1535_vm2, %v3165_v60, -inf  ;;  %v989_v25 = vsel %vm296_vm0, 0, %v988_v36  ;;  %v1052_v3 = vpack.i.b16 %v1051_v20, %v1050_v53 }
 0x14b   : > { %1552 = vmax.xlane.f32.xlu0 %v1551_v12  ;;  %v1058_v49 = vshrl.u32 %v989_v25, 16  ;;  %v1056_v54 = vpack.i.b16 %v997_v39, %v989_v25  ;;  %v1161_v50 = vshrl.u32 %v1099_v61, 16  ;;  %v1100_v55 = vrot.slane %v1099_v61, 4 }
 0x14c   : > { %v1160_v63 = vpack.i.b16 %v1107_v62, %v1099_v61  ;;  %v1162_v4 = vshrl.u32 %v1107_v62, 16  ;;  %v1108_v7 = vrot.slane %v1107_v62, 4 }
 0x14d   : > { %v1300_v6 = vpop.f32.mrf.mxu0  ;;  %v1060_v59 = vpack.i.b16 %v1059_v46, %v1058_v49  ;;  %v1110_v12 = vrot.slane %v1056_v54, 4  ;;  %v1101_v9 = vsel %vm296_vm0, 0, %v1100_v55 }
 0x14e   : > { %v1109_v14 = vsel %vm296_vm0, 0, %v1108_v7  ;;  %v1167_v15 = vshrl.u32 %v1101_v9, 16 }
 0x14f   : > { %v1336_v10 = vpop.f32.mrf.mxu2  ;;  %v1319_v40 = vpop.f32.mrf.mxu1  ;;  %v1118_v6 = vrot.slane %v1060_v59, 4  ;;  %v1166_v18 = vpack.i.b16 %v1109_v14, %v1101_v9  ;;  %v1168_v21 = vshrl.u32 %v1109_v14, 16 }
 0x150   : > { %v3175_v16 = vadd.f32 %v3137_v37, %v1336_v10  ;;  %v1733_v10 = vsel %vm1731_vm3, %v1160_v63, 0  ;;  %v1163_v40 = vpack.i.b16 %v1162_v4, %v1161_v50 }
 0x151   : > { %1742 = vmatpush.bf16.msra.mxu0 %v1733_v10  ;;  %v1771_v26 = vsel %vm1731_vm3, %v1166_v18, 0  ;;  %v1169_v28 = vpack.i.b16 %v1168_v21, %v1167_v15 }
 0x152   : > { %v1355_v22 = vpop.f32.mrf.mxu3  ;;  %v1554_v23 = vsel %vm1535_vm2, %v3175_v16, -inf  ;;  %v1752_v17 = vsel %vm1731_vm3, %v1163_v40, 0  ;;  %1780 = vmatpush.bf16.msra.mxu2 %v1771_v26  ;;  %v3251_v26 = vpop.permute.xlu1 %951 }
 0x153   : > { %v3183_v31 = vadd.f32 %v3142_v41, %v1355_v22  ;;  %1555 = vmax.xlane.f32.xlu0 %v1554_v23  ;;  %1761 = vmatpush.bf16.msra.mxu1 %v1752_v17  ;;  %v1111_v22 = vsel %vm296_vm0, %v1110_v12, %v1048_v0  ;;  %v1119_v23 = vsel %vm296_vm0, %v1118_v6, %v1052_v3  ;;  %v1790_v36 = vsel %vm1731_vm3, %v1169_v28, 0  ;;  %v3253_v28 = vpop.permute.xlu0 %942 }
 0x154   : > { %v1115_v56 = vperm.slane %v1111_v22, %v2852_v24  ;;  %v1123_v48 = vperm.slane %v1119_v23, %v2852_v24  ;;  %1799 = vmatpush.bf16.msra.mxu3 %v1790_v36  ;;  %v3249_v23 = vpop.permute.xlu2 %948 }
 0x155   : > { %v1557_v19 = vsel %vm1535_vm2, %v3183_v31, -inf }
 0x156   : > { %1558 = vmax.xlane.f32.xlu1 %v1557_v19  ;;  %v1172_v19 = vpack.i.b16 %v1123_v48, %v1115_v56  ;;  %v1173_v39 = vshrl.u32 %v1115_v56, 16  ;;  %v1174_v25 = vshrl.u32 %v1123_v48, 16  ;;  %v1116_v42 = vrot.slane %v1115_v56, 4 }
 0x157   : > { %v1338_v29 = vpop.f32.mrf.mxu2  ;;  %v1124_v30 = vrot.slane %v1123_v48, 4 }
 0x158   : > { %v1809_v46 = vsel %vm1731_vm3, %v1172_v19, 0  ;;  %v1175_v49 = vpack.i.b16 %v1174_v25, %v1173_v39  ;;  %v1117_v53 = vsel %vm296_vm0, 0, %v1116_v42 }
 0x159   : > { %1818 = vmatpush.bf16.msrb.mxu0 %v1809_v46  ;;  %v1125_v54 = vsel %vm296_vm0, 0, %v1124_v30  ;;  %v1179_v62 = vshrl.u32 %v1117_v53, 16 }
 0x15a   : > { %v1357_v52 = vpop.f32.mrf.mxu3  ;;  %v1828_v58 = vsel %vm1731_vm3, %v1175_v49, 0  ;;  %v1178_v59 = vpack.i.b16 %v1125_v54, %v1117_v53  ;;  %v1180_v0 = vshrl.u32 %v1125_v54, 16  ;;  %v3256_v48 = vpop.permute.xlu1 %945 }
 0x15b   : > { %1837 = vmatpush.bf16.msrb.mxu1 %v1828_v58 }
 0x15c   : > { %v1847_v50 = vsel %vm1731_vm3, %v1178_v59, 0  ;;  %v1181_v55 = vpack.i.b16 %v1180_v0, %v1179_v62 }
 0x15d   : > { %1856 = vmatpush.bf16.msrb.mxu2 %v1847_v50 }
 0x15e   : > { %v1374_v1 = vpop.f32.mrf.mxu0  ;;  %v1866_v4 = vsel %vm1731_vm3, %v1181_v55, 0 }
 0x15f   : > { %v3194_v5 = vadd.f32 %v3128_v47, %v1374_v1  ;;  %1875 = vmatpush.bf16.msrb.mxu3 %v1866_v4 }
 0x160   : > { %v1393_v8 = vpop.f32.mrf.mxu1 }
 0x161   : > { %v1560_v13 = vsel %vm1535_vm2, %v3194_v5, -inf  ;;  %v3208_v33 = vadd.f32 %v3133_v35, %v1393_v8 }
 0x162   : > { %1561 = vmax.xlane.f32.xlu2 %v1560_v13 }
 0x163   : > { %v1563_v20 = vsel %vm1535_vm2, %v3208_v33, -inf }
 0x166   : > { %v1376_v34 = vpop.f32.mrf.mxu0 }
 0x167   : > { %v1412_v29 = vpop.f32.mrf.mxu2 }
 0x168   : > { %v3212_v43 = vadd.f32 %v3137_v37, %v1412_v29  ;;  %v1395_v44 = vpop.f32.mrf.mxu1 }
 0x169   : > { %v1431_v52 = vpop.f32.mrf.mxu3 }
 0x16a   : > { %1564 = vmax.xlane.f32.xlu2 %v1563_v20  ;;  %v1566_v45 = vsel %vm1535_vm2, %v3212_v43, -inf  ;;  %v3223_v61 = vadd.f32 %v3142_v41, %v1431_v52 }
 0x16b   : > { %1567 = vmax.xlane.f32.xlu1 %v1566_v45 }
 0x16c   : > { %v1569_v63 = vsel %vm1535_vm2, %v3223_v61, -inf }
 0x16e   : > { %v1450_v1 = vpop.f32.mrf.mxu0 }
 0x16f   : > { %v3227_v3 = vadd.f32 %v3128_v47, %v1450_v1  ;;  %v1414_v12 = vpop.f32.mrf.mxu2 }
 0x170   : > { %v1469_v6 = vpop.f32.mrf.mxu1 }
 0x171   : > { %v1433_v9 = vpop.f32.mrf.mxu3  ;;  %v1572_v7 = vsel %vm1535_vm2, %v3227_v3, -inf  ;;  %v3235_v8 = vadd.f32 %v3133_v35, %v1469_v6 }
 0x172   : > { %1570 = vmax.xlane.f32.xlu2 %v1569_v63  ;;  %1573 = vmax.xlane.f32.xlu0 %v1572_v7 }
 0x173   : > { %v1575_v14 = vsel %vm1535_vm2, %v3235_v8, -inf }
 0x176   : > { %v1452_v10 = vpop.f32.mrf.mxu0 }
 0x177   : > { %v1488_v47 = vpop.f32.mrf.mxu2 }
 0x178   : > { %v1471_v40 = vpop.f32.mrf.mxu1  ;;  %v3245_v18 = vadd.f32 %v3137_v37, %v1488_v47 }
 0x179   : > { %v1507_v13 = vpop.f32.mrf.mxu3 }
 0x17a   : > { %v3240_v15 = vadd.f32 %v3142_v41, %v1507_v13  ;;  %1576 = vmax.xlane.f32.xlu2 %v1575_v14  ;;  %v1578_v22 = vsel %vm1535_vm2, %v3245_v18, -inf }
 0x17c   : > { %v1581_v17 = vsel %vm1535_vm2, %v3240_v15, -inf }
 0x17d   : > { %1582 = vmax.xlane.f32.xlu1 %v1581_v17 }
 0x17f   : > { %v1490_v35 = vpop.f32.mrf.mxu2 }
 0x181   : > { %v1509_v21 = vpop.f32.mrf.mxu3 }
 0x182   : > { %1579 = vmax.xlane.f32.xlu2 %v1578_v22 }
 0x1ac   : > { %v1538_v41 = vpop.xlane.xlu2 %1537 }
 0x1ad   : > { %v1584_v56 = vsub.f32 %v3131_v32, %v1538_v41 }
 0x1af   : > { %v1600_v37 = vmul.f32 1.442695, %v1584_v56 }
 0x1b1   : > { %2661 = vpow2.f32 %v1600_v37 }
 0x1b4   : > { %v1541_v34 = vpop.xlane.xlu2 %1540 }
 0x1b5   : > { %v1585_v36 = vsub.f32 %v3140_v38, %v1541_v34  ;;  %v1544_v19 = vpop.xlane.xlu0 %1543 }
 0x1b6   : > { %v1586_v39 = vsub.f32 %v3145_v27, %v1544_v19  ;;  %v998_v19 = vrot.slane %v3249_v23, 4 }
 0x1b7   : > { %v3260_v25 = vpop.eup %2661  ;;  %v1602_v29 = vmul.f32 1.442695, %v1585_v36  ;;  %v1547_v42 = vpop.xlane.xlu1 %1546 }
 0x1b8   : > { %v1604_v30 = vmul.f32 1.442695, %v1586_v39  ;;  %v1587_v44 = vsub.f32 %v3150_v51, %v1547_v42  ;;  %v1632_v32 = vsel %vm1535_vm2, %v3260_v25, 0.0 }
 0x1b9   : > { %2663 = vpow2.f32 %v1602_v29  ;;  %1633 = vadd.xlane.f32.xlu2 %v1632_v32 }
 0x1ba   : > { %2665 = vpow2.f32 %v1604_v30  ;;  %v1606_v46 = vmul.f32 1.442695, %v1587_v44 }
 0x1bc   : > { %v1550_v49 = vpop.xlane.xlu2 %1549  ;;  %2667 = vpow2.f32 %v1606_v46 }
 0x1bd   : > { %v1588_v38 = vsub.f32 %v3162_v57, %v1550_v49 }
 0x1be   : > { %v1553_v52 = vpop.xlane.xlu0 %1552 }
 0x1bf   : > { %v3266_v20 = vpop.eup %2663  ;;  %v1608_v27 = vmul.f32 1.442695, %v1588_v38  ;;  %v1589_v53 = vsub.f32 %v3165_v60, %v1553_v52 }
 0x1c0   : > { %v3269_v54 = vpop.eup %2665  ;;  %v1635_v51 = vsel %vm1535_vm2, %v3266_v20, 0.0 }
 0x1c1   : > { %2669 = vpow2.f32 %v1608_v27  ;;  %v1610_v45 = vmul.f32 1.442695, %v1589_v53  ;;  %1636 = vadd.xlane.f32.xlu0 %v1635_v51  ;;  %v1638_v58 = vsel %vm1535_vm2, %v3269_v54, 0.0 }
 0x1c2   : > { %1639 = vadd.xlane.f32.xlu1 %v1638_v58  ;;  %v3275_v57 = vpop.eup %2667 }
 0x1c3   : > { %2671 = vpow2.f32 %v1610_v45  ;;  %v1641_v12 = vsel %vm1535_vm2, %v3275_v57, 0.0 }
 0x1c6   : > { %v1556_v59 = vpop.xlane.xlu0 %1555 }
 0x1c7   : > { %v3277_v62 = vpop.eup %2669  ;;  %v1590_v60 = vsub.f32 %v3175_v16, %v1556_v59 }
 0x1c8   : > { %v1644_v0 = vsel %vm1535_vm2, %v3277_v62, 0.0 }
 0x1c9   : > { %v3282_v50 = vpop.eup %2671  ;;  %v1612_v55 = vmul.f32 1.442695, %v1590_v60  ;;  %v1559_v1 = vpop.xlane.xlu1 %1558  ;;  %1645 = vadd.xlane.f32.xlu0 %v1644_v0 }
 0x1ca   : > { %v1591_v63 = vsub.f32 %v3183_v31, %v1559_v1  ;;  %1642 = vadd.xlane.f32.xlu1 %v1641_v12  ;;  %v1647_v4 = vsel %vm1535_vm2, %v3282_v50, 0.0 }
 0x1cb   : > { %2673 = vpow2.f32 %v1612_v55  ;;  %1648 = vadd.xlane.f32.xlu2 %v1647_v4 }
 0x1cc   : > { %v1614_v16 = vmul.f32 1.442695, %v1591_v63 }
 0x1ce   : > { %2675 = vpow2.f32 %v1614_v16 }
 0x1d1   : > { %v3289_v6 = vpop.eup %2673 }
 0x1d2   : > { %v1650_v9 = vsel %vm1535_vm2, %v3289_v6, 0.0 }
 0x1d3   : > { %1651 = vadd.xlane.f32.xlu1 %v1650_v9 }
 0x1d4   : > { %v3293_v7 = vpop.eup %2675 }
 0x1d5   : > { %v1653_v10 = vsel %vm1535_vm2, %v3293_v7, 0.0  ;;  %v1562_v31 = vpop.xlane.xlu2 %1561 }
 0x1d6   : > { %1654 = vadd.xlane.f32.xlu2 %v1653_v10  ;;  %v1592_v40 = vsub.f32 %v3194_v5, %v1562_v31 }
 0x1d8   : > { %v1616_v14 = vmul.f32 1.442695, %v1592_v40 }
 0x1da   : > { %2677 = vpow2.f32 %v1616_v14 }
 0x1dd   : > { %954 = vrot.lane.b32.xlu0 %v3012_v2, %s2740_s6  ;;  %v1565_v47 = vpop.xlane.xlu2 %1564 }
 0x1de   : > { %v1568_v17 = vpop.xlane.xlu1 %1567  ;;  %v1593_v36 = vsub.f32 %v3208_v33, %v1565_v47 }
 0x1df   : > { %v1594_v35 = vsub.f32 %v3212_v43, %v1568_v17  ;;  %v1006_v43 = vrot.slane %v3251_v26, 4 }
 0x1e0   : > { %v3308_v34 = vpop.eup %2677 }
 0x1e1   : > { %v1620_v41 = vmul.f32 1.442695, %v1594_v35  ;;  %v1656_v5 = vsel %vm1535_vm2, %v3308_v34, 0.0  ;;  %v1007_v33 = vsel %vm296_vm0, %v1006_v43, %v3256_v48 }
 0x1e2   : > { %v1011_v32 = vperm.slane %v1007_v33, %v2852_v24 }
 0x1e3   : > { %2679 = vpow2.f32 %v1620_v41 }
 0x1e4   : > { %v1067_v12 = vshrl.u32 %v1011_v32, 16 }
 0x1e5   : > { %957 = vrot.lane.b32.xlu0 %v3012_v2, %s2742_s8  ;;  %v1571_v13 = vpop.xlane.xlu2 %1570 }
 0x1e6   : > { %v1595_v21 = vsub.f32 %v3223_v61, %v1571_v13  ;;  %v1618_v61 = vmul.f32 1.442695, %v1593_v36 }
 0x1e8   : > { %v1622_v56 = vmul.f32 1.442695, %v1595_v21 }
 0x1e9   : > { %v3316_v42 = vpop.eup %2679 }
 0x1ea   : > { %2681 = vpow2.f32 %v1622_v56  ;;  %v1662_v23 = vsel %vm1535_vm2, %v3316_v42, 0.0 }
 0x1eb   : > { %2683 = vpow2.f32 %v1618_v61 }
 0x1ec   : > { %963 = vrot.lane.b32.xlu1 %v3012_v2, %s2744_s10 }
 0x1ed   : > { %v1577_v22 = vpop.xlane.xlu2 %1576 }
 0x1ee   : > { %960 = vrot.lane.b32.xlu2 %v3012_v2, %s2745_s11  ;;  %v1597_v26 = vsub.f32 %v3235_v8, %v1577_v22 }
 0x1f0   : > { %v1583_v37 = vpop.xlane.xlu1 %1582  ;;  %v3318_v30 = vpop.eup %2681  ;;  %v1626_v38 = vmul.f32 1.442695, %v1597_v26 }
 0x1f1   : > { %v1599_v2 = vsub.f32 %v3240_v15, %v1583_v37  ;;  %v999_v15 = vsel %vm296_vm0, %v998_v19, %v3253_v28  ;;  %v1665_v49 = vsel %vm1535_vm2, %v3318_v30, 0.0  ;;  %v1574_v28 = vpop.xlane.xlu0 %1573  ;;  %v3332_v52 = vpop.eup %2683 }
 0x1f2   : > { %v1003_v46 = vperm.slane %v999_v15, %v2852_v24  ;;  %v1596_v53 = vsub.f32 %v3227_v3, %v1574_v28  ;;  %v1659_v51 = vsel %vm1535_vm2, %v3332_v52, 0.0 }
 0x1f3   : > { %v1630_v39 = vmul.f32 1.442695, %v1599_v2 }
 0x1f4   : > { %v1004_v8 = vrot.slane %v1003_v46, 4  ;;  %v1624_v60 = vmul.f32 1.442695, %v1596_v53  ;;  %v1066_v63 = vshrl.u32 %v1003_v46, 16  ;;  %v1064_v31 = vpack.i.b16 %v1011_v32, %v1003_v46 }
 0x1f5   : > { %v1580_v29 = vpop.xlane.xlu2 %1579  ;;  %2685 = vpow2.f32 %v1630_v39 }
 0x1f6   : > { %v1598_v44 = vsub.f32 %v3245_v18, %v1580_v29  ;;  %v1012_v18 = vrot.slane %v1011_v32, 4  ;;  %v1005_v58 = vsel %vm296_vm0, 0, %v1004_v8  ;;  %v1068_v47 = vpack.i.b16 %v1067_v12, %v1066_v63 }
 0x1f7   : > { %v1074_v55 = vshrl.u32 %v1005_v58, 16 }
 0x1f8   : > { %v1628_v48 = vmul.f32 1.442695, %v1598_v44  ;;  %v1013_v45 = vsel %vm296_vm0, 0, %v1012_v18 }
 0x1f9   : > { %v1075_v0 = vshrl.u32 %v1013_v45, 16  ;;  %v1072_v4 = vpack.i.b16 %v1013_v45, %v1005_v58 }
 0x1fa   : > { %2687 = vpow2.f32 %v1628_v48 }
 0x1fb   : > { %v3334_v27 = vpop.eup %2685  ;;  %2689 = vpow2.f32 %v1626_v38  ;;  %v1076_v16 = vpack.i.b16 %v1075_v0, %v1074_v55  ;;  %v1126_v40 = vrot.slane %v1072_v4, 4 }
 0x1fc   : > { %v1677_v59 = vsel %vm1535_vm2, %v3334_v27, 0.0  ;;  %2691 = vpow2.f32 %v1624_v60 }
 0x1fd   : > { %v1134_v13 = vrot.slane %v1076_v16, 4  ;;  %v1127_v21 = vsel %vm296_vm0, %v1126_v40, %v1064_v31 }
 0x1fe   : > { %v1131_v41 = vperm.slane %v1127_v21, %v2852_v24 }
 0x1ff   : > { %v1135_v22 = vsel %vm296_vm0, %v1134_v13, %v1068_v47 }
 0x200   : > { %v3343_v1 = vpop.eup %2687  ;;  %v1139_v56 = vperm.slane %v1135_v22, %v2852_v24  ;;  %v1132_v61 = vrot.slane %v1131_v41, 4  ;;  %v1185_v33 = vshrl.u32 %v1131_v41, 16 }
 0x201   : > { %v3345_v3 = vpop.eup %2689  ;;  %v1674_v9 = vsel %vm1535_vm2, %v3343_v1, 0.0 }
 0x202   : > { %v1671_v10 = vsel %vm1535_vm2, %v3345_v3, 0.0  ;;  %v3351_v14 = vpop.eup %2691  ;;  %v1140_v39 = vrot.slane %v1139_v56, 4  ;;  %v1186_v15 = vshrl.u32 %v1139_v56, 16  ;;  %v1133_v44 = vsel %vm296_vm0, 0, %v1132_v61 }
 0x203   : > { %v1668_v35 = vsel %vm1535_vm2, %v3351_v14, 0.0  ;;  %v1191_v45 = vshrl.u32 %v1133_v44, 16 }
 0x204   : > { %v1141_v26 = vsel %vm296_vm0, 0, %v1140_v39 }
 0x205   : > { %v1190_v38 = vpack.i.b16 %v1141_v26, %v1133_v44  ;;  %v1192_v58 = vshrl.u32 %v1141_v26, 16 }
 0x207   : > { %v1193_v55 = vpack.i.b16 %v1192_v58, %v1191_v45 }
 0x20f   : > { %1657 = vadd.xlane.f32.xlu0 %v1656_v5  ;;  %v1184_v5 = vpack.i.b16 %v1139_v56, %v1131_v41 }
 0x211   : > { %v1885_v29 = vsel %vm1731_vm3, %v1184_v5, 0 }
 0x216   : > { %1663 = vadd.xlane.f32.xlu1 %v1662_v23 }
 0x217   : > { %1666 = vadd.xlane.f32.xlu2 %v1665_v49  ;;  %v1187_v49 = vpack.i.b16 %v1186_v15, %v1185_v33 }
 0x21e   : > { %1660 = vadd.xlane.f32.xlu1 %v1659_v51  ;;  %v1904_v51 = vsel %vm1731_vm3, %v1187_v49, 0 }
 0x21f   : > { %1678 = vadd.xlane.f32.xlu2 %v1677_v59 }
 0x226   : > { %1675 = vadd.xlane.f32.xlu1 %v1674_v9 }
 0x227   : > { %1672 = vadd.xlane.f32.xlu2 %v1671_v10  ;;  %v1942_v10 = vsel %vm1731_vm3, %v1193_v55, 0 }
 0x22c   : > { %v1634_v17 = vpop.xlane.xlu2 %1633 }
 0x22d   : > { %2693 = vrcp.f32 %v1634_v17 }
 0x22e   : > { %1669 = vadd.xlane.f32.xlu1 %v1668_v35 }
 0x233   : > { %v2694_v37 = vpop.eup %2693 }
 0x234   : > { %v1696_v36 = vmul.f32 %v2694_v37, %v3260_v25  ;;  %v1637_v2 = vpop.xlane.xlu0 %1636 }
 0x235   : > { %2695 = vrcp.f32 %v1637_v2  ;;  %v1640_v43 = vpop.xlane.xlu1 %1639 }
 0x236   : > { %v1712_v19 = vpack.c.bf16 %v1696_v36, %v1696_v36  ;;  %2697 = vrcp.f32 %v1640_v43 }
 0x238   : > { %2608 = vmatmul.msk.bf16.vlgmr.msra.gmra.mxu0 %vm1535_vm2, %v1712_v19 }
 0x239   : > { %1894 = vmatpush.bf16.msra.mxu0 %v1885_v29 }
 0x23b   : > { %v2696_v25 = vpop.eup %2695 }
 0x23c   : > { %v2698_v23 = vpop.eup %2697  ;;  %v1697_v32 = vmul.f32 %v2696_v25, %v3266_v20  ;;  %v1646_v46 = vpop.xlane.xlu0 %1645  ;;  %v1923_v20 = vsel %vm1731_vm3, %v1190_v38, 0 }
 0x23d   : > { %v1698_v48 = vmul.f32 %v2698_v23, %v3269_v54  ;;  %2699 = vrcp.f32 %v1646_v46  ;;  %v1643_v28 = vpop.xlane.xlu1 %1642 }
 0x23e   : > { %v1713_v18 = vpack.c.bf16 %v1697_v32, %v1697_v32  ;;  %2701 = vrcp.f32 %v1643_v28  ;;  %v1649_v8 = vpop.xlane.xlu2 %1648 }
 0x23f   : > { %v1714_v53 = vpack.c.bf16 %v1698_v48, %v1698_v48  ;;  %2703 = vrcp.f32 %v1649_v8 }
 0x240   : > { %2609 = vmatmul.msk.bf16.vlgmr.msra.gmra.mxu1 %vm1535_vm2, %v1713_v18 }
 0x241   : > { %1913 = vmatpush.bf16.msra.mxu1 %v1904_v51  ;;  %2610 = vmatmul.msk.bf16.vlgmr.msra.gmra.mxu2 %vm1535_vm2, %v1714_v53 }
 0x242   : > { %1932 = vmatpush.bf16.msra.mxu2 %v1923_v20 }
 0x243   : > { %v2700_v54 = vpop.eup %2699 }
 0x244   : > { %v2702_v59 = vpop.eup %2701  ;;  %v1700_v60 = vmul.f32 %v2700_v54, %v3277_v62 }
 0x245   : > { %v1699_v0 = vmul.f32 %v2702_v59, %v3275_v57  ;;  %v2704_v4 = vpop.eup %2703 }
 0x246   : > { %v1716_v12 = vpack.c.bf16 %v1700_v60, %v1700_v60  ;;  %v1652_v63 = vpop.xlane.xlu1 %1651  ;;  %v1701_v31 = vmul.f32 %v2704_v4, %v3282_v50 }
 0x247   : > { %v1715_v16 = vpack.c.bf16 %v1699_v0, %v1699_v0  ;;  %2705 = vrcp.f32 %v1652_v63 }
 0x248   : > { %2612 = vmatmul.msk.bf16.vlgmr.msrb.gmra.mxu0 %vm1535_vm2, %v1716_v12  ;;  %v1717_v47 = vpack.c.bf16 %v1701_v31, %v1701_v31 }
 0x249   : > { %v1655_v9 = vpop.xlane.xlu2 %1654  ;;  %2611 = vmatmul.msk.bf16.vlgmr.msra.gmra.mxu3 %vm1535_vm2, %v1715_v16 }
 0x24a   : > { %2707 = vrcp.f32 %v1655_v9  ;;  %1951 = vmatpush.bf16.msra.mxu3 %v1942_v10 }
 0x24d   : > { %v2706_v62 = vpop.eup %2705 }
 0x24e   : > { %v1702_v57 = vmul.f32 %v2706_v62, %v3289_v6 }
 0x24f   : > { %v955_v22 = vpop.permute.xlu0 %954 }
 0x250   : > { %v2708_v40 = vpop.eup %2707  ;;  %v1718_v13 = vpack.c.bf16 %v1702_v57, %v1702_v57  ;;  %2613 = vmatmul.msk.bf16.vlgmr.msrb.gmra.mxu1 %vm1535_vm2, %v1717_v47 }
 0x251   : > { %v961_v17 = vpop.permute.xlu2 %960  ;;  %v1703_v35 = vmul.f32 %v2708_v40, %v3293_v7 }
 0x252   : > { %2614 = vmatmul.msk.bf16.vlgmr.msrb.gmra.mxu2 %vm1535_vm2, %v1718_v13  ;;  %v1014_v21 = vrot.slane %v961_v17, 4 }
 0x253   : > { %v1719_v41 = vpack.c.bf16 %v1703_v35, %v1703_v35 }
 0x254   : > { %v1015_v50 = vsel %vm296_vm0, %v1014_v21, %v955_v22 }
 0x255   : > { %v1019_v56 = vperm.slane %v1015_v50, %v2852_v24 }
 0x257   : > { %v958_v6 = vpop.permute.xlu0 %957  ;;  %v1020_v2 = vrot.slane %v1019_v56, 4  ;;  %v1082_v44 = vshrl.u32 %v1019_v56, 16 }
 0x259   : > { %2615 = vmatmul.msk.bf16.vlgmr.msrb.gmra.mxu3 %vm1535_vm2, %v1719_v41  ;;  %v1021_v19 = vsel %vm296_vm0, 0, %v1020_v2 }
 0x25a   : > { %v1090_v39 = vshrl.u32 %v1021_v19, 16 }
 0x25e   : > { %v964_v37 = vpop.permute.xlu1 %963 }
 0x25f   : > { %v1022_v36 = vrot.slane %v964_v37, 4 }
 0x261   : > { %v1023_v5 = vsel %vm296_vm0, %v1022_v36, %v958_v6 }
 0x262   : > { %v1027_v43 = vperm.slane %v1023_v5, %v2852_v24 }
 0x264   : > { %v1028_v7 = vrot.slane %v1027_v43, 4  ;;  %v1083_v29 = vshrl.u32 %v1027_v43, 16  ;;  %v1080_v26 = vpack.i.b16 %v1027_v43, %v1019_v56 }
 0x266   : > { %v1029_v61 = vsel %vm296_vm0, 0, %v1028_v7  ;;  %v1084_v32 = vpack.i.b16 %v1083_v29, %v1082_v44 }
 0x267   : > { %v1088_v33 = vpack.i.b16 %v1029_v61, %v1021_v19  ;;  %v1091_v15 = vshrl.u32 %v1029_v61, 16 }
 0x269   : > { %v1092_v25 = vpack.i.b16 %v1091_v15, %v1090_v39  ;;  %v1142_v23 = vrot.slane %v1088_v33, 4 }
 0x26b   : > { %v1150_v46 = vrot.slane %v1092_v25, 4  ;;  %v1143_v49 = vsel %vm296_vm0, %v1142_v23, %v1080_v26 }
 0x26c   : > { %v1147_v48 = vperm.slane %v1143_v49, %v2852_v24 }
 0x26d   : > { %v1151_v28 = vsel %vm296_vm0, %v1150_v46, %v1084_v32 }
 0x26e   : > { %v1155_v38 = vperm.slane %v1151_v28, %v2852_v24  ;;  %v1148_v18 = vrot.slane %v1147_v48, 4  ;;  %v1197_v8 = vshrl.u32 %v1147_v48, 16 }
 0x270   : > { %v1196_v53 = vpack.i.b16 %v1155_v38, %v1147_v48  ;;  %v1198_v51 = vshrl.u32 %v1155_v38, 16  ;;  %v1149_v20 = vsel %vm296_vm0, 0, %v1148_v18  ;;  %v1156_v45 = vrot.slane %v1155_v38, 4 }
 0x271   : > { %v1203_v0 = vshrl.u32 %v1149_v20, 16 }
 0x272   : > { %v1961_v58 = vsel %vm1731_vm3, %v1196_v53, 0  ;;  %v1199_v54 = vpack.i.b16 %v1198_v51, %v1197_v8  ;;  %v1157_v59 = vsel %vm296_vm0, 0, %v1156_v45 }
 0x273   : > { %1970 = vmatpush.bf16.msrb.mxu0 %v1961_v58  ;;  %v1202_v60 = vpack.i.b16 %v1157_v59, %v1149_v20  ;;  %v1204_v55 = vshrl.u32 %v1157_v59, 16 }
 0x274   : > { %v1980_v12 = vsel %vm1731_vm3, %v1199_v54, 0 }
 0x275   : > { %1989 = vmatpush.bf16.msrb.mxu1 %v1980_v12  ;;  %v1999_v63 = vsel %vm1731_vm3, %v1202_v60, 0  ;;  %v1205_v4 = vpack.i.b16 %v1204_v55, %v1203_v0 }
 0x276   : > { %2008 = vmatpush.bf16.msrb.mxu2 %v1999_v63 }
 0x277   : > { %v2018_v16 = vsel %vm1731_vm3, %v1205_v4, 0 }
 0x278   : > { %2027 = vmatpush.bf16.msrb.mxu3 %v2018_v16 }
 0x282   : > { %v1658_v9 = vpop.xlane.xlu0 %1657 }
 0x283   : > { %2709 = vrcp.f32 %v1658_v9 }
 0x289   : > { %v2710_v10 = vpop.eup %2709  ;;  %v1664_v31 = vpop.xlane.xlu1 %1663 }
 0x28a   : > { %v1704_v62 = vmul.f32 %v2710_v10, %v3308_v34  ;;  %v1667_v47 = vpop.xlane.xlu2 %1666  ;;  %2711 = vrcp.f32 %v1664_v31 }
 0x28b   : > { %2713 = vrcp.f32 %v1667_v47 }
 0x28c   : > { %v1720_v57 = vpack.c.bf16 %v1704_v62, %v1704_v62 }
 0x28e   : > { %2616 = vmatmul.msk.bf16.vlgmr.msra.gmra.mxu0 %vm1535_vm2, %v1720_v57 }
 0x290   : > { %v2712_v40 = vpop.eup %2711 }
 0x291   : > { %v2714_v13 = vpop.eup %2713  ;;  %v1706_v17 = vmul.f32 %v2712_v40, %v3316_v42  ;;  %v1661_v35 = vpop.xlane.xlu1 %1660 }
 0x292   : > { %v1707_v21 = vmul.f32 %v2714_v13, %v3318_v30  ;;  %v1679_v22 = vpop.xlane.xlu2 %1678  ;;  %2715 = vrcp.f32 %v1661_v35 }
 0x293   : > { %v1722_v41 = vpack.c.bf16 %v1706_v17, %v1706_v17  ;;  %2717 = vrcp.f32 %v1679_v22 }
 0x294   : > { %v1723_v50 = vpack.c.bf16 %v1707_v21, %v1707_v21 }
 0x295   : > { %2618 = vmatmul.msk.bf16.vlgmr.msra.gmra.mxu2 %vm1535_vm2, %v1722_v41 }
 0x296   : > { %2619 = vmatmul.msk.bf16.vlgmr.msra.gmra.mxu3 %vm1535_vm2, %v1723_v50 }
 0x298   : > { %v2716_v34 = vpop.eup %2715 }
 0x299   : > { %v1705_v56 = vmul.f32 %v2716_v34, %v3332_v52  ;;  %v1676_v37 = vpop.xlane.xlu1 %1675  ;;  %v2718_v42 = vpop.eup %2717 }
 0x29a   : > { %2719 = vrcp.f32 %v1676_v37  ;;  %v1673_v36 = vpop.xlane.xlu2 %1672  ;;  %v1711_v2 = vmul.f32 %v2718_v42, %v3334_v27 }
 0x29b   : > { %v1721_v6 = vpack.c.bf16 %v1705_v56, %v1705_v56  ;;  %2721 = vrcp.f32 %v1673_v36 }
 0x29c   : > { %v1727_v61 = vpack.c.bf16 %v1711_v2, %v1711_v2 }
 0x29d   : > { %2617 = vmatmul.msk.bf16.vlgmr.msra.gmra.mxu1 %vm1535_vm2, %v1721_v6 }
 0x2a0   : > { %v2720_v30 = vpop.eup %2719 }
 0x2a1   : > { %v1710_v5 = vmul.f32 %v2720_v30, %v3343_v1  ;;  %v1670_v43 = vpop.xlane.xlu1 %1669  ;;  %v2722_v7 = vpop.eup %2721 }
 0x2a2   : > { %2723 = vrcp.f32 %v1670_v43  ;;  %v1709_v52 = vmul.f32 %v2722_v7, %v3345_v3 }
 0x2a3   : > { %v1726_v19 = vpack.c.bf16 %v1710_v5, %v1710_v5 }
 0x2a4   : > { %v1725_v33 = vpack.c.bf16 %v1709_v52, %v1709_v52 }
 0x2a5   : > { %2622 = vmatmul.msk.bf16.vlgmr.msrb.gmra.mxu2 %vm1535_vm2, %v1726_v19 }
 0x2a6   : > { %2623 = vmatmul.msk.bf16.vlgmr.msrb.gmra.mxu3 %vm1535_vm2, %v1727_v61 }
 0x2a8   : > { %v2724_v39 = vpop.eup %2723 }
 0x2a9   : > { %v1708_v29 = vmul.f32 %v2724_v39, %v3351_v14 }
 0x2ab   : > { %v1724_v15 = vpack.c.bf16 %v1708_v29, %v1708_v29 }
 0x2ad   : > { %2620 = vmatmul.msk.bf16.vlgmr.msrb.gmra.mxu0 %vm1535_vm2, %v1724_v15  ;;  %2621 = vmatmul.msk.bf16.vlgmr.msrb.gmra.mxu1 %vm1535_vm2, %v1725_v33 }
 0x2b5   : > { %v1744_v27 = vpop.f32.mrf.mxu0 }
 0x2b6   : > { %v2033_v38 = vpack.c.bf16 %v1744_v27, %v1744_v27 }
 0x2bd   : > { %v1746_v1 = vpop.f32.mrf.mxu0  ;;  %v1763_v44 = vpop.f32.mrf.mxu1 }
 0x2be   : > { %v2034_v60 = vpack.c.bf16 %v1763_v44, %v1763_v44 }
 0x2c4   : > { %v1782_v26 = vpop.f32.mrf.mxu2 }
 0x2c5   : > { %v1765_v25 = vpop.f32.mrf.mxu1  ;;  %v1820_v23 = vpop.f32.mrf.mxu0  ;;  %v2035_v54 = vpack.c.bf16 %v1782_v26, %v1782_v26 }
 0x2c6   : > { %v2037_v32 = vpack.c.bf16 %v1820_v23, %v1820_v23 }
 0x2c8   : > { %v2049_v28 = vrot.slane %v2037_v32, 4 }
 0x2ca   : > { %v2050_v18 = vsel %vm296_vm0, %v2049_v28, %v2033_v38 }
 0x2cb   : > { %v2054_v45 = vperm.slane %v2050_v18, %v2845_v11 }
 0x2cc   : > { %v1784_v46 = vpop.f32.mrf.mxu2  ;;  %v1801_v49 = vpop.f32.mrf.mxu3 }
 0x2cd   : > { %v1822_v48 = vpop.f32.mrf.mxu0  ;;  %v1839_v3 = vpop.f32.mrf.mxu1  ;;  %v2063_v55 = vrot.slane %v2054_v45, 4  ;;  %v2036_v47 = vpack.c.bf16 %v1801_v49, %v1801_v49 }
 0x2ce   : > { %v2038_v14 = vpack.c.bf16 %v1839_v3, %v1839_v3 }
 0x2d0   : > { %v2077_v58 = vrot.slane %v2038_v14, 4 }
 0x2d2   : > { %v2078_v12 = vsel %vm296_vm0, %v2077_v58, %v2034_v60 }
 0x2d3   : > { %v2082_v62 = vperm.slane %v2078_v12, %v2845_v11 }
 0x2d4   : > { %v1803_v8 = vpop.f32.mrf.mxu3 }
 0x2d5   : > { %v1841_v53 = vpop.f32.mrf.mxu1  ;;  %v1858_v51 = vpop.f32.mrf.mxu2  ;;  %v2091_v21 = vrot.slane %v2082_v62, 4 }
 0x2d6   : > { %v2039_v20 = vpack.c.bf16 %v1858_v51, %v1858_v51 }
 0x2d8   : > { %v2055_v59 = vrot.slane %v2039_v20, 4 }
 0x2da   : > { %v2056_v0 = vsel %vm296_vm0, %v2055_v59, %v2035_v54 }
 0x2db   : > { %v2060_v63 = vperm.slane %v2056_v0, %v2845_v11 }
 0x2dc   : > { %v1877_v4 = vpop.f32.mrf.mxu3 }
 0x2dd   : > { %v2061_v16 = vrot.slane %v2060_v63, 4  ;;  %v2064_v9 = vsel %vm296_vm0, %v2060_v63, %v2063_v55  ;;  %v2040_v10 = vpack.c.bf16 %v1877_v4, %v1877_v4  ;;  %v1860_v31 = vpop.f32.mrf.mxu2 }
 0x2de   : > { %v2072_v17 = vperm.slane %v2064_v9, %v2852_v24 }
 0x2df   : > { %v2062_v57 = vsel %vm296_vm0, %v2061_v16, %v2054_v45  ;;  %v2083_v40 = vrot.slane %v2040_v10, 4 }
 0x2e0   : > { %v2068_v13 = vperm.slane %v2062_v57, %v2852_v24  ;;  %v2075_v50 = vrot.slane %v2072_v17, 4  ;;  %v2181_v61 = vshrl.u32 %v2072_v17, 16 }
 0x2e1   : > { %v2084_v35 = vsel %vm296_vm0, %v2083_v40, %v2036_v47 }
 0x2e2   : > { %v2088_v22 = vperm.slane %v2084_v35, %v2845_v11  ;;  %v2073_v41 = vrot.slane %v2068_v13, 4  ;;  %v2076_v19 = vsel %vm296_vm0, 0, %v2075_v50  ;;  %v2165_v7 = vshrl.u32 %v2068_v13, 16 }
 0x2e3   : > { %v2189_v25 = vshrl.u32 %v2076_v19, 16 }
 0x2e4   : > { %v2089_v34 = vrot.slane %v2088_v22, 4  ;;  %v2092_v56 = vsel %vm296_vm0, %v2088_v22, %v2091_v21  ;;  %v1879_v37 = vpop.f32.mrf.mxu3  ;;  %v2074_v43 = vsel %vm296_vm0, 0, %v2073_v41 }
 0x2e5   : > { %v2100_v6 = vperm.slane %v2092_v56, %v2852_v24  ;;  %v2173_v26 = vshrl.u32 %v2074_v43, 16 }
 0x2e6   : > { %v2090_v36 = vsel %vm296_vm0, %v2089_v34, %v2082_v62 }
 0x2e7   : > { %v2096_v42 = vperm.slane %v2090_v36, %v2852_v24  ;;  %v2103_v30 = vrot.slane %v2100_v6, 4  ;;  %v2179_v2 = vpack.i.b16 %v2100_v6, %v2072_v17  ;;  %v2182_v5 = vshrl.u32 %v2100_v6, 16 }
 0x2e9   : > { %v2101_v52 = vrot.slane %v2096_v42, 4  ;;  %v2104_v39 = vsel %vm296_vm0, 0, %v2103_v30  ;;  %v2163_v29 = vpack.i.b16 %v2096_v42, %v2068_v13  ;;  %v2166_v33 = vshrl.u32 %v2096_v42, 16 }
 0x2ea   : > { %v2183_v15 = vpack.i.b16 %v2182_v5, %v2181_v61  ;;  %v2187_v27 = vpack.i.b16 %v2104_v39, %v2076_v19  ;;  %v2190_v1 = vshrl.u32 %v2104_v39, 16  ;;  %v2225_v44 = vrot.slane %v2179_v2, 4 }
 0x2eb   : > { %v2102_v23 = vsel %vm296_vm0, 0, %v2101_v52  ;;  %v2167_v32 = vpack.i.b16 %v2166_v33, %v2165_v7 }
 0x2ec   : > { %v2174_v46 = vshrl.u32 %v2102_v23, 16  ;;  %v2231_v49 = vrot.slane %v2187_v27, 4  ;;  %v2253_v48 = vrot.slane %v2183_v15, 4  ;;  %v2171_v3 = vpack.i.b16 %v2102_v23, %v2074_v43 }
 0x2ed   : > { %v2191_v28 = vpack.i.b16 %v2190_v1, %v2189_v25  ;;  %v2226_v38 = vsel %vm296_vm0, %v2225_v44, %v2163_v29 }
 0x2ee   : > { %v2175_v14 = vpack.i.b16 %v2174_v46, %v2173_v26  ;;  %v2230_v18 = vperm.slane %v2226_v38, %v2845_v11  ;;  %v2232_v8 = vsel %vm296_vm0, %v2231_v49, %v2171_v3  ;;  %v2254_v53 = vsel %vm296_vm0, %v2253_v48, %v2167_v32 }
 0x2ef   : > { %v2236_v51 = vperm.slane %v2232_v8, %v2845_v11  ;;  %v2258_v20 = vperm.slane %v2254_v53, %v2845_v11  ;;  %v2259_v45 = vrot.slane %v2191_v28, 4 }
 0x2f0   : > { %v2239_v58 = vrot.slane %v2230_v18, 4 }
 0x2f1   : > { %v2260_v54 = vsel %vm296_vm0, %v2259_v45, %v2175_v14  ;;  %v2267_v59 = vrot.slane %v2258_v20, 4  ;;  %v2237_v60 = vrot.slane %v2236_v51, 4 }
 0x2f2   : > { %v2240_v0 = vsel %vm296_vm0, %v2236_v51, %v2239_v58  ;;  %v2264_v55 = vperm.slane %v2260_v54, %v2845_v11 }
 0x2f3   : > { %v2248_v12 = vperm.slane %v2240_v0, %v2852_v24  ;;  %v2238_v63 = vsel %vm296_vm0, %v2237_v60, %v2230_v18 }
 0x2f4   : > { %v2265_v4 = vrot.slane %v2264_v55, 4  ;;  %v2268_v16 = vsel %vm296_vm0, %v2264_v55, %v2267_v59  ;;  %v3446_v9 = vperm.slane %v2238_v63, %v2852_v24 }
 0x2f5   : > { %v2276_v10 = vperm.slane %v2268_v16, %v2852_v24  ;;  %v2251_v47 = vrot.slane %v2248_v12, 4  ;;  %v2352_v40 = vshrl.u32 %v2248_v12, 16 }
 0x2f6   : > { %v2249_v31 = vrot.slane %v3446_v9, 4  ;;  %v2266_v62 = vsel %vm296_vm0, %v2265_v4, %v2258_v20  ;;  %v2340_v33 = vshrl.u32 %v3446_v9, 16 }
 0x2f7   : > { %v2351_v57 = vpack.i.b16 %v2276_v10, %v2248_v12  ;;  %v2353_v13 = vshrl.u32 %v2276_v10, 16  ;;  %v3452_v17 = vperm.slane %v2266_v62, %v2852_v24  ;;  %v2279_v35 = vrot.slane %v2276_v10, 4 }
 0x2f8   : > { %v2250_v41 = vsel %vm296_vm0, 0, %v2249_v31  ;;  %v2252_v34 = vsel %vm296_vm0, 0, %v2251_v47 }
 0x2f9   : > { %v2397_v21 = vunpack.c.l.b16 %v2351_v57  ;;  %v2354_v22 = vpack.i.b16 %v2353_v13, %v2352_v40  ;;  %v2277_v50 = vrot.slane %v3452_v17, 4  ;;  %v2280_v56 = vsel %vm296_vm0, 0, %v2279_v35 }
 0x2fa   : > { %v2339_v37 = vpack.i.b16 %v3452_v17, %v3446_v9  ;;  %v2357_v30 = vpack.i.b16 %v2280_v56, %v2252_v34  ;;  %v2346_v2 = vshrl.u32 %v2250_v41, 16  ;;  %v2341_v52 = vshrl.u32 %v3452_v17, 16 }
 0x2fb   : > { %v2398_v6 = vpack.c.b16 %v2397_v21, %v2397_v21  ;;  %v2401_v36 = vunpack.c.l.b16 %v2354_v22  ;;  %v2278_v42 = vsel %vm296_vm0, 0, %v2277_v50  ;;  %v2359_v15 = vshrl.u32 %v2280_v56, 16 }
 0x2fc   : > { %v2347_v5 = vshrl.u32 %v2278_v42, 16  ;;  %v2345_v19 = vpack.i.b16 %v2278_v42, %v2250_v41  ;;  %v2405_v61 = vunpack.c.l.b16 %v2357_v30  ;;  %v2342_v44 = vpack.i.b16 %v2341_v52, %v2340_v33 }
 0x2fd   : > { %2399 = vrot.lane.b32.xlu1 %v2398_v6, %s2740_s6  ;;  %v2402_v43 = vpack.c.b16 %v2401_v36, %v2401_v36  ;;  %v2358_v26 = vshrl.u32 %v2252_v34, 16 }
 0x2fe   : > { %v2348_v7 = vpack.i.b16 %v2347_v5, %v2346_v2  ;;  %v2389_v29 = vunpack.c.l.b16 %v2345_v19  ;;  %v2406_v1 = vpack.c.b16 %v2405_v61, %v2405_v61  ;;  %v2385_v32 = vunpack.c.l.b16 %v2342_v44 }
 0x2ff   : > { %2403 = vrot.lane.b32.xlu2 %v2402_v43, %s2747_s13  ;;  %v2360_v23 = vpack.i.b16 %v2359_v15, %v2358_v26 }
 0x300   : > { %v2393_v39 = vunpack.c.l.b16 %v2348_v7  ;;  %v2390_v25 = vpack.c.b16 %v2389_v29, %v2389_v29  ;;  %v2386_v48 = vpack.c.b16 %v2385_v32, %v2385_v32 }
 0x301   : > { %v2409_v46 = vunpack.c.l.b16 %v2360_v23 }
 0x302   : > { %v2394_v27 = vpack.c.b16 %v2393_v39, %v2393_v39 }
 0x303   : > { %v2410_v3 = vpack.c.b16 %v2409_v46, %v2409_v46 }
 0x304   : > { %2395 = vrot.lane.b32.xlu0 %v2394_v27, %s2742_s8 }
 0x305   : > { %2407 = vrot.lane.b32.xlu1 %v2406_v1, %s2746_s12 }
 0x307   : > { %2391 = vrot.lane.b32.xlu2 %v2390_v25, %s2745_s11 }
 0x30b   : > { %v1896_v49 = vpop.f32.mrf.mxu0 }
 0x30c   : > { %v2041_v4 = vpack.c.bf16 %v1896_v49, %v1896_v49 }
 0x30d   : > { %2387 = vrot.lane.b32.xlu1 %v2386_v48, %s2744_s10 }
 0x30f   : > { %2411 = vrot.lane.b32.xlu2 %v2410_v3, %s2743_s9 }
 0x313   : > { %v1898_v28 = vpop.f32.mrf.mxu0 }
 0x318   : > { %v1934_v38 = vpop.f32.mrf.mxu2 }
 0x319   : > { %v1953_v14 = vpop.f32.mrf.mxu3  ;;  %v2043_v0 = vpack.c.bf16 %v1934_v38, %v1934_v38 }
 0x31a   : > { %v1915_v18 = vpop.f32.mrf.mxu1  ;;  %v2044_v16 = vpack.c.bf16 %v1953_v14, %v1953_v14 }
 0x31b   : > { %v2042_v31 = vpack.c.bf16 %v1915_v18, %v1915_v18 }
 0x320   : > { %v1936_v8 = vpop.f32.mrf.mxu2 }
 0x321   : > { %v1955_v53 = vpop.f32.mrf.mxu3 }
 0x322   : > { %v1917_v51 = vpop.f32.mrf.mxu1 }
 0x328   : > { %v2010_v20 = vpop.f32.mrf.mxu2 }
 0x329   : > { %v2029_v45 = vpop.f32.mrf.mxu3  ;;  %v2047_v58 = vpack.c.bf16 %v2010_v20, %v2010_v20 }
 0x32a   : > { %v2048_v54 = vpack.c.bf16 %v2029_v45, %v2029_v45  ;;  %v1972_v59 = vpop.f32.mrf.mxu0  ;;  %v1991_v60 = vpop.f32.mrf.mxu1 }
 0x32b   : > { %v2111_v55 = vrot.slane %v2047_v58, 4  ;;  %v2045_v12 = vpack.c.bf16 %v1972_v59, %v1972_v59  ;;  %v2046_v63 = vpack.c.bf16 %v1991_v60, %v1991_v60 }
 0x32c   : > { %v2139_v10 = vrot.slane %v2048_v54, 4 }
 0x32d   : > { %v2112_v62 = vsel %vm296_vm0, %v2111_v55, %v2043_v0  ;;  %v2105_v47 = vrot.slane %v2045_v12, 4  ;;  %v2133_v57 = vrot.slane %v2046_v63, 4 }
 0x32e   : > { %v2140_v40 = vsel %vm296_vm0, %v2139_v10, %v2044_v16  ;;  %v2116_v13 = vperm.slane %v2112_v62, %v2845_v11 }
 0x32f   : > { %v2144_v35 = vperm.slane %v2140_v40, %v2845_v11  ;;  %v2106_v21 = vsel %vm296_vm0, %v2105_v47, %v2041_v4  ;;  %v2134_v22 = vsel %vm296_vm0, %v2133_v57, %v2042_v31 }
 0x330   : > { %v2117_v41 = vrot.slane %v2116_v13, 4  ;;  %v2110_v50 = vperm.slane %v2106_v21, %v2845_v11  ;;  %v2138_v34 = vperm.slane %v2134_v22, %v2845_v11  ;;  %v2012_v56 = vpop.f32.mrf.mxu2 }
 0x331   : > { %v2145_v6 = vrot.slane %v2144_v35, 4  ;;  %v2031_v36 = vpop.f32.mrf.mxu3 }
 0x332   : > { %v2118_v42 = vsel %vm296_vm0, %v2117_v41, %v2110_v50  ;;  %v2119_v30 = vrot.slane %v2110_v50, 4  ;;  %v2147_v2 = vrot.slane %v2138_v34, 4  ;;  %v1974_v5 = vpop.f32.mrf.mxu0  ;;  %v1993_v43 = vpop.f32.mrf.mxu1 }
 0x333   : > { %v2124_v19 = vperm.slane %v2118_v42, %v2852_v24  ;;  %v2146_v7 = vsel %vm296_vm0, %v2145_v6, %v2138_v34 }
 0x334   : > { %v2120_v61 = vsel %vm296_vm0, %v2116_v13, %v2119_v30  ;;  %v2148_v52 = vsel %vm296_vm0, %v2144_v35, %v2147_v2  ;;  %v2152_v39 = vperm.slane %v2146_v7, %v2852_v24 }
 0x335   : > { %v2128_v29 = vperm.slane %v2120_v61, %v2852_v24  ;;  %v2129_v33 = vrot.slane %v2124_v19, 4  ;;  %v2156_v15 = vperm.slane %v2148_v52, %v2852_v24  ;;  %v2197_v27 = vshrl.u32 %v2124_v19, 16 }
 0x336   : > { %v2157_v1 = vrot.slane %v2152_v39, 4  ;;  %v2195_v23 = vpack.i.b16 %v2152_v39, %v2124_v19  ;;  %v2198_v49 = vshrl.u32 %v2152_v39, 16 }
 0x337   : > { %v2130_v44 = vsel %vm296_vm0, 0, %v2129_v33  ;;  %v2131_v26 = vrot.slane %v2128_v29, 4  ;;  %v2159_v25 = vrot.slane %v2156_v15, 4  ;;  %v2213_v32 = vshrl.u32 %v2128_v29, 16 }
 0x338   : > { %v2158_v46 = vsel %vm296_vm0, 0, %v2157_v1  ;;  %v2211_v48 = vpack.i.b16 %v2156_v15, %v2128_v29  ;;  %v2205_v28 = vshrl.u32 %v2130_v44, 16  ;;  %v2214_v8 = vshrl.u32 %v2156_v15, 16 }
 0x339   : > { %v2132_v3 = vsel %vm296_vm0, 0, %v2131_v26  ;;  %v2160_v38 = vsel %vm296_vm0, 0, %v2159_v25  ;;  %v2206_v14 = vshrl.u32 %v2158_v46, 16  ;;  %v2203_v59 = vpack.i.b16 %v2158_v46, %v2130_v44 }
 0x33a   : > { %v2221_v18 = vshrl.u32 %v2132_v3, 16  ;;  %v2222_v53 = vshrl.u32 %v2160_v38, 16  ;;  %v2281_v51 = vrot.slane %v2211_v48, 4  ;;  %v2219_v20 = vpack.i.b16 %v2160_v38, %v2132_v3 }
 0x33b   : > { %v2215_v45 = vpack.i.b16 %v2214_v8, %v2213_v32  ;;  %v2199_v55 = vpack.i.b16 %v2198_v49, %v2197_v27  ;;  %v2207_v63 = vpack.i.b16 %v2206_v14, %v2205_v28 }
 0x33c   : > { %v2223_v58 = vpack.i.b16 %v2222_v53, %v2221_v18  ;;  %v2282_v54 = vsel %vm296_vm0, %v2281_v51, %v2195_v23  ;;  %v2287_v0 = vrot.slane %v2219_v20, 4 }
 0x33d   : > { %v2286_v60 = vperm.slane %v2282_v54, %v2845_v11  ;;  %v2309_v12 = vrot.slane %v2215_v45, 4 }
 0x33e   : > { %v2315_v4 = vrot.slane %v2223_v58, 4  ;;  %v2288_v16 = vsel %vm296_vm0, %v2287_v0, %v2203_v59 }
 0x33f   : > { %v2295_v10 = vrot.slane %v2286_v60, 4  ;;  %v2292_v31 = vperm.slane %v2288_v16, %v2845_v11  ;;  %v2310_v62 = vsel %vm296_vm0, %v2309_v12, %v2199_v55 }
 0x340   : > { %v2316_v47 = vsel %vm296_vm0, %v2315_v4, %v2207_v63  ;;  %v2314_v57 = vperm.slane %v2310_v62, %v2845_v11 }
 0x341   : > { %v2320_v40 = vperm.slane %v2316_v47, %v2845_v11  ;;  %v2296_v13 = vsel %vm296_vm0, %v2292_v31, %v2295_v10  ;;  %v2293_v35 = vrot.slane %v2292_v31, 4 }
 0x342   : > { %v2323_v21 = vrot.slane %v2314_v57, 4  ;;  %v2304_v50 = vperm.slane %v2296_v13, %v2852_v24 }
 0x343   : > { %v2321_v22 = vrot.slane %v2320_v40, 4  ;;  %v2294_v41 = vsel %vm296_vm0, %v2293_v35, %v2286_v60 }
 0x344   : > { %v2324_v34 = vsel %vm296_vm0, %v2320_v40, %v2323_v21  ;;  %v2300_v56 = vperm.slane %v2294_v41, %v2852_v24  ;;  %v2307_v7 = vrot.slane %v2304_v50, 4  ;;  %v2376_v46 = vshrl.u32 %v2304_v50, 16 }
 0x345   : > { %v2322_v6 = vsel %vm296_vm0, %v2321_v22, %v2314_v57  ;;  %v2332_v36 = vperm.slane %v2324_v34, %v2852_v24 }
 0x346   : > { %v2328_v42 = vperm.slane %v2322_v6, %v2852_v24  ;;  %v2305_v11 = vrot.slane %v2300_v56, 4  ;;  %v2364_v33 = vshrl.u32 %v2300_v56, 16  ;;  %v2308_v28 = vsel %vm296_vm0, 0, %v2307_v7 }
 0x347   : > { %v2375_v30 = vpack.i.b16 %v2332_v36, %v2304_v50  ;;  %v2335_v61 = vrot.slane %v2332_v36, 4  ;;  %v2377_v44 = vshrl.u32 %v2332_v36, 16  ;;  %v2382_v8 = vshrl.u32 %v2308_v28, 16 }
 0x348   : > { %v2363_v2 = vpack.i.b16 %v2328_v42, %v2300_v56  ;;  %v2333_v5 = vrot.slane %v2328_v42, 4  ;;  %v2365_v43 = vshrl.u32 %v2328_v42, 16  ;;  %v2306_v19 = vsel %vm296_vm0, 0, %v2305_v11 }
 0x349   : > { %v2429_v52 = vunpack.c.l.b16 %v2375_v30  ;;  %v2370_v27 = vshrl.u32 %v2306_v19, 16  ;;  %v2336_v49 = vsel %vm296_vm0, 0, %v2335_v61  ;;  %v2378_v3 = vpack.i.b16 %v2377_v44, %v2376_v46 }
 0x34a   : > { %v2413_v39 = vunpack.c.l.b16 %v2363_v2  ;;  %v2334_v29 = vsel %vm296_vm0, 0, %v2333_v5  ;;  %v2366_v25 = vpack.i.b16 %v2365_v43, %v2364_v33  ;;  %v2383_v18 = vshrl.u32 %v2336_v49, 16 }
 0x34b   : > { %v2369_v15 = vpack.i.b16 %v2334_v29, %v2306_v19  ;;  %v2371_v1 = vshrl.u32 %v2334_v29, 16  ;;  %v2430_v26 = vpack.c.b16 %v2429_v52, %v2429_v52  ;;  %v2433_v53 = vunpack.c.l.b16 %v2378_v3 }
 0x34c   : > { %v2414_v24 = vpack.c.b16 %v2413_v39, %v2413_v39  ;;  %v2417_v38 = vunpack.c.l.b16 %v2366_v25  ;;  %v2384_v45 = vpack.i.b16 %v2383_v18, %v2382_v8  ;;  %v2381_v58 = vpack.i.b16 %v2336_v49, %v2308_v28 }
 0x34d   : > { %v2421_v23 = vunpack.c.l.b16 %v2369_v15  ;;  %v2372_v32 = vpack.i.b16 %v2371_v1, %v2370_v27  ;;  %2431 = vrot.lane.b32.xlu1 %v2430_v26, %s2734_s22  ;;  %v2434_v54 = vpack.c.b16 %v2433_v53, %v2433_v53  ;;  %vm2484_vm0 = vcmask 916480  }
 0x34e   : > { %2415 = vrot.lane.b32.xlu0 %v2414_v24, %s2741_s7  ;;  %v2418_v51 = vpack.c.b16 %v2417_v38, %v2417_v38  ;;  %v2441_v59 = vunpack.c.l.b16 %v2384_v45  ;;  %v2437_v60 = vunpack.c.l.b16 %v2381_v58 }
 0x34f   : > { %v2422_v48 = vpack.c.b16 %v2421_v23, %v2421_v23  ;;  %v2425_v14 = vunpack.c.l.b16 %v2372_v32 }
 0x350   : > { %v2442_v0 = vpack.c.b16 %v2441_v59, %v2441_v59  ;;  %v2438_v55 = vpack.c.b16 %v2437_v60, %v2437_v60 }
 0x351   : > { %2423 = vrot.lane.b32.xlu2 %v2422_v48, %s2736_s28  ;;  %v2426_v20 = vpack.c.b16 %v2425_v14, %v2425_v14 }
 0x355   : > { %2419 = vrot.lane.b32.xlu1 %v2418_v51, %s2735_s23  ;;  %s246_s23 = scalar_lea.vmem %s3534_s4, %s2586_s17 }
 0x356   : > { %2427 = vrot.lane.b32.xlu0 %v2426_v20, %s2737_s29 }
 0x359   : > { %2435 = vrot.lane.b32.xlu2 %v2434_v54, %s2739_s5  ;;  %v2404_v4 = vpop.permute.xlu2 %2403 }
 0x35d   : > { %2443 = vrot.lane.b32.xlu1 %v2442_v0, %s2733_s21 }
 0x35e   : > { %2439 = vrot.lane.b32.xlu0 %v2438_v55, %s2738_s30 }
 0x361   : > { %v2392_v10 = vpop.permute.xlu2 %2391 }
 0x369   : > { %v2412_v40 = vpop.permute.xlu2 %2411 }
 0x36f   : > { %v2400_v12 = vpop.permute.xlu1 %2399 }
 0x376   : > { %v2396_v62 = vpop.permute.xlu0 %2395 }
 0x377   : > { %v2408_v63 = vpop.permute.xlu1 %2407 }
 0x37f   : > { %v2388_v16 = vpop.permute.xlu1 %2387 }
 0x380   : > { %v2447_v31 = vsel %vm1206_vm1, %v2339_v37, %v2388_v16  ;;  %vm2487_vm1 = vcmask 982016  }
 0x381   : > { %v2450_v47 = vsel %vm2448_vm4, %v2447_v31, %v2392_v10 }
 0x382   : > { %v2453_v57 = vsel %vm2451_vm5, %v2450_v47, %v2396_v62 }
 0x383   : > { %v2456_v13 = vsel %vm2454_vm6, %v2453_v57, %v2400_v12 }
 0x384   : > { %v2459_v22 = vsel %vm2457_vm7, %v2456_v13, %v2404_v4 }
 0x385   : > { %v2462_v41 = vsel %vm2460_vm8, %v2459_v22, %v2408_v63 }
 0x386   : > { %v2465_v9 = vsel %vm2463_vm9, %v2462_v41, %v2412_v40 }
 0x3ab   : > { %v2424_v50 = vpop.permute.xlu2 %2423 }
 0x3b3   : > { %v2436_v11 = vpop.permute.xlu2 %2435 }
 0x3bf   : > { %v2432_v35 = vpop.permute.xlu1 %2431 }
 0x3c0   : > { %v2416_v21 = vpop.permute.xlu0 %2415 }
 0x3c1   : > { %v2468_v17 = vsel %vm2466_vm10, %v2465_v9, %v2416_v21 }
 0x3c7   : > { %v2420_v37 = vpop.permute.xlu1 %2419 }
 0x3c8   : > { %v2428_v34 = vpop.permute.xlu0 %2427  ;;  %v2471_v56 = vsel %vm2469_vm11, %v2468_v17, %v2420_v37 }
 0x3c9   : > { %v2474_v6 = vsel %vm2472_vm12, %v2471_v56, %v2424_v50 }
 0x3ca   : > { %v2477_v36 = vsel %vm2475_vm13, %v2474_v6, %v2428_v34 }
 0x3cb   : > { %v2480_v42 = vsel %vm2478_vm14, %v2477_v36, %v2432_v35 }
 0x3cc   : > { %v2483_v30 = vsel %vm2481_vm15, %v2480_v42, %v2436_v11 }
 0x3cf   : > { %v2444_v5 = vpop.permute.xlu1 %2443 }
 0x3d0   : > { %v2440_v2 = vpop.permute.xlu0 %2439 }
 0x3d1   : > { %v2486_v43 = vsel %vm2484_vm0, %v2483_v30, %v2440_v2 }
 0x3d2   : > { %v2489_v19 = vsel %vm2487_vm1, %v2486_v43, %v2444_v5 }
 0x3d3   : > { %2491 = vst [vmem:[%s246_s23] sm:$0xf] %v2489_v19 }
 0x3d4 PF: > { %s14_s15 = sadd.s32 1, %s2731_s15  }
 0x3d5   : > { %p11_p4 = scmp.ge.s32.totalorder %s14_s15, 4  }
 0x3d7   :  { %13 = sbr.rel (!%p11_p4) target bundleno = 1 (0x1), region = 75 }

// kernel: fusionnet_forward.9
= control target key start
LH: loop header
LB: loop body
LE: loop exit
PB: predicated region body
PF: predicated region fallthrough
CT: control target
= control target key end

     0   :  { %s2966_s15 = smov 0   ;;  %s3877_s0 = inlined_call_operand.vmem [shape: bf16[2,8,128], index: 0, kind: input, shape index: {}]   ;;  %s3878_s1 = inlined_call_operand.vmem [shape: bf16[2,8,128], index: 1, kind: input, shape index: {}]   ;;  %s3879_s2 = inlined_call_operand.vmem [shape: bf16[2,8,128], index: 2, kind: input, shape index: {}]   ;;  %s3880_s3 = inlined_call_operand.vmem [shape: bf16[2,4,8,8], index: 3, kind: input, shape index: {}]   ;;  %s3881_s4 = inlined_call_operand.vmem [shape: bf16[2,8,128], index: 4, kind: output, shape index: {}]  }
   0x1 LB: > { %s2772_s16 = sadd.s32 4294967295, %s2922_s15   ;;  %p2776_p0 = scmp.ge.s32.totalorder %s2922_s15, 1  ;;  %s2922_s15 = sphi %s2966_s15, %s14_s15  }
   0x2   : > { %p189_p1 = scmp.lt.s32.totalorder %s2922_s15, 3 }
   0x4   : > { %p190_p2 = pnand %p2776_p0, %p189_p1 }
   0x5   : > { %p226_p3 = scmp.lt.s32.totalorder (!%p190_p2), %s2772_s16, 1  ;;  %s2924_s21 = smov (!%p190_p2), 120  }
   0x6   : > { %193 = sbr.rel (%p190_p2) target bundleno = 1008 (0x3f0), region = 36  ;;  %s2925_s22 = smov (!%p190_p2), 96  }
   0x7   : > { %s2926_s23 = smov (!%p190_p2), 72   ;;  %s2927_s24 = smov (!%p190_p2), 80  }
   0x8   : > { %s2928_s25 = smov (!%p190_p2), 88   ;;  %s2929_s26 = smov (!%p190_p2), 112  }
   0x9   : > { %s2930_s30 = smov (!%p190_p2), 104   ;;  %s2931_s5 = smov (!%p190_p2), 32  }
   0xa   : > { %s2932_s6 = smov (!%p190_p2), 24   ;;  %s2933_s7 = smov (!%p190_p2), 64  }
   0xb   : > { %s3883_s16 = smov (!%p226_p3, %s2772_s16), 1  ;;  %s2934_s8 = smov 56   ;;  %v2939_v5 = vmov 1983009808   ;;  %vm296_vm0 = vcmask 1047556   ;;  %vm1398_vm1 = vcmask 64512  }
   0xc   : > { %s2977_s17 = sshll.u32 %s3883_s16, 2  ;;  %s2935_s9 = smov 16   ;;  %v299_v6 = vunpack.c.l.s4 %v2939_v5  ;;  %v2940_v12 = vmov 1934713408   ;;  %vm1922_vm2 = vcmask 1043456   ;;  %vm2639_vm3 = vcmask 130048  }
   0xd   : > { %s233_s20 = scalar_lea.vmem %s3878_s1, %s2977_s17  ;;  %s229_s29 = scalar_lea.vmem %s3877_s0, %s2977_s17  ;;  %v313_v13 = vunpack.c.l.s4 %v2940_v12  ;;  %vm2642_vm4 = vcmask 195584   ;;  %vm2645_vm5 = vcmask 261120   ;;  %vm2648_vm6 = vcmask 326656  }
   0xe   : > { %v632_v0 = vld [vmem:[%s233_s20] sm:$0xf]  ;;  %s2936_s10 = smov 8   ;;  %s2937_s11 = smov 48   ;;  %v3036_v10 = vunpack.c.0.s8 %v299_v6  ;;  %vm2651_vm7 = vcmask 392192   ;;  %vm2654_vm8 = vcmask 457728  }
   0xf   : > { %634 = vrot.lane.b32.xlu1 %v632_v0, %s2924_s21  ;;  %643 = vrot.lane.b32.xlu0 %v632_v0, %s2925_s22  ;;  %v2993_v1 = vld [vmem:[%s229_s29] sm:$0xf]  ;;  %s2938_s12 = smov 40   ;;  %v3041_v20 = vunpack.c.0.s8 %v313_v13  ;;  %s237_s18 = scalar_lea.vmem %s3879_s2, %s2977_s17  ;;  %vm2657_vm9 = vcmask 523264   ;;  %vm2660_vm10 = vcmask 588800   ;;  %vm2663_vm11 = vcmask 654336  }
  0x10   : > { %652 = vrot.lane.b32.xlu2 %v632_v0, %s2926_s23  ;;  %s2817_s19 = sshll.u32 %s3883_s16, 4  ;;  %vm2666_vm12 = vcmask 719872   ;;  %vm2669_vm13 = vcmask 785408   ;;  %vm2672_vm14 = vcmask 850944   ;;  %vm2675_vm15 = vcmask 916480  }
  0x11   : > { %s3424_s28 = scalar_lea.vmem %s3880_s3, %s2817_s19 }
  0x17   : > { %649 = vrot.lane.b32.xlu1 %v632_v0, %s2927_s24  ;;  %646 = vrot.lane.b32.xlu0 %v632_v0, %s2928_s25 }
  0x18   : > { %637 = vrot.lane.b32.xlu2 %v632_v0, %s2929_s26 }
  0x1f   : > { %640 = vrot.lane.b32.xlu0 %v632_v0, %s2930_s30  ;;  %259 = vrot.lane.b32.xlu1 %v2993_v1, %s2925_s22 }
  0x20   : > { %262 = vrot.lane.b32.xlu2 %v2993_v1, %s2928_s25 }
  0x27   : > { %250 = vrot.lane.b32.xlu0 %v2993_v1, %s2924_s21  ;;  %265 = vrot.lane.b32.xlu1 %v2993_v1, %s2927_s24 }
  0x28   : > { %268 = vrot.lane.b32.xlu2 %v2993_v1, %s2926_s23 }
  0x2f   : > { %253 = vrot.lane.b32.xlu0 %v2993_v1, %s2929_s26  ;;  %256 = vrot.lane.b32.xlu1 %v2993_v1, %s2930_s30 }
  0x30   : > { %667 = vrot.lane.b32.xlu2 %v632_v0, %s2931_s5 }
  0x37   : > { %670 = vrot.lane.b32.xlu0 %v632_v0, %s2932_s6  ;;  %655 = vrot.lane.b32.xlu1 %v632_v0, %s2933_s7 }
  0x38   : > { %658 = vrot.lane.b32.xlu2 %v632_v0, %s2934_s8 }
  0x3f   : > { %673 = vrot.lane.b32.xlu0 %v632_v0, %s2935_s9  ;;  %676 = vrot.lane.b32.xlu1 %v632_v0, %s2936_s10 }
  0x40   : > { %661 = vrot.lane.b32.xlu2 %v632_v0, %s2937_s11 }
  0x47   : > { %664 = vrot.lane.b32.xlu0 %v632_v0, %s2938_s12  ;;  %283 = vrot.lane.b32.xlu1 %v2993_v1, %s2931_s5 }
  0x48   : > { %286 = vrot.lane.b32.xlu2 %v2993_v1, %s2932_s6 }
  0x4f   : > { %271 = vrot.lane.b32.xlu0 %v2993_v1, %s2933_s7  ;;  %274 = vrot.lane.b32.xlu1 %v2993_v1, %s2934_s8 }
  0x50   : > { %289 = vrot.lane.b32.xlu2 %v2993_v1, %s2935_s9 }
  0x57   : > { %292 = vrot.lane.b32.xlu0 %v2993_v1, %s2936_s10  ;;  %277 = vrot.lane.b32.xlu1 %v2993_v1, %s2937_s11 }
  0x58   : > { %280 = vrot.lane.b32.xlu2 %v2993_v1, %s2938_s12 }
  0x6a   : > { %v653_v2 = vpop.permute.xlu2 %652 }
  0x6b   : > { %v713_v28 = vrot.slane %v653_v2, 4 }
  0x72   : > { %v638_v3 = vpop.permute.xlu2 %637 }
  0x7a   : > { %v3034_v9 = vpop.permute.xlu2 %262 }
  0x7b   : > { %v324_v48 = vrot.slane %v3034_v9, 4 }
  0x81   : > { %v635_v4 = vpop.permute.xlu1 %634  ;;  %v644_v7 = vpop.permute.xlu0 %643 }
  0x82   : > { %v679_v8 = vrot.slane %v644_v7, 4  ;;  %v3044_v22 = vpop.permute.xlu2 %268 }
  0x84   : > { %v680_v11 = vsel %vm296_vm0, %v679_v8, %v632_v0 }
  0x85   : > { %v684_v14 = vperm.slane %v680_v11, %v3036_v10 }
  0x87   : > { %v693_v23 = vrot.slane %v684_v14, 4 }
  0x89   : > { %v650_v15 = vpop.permute.xlu1 %649  ;;  %v647_v16 = vpop.permute.xlu0 %646 }
  0x8a   : > { %v685_v17 = vrot.slane %v650_v15, 4  ;;  %v707_v18 = vrot.slane %v647_v16, 4  ;;  %v3059_v45 = vpop.permute.xlu2 %667 }
  0x8c   : > { %v708_v19 = vsel %vm296_vm0, %v707_v18, %v635_v4  ;;  %v686_v21 = vsel %vm296_vm0, %v685_v17, %v638_v3 }
  0x8d   : > { %v690_v24 = vperm.slane %v686_v21, %v3036_v10  ;;  %v712_v25 = vperm.slane %v708_v19, %v3036_v10 }
  0x8f   : > { %v691_v26 = vrot.slane %v690_v24, 4  ;;  %v694_v27 = vsel %vm296_vm0, %v690_v24, %v693_v23  ;;  %v721_v36 = vrot.slane %v712_v25, 4 }
  0x90   : > { %v702_v29 = vperm.slane %v694_v27, %v3041_v20 }
  0x91   : > { %v692_v30 = vsel %vm296_vm0, %v691_v26, %v684_v14  ;;  %v641_v31 = vpop.permute.xlu0 %640  ;;  %v260_v32 = vpop.permute.xlu1 %259  ;;  %v330_v14 = vrot.slane %v3044_v22, 4 }
  0x92   : > { %v698_v33 = vperm.slane %v692_v30, %v3041_v20  ;;  %v705_v34 = vrot.slane %v702_v29, 4  ;;  %v714_v35 = vsel %vm296_vm0, %v713_v28, %v641_v31  ;;  %v295_v38 = vrot.slane %v260_v32, 4  ;;  %v3074_v23 = vpop.permute.xlu2 %658 }
  0x93   : > { %v718_v37 = vperm.slane %v714_v35, %v3036_v10  ;;  %v811_v46 = vshrl.u32 %v702_v29, 16 }
  0x94   : > { %v703_v39 = vrot.slane %v698_v33, 4  ;;  %v706_v42 = vsel %vm296_vm0, 0, %v705_v34  ;;  %v297_v44 = vsel %vm296_vm0, %v295_v38, %v2993_v1  ;;  %v795_v54 = vshrl.u32 %v698_v33, 16 }
  0x95   : > { %v719_v40 = vrot.slane %v718_v37, 4  ;;  %v722_v41 = vsel %vm296_vm0, %v718_v37, %v721_v36  ;;  %v819_v55 = vshrl.u32 %v706_v42, 16  ;;  %v301_v56 = vperm.slane %v297_v44, %v3036_v10 }
  0x96   : > { %v730_v43 = vperm.slane %v722_v41, %v3041_v20  ;;  %v704_v53 = vsel %vm296_vm0, 0, %v703_v39  ;;  %v735_v38 = vrot.slane %v3059_v45, 4 }
  0x97   : > { %v720_v47 = vsel %vm296_vm0, %v719_v40, %v712_v25  ;;  %v803_v3 = vshrl.u32 %v704_v53, 16  ;;  %v310_v26 = vrot.slane %v301_v56, 4 }
  0x98   : > { %v726_v49 = vperm.slane %v720_v47, %v3041_v20  ;;  %v733_v50 = vrot.slane %v730_v43, 4  ;;  %v809_v51 = vpack.i.b16 %v730_v43, %v702_v29  ;;  %v812_v52 = vshrl.u32 %v730_v43, 16 }
  0x99   : > { %v251_v57 = vpop.permute.xlu0 %250  ;;  %v266_v58 = vpop.permute.xlu1 %265 }
  0x9a   : > { %v731_v59 = vrot.slane %v726_v49, 4  ;;  %v734_v60 = vsel %vm296_vm0, 0, %v733_v50  ;;  %v793_v61 = vpack.i.b16 %v726_v49, %v698_v33  ;;  %v796_v62 = vshrl.u32 %v726_v49, 16 }
  0x9b   : > { %v813_v63 = vpack.i.b16 %v812_v52, %v811_v46  ;;  %v817_v0 = vpack.i.b16 %v734_v60, %v706_v42  ;;  %v820_v1 = vshrl.u32 %v734_v60, 16  ;;  %v855_v2 = vrot.slane %v809_v51, 4 }
  0x9c   : > { %v732_v4 = vsel %vm296_vm0, 0, %v731_v59  ;;  %v797_v5 = vpack.i.b16 %v796_v62, %v795_v54  ;;  %v325_v6 = vsel %vm296_vm0, %v324_v48, %v251_v57  ;;  %v302_v21 = vrot.slane %v266_v58, 4 }
  0x9d   : > { %v801_v7 = vpack.i.b16 %v732_v4, %v704_v53  ;;  %v804_v8 = vshrl.u32 %v732_v4, 16  ;;  %v821_v9 = vpack.i.b16 %v820_v1, %v819_v55  ;;  %v861_v11 = vrot.slane %v817_v0, 4 }
  0x9e   : > { %v883_v12 = vrot.slane %v813_v63, 4  ;;  %v329_v13 = vperm.slane %v325_v6, %v3036_v10  ;;  %v856_v15 = vsel %vm296_vm0, %v855_v2, %v793_v61 }
  0x9f   : > { %v889_v16 = vrot.slane %v821_v9, 4  ;;  %v805_v17 = vpack.i.b16 %v804_v8, %v803_v3  ;;  %v860_v18 = vperm.slane %v856_v15, %v3036_v10  ;;  %v862_v19 = vsel %vm296_vm0, %v861_v11, %v801_v7  ;;  %v3110_v3 = vpop.permute.xlu2 %661 }
  0xa0   : > { %v866_v24 = vperm.slane %v862_v19, %v3036_v10  ;;  %v884_v25 = vsel %vm296_vm0, %v883_v12, %v797_v5  ;;  %v338_v34 = vrot.slane %v329_v13, 4 }
  0xa1   : > { %v254_v27 = vpop.permute.xlu0 %253  ;;  %v257_v28 = vpop.permute.xlu1 %256  ;;  %v890_v22 = vsel %vm296_vm0, %v889_v16, %v805_v17  ;;  %v869_v29 = vrot.slane %v860_v18, 4  ;;  %v888_v37 = vperm.slane %v884_v25, %v3036_v10 }
  0xa2   : > { %v303_v30 = vsel %vm296_vm0, %v302_v21, %v254_v27  ;;  %v331_v31 = vsel %vm296_vm0, %v330_v14, %v257_v28  ;;  %v867_v32 = vrot.slane %v866_v24, 4  ;;  %v894_v33 = vperm.slane %v890_v22, %v3036_v10 }
  0xa3   : > { %v307_v35 = vperm.slane %v303_v30, %v3036_v10  ;;  %v335_v36 = vperm.slane %v331_v31, %v3036_v10  ;;  %v870_v40 = vsel %vm296_vm0, %v866_v24, %v869_v29  ;;  %v897_v52 = vrot.slane %v888_v37, 4 }
  0xa4   : > { %v895_v39 = vrot.slane %v894_v33, 4  ;;  %v868_v48 = vsel %vm296_vm0, %v867_v32, %v860_v18 }
  0xa5   : > { %v308_v41 = vrot.slane %v307_v35, 4  ;;  %v311_v42 = vsel %vm296_vm0, %v307_v35, %v310_v26  ;;  %v336_v43 = vrot.slane %v335_v36, 4  ;;  %v339_v44 = vsel %vm296_vm0, %v335_v36, %v338_v34 }
  0xa6   : > { %v319_v46 = vperm.slane %v311_v42, %v3041_v20  ;;  %v347_v47 = vperm.slane %v339_v44, %v3041_v20  ;;  %v896_v49 = vsel %vm296_vm0, %v895_v39, %v888_v37  ;;  %v874_v62 = vperm.slane %v868_v48, %v3041_v20 }
  0xa7   : > { %v309_v45 = vsel %vm296_vm0, %v308_v41, %v301_v56  ;;  %v337_v50 = vsel %vm296_vm0, %v336_v43, %v329_v13  ;;  %v902_v51 = vperm.slane %v896_v49, %v3041_v20  ;;  %v3104_v56 = vperm.slane %v870_v40, %v3041_v20  ;;  %v3152_v49 = vpop.permute.xlu2 %286 }
  0xa8   : > { %v3097_v53 = vperm.slane %v309_v45, %v3041_v20  ;;  %v322_v54 = vrot.slane %v319_v46, 4  ;;  %v428_v55 = vshrl.u32 %v319_v46, 16  ;;  %v3100_v57 = vperm.slane %v337_v50, %v3041_v20 }
  0xa9   : > { %v350_v58 = vrot.slane %v347_v47, 4  ;;  %v429_v59 = vshrl.u32 %v347_v47, 16  ;;  %v671_v60 = vpop.permute.xlu0 %670  ;;  %v656_v61 = vpop.permute.xlu1 %655  ;;  %v426_v6 = vpack.i.b16 %v347_v47, %v319_v46  ;;  %v969_v7 = vpack.i.b16 %v902_v51, %v874_v62 }
  0xaa   : > { %v320_v63 = vrot.slane %v3097_v53, 4  ;;  %v323_v0 = vsel %vm296_vm0, 0, %v322_v54  ;;  %v412_v1 = vshrl.u32 %v3097_v53, 16  ;;  %v348_v2 = vrot.slane %v3100_v57, 4 }
  0xab   : > { %v351_v4 = vsel %vm296_vm0, 0, %v350_v58  ;;  %v413_v5 = vshrl.u32 %v3100_v57, 16  ;;  %v3120_v11 = vpack.i.b16 %v429_v59, %v428_v55  ;;  %v436_v14 = vshrl.u32 %v323_v0, 16 }
  0xac   : > { %v3115_v8 = vsel %vm296_vm0, 0, %v320_v63  ;;  %v3118_v9 = vsel %vm296_vm0, 0, %v348_v2  ;;  %v434_v12 = vpack.i.b16 %v351_v4, %v323_v0  ;;  %v410_v15 = vpack.i.b16 %v3100_v57, %v3097_v53 }
  0xad   : > { %v420_v13 = vshrl.u32 %v3115_v8, 16  ;;  %v898_v16 = vsel %vm296_vm0, %v894_v33, %v897_v52  ;;  %v3126_v17 = vpack.i.b16 %v413_v5, %v412_v1  ;;  %v418_v18 = vpack.i.b16 %v3118_v9, %v3115_v8 }
  0xae   : > { %v421_v19 = vshrl.u32 %v3118_v9, 16  ;;  %v437_v21 = vshrl.u32 %v351_v4, 16  ;;  %v3131_v24 = vrot.slane %v426_v6, 4  ;;  %v763_v25 = vrot.slane %v671_v60, 4 }
  0xaf   : > { %v736_v26 = vsel %vm296_vm0, %v735_v38, %v656_v61  ;;  %v1403_v27 = vsel %vm1398_vm1, %v969_v7, 0  ;;  %v478_v28 = vrot.slane %v434_v12, 4  ;;  %v500_v22 = vrot.slane %v3120_v11, 4 }
  0xb0   : > { %1412 = vmatpush.bf16.xpose.msra.mxu0 %v1403_v27  ;;  %v906_v29 = vperm.slane %v898_v16, %v3041_v20  ;;  %v970_v30 = vshrl.u32 %v874_v62, 16  ;;  %v764_v31 = vsel %vm296_vm0, %v763_v25, %v3074_v23  ;;  %v971_v32 = vshrl.u32 %v902_v51, 16 }
  0xb1   : > { %v879_v33 = vrot.slane %v874_v62, 4  ;;  %v907_v34 = vrot.slane %v902_v51, 4  ;;  %v674_v35 = vpop.permute.xlu0 %673  ;;  %v677_v36 = vpop.permute.xlu1 %676  ;;  %v3139_v37 = vpack.i.b16 %v421_v19, %v420_v13  ;;  %v3141_v38 = vpack.i.b16 %v437_v21, %v436_v14 }
  0xb2   : > { %v740_v39 = vperm.slane %v736_v26, %v3036_v10  ;;  %v981_v40 = vpack.i.b16 %v906_v29, %v3104_v56  ;;  %v3146_v41 = vperm.slane %v764_v31, %v3036_v10  ;;  %v972_v42 = vpack.i.b16 %v971_v32, %v970_v30 }
  0xb3   : > { %v880_v43 = vsel %vm296_vm0, 0, %v879_v33  ;;  %v908_v23 = vsel %vm296_vm0, 0, %v907_v34  ;;  %v982_v47 = vshrl.u32 %v3104_v56, 16  ;;  %v983_v48 = vshrl.u32 %v906_v29, 16  ;;  %v3189_v33 = vpop.permute.xlu2 %289 }
  0xb4   : > { %v1479_v44 = vsel %vm1398_vm1, %v981_v40, 0  ;;  %v975_v46 = vpack.i.b16 %v908_v23, %v880_v43  ;;  %v1422_v45 = vsel %vm1398_vm1, %v972_v42, 0  ;;  %v881_v50 = vrot.slane %v3104_v56, 4 }
  0xb5   : > { %v909_v51 = vrot.slane %v906_v29, 4  ;;  %v976_v52 = vshrl.u32 %v880_v43, 16  ;;  %1431 = vmatpush.bf16.xpose.msra.mxu1 %v1422_v45  ;;  %v984_v55 = vpack.i.b16 %v983_v48, %v982_v47  ;;  %v977_v58 = vshrl.u32 %v908_v23, 16 }
  0xb6   : > { %v1441_v54 = vsel %vm1398_vm1, %v975_v46, 0  ;;  %v741_v59 = vrot.slane %v674_v35, 4  ;;  %v749_v60 = vrot.slane %v740_v39, 4  ;;  %v882_v61 = vsel %vm296_vm0, 0, %v881_v50  ;;  %v3207_v50 = vld [vmem:[%s237_s18] sm:$0xf] }
  0xb7   : > { %1450 = vmatpush.bf16.xpose.msra.mxu2 %v1441_v54  ;;  %v910_v62 = vsel %vm296_vm0, 0, %v909_v51  ;;  %v769_v63 = vrot.slane %v677_v36, 4  ;;  %v777_v0 = vrot.slane %v3146_v41, 4  ;;  %v1498_v1 = vsel %vm1398_vm1, %v984_v55, 0  ;;  %1026 = vrot.lane.b32.xlu1 %v3207_v50, %s2925_s22 }
  0xb8   : > { %1488 = vmatpush.bf16.xpose.msrb.mxu0 %v1479_v44  ;;  %v987_v56 = vpack.i.b16 %v910_v62, %v882_v61  ;;  %v978_v2 = vpack.i.b16 %v977_v58, %v976_v52  ;;  %v988_v4 = vshrl.u32 %v882_v61, 16  ;;  %v989_v5 = vshrl.u32 %v910_v62, 16  ;;  %1017 = vrot.lane.b32.xlu0 %v3207_v50, %s2924_s21 }
  0xb9   : > { %v742_v6 = vsel %vm296_vm0, %v741_v59, %v3110_v3  ;;  %v665_v7 = vpop.permute.xlu0 %664  ;;  %v479_v8 = vsel %vm296_vm0, %v478_v28, %v418_v18  ;;  %v3164_v9 = vpop.permute.xlu1 %283  ;;  %v506_v19 = vrot.slane %v3141_v38, 4  ;;  %v473_v18 = vsel %vm296_vm0, %v3131_v24, %v410_v15  ;;  %1029 = vrot.lane.b32.xlu2 %v3207_v50, %s2928_s25 }
  0xba   : > { %v1517_v12 = vsel %vm1398_vm1, %v987_v56, 0  ;;  %v1460_v13 = vsel %vm1398_vm1, %v978_v2, 0  ;;  %v746_v14 = vperm.slane %v742_v6, %v3036_v10  ;;  %v770_v16 = vsel %vm296_vm0, %v769_v63, %v665_v7 }
  0xbb   : > { %1469 = vmatpush.bf16.xpose.msra.mxu3 %v1460_v13  ;;  %v990_v21 = vpack.i.b16 %v989_v5, %v988_v4  ;;  %v774_v3 = vperm.slane %v770_v16, %v3036_v10  ;;  %v380_v27 = vrot.slane %v3152_v49, 4  ;;  %v3180_v28 = vperm.slane %v479_v8, %v3036_v10 }
  0xbc   : > { %v747_v25 = vrot.slane %v746_v14, 4  ;;  %v750_v26 = vsel %vm296_vm0, %v746_v14, %v749_v60  ;;  %v477_v15 = vperm.slane %v473_v18, %v3036_v10  ;;  %v352_v24 = vrot.slane %v3164_v9, 4 }
  0xbd   : > { %1507 = vmatpush.bf16.xpose.msrb.mxu1 %v1498_v1  ;;  %v1536_v29 = vsel %vm1398_vm1, %v990_v21, 0  ;;  %v758_v30 = vperm.slane %v750_v26, %v3041_v20  ;;  %v775_v31 = vrot.slane %v774_v3, 4  ;;  %v778_v32 = vsel %vm296_vm0, %v774_v3, %v777_v0  ;;  %v281_v21 = vpop.permute.xlu2 %280 }
  0xbe   : > { %v748_v53 = vsel %vm296_vm0, %v747_v25, %v740_v39  ;;  %v786_v57 = vperm.slane %v778_v32, %v3041_v20  ;;  %v484_v38 = vrot.slane %v3180_v28, 4  ;;  %v486_v52 = vrot.slane %v477_v15, 4 }
  0xbf   : > { %1526 = vmatpush.bf16.xpose.msrb.mxu2 %v1517_v12  ;;  %v3196_v34 = vperm.slane %v748_v53, %v3041_v20  ;;  %v761_v35 = vrot.slane %v758_v30, 4  ;;  %v776_v36 = vsel %vm296_vm0, %v775_v31, %v3146_v41  ;;  %v843_v39 = vshrl.u32 %v758_v30, 16  ;;  %1032 = vrot.lane.b32.xlu1 %v3207_v50, %s2927_s24 }
  0xc0   : > { %v3202_v40 = vperm.slane %v776_v36, %v3041_v20  ;;  %v789_v42 = vrot.slane %v786_v57, 4  ;;  %v844_v43 = vshrl.u32 %v786_v57, 16  ;;  %v841_v47 = vpack.i.b16 %v786_v57, %v758_v30  ;;  %1035 = vrot.lane.b32.xlu0 %v3207_v50, %s2926_s23 }
  0xc1   : > { %v759_v23 = vrot.slane %v3196_v34, 4  ;;  %v762_v44 = vsel %vm296_vm0, 0, %v761_v35  ;;  %v827_v46 = vshrl.u32 %v3196_v34, 16  ;;  %v272_v48 = vpop.permute.xlu0 %271  ;;  %v275_v45 = vpop.permute.xlu1 %274  ;;  %v501_v54 = vsel %vm296_vm0, %v500_v22, %v3126_v17  ;;  %1020 = vrot.lane.b32.xlu2 %v3207_v50, %s2929_s26 }
  0xc2   : > { %v787_v41 = vrot.slane %v3202_v40, 4  ;;  %v790_v51 = vsel %vm296_vm0, 0, %v789_v42  ;;  %v828_v58 = vshrl.u32 %v3202_v40, 16  ;;  %v485_v60 = vsel %vm296_vm0, %v484_v38, %v477_v15 }
  0xc3   : > { %1545 = vmatpush.bf16.xpose.msrb.mxu3 %v1536_v29  ;;  %v3220_v55 = vsel %vm296_vm0, 0, %v759_v23  ;;  %v849_v59 = vpack.i.b16 %v790_v51, %v762_v44  ;;  %v851_v11 = vshrl.u32 %v762_v44, 16  ;;  %v3229_v22 = vpack.i.b16 %v844_v43, %v843_v39 }
  0xc4   : > { %v3227_v17 = vsel %vm296_vm0, 0, %v787_v41  ;;  %v852_v61 = vshrl.u32 %v790_v51, 16  ;;  %v835_v62 = vshrl.u32 %v3220_v55, 16  ;;  %v825_v63 = vpack.i.b16 %v3202_v40, %v3196_v34 }
  0xc5   : > { %v3234_v0 = vpack.i.b16 %v828_v58, %v827_v46  ;;  %v3236_v1 = vrot.slane %v841_v47, 4  ;;  %v833_v56 = vpack.i.b16 %v3227_v17, %v3220_v55  ;;  %v836_v2 = vshrl.u32 %v3227_v17, 16 }
  0xc6   : > { %v491_v4 = vperm.slane %v485_v60, %v3041_v20  ;;  %v505_v5 = vperm.slane %v501_v54, %v3036_v10  ;;  %v3243_v6 = vrot.slane %v849_v59, 4  ;;  %v507_v7 = vsel %vm296_vm0, %v506_v19, %v3139_v37 }
  0xc7   : > { %v353_v8 = vsel %vm296_vm0, %v352_v24, %v272_v48  ;;  %v358_v9 = vrot.slane %v3189_v33, 4  ;;  %v3249_v12 = vpack.i.b16 %v852_v61, %v851_v11  ;;  %v939_v13 = vrot.slane %v3229_v22, 4  ;;  %1023 = vrot.lane.b32.xlu1 %v3207_v50, %s2930_s30 }
  0xc8   : > { %v511_v14 = vperm.slane %v507_v7, %v3036_v10  ;;  %v514_v16 = vrot.slane %v505_v5, 4  ;;  %v496_v3 = vrot.slane %v491_v4, 4  ;;  %v357_v18 = vperm.slane %v353_v8, %v3036_v10  ;;  %1050 = vrot.lane.b32.xlu0 %v3207_v50, %s2931_s5 }
  0xc9   : > { %v381_v25 = vsel %vm296_vm0, %v380_v27, %v275_v45  ;;  %v293_v37 = vpop.permute.xlu0 %292  ;;  %v487_v19 = vsel %vm296_vm0, %v3180_v28, %v486_v52  ;;  %v278_v26 = vpop.permute.xlu1 %277  ;;  %v3267_v49 = vpack.i.b16 %v836_v2, %v835_v62  ;;  %v945_v35 = vrot.slane %v3249_v12, 4  ;;  %1053 = vrot.lane.b32.xlu2 %v3207_v50, %s2932_s6 }
  0xca   : > { %v512_v29 = vrot.slane %v511_v14, 4  ;;  %v385_v30 = vperm.slane %v381_v25, %v3036_v10  ;;  %v386_v31 = vrot.slane %v293_v37, 4  ;;  %v3261_v32 = vperm.slane %v487_v19, %v3041_v20 }
  0xcb   : > { %v497_v27 = vsel %vm296_vm0, 0, %v496_v3  ;;  %v515_v28 = vsel %vm296_vm0, %v511_v14, %v514_v16  ;;  %v359_v53 = vsel %vm296_vm0, %v358_v9, %v278_v26  ;;  %v366_v15 = vrot.slane %v357_v18, 4 }
  0xcc   : > { %v513_v57 = vsel %vm296_vm0, %v512_v29, %v505_v5  ;;  %v394_v24 = vrot.slane %v385_v30, 4  ;;  %v387_v33 = vsel %vm296_vm0, %v386_v31, %v281_v21  ;;  %v363_v39 = vperm.slane %v359_v53, %v3036_v10 }
  0xcd   : > { %v519_v36 = vperm.slane %v513_v57, %v3041_v20  ;;  %v391_v38 = vperm.slane %v387_v33, %v3036_v10  ;;  %v587_v42 = vshrl.u32 %v491_v4, 16  ;;  %v593_v43 = vshrl.u32 %v497_v27, 16 }
  0xce   : > { %v3281_v23 = vperm.slane %v515_v28, %v3041_v20  ;;  %v599_v44 = vshrl.u32 %v3261_v32, 16  ;;  %v364_v51 = vrot.slane %v363_v39, 4  ;;  %v367_v52 = vsel %vm296_vm0, %v363_v39, %v366_v15 }
  0xcf   : > { %v586_v46 = vpack.i.b16 %v519_v36, %v491_v4  ;;  %v588_v47 = vshrl.u32 %v519_v36, 16  ;;  %v524_v48 = vrot.slane %v519_v36, 4  ;;  %v392_v45 = vrot.slane %v391_v38, 4  ;;  %1038 = vrot.lane.b32.xlu1 %v3207_v50, %s2933_s7 }
  0xd0   : > { %v395_v41 = vsel %vm296_vm0, %v391_v38, %v394_v24  ;;  %v498_v54 = vrot.slane %v3261_v32, 4  ;;  %v365_v4 = vsel %vm296_vm0, %v364_v51, %v357_v18  ;;  %v375_v8 = vperm.slane %v367_v52, %v3041_v20  ;;  %1041 = vrot.lane.b32.xlu0 %v3207_v50, %s2934_s8 }
  0xd1   : > { %2783 = vmatmul.msk.bf16.vlgmr.msra.gmra.mxu0 %vm1398_vm1, %v586_v46  ;;  %v589_v58 = vpack.i.b16 %v588_v47, %v587_v42  ;;  %v525_v59 = vsel %vm296_vm0, 0, %v524_v48  ;;  %v393_v60 = vsel %vm296_vm0, %v392_v45, %v385_v30  ;;  %v403_v11 = vperm.slane %v395_v41, %v3041_v20  ;;  %1056 = vrot.lane.b32.xlu2 %v3207_v50, %s2935_s9 }
  0xd2   : > { %v592_v61 = vpack.i.b16 %v525_v59, %v497_v27  ;;  %v594_v62 = vshrl.u32 %v525_v59, 16  ;;  %v399_v2 = vperm.slane %v393_v60, %v3041_v20  ;;  %v371_v7 = vperm.slane %v365_v4, %v3041_v20 }
  0xd3   : > { %2784 = vmatmul.msk.bf16.vlgmr.msra.gmra.mxu1 %vm1398_vm1, %v589_v58  ;;  %v406_v5 = vrot.slane %v403_v11, 4  ;;  %v912_v9 = vsel %vm296_vm0, %v3236_v1, %v825_v63  ;;  %v461_v3 = vshrl.u32 %v403_v11, 16  ;;  %v378_v37 = vrot.slane %v375_v8, 4 }
  0xd4   : > { %2785 = vmatmul.msk.bf16.vlgmr.msra.gmra.mxu2 %vm1398_vm1, %v592_v61  ;;  %v595_v14 = vpack.i.b16 %v594_v62, %v593_v43  ;;  %v404_v16 = vrot.slane %v399_v2, 4  ;;  %v445_v21 = vshrl.u32 %v399_v2, 16  ;;  %v376_v25 = vrot.slane %v371_v7, 4 }
  0xd5   : > { %v407_v18 = vsel %vm296_vm0, 0, %v406_v5  ;;  %v442_v19 = vpack.i.b16 %v399_v2, %v371_v7  ;;  %v444_v63 = vshrl.u32 %v371_v7, 16  ;;  %v458_v1 = vpack.i.b16 %v403_v11, %v375_v8 }
  0xd6   : > { %2786 = vmatmul.msk.bf16.vlgmr.msra.gmra.mxu3 %vm1398_vm1, %v595_v14  ;;  %v405_v34 = vsel %vm296_vm0, 0, %v404_v16  ;;  %v469_v40 = vshrl.u32 %v407_v18, 16  ;;  %v377_v29 = vsel %vm296_vm0, 0, %v376_v25  ;;  %v379_v30 = vsel %vm296_vm0, 0, %v378_v37 }
  0xd7   : > { %v453_v26 = vshrl.u32 %v405_v34, 16  ;;  %v460_v31 = vshrl.u32 %v375_v8, 16  ;;  %v450_v27 = vpack.i.b16 %v405_v34, %v377_v29  ;;  %v452_v28 = vshrl.u32 %v377_v29, 16 }
  0xd8   : > { %v466_v53 = vpack.i.b16 %v407_v18, %v379_v30  ;;  %v600_v57 = vshrl.u32 %v3281_v23, 16  ;;  %v446_v15 = vpack.i.b16 %v445_v21, %v444_v63  ;;  %v468_v33 = vshrl.u32 %v379_v30, 16 }
  0xd9   : > { %v462_v24 = vpack.i.b16 %v461_v3, %v460_v31  ;;  %v528_v36 = vrot.slane %v458_v1, 4  ;;  %v454_v38 = vpack.i.b16 %v453_v26, %v452_v28  ;;  %v526_v42 = vrot.slane %v3281_v23, 4 }
  0xda   : > { %v534_v39 = vrot.slane %v466_v53, 4  ;;  %v918_v43 = vsel %vm296_vm0, %v3243_v6, %v833_v56  ;;  %v470_v46 = vpack.i.b16 %v469_v40, %v468_v33  ;;  %v499_v45 = vsel %vm296_vm0, 0, %v498_v54 }
  0xdb   : > { %v529_v47 = vsel %vm296_vm0, %v528_v36, %v442_v19  ;;  %v556_v48 = vrot.slane %v462_v24, 4  ;;  %v598_v55 = vpack.i.b16 %v3281_v23, %v3261_v32  ;;  %v601_v56 = vpack.i.b16 %v600_v57, %v599_v44 }
  0xdc   : > { %v535_v17 = vsel %vm296_vm0, %v534_v39, %v450_v27  ;;  %v527_v6 = vsel %vm296_vm0, 0, %v526_v42  ;;  %v562_v52 = vrot.slane %v470_v46, 4  ;;  %v916_v54 = vperm.slane %v912_v9, %v3036_v10 }
  0xdd   : > { %v3335_v41 = vperm.slane %v535_v17, %v3036_v10  ;;  %v557_v51 = vsel %vm296_vm0, %v556_v48, %v446_v15  ;;  %v3340_v58 = vperm.slane %v529_v47, %v3036_v10  ;;  %v605_v59 = vshrl.u32 %v499_v45, 16 }
  0xde   : > { %v3343_v23 = vperm.slane %v557_v51, %v3036_v10  ;;  %v922_v32 = vperm.slane %v918_v43, %v3036_v10  ;;  %v563_v44 = vsel %vm296_vm0, %v562_v52, %v454_v38  ;;  %v940_v60 = vsel %vm296_vm0, %v939_v13, %v3234_v0 }
  0xdf   : > { %v946_v11 = vsel %vm296_vm0, %v945_v35, %v3267_v49  ;;  %v925_v61 = vrot.slane %v916_v54, 4  ;;  %v3356_v62 = vperm.slane %v563_v44, %v3036_v10  ;;  %v606_v2 = vshrl.u32 %v527_v6, 16 }
  0xe0   : > { %v923_v4 = vrot.slane %v922_v32, 4  ;;  %v944_v5 = vperm.slane %v940_v60, %v3036_v10  ;;  %v604_v7 = vpack.i.b16 %v527_v6, %v499_v45  ;;  %v950_v22 = vperm.slane %v946_v11, %v3036_v10 }
  0xe1   : > { %2787 = vmatmul.msk.bf16.vlgmr.msrb.gmra.mxu0 %vm1398_vm1, %v598_v55  ;;  %v926_v0 = vsel %vm296_vm0, %v922_v32, %v925_v61  ;;  %v540_v13 = vrot.slane %v3335_v41, 4  ;;  %v568_v8 = vrot.slane %v3356_v62, 4  ;;  %v542_v9 = vrot.slane %v3340_v58, 4 }
  0xe2   : > { %v924_v12 = vsel %vm296_vm0, %v923_v4, %v916_v54  ;;  %v934_v49 = vperm.slane %v926_v0, %v3041_v20  ;;  %v953_v35 = vrot.slane %v944_v5, 4  ;;  %v951_v16 = vrot.slane %v950_v22, 4 }
  0xe3   : > { %2788 = vmatmul.msk.bf16.vlgmr.msrb.gmra.mxu1 %vm1398_vm1, %v601_v56  ;;  %v930_v14 = vperm.slane %v924_v12, %v3041_v20  ;;  %v541_v21 = vsel %vm296_vm0, %v540_v13, %v3340_v58  ;;  %v607_v3 = vpack.i.b16 %v606_v2, %v605_v59  ;;  %v569_v37 = vsel %vm296_vm0, %v568_v8, %v3343_v23 }
  0xe4   : > { %2789 = vmatmul.msk.bf16.vlgmr.msrb.gmra.mxu2 %vm1398_vm1, %v604_v7  ;;  %v954_v18 = vsel %vm296_vm0, %v950_v22, %v953_v35  ;;  %v547_v25 = vperm.slane %v541_v21, %v3041_v20  ;;  %v952_v19 = vsel %vm296_vm0, %v951_v16, %v944_v5  ;;  %v1006_v63 = vshrl.u32 %v934_v49, 16 }
  0xe5   : > { %v935_v34 = vrot.slane %v930_v14, 4  ;;  %v962_v40 = vperm.slane %v954_v18, %v3041_v20  ;;  %v958_v1 = vperm.slane %v952_v19, %v3041_v20  ;;  %v994_v26 = vshrl.u32 %v930_v14, 16 }
  0xe6   : > { %2790 = vmatmul.msk.bf16.vlgmr.msrb.gmra.mxu3 %vm1398_vm1, %v607_v3  ;;  %v575_v29 = vperm.slane %v569_v37, %v3041_v20  ;;  %v937_v30 = vrot.slane %v934_v49, 4  ;;  %v611_v33 = vshrl.u32 %v547_v25, 16  ;;  %v552_v52 = vrot.slane %v547_v25, 4 }
  0xe7   : > { %v936_v31 = vsel %vm296_vm0, 0, %v935_v34  ;;  %v1005_v27 = vpack.i.b16 %v962_v40, %v934_v49  ;;  %v1007_v28 = vshrl.u32 %v962_v40, 16  ;;  %v965_v53 = vrot.slane %v962_v40, 4 }
  0xe8   : > { %v993_v57 = vpack.i.b16 %v958_v1, %v930_v14  ;;  %v995_v15 = vshrl.u32 %v958_v1, 16  ;;  %v963_v24 = vrot.slane %v958_v1, 4  ;;  %v1000_v36 = vshrl.u32 %v936_v31, 16 }
  0xe9   : > { %v1631_v38 = vsel %vm1398_vm1, %v1005_v27, 0  ;;  %v1008_v39 = vpack.i.b16 %v1007_v28, %v1006_v63  ;;  %v938_v42 = vsel %vm296_vm0, 0, %v937_v30  ;;  %v966_v48 = vsel %vm296_vm0, 0, %v965_v53 }
  0xea   : > { %v1555_v43 = vsel %vm1398_vm1, %v993_v57, 0  ;;  %v996_v46 = vpack.i.b16 %v995_v15, %v994_v26  ;;  %v964_v47 = vsel %vm296_vm0, 0, %v963_v24  ;;  %v1011_v56 = vpack.i.b16 %v966_v48, %v938_v42 }
  0xeb   : > { %1564 = vmatpush.bf16.xpose.msra.mxu0 %v1555_v43  ;;  %v999_v45 = vpack.i.b16 %v964_v47, %v936_v31  ;;  %v1001_v55 = vshrl.u32 %v964_v47, 16  ;;  %v1650_v17 = vsel %vm1398_vm1, %v1008_v39, 0  ;;  %v612_v51 = vshrl.u32 %v575_v29, 16 }
  0xec   : > { %v1574_v6 = vsel %vm1398_vm1, %v996_v46, 0  ;;  %v580_v54 = vrot.slane %v575_v29, 4  ;;  %v1669_v44 = vsel %vm1398_vm1, %v1011_v56, 0  ;;  %v1012_v60 = vshrl.u32 %v938_v42, 16  ;;  %v2819_v56 = vld [vmem:[%s3424_s28] sm:$0xff]  }
  0xed   : > { %1583 = vmatpush.bf16.xpose.msra.mxu1 %v1574_v6  ;;  %v1593_v59 = vsel %vm1398_vm1, %v999_v45, 0  ;;  %v1002_v32 = vpack.i.b16 %v1001_v55, %v1000_v36  ;;  %v610_v11 = vpack.i.b16 %v575_v29, %v547_v25  ;;  %v553_v61 = vsel %vm296_vm0, 0, %v552_v52 }
  0xee   : > { %1602 = vmatpush.bf16.xpose.msra.mxu2 %v1593_v59  ;;  %v581_v2 = vsel %vm296_vm0, 0, %v580_v54  ;;  %v1013_v4 = vshrl.u32 %v966_v48, 16  ;;  %v617_v7 = vshrl.u32 %v553_v61, 16  ;;  %v613_v0 = vpack.i.b16 %v612_v51, %v611_v33 }
  0xef   : > { %v1612_v5 = vsel %vm1398_vm1, %v1002_v32, 0  ;;  %v618_v22 = vshrl.u32 %v581_v2, 16  ;;  %v570_v12 = vrot.slane %v3343_v23, 4  ;;  %v616_v49 = vpack.i.b16 %v581_v2, %v553_v61 }
  0xf0   : > { %1621 = vmatpush.bf16.xpose.msra.mxu3 %v1612_v5  ;;  %v1014_v13 = vpack.i.b16 %v1013_v4, %v1012_v60  ;;  %v543_v35 = vsel %vm296_vm0, %v3335_v41, %v542_v9  ;;  %v3437_v61 = vunpack.c.l.bf16 %v2819_v56 }
  0xf1   : > { %v571_v14 = vsel %vm296_vm0, %v3356_v62, %v570_v12  ;;  %v619_v16 = vpack.i.b16 %v618_v22, %v617_v7  ;;  %v551_v21 = vperm.slane %v543_v35, %v3041_v20  ;;  %v3440_v7 = vunpack.c.h.bf16 %v2819_v56 }
  0xf2   : > { %2791 = vmatmul.msk.bf16.vlgmr.msra.gmra.mxu0 %vm1398_vm1, %v610_v11  ;;  %v1688_v8 = vsel %vm1398_vm1, %v1014_v13, 0  ;;  %v579_v23 = vperm.slane %v571_v14, %v3041_v20 }
  0xf3   : > { %1640 = vmatpush.bf16.xpose.msrb.mxu0 %v1631_v38  ;;  %v554_v41 = vrot.slane %v551_v21, 4  ;;  %v623_v9 = vshrl.u32 %v551_v21, 16 }
  0xf4   : > { %2792 = vmatmul.msk.bf16.vlgmr.msra.gmra.mxu1 %vm1398_vm1, %v613_v0  ;;  %v582_v58 = vrot.slane %v579_v23, 4  ;;  %v624_v3 = vshrl.u32 %v579_v23, 16  ;;  %v622_v25 = vpack.i.b16 %v579_v23, %v551_v21 }
  0xf5   : > { %1659 = vmatpush.bf16.xpose.msrb.mxu1 %v1650_v17  ;;  %2793 = vmatmul.msk.bf16.vlgmr.msra.gmra.mxu2 %vm1398_vm1, %v616_v49  ;;  %v555_v18 = vsel %vm296_vm0, 0, %v554_v41 }
  0xf6   : > { %1678 = vmatpush.bf16.xpose.msrb.mxu2 %v1669_v44  ;;  %v583_v62 = vsel %vm296_vm0, 0, %v582_v58  ;;  %v629_v37 = vshrl.u32 %v555_v18, 16  ;;  %v625_v34 = vpack.i.b16 %v624_v3, %v623_v9 }
  0xf7   : > { %2794 = vmatmul.msk.bf16.vlgmr.msra.gmra.mxu3 %vm1398_vm1, %v619_v16  ;;  %v630_v19 = vshrl.u32 %v583_v62, 16  ;;  %v628_v40 = vpack.i.b16 %v583_v62, %v555_v18 }
  0xf8   : > { %1697 = vmatpush.bf16.xpose.msrb.mxu3 %v1688_v8 }
  0xf9   : > { %v631_v63 = vpack.i.b16 %v630_v19, %v629_v37 }
 0x102   : > { %2795 = vmatmul.msk.bf16.vlgmr.msrb.gmra.mxu0 %vm1398_vm1, %v622_v25 }
 0x104   : > { %2796 = vmatmul.msk.bf16.vlgmr.msrb.gmra.mxu1 %vm1398_vm1, %v625_v34 }
 0x105   : > { %2797 = vmatmul.msk.bf16.vlgmr.msrb.gmra.mxu2 %vm1398_vm1, %v628_v40 }
 0x107   : > { %2798 = vmatmul.msk.bf16.vlgmr.msrb.gmra.mxu3 %vm1398_vm1, %v631_v63  ;;  %v2826_v63 = vld [vmem:[%s3424_s28 + $0x8] sm:$0xff]  }
 0x113   : > { %v1030_v30 = vpop.permute.xlu2 %1029 }
 0x114   : > { %v1090_v27 = vrot.slane %v1030_v30, 4 }
 0x11b   : > { %v1021_v39 = vpop.permute.xlu2 %1020 }
 0x129   : > { %v1027_v1 = vpop.permute.xlu1 %1026 }
 0x12a   : > { %v1062_v26 = vrot.slane %v1027_v1, 4  ;;  %v1018_v29 = vpop.permute.xlu0 %1017 }
 0x12b   : > { %v1091_v53 = vsel %vm296_vm0, %v1090_v27, %v1018_v29 }
 0x12c   : > { %v1063_v31 = vsel %vm296_vm0, %v1062_v26, %v3207_v50  ;;  %v1095_v15 = vperm.slane %v1091_v53, %v3036_v10  ;;  %v3455_v53 = vunpack.c.l.bf16 %v2826_v63 }
 0x12d   : > { %v1067_v57 = vperm.slane %v1063_v31, %v3036_v10 }
 0x12e   : > { %v1104_v42 = vrot.slane %v1095_v15, 4 }
 0x12f   : > { %v1076_v36 = vrot.slane %v1067_v57, 4 }
 0x131   : > { %v1033_v28 = vpop.permute.xlu1 %1032 }
 0x132   : > { %v1068_v24 = vrot.slane %v1033_v28, 4  ;;  %v1036_v33 = vpop.permute.xlu0 %1035 }
 0x133   : > { %v1096_v38 = vrot.slane %v1036_v33, 4 }
 0x134   : > { %v1069_v43 = vsel %vm296_vm0, %v1068_v24, %v1021_v39 }
 0x135   : > { %v1073_v47 = vperm.slane %v1069_v43, %v3036_v10 }
 0x137   : > { %v1074_v55 = vrot.slane %v1073_v47, 4  ;;  %v1077_v17 = vsel %vm296_vm0, %v1073_v47, %v1076_v36 }
 0x138   : > { %v1085_v6 = vperm.slane %v1077_v17, %v3041_v20 }
 0x139   : > { %v1024_v46 = vpop.permute.xlu1 %1023  ;;  %v1075_v54 = vsel %vm296_vm0, %v1074_v55, %v1067_v57  ;;  %v3457_v57 = vunpack.c.h.bf16 %v2826_v63 }
 0x13a   : > { %v1097_v48 = vsel %vm296_vm0, %v1096_v38, %v1024_v46  ;;  %v1081_v32 = vperm.slane %v1075_v54, %v3041_v20  ;;  %v1088_v44 = vrot.slane %v1085_v6, 4  ;;  %v1194_v60 = vshrl.u32 %v1085_v6, 16 }
 0x13b   : > { %v1101_v45 = vperm.slane %v1097_v48, %v3036_v10 }
 0x13c   : > { %v1086_v22 = vrot.slane %v1081_v32, 4  ;;  %v1089_v0 = vsel %vm296_vm0, 0, %v1088_v44  ;;  %v1178_v13 = vshrl.u32 %v1081_v32, 16 }
 0x13d   : > { %v1102_v51 = vrot.slane %v1101_v45, 4  ;;  %v1105_v52 = vsel %vm296_vm0, %v1101_v45, %v1104_v42  ;;  %v1202_v12 = vshrl.u32 %v1089_v0, 16 }
 0x13e   : > { %v1113_v59 = vperm.slane %v1105_v52, %v3041_v20  ;;  %v1087_v16 = vsel %vm296_vm0, 0, %v1086_v22 }
 0x13f   : > { %v1103_v11 = vsel %vm296_vm0, %v1102_v51, %v1095_v15  ;;  %v1186_v9 = vshrl.u32 %v1087_v16, 16 }
 0x140   : > { %v1109_v2 = vperm.slane %v1103_v11, %v3041_v20  ;;  %v1116_v4 = vrot.slane %v1113_v59, 4  ;;  %v1195_v5 = vshrl.u32 %v1113_v59, 16  ;;  %v1192_v8 = vpack.i.b16 %v1113_v59, %v1085_v6 }
 0x142   : > { %v1114_v49 = vrot.slane %v1109_v2, 4  ;;  %v1117_v35 = vsel %vm296_vm0, 0, %v1116_v4  ;;  %v1179_v21 = vshrl.u32 %v1109_v2, 16  ;;  %v1196_v23 = vpack.i.b16 %v1195_v5, %v1194_v60 }
 0x143   : > { %v1200_v41 = vpack.i.b16 %v1117_v35, %v1089_v0  ;;  %v1203_v18 = vshrl.u32 %v1117_v35, 16  ;;  %v1176_v25 = vpack.i.b16 %v1109_v2, %v1081_v32  ;;  %v1238_v26 = vrot.slane %v1192_v8, 4 }
 0x144   : > { %v1115_v3 = vsel %vm296_vm0, 0, %v1114_v49  ;;  %v1180_v37 = vpack.i.b16 %v1179_v21, %v1178_v13  ;;  %v1266_v31 = vrot.slane %v1196_v23, 4 }
 0x145   : > { %v1184_v19 = vpack.i.b16 %v1115_v3, %v1087_v16  ;;  %v1187_v34 = vshrl.u32 %v1115_v3, 16  ;;  %v1204_v1 = vpack.i.b16 %v1203_v18, %v1202_v12  ;;  %v1244_v29 = vrot.slane %v1200_v41, 4 }
 0x146   : > { %v1239_v15 = vsel %vm296_vm0, %v1238_v26, %v1176_v25  ;;  %v1267_v33 = vsel %vm296_vm0, %v1266_v31, %v1180_v37 }
 0x147   : > { %v1188_v30 = vpack.i.b16 %v1187_v34, %v1186_v9  ;;  %v1272_v27 = vrot.slane %v1204_v1, 4  ;;  %v1245_v24 = vsel %vm296_vm0, %v1244_v29, %v1184_v19  ;;  %v1243_v39 = vperm.slane %v1239_v15, %v3036_v10 }
 0x148   : > { %v1249_v42 = vperm.slane %v1245_v24, %v3036_v10  ;;  %v1271_v43 = vperm.slane %v1267_v33, %v3036_v10 }
 0x149   : > { %v1273_v36 = vsel %vm296_vm0, %v1272_v27, %v1188_v30  ;;  %v1252_v51 = vrot.slane %v1243_v39, 4 }
 0x14a   : > { %v1277_v46 = vperm.slane %v1273_v36, %v3036_v10  ;;  %v1250_v55 = vrot.slane %v1249_v42, 4  ;;  %v1280_v52 = vrot.slane %v1271_v43, 4 }
 0x14b   : > { %v1253_v11 = vsel %vm296_vm0, %v1249_v42, %v1252_v51 }
 0x14c   : > { %v1278_v17 = vrot.slane %v1277_v46, 4  ;;  %v1251_v32 = vsel %vm296_vm0, %v1250_v55, %v1243_v39  ;;  %v1261_v5 = vperm.slane %v1253_v11, %v3041_v20  ;;  %v1281_v22 = vsel %vm296_vm0, %v1277_v46, %v1280_v52 }
 0x14d   : > { %v1257_v44 = vperm.slane %v1251_v32, %v3041_v20  ;;  %v1289_v13 = vperm.slane %v1281_v22, %v3041_v20 }
 0x14e   : > { %v1414_v14 = vpop.f32.mrf.mxu0  ;;  %v1279_v60 = vsel %vm296_vm0, %v1278_v17, %v1271_v43  ;;  %v1365_v9 = vshrl.u32 %v1261_v5, 16  ;;  %v1264_v24 = vrot.slane %v1261_v5, 4 }
 0x14f   : > { %v3446_v58 = vadd.f32 %v3437_v61, %v1414_v14  ;;  %v1285_v4 = vperm.slane %v1279_v60, %v3041_v20  ;;  %v1353_v0 = vshrl.u32 %v1257_v44, 16  ;;  %v1262_v12 = vrot.slane %v1257_v44, 4 }
 0x150   : > { %v1433_v62 = vpop.f32.mrf.mxu1  ;;  %v1364_v23 = vpack.i.b16 %v1289_v13, %v1261_v5  ;;  %v1366_v37 = vshrl.u32 %v1289_v13, 16  ;;  %v1292_v33 = vrot.slane %v1289_v13, 4  ;;  %v1265_v39 = vsel %vm296_vm0, 0, %v1264_v24 }
 0x151   : > { %v1727_v40 = vsel %vm1398_vm1, %v3446_v58, -inf  ;;  %v3453_v28 = vadd.f32 %v3440_v7, %v1433_v62  ;;  %v1352_v35 = vpack.i.b16 %v1285_v4, %v1257_v44  ;;  %v1354_v8 = vshrl.u32 %v1285_v4, 16 }
 0x152   : > { %1728 = vmax.xlane.f32.xlu2 %v1727_v40  ;;  %v1290_v14 = vrot.slane %v1285_v4, 4  ;;  %v1263_v41 = vsel %vm296_vm0, 0, %v1262_v12  ;;  %v2000_v63 = vsel %vm1922_vm2, %v1364_v23, 0  ;;  %v1367_v29 = vpack.i.b16 %v1366_v37, %v1365_v9 }
 0x153   : > { %v1730_v6 = vsel %vm1398_vm1, %v3453_v28, -inf  ;;  %v1924_v18 = vsel %vm1922_vm2, %v1352_v35, 0  ;;  %v1355_v62 = vpack.i.b16 %v1354_v8, %v1353_v0  ;;  %v1359_v30 = vshrl.u32 %v1263_v41, 16 }
 0x154   : > { %v1291_v25 = vsel %vm296_vm0, 0, %v1290_v14  ;;  %1933 = vmatpush.bf16.msra.mxu0 %v1924_v18  ;;  %v2019_v36 = vsel %vm1922_vm2, %v1367_v29, 0  ;;  %v1293_v42 = vsel %vm296_vm0, 0, %v1292_v33 }
 0x155   : > { %v1358_v1 = vpack.i.b16 %v1291_v25, %v1263_v41  ;;  %v1943_v26 = vsel %vm1922_vm2, %v1355_v62, 0  ;;  %v1360_v31 = vshrl.u32 %v1291_v25, 16  ;;  %v1372_v55 = vshrl.u32 %v1293_v42, 16 }
 0x156   : > { %v1416_v38 = vpop.f32.mrf.mxu0  ;;  %1952 = vmatpush.bf16.msra.mxu1 %v1943_v26 }
 0x157   : > { %v1452_v47 = vpop.f32.mrf.mxu2  ;;  %v1962_v15 = vsel %vm1922_vm2, %v1358_v1, 0  ;;  %v1361_v38 = vpack.i.b16 %v1360_v31, %v1359_v30 }
 0x158   : > { %v3468_v48 = vadd.f32 %v3455_v53, %v1452_v47  ;;  %v1435_v45 = vpop.f32.mrf.mxu1  ;;  %2009 = vmatpush.bf16.msrb.mxu0 %v2000_v63  ;;  %1971 = vmatpush.bf16.msra.mxu2 %v1962_v15  ;;  %v1370_v47 = vpack.i.b16 %v1293_v42, %v1265_v39 }
 0x159   : > { %v1471_v56 = vpop.f32.mrf.mxu3  ;;  %v1981_v46 = vsel %vm1922_vm2, %v1361_v38, 0  ;;  %v1371_v45 = vshrl.u32 %v1265_v39, 16  ;;  %v3561_v38 = vpop.permute.xlu0 %1050 }
 0x15a   : > { %v3473_v54 = vadd.f32 %v3457_v57, %v1471_v56  ;;  %1731 = vmax.xlane.f32.xlu2 %v1730_v6  ;;  %v1733_v59 = vsel %vm1398_vm1, %v3468_v48, -inf  ;;  %2028 = vmatpush.bf16.msrb.mxu1 %v2019_v36  ;;  %v2038_v51 = vsel %vm1922_vm2, %v1370_v47, 0  ;;  %v3559_v36 = vpop.permute.xlu2 %1053 }
 0x15b   : > { %1734 = vmax.xlane.f32.xlu0 %v1733_v59  ;;  %1990 = vmatpush.bf16.msra.mxu3 %v1981_v46  ;;  %v1373_v52 = vpack.i.b16 %v1372_v55, %v1371_v45 }
 0x15c   : > { %v1736_v2 = vsel %vm1398_vm1, %v3473_v54, -inf  ;;  %2047 = vmatpush.bf16.msrb.mxu2 %v2038_v51 }
 0x15d   : > { %1737 = vmax.xlane.f32.xlu1 %v1736_v2  ;;  %v2057_v60 = vsel %vm1922_vm2, %v1373_v52, 0 }
 0x15e   : > { %v1490_v49 = vpop.f32.mrf.mxu0 }
 0x15f   : > { %v3488_v16 = vadd.f32 %v3437_v61, %v1490_v49  ;;  %v1454_v21 = vpop.f32.mrf.mxu2  ;;  %2066 = vmatpush.bf16.msrb.mxu3 %v2057_v60 }
 0x160   : > { %v1509_v3 = vpop.f32.mrf.mxu1 }
 0x161   : > { %v3494_v19 = vadd.f32 %v3440_v7, %v1509_v3  ;;  %v1473_v34 = vpop.f32.mrf.mxu3  ;;  %v1739_v40 = vsel %vm1398_vm1, %v3488_v16, -inf  ;;  %v3565_v42 = vpop.permute.xlu0 %1041 }
 0x162   : > { %1740 = vmax.xlane.f32.xlu2 %v1739_v40 }
 0x163   : > { %v1742_v27 = vsel %vm1398_vm1, %v3494_v19, -inf }
 0x164   : > { %1743 = vmax.xlane.f32.xlu0 %v1742_v27 }
 0x166   : > { %v1492_v43 = vpop.f32.mrf.mxu0 }
 0x167   : > { %v1528_v17 = vpop.f32.mrf.mxu2  ;;  %v3568_v43 = vpop.permute.xlu1 %1038 }
 0x168   : > { %v3508_v56 = vadd.f32 %v3455_v53, %v1528_v17  ;;  %v1511_v6 = vpop.f32.mrf.mxu1 }
 0x169   : > { %v1547_v59 = vpop.f32.mrf.mxu3 }
 0x16a   : > { %v3512_v32 = vadd.f32 %v3457_v57, %v1547_v59  ;;  %v1745_v44 = vsel %vm1398_vm1, %v3508_v56, -inf }
 0x16c   : > { %1746 = vmax.xlane.f32.xlu0 %v1745_v44  ;;  %v1748_v11 = vsel %vm1398_vm1, %v3512_v32, -inf }
 0x16d   : > { %1749 = vmax.xlane.f32.xlu1 %v1748_v11 }
 0x16f   : > { %v1530_v2 = vpop.f32.mrf.mxu2  ;;  %v1566_v4 = vpop.f32.mrf.mxu0 }
 0x170   : > { %v3520_v5 = vadd.f32 %v3437_v61, %v1566_v4 }
 0x171   : > { %v1549_v22 = vpop.f32.mrf.mxu3  ;;  %v1585_v0 = vpop.f32.mrf.mxu1 }
 0x172   : > { %v3523_v13 = vadd.f32 %v3440_v7, %v1585_v0  ;;  %v1751_v12 = vsel %vm1398_vm1, %v3520_v5, -inf }
 0x174   : > { %v1754_v49 = vsel %vm1398_vm1, %v3523_v13, -inf }
 0x175   : > { %1752 = vmax.xlane.f32.xlu1 %v1751_v12  ;;  %1755 = vmax.xlane.f32.xlu0 %v1754_v49 }
 0x177   : > { %v1568_v35 = vpop.f32.mrf.mxu0 }
 0x178   : > { %v1604_v8 = vpop.f32.mrf.mxu2 }
 0x179   : > { %v3530_v14 = vadd.f32 %v3455_v53, %v1604_v8  ;;  %v1587_v21 = vpop.f32.mrf.mxu1 }
 0x17a   : > { %v1623_v23 = vpop.f32.mrf.mxu3 }
 0x17b   : > { %v3533_v41 = vadd.f32 %v3457_v57, %v1623_v23  ;;  %v1757_v9 = vsel %vm1398_vm1, %v3530_v14, -inf }
 0x17d   : > { %1758 = vmax.xlane.f32.xlu0 %v1757_v9  ;;  %v1760_v3 = vsel %vm1398_vm1, %v3533_v41, -inf }
 0x17e   : > { %1761 = vmax.xlane.f32.xlu2 %v1760_v3 }
 0x17f   : > { %v1642_v18 = vpop.f32.mrf.mxu0 }
 0x180   : > { %v3540_v62 = vadd.f32 %v3437_v61, %v1642_v18  ;;  %v1606_v25 = vpop.f32.mrf.mxu2 }
 0x181   : > { %v1661_v37 = vpop.f32.mrf.mxu1 }
 0x182   : > { %v3543_v34 = vadd.f32 %v3440_v7, %v1661_v37  ;;  %v1625_v40 = vpop.f32.mrf.mxu3  ;;  %v1763_v63 = vsel %vm1398_vm1, %v3540_v62, -inf }
 0x184   : > { %v1766_v1 = vsel %vm1398_vm1, %v3543_v34, -inf }
 0x185   : > { %1764 = vmax.xlane.f32.xlu0 %v1763_v63 }
 0x186   : > { %1767 = vmax.xlane.f32.xlu2 %v1766_v1 }
 0x187   : > { %v1644_v26 = vpop.f32.mrf.mxu0 }
 0x188   : > { %v1680_v29 = vpop.f32.mrf.mxu2 }
 0x189   : > { %v3550_v30 = vadd.f32 %v3455_v53, %v1680_v29  ;;  %v1663_v61 = vpop.f32.mrf.mxu1  ;;  %v3563_v53 = vpop.permute.xlu2 %1056 }
 0x18a   : > { %v1699_v31 = vpop.f32.mrf.mxu3 }
 0x18b   : > { %v3553_v27 = vadd.f32 %v3457_v57, %v1699_v31  ;;  %v1769_v7 = vsel %vm1398_vm1, %v3550_v30, -inf }
 0x18d   : > { %v1772_v15 = vsel %vm1398_vm1, %v3553_v27, -inf }
 0x18e   : > { %1773 = vmax.xlane.f32.xlu1 %v1772_v15  ;;  %1770 = vmax.xlane.f32.xlu2 %v1769_v7 }
 0x190   : > { %v1682_v24 = vpop.f32.mrf.mxu2 }
 0x192   : > { %v1701_v33 = vpop.f32.mrf.mxu3 }
 0x1c5   : > { %v1729_v39 = vpop.xlane.xlu2 %1728 }
 0x1c6   : > { %v1775_v57 = vsub.f32 %v3446_v58, %v1729_v39 }
 0x1c8   : > { %v1791_v46 = vmul.f32 1.442695, %v1775_v57 }
 0x1ca   : > { %2852 = vpow2.f32 %v1791_v46 }
 0x1cd   : > { %v1732_v47 = vpop.xlane.xlu2 %1731 }
 0x1ce   : > { %v1776_v45 = vsub.f32 %v3453_v28, %v1732_v47  ;;  %v1735_v55 = vpop.xlane.xlu0 %1734 }
 0x1cf   : > { %v1777_v51 = vsub.f32 %v3468_v48, %v1735_v55 }
 0x1d0   : > { %v3571_v17 = vpop.eup %2852  ;;  %v1793_v6 = vmul.f32 1.442695, %v1776_v45  ;;  %v1738_v52 = vpop.xlane.xlu1 %1737 }
 0x1d1   : > { %v1778_v59 = vsub.f32 %v3473_v54, %v1738_v52  ;;  %v1823_v44 = vsel %vm1398_vm1, %v3571_v17, 0.0  ;;  %v1795_v60 = vmul.f32 1.442695, %v1777_v51 }
 0x1d2   : > { %2854 = vpow2.f32 %v1793_v6  ;;  %1824 = vadd.xlane.f32.xlu2 %v1823_v44 }
 0x1d3   : > { %v1797_v58 = vmul.f32 1.442695, %v1778_v59 }
 0x1d5   : > { %2856 = vpow2.f32 %v1797_v58  ;;  %v1741_v22 = vpop.xlane.xlu2 %1740 }
 0x1d6   : > { %2858 = vpow2.f32 %v1795_v60  ;;  %v1779_v49 = vsub.f32 %v3488_v16, %v1741_v22 }
 0x1d7   : > { %v1744_v12 = vpop.xlane.xlu0 %1743 }
 0x1d8   : > { %v3577_v11 = vpop.eup %2854  ;;  %v1799_v8 = vmul.f32 1.442695, %v1779_v49  ;;  %v1780_v1 = vsub.f32 %v3494_v19, %v1744_v12 }
 0x1d9   : > { %v1826_v28 = vsel %vm1398_vm1, %v3577_v11, 0.0 }
 0x1da   : > { %1827 = vadd.xlane.f32.xlu1 %v1826_v28  ;;  %2860 = vpow2.f32 %v1799_v8 }
 0x1db   : > { %v3581_v2 = vpop.eup %2856 }
 0x1dc   : > { %v1832_v48 = vsel %vm1398_vm1, %v3581_v2, 0.0  ;;  %v3585_v54 = vpop.eup %2858 }
 0x1dd   : > { %1833 = vadd.xlane.f32.xlu0 %v1832_v48  ;;  %v1829_v4 = vsel %vm1398_vm1, %v3585_v54, 0.0 }
 0x1df   : > { %v1747_v21 = vpop.xlane.xlu0 %1746 }
 0x1e0   : > { %v1781_v23 = vsub.f32 %v3508_v56, %v1747_v21  ;;  %v1750_v18 = vpop.xlane.xlu1 %1749  ;;  %v3598_v63 = vpop.eup %2860 }
 0x1e1   : > { %v1835_v16 = vsel %vm1398_vm1, %v3598_v63, 0.0  ;;  %v1782_v56 = vsub.f32 %v3512_v32, %v1750_v18 }
 0x1e2   : > { %1830 = vadd.xlane.f32.xlu1 %v1829_v4  ;;  %v1803_v3 = vmul.f32 1.442695, %v1781_v23 }
 0x1e3   : > { %v1805_v7 = vmul.f32 1.442695, %v1782_v56 }
 0x1e4   : > { %2862 = vpow2.f32 %v1803_v3 }
 0x1e8   : > { %v1756_v37 = vpop.xlane.xlu0 %1755  ;;  %v1753_v26 = vpop.xlane.xlu1 %1752 }
 0x1e9   : > { %v1783_v19 = vsub.f32 %v3520_v5, %v1753_v26  ;;  %v1784_v51 = vsub.f32 %v3523_v13, %v1756_v37 }
 0x1ea   : > { %1047 = vrot.lane.b32.xlu2 %v3207_v50, %s2938_s12  ;;  %v3605_v61 = vpop.eup %2862 }
 0x1eb   : > { %v1841_v32 = vsel %vm1398_vm1, %v3605_v61, 0.0  ;;  %v1807_v39 = vmul.f32 1.442695, %v1783_v19 }
 0x1f0   : > { %v1759_v15 = vpop.xlane.xlu0 %1758 }
 0x1f1   : > { %1059 = vrot.lane.b32.xlu0 %v3207_v50, %s2936_s10  ;;  %v1762_v0 = vpop.xlane.xlu2 %1761  ;;  %v1785_v33 = vsub.f32 %v3530_v14, %v1759_v15 }
 0x1f2   : > { %v1786_v9 = vsub.f32 %v3533_v41, %v1762_v0  ;;  %v1801_v41 = vmul.f32 1.442695, %v1780_v1 }
 0x1f4   : > { %v1813_v25 = vmul.f32 1.442695, %v1786_v9 }
 0x1f6   : > { %2864 = vpow2.f32 %v1813_v25 }
 0x1f7   : > { %2866 = vpow2.f32 %v1801_v41 }
 0x1f8   : > { %v1765_v60 = vpop.xlane.xlu0 %1764 }
 0x1f9   : > { %v1768_v35 = vpop.xlane.xlu2 %1767  ;;  %v1787_v4 = vsub.f32 %v3540_v62, %v1765_v60 }
 0x1fb   : > { %1044 = vrot.lane.b32.xlu1 %v3207_v50, %s2937_s11  ;;  %v1815_v12 = vmul.f32 1.442695, %v1787_v4 }
 0x1fc   : > { %v3607_v31 = vpop.eup %2864 }
 0x1fd   : > { %v1856_v24 = vsel %vm1398_vm1, %v3607_v31, 0.0  ;;  %v3616_v46 = vpop.eup %2866 }
 0x1fe   : > { %v1838_v14 = vsel %vm1398_vm1, %v3616_v46, 0.0 }
 0x201   : > { %v1771_v40 = vpop.xlane.xlu2 %1770  ;;  %v1774_v5 = vpop.xlane.xlu1 %1773 }
 0x202   : > { %v1789_v50 = vsub.f32 %v3550_v30, %v1771_v40  ;;  %v1788_v30 = vsub.f32 %v3543_v34, %v1768_v35  ;;  %v1811_v34 = vmul.f32 1.442695, %v1785_v33  ;;  %v1790_v55 = vsub.f32 %v3553_v27, %v1774_v5 }
 0x203   : > { %v1809_v27 = vmul.f32 1.442695, %v1784_v51 }
 0x204   : > { %v1819_v29 = vmul.f32 1.442695, %v1789_v50  ;;  %v1817_v57 = vmul.f32 1.442695, %v1788_v30  ;;  %v1821_v59 = vmul.f32 1.442695, %v1790_v55 }
 0x206   : > { %2868 = vpow2.f32 %v1819_v29  ;;  %v1146_v29 = vrot.slane %v3559_v36, 4 }
 0x207   : > { %2870 = vpow2.f32 %v1805_v7 }
 0x208   : > { %2872 = vpow2.f32 %v1807_v39 }
 0x209   : > { %2874 = vpow2.f32 %v1817_v57 }
 0x20a   : > { %2876 = vpow2.f32 %v1811_v34 }
 0x20b   : > { %2878 = vpow2.f32 %v1821_v59 }
 0x20c   : > { %v3618_v47 = vpop.eup %2868  ;;  %2880 = vpow2.f32 %v1809_v27 }
 0x20d   : > { %v3620_v45 = vpop.eup %2870  ;;  %v1865_v6 = vsel %vm1398_vm1, %v3618_v47, 0.0  ;;  %2882 = vpow2.f32 %v1815_v12 }
 0x20e   : > { %v1844_v52 = vsel %vm1398_vm1, %v3620_v45, 0.0  ;;  %v3630_v44 = vpop.eup %2872 }
 0x20f   : > { %v3632_v58 = vpop.eup %2874  ;;  %v1847_v48 = vsel %vm1398_vm1, %v3630_v44, 0.0 }
 0x210   : > { %v3634_v28 = vpop.eup %2876  ;;  %v1862_v13 = vsel %vm1398_vm1, %v3632_v58, 0.0 }
 0x211   : > { %v1853_v22 = vsel %vm1398_vm1, %v3634_v28, 0.0  ;;  %v3643_v0 = vpop.eup %2878 }
 0x212   : > { %v3645_v49 = vpop.eup %2880  ;;  %v1868_v35 = vsel %vm1398_vm1, %v3643_v0, 0.0 }
 0x213   : > { %1836 = vadd.xlane.f32.xlu2 %v1835_v16  ;;  %v1850_v8 = vsel %vm1398_vm1, %v3645_v49, 0.0  ;;  %v3651_v62 = vpop.eup %2882 }
 0x214   : > { %v1859_v21 = vsel %vm1398_vm1, %v3651_v62, 0.0 }
 0x21b   : > { %1857 = vadd.xlane.f32.xlu2 %v1856_v24  ;;  %1842 = vadd.xlane.f32.xlu0 %v1841_v32 }
 0x223   : > { %1866 = vadd.xlane.f32.xlu2 %v1865_v6  ;;  %1839 = vadd.xlane.f32.xlu0 %v1838_v14 }
 0x225   : > { %1845 = vadd.xlane.f32.xlu1 %v1844_v52 }
 0x22b   : > { %1863 = vadd.xlane.f32.xlu2 %v1862_v13  ;;  %1848 = vadd.xlane.f32.xlu0 %v1847_v48 }
 0x22d   : > { %1854 = vadd.xlane.f32.xlu1 %v1853_v22 }
 0x233   : > { %1869 = vadd.xlane.f32.xlu0 %v1868_v35 }
 0x235   : > { %1851 = vadd.xlane.f32.xlu1 %v1850_v8 }
 0x23d   : > { %1860 = vadd.xlane.f32.xlu1 %v1859_v21 }
 0x245   : > { %v1825_v23 = vpop.xlane.xlu2 %1824 }
 0x246   : > { %2884 = vrcp.f32 %v1825_v23 }
 0x24c   : > { %v2885_v9 = vpop.eup %2884 }
 0x24d   : > { %v1887_v3 = vmul.f32 %v2885_v9, %v3571_v17  ;;  %v1828_v18 = vpop.xlane.xlu1 %1827  ;;  %v1048_v32 = vpop.permute.xlu2 %1047 }
 0x24e   : > { %2886 = vrcp.f32 %v1828_v18 }
 0x24f   : > { %v1903_v25 = vpack.c.bf16 %v1887_v3, %v1887_v3 }
 0x250   : > { %v1834_v37 = vpop.xlane.xlu0 %1833 }
 0x251   : > { %2888 = vrcp.f32 %v1834_v37  ;;  %2799 = vmatmul.msk.bf16.vlgmr.msra.gmra.mxu0 %vm1398_vm1, %v1903_v25 }
 0x254   : > { %v2887_v40 = vpop.eup %2886 }
 0x255   : > { %v1888_v1 = vmul.f32 %v2887_v40, %v3577_v11  ;;  %v1831_v50 = vpop.xlane.xlu1 %1830  ;;  %v1147_v11 = vsel %vm296_vm0, %v1146_v29, %v3565_v42 }
 0x256   : > { %2890 = vrcp.f32 %v1831_v50  ;;  %v1151_v15 = vperm.slane %v1147_v11, %v3036_v10 }
 0x257   : > { %v2889_v16 = vpop.eup %2888  ;;  %v1904_v56 = vpack.c.bf16 %v1888_v1, %v1888_v1 }
 0x258   : > { %v1890_v41 = vmul.f32 %v2889_v16, %v3581_v2  ;;  %v1118_v2 = vrot.slane %v3561_v38, 4  ;;  %v1160_v36 = vrot.slane %v1151_v15, 4  ;;  %v1124_v38 = vrot.slane %v3563_v53, 4 }
 0x259   : > { %2800 = vmatmul.msk.bf16.vlgmr.msra.gmra.mxu1 %vm1398_vm1, %v1904_v56 }
 0x25a   : > { %v1906_v26 = vpack.c.bf16 %v1890_v41, %v1890_v41 }
 0x25c   : > { %v2891_v17 = vpop.eup %2890  ;;  %2802 = vmatmul.msk.bf16.vlgmr.msra.gmra.mxu3 %vm1398_vm1, %v1906_v26 }
 0x25d   : > { %v1889_v7 = vmul.f32 %v2891_v17, %v3585_v54  ;;  %v1119_v54 = vsel %vm296_vm0, %v1118_v2, %v3568_v43 }
 0x25e   : > { %v1123_v34 = vperm.slane %v1119_v54, %v3036_v10 }
 0x25f   : > { %v1905_v19 = vpack.c.bf16 %v1889_v7, %v1889_v7 }
 0x260   : > { %v1132_v59 = vrot.slane %v1123_v34, 4 }
 0x261   : > { %2801 = vmatmul.msk.bf16.vlgmr.msra.gmra.mxu2 %vm1398_vm1, %v1905_v19 }
 0x263   : > { %v1060_v30 = vpop.permute.xlu0 %1059 }
 0x264   : > { %v1152_v24 = vrot.slane %v1060_v30, 4 }
 0x266   : > { %v1153_v33 = vsel %vm296_vm0, %v1152_v24, %v1048_v32 }
 0x267   : > { %v1157_v39 = vperm.slane %v1153_v33, %v3036_v10 }
 0x269   : > { %v1158_v57 = vrot.slane %v1157_v39, 4  ;;  %v1161_v42 = vsel %vm296_vm0, %v1157_v39, %v1160_v36 }
 0x26a   : > { %v1169_v5 = vperm.slane %v1161_v42, %v3041_v20 }
 0x26b   : > { %v1159_v55 = vsel %vm296_vm0, %v1158_v57, %v1151_v15 }
 0x26c   : > { %v1165_v6 = vperm.slane %v1159_v55, %v3041_v20  ;;  %v1172_v51 = vrot.slane %v1169_v5, 4  ;;  %v1227_v23 = vshrl.u32 %v1169_v5, 16 }
 0x26d   : > { %v1045_v14 = vpop.permute.xlu1 %1044 }
 0x26e   : > { %v1125_v52 = vsel %vm296_vm0, %v1124_v38, %v1045_v14  ;;  %v1170_v27 = vrot.slane %v1165_v6, 4  ;;  %v1173_v48 = vsel %vm296_vm0, 0, %v1172_v51  ;;  %v1211_v21 = vshrl.u32 %v1165_v6, 16 }
 0x26f   : > { %v1129_v43 = vperm.slane %v1125_v52, %v3036_v10  ;;  %v1235_v3 = vshrl.u32 %v1173_v48, 16 }
 0x270   : > { %v1171_v9 = vsel %vm296_vm0, 0, %v1170_v27 }
 0x271   : > { %v1130_v60 = vrot.slane %v1129_v43, 4  ;;  %v1133_v13 = vsel %vm296_vm0, %v1129_v43, %v1132_v59  ;;  %v1219_v41 = vshrl.u32 %v1171_v9, 16 }
 0x272   : > { %v1141_v4 = vperm.slane %v1133_v13, %v3041_v20 }
 0x273   : > { %v1131_v22 = vsel %vm296_vm0, %v1130_v60, %v1123_v34 }
 0x274   : > { %v1137_v53 = vperm.slane %v1131_v22, %v3041_v20  ;;  %v1144_v12 = vrot.slane %v1141_v4, 4  ;;  %v1224_v35 = vpack.i.b16 %v1169_v5, %v1141_v4  ;;  %v1226_v8 = vshrl.u32 %v1141_v4, 16 }
 0x276   : > { %v1142_v18 = vrot.slane %v1137_v53, 4  ;;  %v1145_v25 = vsel %vm296_vm0, 0, %v1144_v12  ;;  %v1208_v37 = vpack.i.b16 %v1165_v6, %v1137_v53  ;;  %v1210_v40 = vshrl.u32 %v1137_v53, 16 }
 0x277   : > { %v1228_v1 = vpack.i.b16 %v1227_v23, %v1226_v8  ;;  %v1232_v50 = vpack.i.b16 %v1173_v48, %v1145_v25  ;;  %v1234_v16 = vshrl.u32 %v1145_v25, 16  ;;  %v1294_v56 = vrot.slane %v1224_v35, 4 }
 0x278   : > { %v1143_v26 = vsel %vm296_vm0, 0, %v1142_v18  ;;  %v1212_v17 = vpack.i.b16 %v1211_v21, %v1210_v40 }
 0x279   : > { %v1216_v29 = vpack.i.b16 %v1171_v9, %v1143_v26  ;;  %v1218_v7 = vshrl.u32 %v1143_v26, 16  ;;  %v1236_v19 = vpack.i.b16 %v1235_v3, %v1234_v16  ;;  %v1300_v11 = vrot.slane %v1232_v50, 4 }
 0x27a   : > { %v1322_v15 = vrot.slane %v1228_v1, 4  ;;  %v1295_v30 = vsel %vm296_vm0, %v1294_v56, %v1208_v37 }
 0x27b   : > { %v1220_v2 = vpack.i.b16 %v1219_v41, %v1218_v7  ;;  %v1328_v24 = vrot.slane %v1236_v19, 4  ;;  %v1299_v32 = vperm.slane %v1295_v30, %v3036_v10  ;;  %v1301_v33 = vsel %vm296_vm0, %v1300_v11, %v1216_v29 }
 0x27c   : > { %v1305_v36 = vperm.slane %v1301_v33, %v3036_v10  ;;  %v1323_v39 = vsel %vm296_vm0, %v1322_v15, %v1212_v17 }
 0x27d   : > { %v1327_v54 = vperm.slane %v1323_v39, %v3036_v10  ;;  %v1329_v57 = vsel %vm296_vm0, %v1328_v24, %v1220_v2  ;;  %v1308_v42 = vrot.slane %v1299_v32, 4 }
 0x27e   : > { %v1306_v5 = vrot.slane %v1305_v36, 4  ;;  %v1333_v34 = vperm.slane %v1329_v57, %v3036_v10 }
 0x27f   : > { %v1309_v55 = vsel %vm296_vm0, %v1305_v36, %v1308_v42  ;;  %v1336_v38 = vrot.slane %v1327_v54, 4 }
 0x280   : > { %v1307_v6 = vsel %vm296_vm0, %v1306_v5, %v1299_v32  ;;  %v1334_v14 = vrot.slane %v1333_v34, 4  ;;  %v1317_v51 = vperm.slane %v1309_v55, %v3041_v20 }
 0x281   : > { %v1313_v52 = vperm.slane %v1307_v6, %v3041_v20  ;;  %v1337_v59 = vsel %vm296_vm0, %v1333_v34, %v1336_v38 }
 0x282   : > { %v1335_v43 = vsel %vm296_vm0, %v1334_v14, %v1327_v54  ;;  %v1345_v27 = vperm.slane %v1337_v59, %v3041_v20  ;;  %v1320_v60 = vrot.slane %v1317_v51, 4  ;;  %v1389_v4 = vshrl.u32 %v1317_v51, 16 }
 0x283   : > { %v1341_v13 = vperm.slane %v1335_v43, %v3041_v20  ;;  %v1318_v48 = vrot.slane %v1313_v52, 4  ;;  %v1377_v22 = vshrl.u32 %v1313_v52, 16 }
 0x284   : > { %v1388_v53 = vpack.i.b16 %v1345_v27, %v1317_v51  ;;  %v1348_v12 = vrot.slane %v1345_v27, 4  ;;  %v1390_v35 = vshrl.u32 %v1345_v27, 16  ;;  %v1321_v18 = vsel %vm296_vm0, 0, %v1320_v60 }
 0x285   : > { %v1376_v8 = vpack.i.b16 %v1341_v13, %v1313_v52  ;;  %v1378_v21 = vshrl.u32 %v1341_v13, 16  ;;  %v1319_v23 = vsel %vm296_vm0, 0, %v1318_v48  ;;  %v1346_v9 = vrot.slane %v1341_v13, 4 }
 0x286   : > { %v1837_v3 = vpop.xlane.xlu2 %1836  ;;  %v1349_v25 = vsel %vm296_vm0, 0, %v1348_v12  ;;  %v1391_v37 = vpack.i.b16 %v1390_v35, %v1389_v4  ;;  %v1383_v56 = vshrl.u32 %v1319_v23, 16  ;;  %v1395_v29 = vshrl.u32 %v1321_v18, 16 }
 0x287   : > { %2892 = vrcp.f32 %v1837_v3  ;;  %v2076_v40 = vsel %vm1922_vm2, %v1376_v8, 0  ;;  %v1379_v1 = vpack.i.b16 %v1378_v21, %v1377_v22  ;;  %v1347_v50 = vsel %vm296_vm0, 0, %v1346_v9 }
 0x288   : > { %2085 = vmatpush.bf16.msra.mxu0 %v2076_v40  ;;  %v1382_v16 = vpack.i.b16 %v1347_v50, %v1319_v23  ;;  %v1384_v41 = vshrl.u32 %v1347_v50, 16  ;;  %v1394_v26 = vpack.i.b16 %v1349_v25, %v1321_v18  ;;  %v1396_v7 = vshrl.u32 %v1349_v25, 16 }
 0x289   : > { %v2095_v17 = vsel %vm1922_vm2, %v1379_v1, 0  ;;  %v2152_v36 = vsel %vm1922_vm2, %v1388_v53, 0  ;;  %v2171_v43 = vsel %vm1922_vm2, %v1391_v37, 0 }
 0x28a   : > { %2104 = vmatpush.bf16.msra.mxu1 %v2095_v17  ;;  %v2114_v19 = vsel %vm1922_vm2, %v1382_v16, 0  ;;  %v1385_v11 = vpack.i.b16 %v1384_v41, %v1383_v56  ;;  %v1397_v15 = vpack.i.b16 %v1396_v7, %v1395_v29 }
 0x28b   : > { %2123 = vmatpush.bf16.msra.mxu2 %v2114_v19 }
 0x28c   : > { %v2133_v30 = vsel %vm1922_vm2, %v1385_v11, 0  ;;  %v2209_v27 = vsel %vm1922_vm2, %v1397_v15, 0 }
 0x28d   : > { %v2893_v2 = vpop.eup %2892  ;;  %2142 = vmatpush.bf16.msra.mxu3 %v2133_v30 }
 0x28e   : > { %v1891_v24 = vmul.f32 %v2893_v2, %v3598_v63  ;;  %v1843_v32 = vpop.xlane.xlu0 %1842  ;;  %v2190_v63 = vsel %vm1922_vm2, %v1394_v26, 0  ;;  %v1858_v34 = vpop.xlane.xlu2 %1857 }
 0x28f   : > { %2894 = vrcp.f32 %v1843_v32 }
 0x290   : > { %v1907_v33 = vpack.c.bf16 %v1891_v24, %v1891_v24 }
 0x292   : > { %2803 = vmatmul.msk.bf16.vlgmr.msrb.gmra.mxu0 %vm1398_vm1, %v1907_v33 }
 0x293   : > { %2161 = vmatpush.bf16.msrb.mxu0 %v2152_v36 }
 0x295   : > { %v2895_v39 = vpop.eup %2894 }
 0x296   : > { %v1840_v54 = vpop.xlane.xlu0 %1839  ;;  %v1893_v57 = vmul.f32 %v2895_v39, %v3605_v61  ;;  %v1867_v13 = vpop.xlane.xlu2 %1866 }
 0x297   : > { %2896 = vrcp.f32 %v1840_v54 }
 0x298   : > { %v1846_v42 = vpop.xlane.xlu1 %1845  ;;  %v1909_v5 = vpack.c.bf16 %v1893_v57, %v1893_v57 }
 0x299   : > { %2898 = vrcp.f32 %v1846_v42 }
 0x29a   : > { %2805 = vmatmul.msk.bf16.vlgmr.msrb.gmra.mxu2 %vm1398_vm1, %v1909_v5 }
 0x29b   : > { %2199 = vmatpush.bf16.msrb.mxu2 %v2190_v63 }
 0x29d   : > { %v2897_v55 = vpop.eup %2896 }
 0x29e   : > { %v1849_v38 = vpop.xlane.xlu0 %1848  ;;  %v1892_v14 = vmul.f32 %v2897_v55, %v3616_v46  ;;  %v1864_v9 = vpop.xlane.xlu2 %1863 }
 0x29f   : > { %v2899_v6 = vpop.eup %2898  ;;  %2900 = vrcp.f32 %v1849_v38 }
 0x2a0   : > { %v1894_v51 = vmul.f32 %v2899_v6, %v3620_v45  ;;  %v1855_v52 = vpop.xlane.xlu1 %1854  ;;  %v1908_v61 = vpack.c.bf16 %v1892_v14, %v1892_v14 }
 0x2a1   : > { %2902 = vrcp.f32 %v1855_v52 }
 0x2a2   : > { %v1910_v59 = vpack.c.bf16 %v1894_v51, %v1894_v51  ;;  %2804 = vmatmul.msk.bf16.vlgmr.msrb.gmra.mxu1 %vm1398_vm1, %v1908_v61  ;;  %2904 = vrcp.f32 %v1858_v34 }
 0x2a3   : > { %2180 = vmatpush.bf16.msrb.mxu1 %v2171_v43 }
 0x2a4   : > { %2806 = vmatmul.msk.bf16.vlgmr.msrb.gmra.mxu3 %vm1398_vm1, %v1910_v59 }
 0x2a5   : > { %2218 = vmatpush.bf16.msrb.mxu3 %v2209_v27  ;;  %v2901_v60 = vpop.eup %2900 }
 0x2a6   : > { %v1895_v45 = vmul.f32 %v2901_v60, %v3630_v44 }
 0x2a7   : > { %v2903_v46 = vpop.eup %2902 }
 0x2a8   : > { %v1897_v48 = vmul.f32 %v2903_v46, %v3634_v28  ;;  %v1852_v4 = vpop.xlane.xlu1 %1851  ;;  %v1911_v22 = vpack.c.bf16 %v1895_v45, %v1895_v45  ;;  %v2905_v12 = vpop.eup %2904 }
 0x2a9   : > { %2906 = vrcp.f32 %v1852_v4  ;;  %v1898_v35 = vmul.f32 %v2905_v12, %v3607_v31  ;;  %v1870_v28 = vpop.xlane.xlu0 %1869 }
 0x2aa   : > { %v1913_v53 = vpack.c.bf16 %v1897_v48, %v1897_v48  ;;  %2807 = vmatmul.msk.bf16.vlgmr.msra.gmra.mxu0 %vm1398_vm1, %v1911_v22  ;;  %2908 = vrcp.f32 %v1867_v13 }
 0x2ab   : > { %v1914_v44 = vpack.c.bf16 %v1898_v35, %v1898_v35 }
 0x2ac   : > { %2809 = vmatmul.msk.bf16.vlgmr.msra.gmra.mxu2 %vm1398_vm1, %v1913_v53 }
 0x2af   : > { %v2907_v8 = vpop.eup %2906 }
 0x2b0   : > { %v1896_v21 = vmul.f32 %v2907_v8, %v3645_v49  ;;  %v1861_v23 = vpop.xlane.xlu1 %1860  ;;  %v2909_v18 = vpop.eup %2908 }
 0x2b1   : > { %2910 = vrcp.f32 %v1861_v23  ;;  %v1901_v25 = vmul.f32 %v2909_v18, %v3618_v47 }
 0x2b2   : > { %v1912_v3 = vpack.c.bf16 %v1896_v21, %v1896_v21  ;;  %2912 = vrcp.f32 %v1864_v9 }
 0x2b3   : > { %2914 = vrcp.f32 %v1870_v28  ;;  %v1917_v49 = vpack.c.bf16 %v1901_v25, %v1901_v25 }
 0x2b4   : > { %2808 = vmatmul.msk.bf16.vlgmr.msra.gmra.mxu1 %vm1398_vm1, %v1912_v3  ;;  %2810 = vmatmul.msk.bf16.vlgmr.msra.gmra.mxu3 %vm1398_vm1, %v1914_v44 }
 0x2b7   : > { %v2911_v37 = vpop.eup %2910 }
 0x2b8   : > { %v1899_v31 = vmul.f32 %v2911_v37, %v3651_v62  ;;  %v2913_v40 = vpop.eup %2912 }
 0x2b9   : > { %v2915_v50 = vpop.eup %2914  ;;  %v1900_v16 = vmul.f32 %v2913_v40, %v3632_v58 }
 0x2ba   : > { %v1915_v1 = vpack.c.bf16 %v1899_v31, %v1899_v31  ;;  %v1902_v56 = vmul.f32 %v2915_v50, %v3643_v0 }
 0x2bb   : > { %v1916_v41 = vpack.c.bf16 %v1900_v16, %v1900_v16 }
 0x2bc   : > { %2811 = vmatmul.msk.bf16.vlgmr.msrb.gmra.mxu0 %vm1398_vm1, %v1915_v1  ;;  %2813 = vmatmul.msk.bf16.vlgmr.msrb.gmra.mxu2 %vm1398_vm1, %v1917_v49  ;;  %v1918_v26 = vpack.c.bf16 %v1902_v56, %v1902_v56 }
 0x2c4   : > { %2812 = vmatmul.msk.bf16.vlgmr.msrb.gmra.mxu1 %vm1398_vm1, %v1916_v41  ;;  %2814 = vmatmul.msk.bf16.vlgmr.msrb.gmra.mxu3 %vm1398_vm1, %v1918_v26 }
 0x2ce   : > { %v1935_v47 = vpop.f32.mrf.mxu0 }
 0x2cf   : > { %v2224_v32 = vpack.c.bf16 %v1935_v47, %v1935_v47 }
 0x2d6   : > { %v1937_v62 = vpop.f32.mrf.mxu0  ;;  %v1954_v17 = vpop.f32.mrf.mxu1 }
 0x2d7   : > { %v2225_v55 = vpack.c.bf16 %v1954_v17, %v1954_v17 }
 0x2de   : > { %v1956_v29 = vpop.f32.mrf.mxu1 }
 0x2df   : > { %v1992_v7 = vpop.f32.mrf.mxu3 }
 0x2e0   : > { %v2227_v45 = vpack.c.bf16 %v1992_v7, %v1992_v7 }
 0x2e4   : > { %v1973_v19 = vpop.f32.mrf.mxu2 }
 0x2e5   : > { %v2226_v57 = vpack.c.bf16 %v1973_v19, %v1973_v19 }
 0x2e7   : > { %v1994_v11 = vpop.f32.mrf.mxu3 }
 0x2ec   : > { %v1975_v15 = vpop.f32.mrf.mxu2 }
 0x30f   : > { %v2011_v30 = vpop.f32.mrf.mxu0 }
 0x310   : > { %v2228_v2 = vpack.c.bf16 %v2011_v30, %v2011_v30 }
 0x312   : > { %v2240_v58 = vrot.slane %v2228_v2, 4 }
 0x314   : > { %v2241_v0 = vsel %vm296_vm0, %v2240_v58, %v2224_v32 }
 0x315   : > { %v2245_v39 = vperm.slane %v2241_v0, %v3036_v10 }
 0x317   : > { %v2013_v24 = vpop.f32.mrf.mxu0  ;;  %v2254_v38 = vrot.slane %v2245_v39, 4 }
 0x31d   : > { %v2049_v33 = vpop.f32.mrf.mxu2 }
 0x31e   : > { %v2230_v36 = vpack.c.bf16 %v2049_v33, %v2049_v33 }
 0x31f   : > { %v2030_v54 = vpop.f32.mrf.mxu1 }
 0x320   : > { %v2246_v42 = vrot.slane %v2230_v36, 4  ;;  %v2229_v5 = vpack.c.bf16 %v2030_v54, %v2030_v54 }
 0x322   : > { %v2247_v63 = vsel %vm296_vm0, %v2246_v42, %v2226_v57  ;;  %v2268_v34 = vrot.slane %v2229_v5, 4 }
 0x323   : > { %v2251_v6 = vperm.slane %v2247_v63, %v3036_v10 }
 0x324   : > { %v2269_v52 = vsel %vm296_vm0, %v2268_v34, %v2225_v55 }
 0x325   : > { %v2252_v14 = vrot.slane %v2251_v6, 4  ;;  %v2255_v51 = vsel %vm296_vm0, %v2251_v6, %v2254_v38  ;;  %v2051_v61 = vpop.f32.mrf.mxu2  ;;  %v2273_v13 = vperm.slane %v2269_v52, %v3036_v10 }
 0x326   : > { %v2263_v22 = vperm.slane %v2255_v51, %v3041_v20 }
 0x327   : > { %v2068_v59 = vpop.f32.mrf.mxu3  ;;  %v2253_v43 = vsel %vm296_vm0, %v2252_v14, %v2245_v39  ;;  %v2032_v27 = vpop.f32.mrf.mxu1  ;;  %v2282_v12 = vrot.slane %v2273_v13, 4 }
 0x328   : > { %v2231_v60 = vpack.c.bf16 %v2068_v59, %v2068_v59  ;;  %v3747_v46 = vpop.f32.mrf.mxu0  ;;  %v2259_v4 = vperm.slane %v2253_v43, %v3041_v20  ;;  %v2266_v21 = vrot.slane %v2263_v22, 4  ;;  %v2372_v41 = vshrl.u32 %v2263_v22, 16 }
 0x329   : > { %v2232_v61 = vpack.c.bf16 %v3747_v46, %v3747_v46 }
 0x32a   : > { %v2274_v48 = vrot.slane %v2231_v60, 4  ;;  %v2264_v8 = vrot.slane %v2259_v4, 4  ;;  %v2267_v16 = vsel %vm296_vm0, 0, %v2266_v21  ;;  %v2356_v56 = vshrl.u32 %v2259_v4, 16 }
 0x32b   : > { %v2380_v30 = vshrl.u32 %v2267_v16, 16 }
 0x32c   : > { %v2275_v53 = vsel %vm296_vm0, %v2274_v48, %v2227_v45  ;;  %v2265_v50 = vsel %vm296_vm0, 0, %v2264_v8 }
 0x32d   : > { %v2279_v35 = vperm.slane %v2275_v53, %v3036_v10  ;;  %v2364_v15 = vshrl.u32 %v2265_v50, 16 }
 0x32f   : > { %v2280_v23 = vrot.slane %v2279_v35, 4  ;;  %v2283_v9 = vsel %vm296_vm0, %v2279_v35, %v2282_v12  ;;  %v2070_v44 = vpop.f32.mrf.mxu3  ;;  %v3755_v28 = vpop.f32.mrf.mxu2 }
 0x330   : > { %v2291_v3 = vperm.slane %v2283_v9, %v3041_v20  ;;  %v2089_v18 = vpop.f32.mrf.mxu0  ;;  %v2234_v9 = vpack.c.bf16 %v3755_v28, %v3755_v28 }
 0x331   : > { %v2281_v25 = vsel %vm296_vm0, %v2280_v23, %v2273_v13  ;;  %v3759_v37 = vpop.f32.mrf.mxu1 }
 0x332   : > { %v2287_v31 = vperm.slane %v2281_v25, %v3041_v20  ;;  %v2294_v40 = vrot.slane %v2291_v3, 4  ;;  %v2370_v49 = vpack.i.b16 %v2291_v3, %v2263_v22  ;;  %v2373_v1 = vshrl.u32 %v2291_v3, 16 }
 0x333   : > { %v2233_v25 = vpack.c.bf16 %v3759_v37, %v3759_v37 }
 0x334   : > { %v2292_v26 = vrot.slane %v2287_v31, 4  ;;  %v2295_v47 = vsel %vm296_vm0, 0, %v2294_v40  ;;  %v2354_v62 = vpack.i.b16 %v2287_v31, %v2259_v4  ;;  %v2357_v17 = vshrl.u32 %v2287_v31, 16 }
 0x335   : > { %v2374_v29 = vpack.i.b16 %v2373_v1, %v2372_v41  ;;  %v2378_v7 = vpack.i.b16 %v2295_v47, %v2267_v16  ;;  %v2381_v19 = vshrl.u32 %v2295_v47, 16  ;;  %v2416_v11 = vrot.slane %v2370_v49, 4 }
 0x336   : > { %v2293_v2 = vsel %vm296_vm0, 0, %v2292_v26  ;;  %v2358_v24 = vpack.i.b16 %v2357_v17, %v2356_v56 }
 0x337   : > { %v2365_v58 = vshrl.u32 %v2293_v2, 16  ;;  %v2422_v32 = vrot.slane %v2378_v7, 4  ;;  %v2444_v0 = vrot.slane %v2374_v29, 4  ;;  %v2127_v33 = vpop.f32.mrf.mxu2  ;;  %v3766_v36 = vpop.f32.mrf.mxu3  ;;  %v2362_v39 = vpack.i.b16 %v2293_v2, %v2265_v50 }
 0x338   : > { %v2382_v54 = vpack.i.b16 %v2381_v19, %v2380_v30  ;;  %v2417_v57 = vsel %vm296_vm0, %v2416_v11, %v2354_v62 }
 0x339   : > { %v2108_v42 = vpop.f32.mrf.mxu1  ;;  %v2163_v5 = vpop.f32.mrf.mxu0  ;;  %v2366_v63 = vpack.i.b16 %v2365_v58, %v2364_v15  ;;  %v2421_v34 = vperm.slane %v2417_v57, %v3036_v10  ;;  %v2423_v55 = vsel %vm296_vm0, %v2422_v32, %v2362_v39  ;;  %v2445_v38 = vsel %vm296_vm0, %v2444_v0, %v2358_v24 }
 0x33a   : > { %v2236_v6 = vpack.c.bf16 %v2163_v5, %v2163_v5  ;;  %v2427_v14 = vperm.slane %v2423_v55, %v3036_v10  ;;  %v2449_v51 = vperm.slane %v2445_v38, %v3036_v10  ;;  %v2450_v52 = vrot.slane %v2382_v54, 4 }
 0x33b   : > { %v2430_v59 = vrot.slane %v2421_v34, 4 }
 0x33c   : > { %v2296_v43 = vrot.slane %v2236_v6, 4  ;;  %v2451_v27 = vsel %vm296_vm0, %v2450_v52, %v2366_v63  ;;  %v2458_v60 = vrot.slane %v2449_v51, 4  ;;  %v2428_v13 = vrot.slane %v2427_v14, 4 }
 0x33d   : > { %v2431_v45 = vsel %vm296_vm0, %v2427_v14, %v2430_v59  ;;  %v2455_v48 = vperm.slane %v2451_v27, %v3036_v10 }
 0x33e   : > { %v2297_v4 = vsel %vm296_vm0, %v2296_v43, %v2232_v61  ;;  %v2439_v22 = vperm.slane %v2431_v45, %v3041_v20  ;;  %v2429_v53 = vsel %vm296_vm0, %v2428_v13, %v2421_v34  ;;  %v2235_v61 = vpack.c.bf16 %v3766_v36, %v3766_v36 }
 0x33f   : > { %v2301_v12 = vperm.slane %v2297_v4, %v3036_v10  ;;  %v2146_v35 = vpop.f32.mrf.mxu3  ;;  %v2201_v46 = vpop.f32.mrf.mxu2  ;;  %v2456_v8 = vrot.slane %v2455_v48, 4  ;;  %v2459_v21 = vsel %vm296_vm0, %v2455_v48, %v2458_v60  ;;  %v3785_v23 = vperm.slane %v2429_v53, %v3041_v20 }
 0x340   : > { %v2238_v44 = vpack.c.bf16 %v2201_v46, %v2201_v46  ;;  %v2467_v3 = vperm.slane %v2459_v21, %v3041_v20  ;;  %v2442_v18 = vrot.slane %v2439_v22, 4  ;;  %v2543_v1 = vshrl.u32 %v2439_v22, 16 }
 0x341   : > { %v2310_v31 = vrot.slane %v2301_v12, 4  ;;  %v2165_v40 = vpop.f32.mrf.mxu0  ;;  %v2182_v49 = vpop.f32.mrf.mxu1  ;;  %v2457_v50 = vsel %vm296_vm0, %v2456_v8, %v2449_v51  ;;  %v2440_v62 = vrot.slane %v3785_v23, 4  ;;  %v2531_v53 = vshrl.u32 %v3785_v23, 16 }
 0x342   : > { %v2302_v16 = vrot.slane %v2238_v44, 4  ;;  %v2237_v56 = vpack.c.bf16 %v2182_v49, %v2182_v49  ;;  %v2542_v41 = vpack.i.b16 %v2467_v3, %v2439_v22  ;;  %v2544_v26 = vshrl.u32 %v2467_v3, 16 }
 0x343   : > { %v2443_v47 = vsel %vm296_vm0, 0, %v2442_v18  ;;  %v2470_v28 = vrot.slane %v2467_v3, 4  ;;  %v3796_v17 = vperm.slane %v2457_v50, %v3041_v20  ;;  %v2441_v27 = vsel %vm296_vm0, 0, %v2440_v62 }
 0x344   : > { %v2303_v37 = vsel %vm296_vm0, %v2302_v16, %v2234_v9  ;;  %v2324_v29 = vrot.slane %v2237_v56, 4  ;;  %v2588_v7 = vunpack.c.l.b16 %v2542_v41  ;;  %v2545_v19 = vpack.i.b16 %v2544_v26, %v2543_v1 }
 0x345   : > { %v2307_v11 = vperm.slane %v2303_v37, %v3036_v10  ;;  %v2471_v15 = vsel %vm296_vm0, 0, %v2470_v28  ;;  %v2549_v30 = vshrl.u32 %v2443_v47, 16  ;;  %v2468_v2 = vrot.slane %v3796_v17, 4 }
 0x346   : > { %v2325_v24 = vsel %vm296_vm0, %v2324_v29, %v2233_v25  ;;  %v2589_v58 = vpack.c.b16 %v2588_v7, %v2588_v7  ;;  %v2592_v32 = vunpack.c.l.b16 %v2545_v19  ;;  %v2550_v0 = vshrl.u32 %v2471_v15, 16 }
 0x347   : > { %v2308_v33 = vrot.slane %v2307_v11, 4  ;;  %v2311_v39 = vsel %vm296_vm0, %v2307_v11, %v2310_v31  ;;  %v2329_v54 = vperm.slane %v2325_v24, %v3036_v10  ;;  %v2203_v57 = vpop.f32.mrf.mxu2  ;;  %v2220_v42 = vpop.f32.mrf.mxu3  ;;  %v2548_v5 = vpack.i.b16 %v2471_v15, %v2443_v47 }
 0x348   : > { %v2319_v63 = vperm.slane %v2311_v39, %v3041_v20  ;;  %2590 = vrot.lane.b32.xlu0 %v2589_v58, %s2931_s5  ;;  %v2239_v34 = vpack.c.bf16 %v2220_v42, %v2220_v42  ;;  %v2593_v55 = vpack.c.b16 %v2592_v32, %v2592_v32  ;;  %v2551_v38 = vpack.i.b16 %v2550_v0, %v2549_v30 }
 0x349   : > { %v2309_v6 = vsel %vm296_vm0, %v2308_v33, %v2301_v12  ;;  %v2184_v14 = vpop.f32.mrf.mxu1  ;;  %v2596_v51 = vunpack.c.l.b16 %v2548_v5  ;;  %v2469_v52 = vsel %vm296_vm0, 0, %v2468_v2  ;;  %v2338_v4 = vrot.slane %v2329_v54, 4 }
 0x34a   : > { %v3812_v59 = vperm.slane %v2309_v6, %v3041_v20  ;;  %v2330_v43 = vrot.slane %v2239_v34, 4  ;;  %2594 = vrot.lane.b32.xlu1 %v2593_v55, %s2938_s12  ;;  %v2322_v60 = vrot.slane %v2319_v63, 4  ;;  %v2600_v13 = vunpack.c.l.b16 %v2551_v38 }
 0x34b   : > { %v2536_v45 = vpack.i.b16 %v2469_v52, %v2441_v27  ;;  %v2597_v35 = vpack.c.b16 %v2596_v51, %v2596_v51  ;;  %v2537_v8 = vshrl.u32 %v2441_v27, 16  ;;  %v2538_v21 = vshrl.u32 %v2469_v52, 16 }
 0x34c   : > { %v2320_v48 = vrot.slane %v3812_v59, 4  ;;  %v2331_v22 = vsel %vm296_vm0, %v2330_v43, %v2235_v61  ;;  %v2601_v12 = vpack.c.b16 %v2600_v13, %v2600_v13  ;;  %v2532_v9 = vshrl.u32 %v3796_v17, 16 }
 0x34d   : > { %v2335_v36 = vperm.slane %v2331_v22, %v3036_v10  ;;  %v2580_v46 = vunpack.c.l.b16 %v2536_v45  ;;  %v2530_v44 = vpack.i.b16 %v3796_v17, %v3785_v23  ;;  %v2323_v18 = vsel %vm296_vm0, 0, %v2322_v60 }
 0x34e   : > { %v2321_v3 = vsel %vm296_vm0, 0, %v2320_v48  ;;  %2602 = vrot.lane.b32.xlu2 %v2601_v12, %s2934_s8  ;;  %v2539_v50 = vpack.i.b16 %v2538_v21, %v2537_v8  ;;  %v2533_v16 = vpack.i.b16 %v2532_v9, %v2531_v53  ;;  %v2388_v56 = vshrl.u32 %v3812_v59, 16 }
 0x34f   : > { %v2336_v25 = vrot.slane %v2335_v36, 4  ;;  %v2339_v31 = vsel %vm296_vm0, %v2335_v36, %v2338_v4  ;;  %v2222_v40 = vpop.f32.mrf.mxu3  ;;  %v2581_v1 = vpack.c.b16 %v2580_v46, %v2580_v46  ;;  %v2404_v41 = vshrl.u32 %v2319_v63, 16 }
 0x350   : > { %v2347_v49 = vperm.slane %v2339_v31, %v3041_v20  ;;  %2598 = vrot.lane.b32.xlu0 %v2597_v35, %s2937_s11  ;;  %v2396_v29 = vshrl.u32 %v2321_v3, 16  ;;  %v2412_v7 = vshrl.u32 %v2323_v18, 16  ;;  %v2584_v19 = vunpack.c.l.b16 %v2539_v50 }
 0x351   : > { %v2337_v26 = vsel %vm296_vm0, %v2336_v25, %v2329_v54  ;;  %v2576_v11 = vunpack.c.l.b16 %v2533_v16 }
 0x352   : > { %v2343_v47 = vperm.slane %v2337_v26, %v3041_v20  ;;  %v2350_v28 = vrot.slane %v2347_v49, 4  ;;  %v2402_v62 = vpack.i.b16 %v2347_v49, %v2319_v63  ;;  %v2405_v37 = vshrl.u32 %v2347_v49, 16  ;;  %2582 = vrot.lane.b32.xlu1 %v2581_v1, %s2935_s9 }
 0x353   : > { %v2585_v57 = vpack.c.b16 %v2584_v19, %v2584_v19  ;;  %v2577_v42 = vpack.c.b16 %v2576_v11, %v2576_v11 }
 0x354   : > { %v2348_v15 = vrot.slane %v2343_v47, 4  ;;  %v2351_v30 = vsel %vm296_vm0, 0, %v2350_v28  ;;  %v2386_v2 = vpack.i.b16 %v2343_v47, %v3812_v59  ;;  %v2389_v24 = vshrl.u32 %v2343_v47, 16 }
 0x355   : > { %v2406_v58 = vpack.i.b16 %v2405_v37, %v2404_v41  ;;  %v2410_v32 = vpack.i.b16 %v2351_v30, %v2323_v18  ;;  %v2413_v0 = vshrl.u32 %v2351_v30, 16  ;;  %v2472_v33 = vrot.slane %v2402_v62, 4 }
 0x356   : > { %v2349_v39 = vsel %vm296_vm0, 0, %v2348_v15  ;;  %v2390_v54 = vpack.i.b16 %v2389_v24, %v2388_v56  ;;  %2586 = vrot.lane.b32.xlu2 %v2585_v57, %s2932_s6 }
 0x357   : > { %v2397_v5 = vshrl.u32 %v2349_v39, 16  ;;  %v2478_v63 = vrot.slane %v2410_v32, 4  ;;  %v2500_v34 = vrot.slane %v2406_v58, 4  ;;  %v2394_v55 = vpack.i.b16 %v2349_v39, %v2321_v3 }
 0x358   : > { %2578 = vrot.lane.b32.xlu0 %v2577_v42, %s2936_s10  ;;  %v2414_v38 = vpack.i.b16 %v2413_v0, %v2412_v7  ;;  %v2473_v6 = vsel %vm296_vm0, %v2472_v33, %v2386_v2 }
 0x359   : > { %v2398_v14 = vpack.i.b16 %v2397_v5, %v2396_v29  ;;  %v2477_v51 = vperm.slane %v2473_v6, %v3036_v10  ;;  %v2479_v52 = vsel %vm296_vm0, %v2478_v63, %v2394_v55  ;;  %v2501_v61 = vsel %vm296_vm0, %v2500_v34, %v2390_v54 }
 0x35a   : > { %v2483_v59 = vperm.slane %v2479_v52, %v3036_v10  ;;  %v2505_v43 = vperm.slane %v2501_v61, %v3036_v10  ;;  %v2506_v27 = vrot.slane %v2414_v38, 4 }
 0x35b   : > { %v2486_v60 = vrot.slane %v2477_v51, 4 }
 0x35c   : > { %v2507_v13 = vsel %vm296_vm0, %v2506_v27, %v2398_v14  ;;  %v2514_v45 = vrot.slane %v2505_v43, 4  ;;  %v2484_v48 = vrot.slane %v2483_v59, 4 }
 0x35d   : > { %v2487_v4 = vsel %vm296_vm0, %v2483_v59, %v2486_v60  ;;  %v2511_v22 = vperm.slane %v2507_v13, %v3036_v10 }
 0x35e   : > { %v2485_v53 = vsel %vm296_vm0, %v2484_v48, %v2477_v51  ;;  %v2495_v46 = vperm.slane %v2487_v4, %v3041_v20 }
 0x35f   : > { %v2515_v36 = vsel %vm296_vm0, %v2511_v22, %v2514_v45  ;;  %v2491_v12 = vperm.slane %v2485_v53, %v3041_v20  ;;  %v2512_v35 = vrot.slane %v2511_v22, 4 }
 0x360   : > { %v2523_v8 = vperm.slane %v2515_v36, %v3041_v20  ;;  %v2498_v56 = vrot.slane %v2495_v46, 4  ;;  %v2567_v15 = vshrl.u32 %v2495_v46, 16 }
 0x361   : > { %v2513_v21 = vsel %vm296_vm0, %v2512_v35, %v2505_v43  ;;  %v2496_v9 = vrot.slane %v2491_v12, 4  ;;  %v2555_v10 = vshrl.u32 %v2491_v12, 16 }
 0x362   : > { %v2566_v3 = vpack.i.b16 %v2523_v8, %v2495_v46  ;;  %v2519_v18 = vperm.slane %v2513_v21, %v3041_v20  ;;  %v2526_v31 = vrot.slane %v2523_v8, 4  ;;  %v2568_v16 = vshrl.u32 %v2523_v8, 16 }
 0x363   : > { %v2497_v25 = vsel %vm296_vm0, 0, %v2496_v9  ;;  %v2499_v30 = vsel %vm296_vm0, 0, %v2498_v56 }
 0x364   : > { %v2620_v40 = vunpack.c.l.b16 %v2566_v3  ;;  %v2554_v49 = vpack.i.b16 %v2519_v18, %v2491_v12  ;;  %v2524_v1 = vrot.slane %v2519_v18, 4  ;;  %v2556_v50 = vshrl.u32 %v2519_v18, 16 }
 0x365   : > { %v2561_v37 = vshrl.u32 %v2497_v25, 16  ;;  %v2527_v20 = vsel %vm296_vm0, 0, %v2526_v31  ;;  %v2569_v32 = vpack.i.b16 %v2568_v16, %v2567_v15  ;;  %v2573_v33 = vshrl.u32 %v2499_v30, 16 }
 0x366   : > { %v2621_v41 = vpack.c.b16 %v2620_v40, %v2620_v40  ;;  %v2604_v26 = vunpack.c.l.b16 %v2554_v49  ;;  %v2525_v47 = vsel %vm296_vm0, 0, %v2524_v1  ;;  %v2557_v28 = vpack.i.b16 %v2556_v50, %v2555_v10 }
 0x367   : > { %v2560_v62 = vpack.i.b16 %v2525_v47, %v2497_v25  ;;  %v2562_v29 = vshrl.u32 %v2525_v47, 16  ;;  %v2574_v24 = vshrl.u32 %v2527_v20, 16  ;;  %v2624_v57 = vunpack.c.l.b16 %v2569_v32 }
 0x368   : > { %2622 = vrot.lane.b32.xlu0 %v2621_v41, %s2925_s22  ;;  %v2605_v7 = vpack.c.b16 %v2604_v26, %v2604_v26  ;;  %v2608_v2 = vunpack.c.l.b16 %v2557_v28  ;;  %v2572_v5 = vpack.i.b16 %v2527_v20, %v2499_v30  ;;  %vm2678_vm0 = vcmask 982016   ;;  %s246_s22 = scalar_lea.vmem %s3881_s4, %s2977_s17 }
 0x369   : > { %v2612_v19 = vunpack.c.l.b16 %v2560_v62  ;;  %v2563_v11 = vpack.i.b16 %v2562_v29, %v2561_v37  ;;  %v2575_v54 = vpack.i.b16 %v2574_v24, %v2573_v33  ;;  %v2625_v34 = vpack.c.b16 %v2624_v57, %v2624_v57 }
 0x36a   : > { %2606 = vrot.lane.b32.xlu1 %v2605_v7, %s2933_s7  ;;  %v2609_v39 = vpack.c.b16 %v2608_v2, %v2608_v2  ;;  %v2628_v55 = vunpack.c.l.b16 %v2572_v5 }
 0x36b   : > { %v2613_v58 = vpack.c.b16 %v2612_v19, %v2612_v19  ;;  %v2616_v0 = vunpack.c.l.b16 %v2563_v11  ;;  %v2632_v63 = vunpack.c.l.b16 %v2575_v54 }
 0x36c   : > { %v2629_v6 = vpack.c.b16 %v2628_v55, %v2628_v55 }
 0x36d   : > { %2614 = vrot.lane.b32.xlu2 %v2613_v58, %s2927_s24  ;;  %v2617_v42 = vpack.c.b16 %v2616_v0, %v2616_v0  ;;  %v2633_v38 = vpack.c.b16 %v2632_v63, %v2632_v63 }
 0x370   : > { %2610 = vrot.lane.b32.xlu0 %v2609_v39, %s2926_s23 }
 0x372   : > { %2618 = vrot.lane.b32.xlu1 %v2617_v42, %s2928_s25 }
 0x375   : > { %2626 = vrot.lane.b32.xlu2 %v2625_v34, %s2930_s30 }
 0x378   : > { %2634 = vrot.lane.b32.xlu0 %v2633_v38, %s2924_s21 }
 0x37a   : > { %2630 = vrot.lane.b32.xlu1 %v2629_v6, %s2929_s26 }
 0x3a8   : > { %v2603_v61 = vpop.permute.xlu2 %2602 }
 0x3b0   : > { %v2587_v13 = vpop.permute.xlu2 %2586 }
 0x3ba   : > { %v2591_v14 = vpop.permute.xlu0 %2590 }
 0x3bc   : > { %v2595_v52 = vpop.permute.xlu1 %2594 }
 0x3c2   : > { %v2599_v51 = vpop.permute.xlu0 %2598 }
 0x3c4   : > { %v2583_v27 = vpop.permute.xlu1 %2582 }
 0x3c7   : > { %v2615_v12 = vpop.permute.xlu2 %2614 }
 0x3ca   : > { %v2579_v59 = vpop.permute.xlu0 %2578 }
 0x3cb   : > { %v2638_v43 = vsel %vm1398_vm1, %v2530_v44, %v2579_v59 }
 0x3cc   : > { %v2641_v60 = vsel %vm2639_vm3, %v2638_v43, %v2583_v27 }
 0x3cd   : > { %v2644_v45 = vsel %vm2642_vm4, %v2641_v60, %v2587_v13 }
 0x3ce   : > { %v2647_v48 = vsel %vm2645_vm5, %v2644_v45, %v2591_v14 }
 0x3cf   : > { %v2650_v22 = vsel %vm2648_vm6, %v2647_v48, %v2595_v52  ;;  %v2627_v3 = vpop.permute.xlu2 %2626 }
 0x3d0   : > { %v2653_v36 = vsel %vm2651_vm7, %v2650_v22, %v2599_v51 }
 0x3d1   : > { %v2656_v23 = vsel %vm2654_vm8, %v2653_v36, %v2603_v61 }
 0x3da   : > { %v2623_v4 = vpop.permute.xlu0 %2622 }
 0x3dc   : > { %v2607_v53 = vpop.permute.xlu1 %2606 }
 0x3dd   : > { %v2659_v17 = vsel %vm2657_vm9, %v2656_v23, %v2607_v53 }
 0x3e2   : > { %v2611_v44 = vpop.permute.xlu0 %2610 }
 0x3e3   : > { %v2662_v35 = vsel %vm2660_vm10, %v2659_v17, %v2611_v44 }
 0x3e4   : > { %v2665_v46 = vsel %vm2663_vm11, %v2662_v35, %v2615_v12  ;;  %v2619_v8 = vpop.permute.xlu1 %2618 }
 0x3e5   : > { %v2668_v21 = vsel %vm2666_vm12, %v2665_v46, %v2619_v8 }
 0x3e6   : > { %v2671_v9 = vsel %vm2669_vm13, %v2668_v21, %v2623_v4 }
 0x3e7   : > { %v2674_v18 = vsel %vm2672_vm14, %v2671_v9, %v2627_v3 }
 0x3ea   : > { %v2635_v10 = vpop.permute.xlu0 %2634 }
 0x3ec   : > { %v2631_v25 = vpop.permute.xlu1 %2630 }
 0x3ed   : > { %v2677_v31 = vsel %vm2675_vm15, %v2674_v18, %v2631_v25 }
 0x3ee   : > { %v2680_v40 = vsel %vm2678_vm0, %v2677_v31, %v2635_v10 }
 0x3ef   : > { %2682 = vst [vmem:[%s246_s22] sm:$0xf] %v2680_v40 }
 0x3f0 PF: > { %s14_s15 = sadd.s32 1, %s2922_s15  }
 0x3f1   : > { %p11_p4 = scmp.ge.s32.totalorder %s14_s15, 4  }
 0x3f3   :  { %13 = sbr.rel (!%p11_p4) target bundleno = 1 (0x1), region = 75 }

// kernel: fusionnet_forward.10
= control target key start
LH: loop header
LB: loop body
LE: loop exit
PB: predicated region body
PF: predicated region fallthrough
CT: control target
= control target key end

     0   :  { %s2773_s15 = smov 0   ;;  %s3527_s0 = inlined_call_operand.vmem [shape: bf16[2,4,128], index: 0, kind: input, shape index: {}]   ;;  %s3528_s1 = inlined_call_operand.vmem [shape: bf16[2,8,128], index: 1, kind: input, shape index: {}]   ;;  %s3529_s2 = inlined_call_operand.vmem [shape: bf16[2,8,128], index: 2, kind: input, shape index: {}]   ;;  %s3530_s3 = inlined_call_operand.vmem [shape: bf16[2,4,4,8], index: 3, kind: input, shape index: {}]   ;;  %s3531_s4 = inlined_call_operand.vmem [shape: bf16[2,4,128], index: 4, kind: output, shape index: {}]  }
   0x1 LB: > { %s2588_s16 = sadd.s32 4294967295, %s2729_s15   ;;  %p2592_p0 = scmp.ge.s32.totalorder %s2729_s15, 1  ;;  %s2729_s15 = sphi %s2773_s15, %s14_s15  }
   0x2   : > { %p189_p1 = scmp.lt.s32.totalorder %s2729_s15, 3 }
   0x4   : > { %p190_p2 = pnand %p2592_p0, %p189_p1 }
   0x5   : > { %p226_p3 = scmp.lt.s32.totalorder (!%p190_p2), %s2588_s16, 1  ;;  %s2731_s21 = smov (!%p190_p2), 120  }
   0x6   : > { %193 = sbr.rel (%p190_p2) target bundleno = 982 (0x3d6), region = 36  ;;  %s2732_s22 = smov (!%p190_p2), 96  }
   0x7   : > { %s2733_s23 = smov (!%p190_p2), 72   ;;  %s2734_s25 = smov (!%p190_p2), 80  }
   0x8   : > { %s2735_s26 = smov (!%p190_p2), 88   ;;  %s2736_s27 = smov (!%p190_p2), 112  }
   0x9   : > { %s2737_s5 = smov (!%p190_p2), 104   ;;  %s2738_s6 = smov (!%p190_p2), 32  }
   0xa   : > { %s2739_s7 = smov (!%p190_p2), 24   ;;  %s2740_s8 = smov (!%p190_p2), 64  }
   0xb   : > { %s3533_s16 = smov (!%p226_p3, %s2588_s16), 1  ;;  %s2741_s9 = smov 56   ;;  %v2746_v6 = vmov 1983009808   ;;  %vm296_vm0 = vcmask 1047556   ;;  %vm1302_vm1 = vcmask 64512  }
   0xc   : > { %s2594_s17 = sshll.u32 %s3533_s16, 2  ;;  %s2593_s24 = sshll.u32 %s3533_s16, 1  ;;  %v586_v7 = vunpack.c.l.s4 %v2746_v6  ;;  %v2747_v12 = vmov 1934713408   ;;  %vm1631_vm2 = vcmask 60416   ;;  %vm1827_vm3 = vcmask 1043456  }
   0xd   : > { %s233_s20 = scalar_lea.vmem %s3528_s1, %s2594_s17  ;;  %s229_s30 = scalar_lea.vmem %s3527_s0, %s2593_s24  ;;  %v299_v13 = vunpack.c.l.s4 %v2747_v12  ;;  %vm2455_vm4 = vcmask 130048   ;;  %vm2458_vm5 = vcmask 195584   ;;  %vm2461_vm6 = vcmask 261120  }
   0xe   : > { %v536_v0 = vld [vmem:[%s233_s20] sm:$0xf]  ;;  %s2742_s10 = smov 16   ;;  %s2743_s11 = smov 8   ;;  %v2844_v10 = vunpack.c.0.s8 %v586_v7  ;;  %vm2464_vm7 = vcmask 326656   ;;  %vm2467_vm8 = vcmask 392192  }
   0xf   : > { %538 = vrot.lane.b32.xlu1 %v536_v0, %s2731_s21  ;;  %547 = vrot.lane.b32.xlu0 %v536_v0, %s2732_s22  ;;  %v2801_v1 = vld [vmem:[%s229_s30] sm:$0x3]  ;;  %s2744_s12 = smov 48   ;;  %s2745_s13 = smov 40   ;;  %v2850_v20 = vunpack.c.0.s8 %v299_v13  ;;  %vm2470_vm9 = vcmask 457728   ;;  %vm2473_vm10 = vcmask 523264  }
  0x10   : > { %556 = vrot.lane.b32.xlu2 %v536_v0, %s2733_s23  ;;  %s237_s19 = scalar_lea.vmem %s3529_s2, %s2594_s17  ;;  %s2633_s17 = sshll.u32 %s3533_s16, 3  ;;  %vm2476_vm11 = vcmask 588800   ;;  %vm2479_vm12 = vcmask 654336   ;;  %vm2482_vm13 = vcmask 719872   ;;  %vm2485_vm14 = vcmask 785408  }
  0x11   : > { %s242_s29 = scalar_lea.vmem %s3530_s3, %s2633_s17  ;;  %vm2488_vm15 = vcmask 850944  }
  0x17   : > { %553 = vrot.lane.b32.xlu1 %v536_v0, %s2734_s25  ;;  %550 = vrot.lane.b32.xlu0 %v536_v0, %s2735_s26 }
  0x18   : > { %541 = vrot.lane.b32.xlu2 %v536_v0, %s2736_s27 }
  0x1f   : > { %544 = vrot.lane.b32.xlu0 %v536_v0, %s2737_s5  ;;  %253 = vrot.lane.b32.xlu1 %v2801_v1, %s2736_s27 }
  0x20   : > { %256 = vrot.lane.b32.xlu2 %v2801_v1, %s2737_s5 }
  0x27   : > { %250 = vrot.lane.b32.xlu0 %v2801_v1, %s2731_s21  ;;  %571 = vrot.lane.b32.xlu1 %v536_v0, %s2738_s6 }
  0x28   : > { %574 = vrot.lane.b32.xlu2 %v536_v0, %s2739_s7 }
  0x2f   : > { %265 = vrot.lane.b32.xlu0 %v2801_v1, %s2734_s25  ;;  %268 = vrot.lane.b32.xlu1 %v2801_v1, %s2733_s23 }
  0x30   : > { %559 = vrot.lane.b32.xlu2 %v536_v0, %s2740_s8 }
  0x37   : > { %562 = vrot.lane.b32.xlu0 %v536_v0, %s2741_s9  ;;  %577 = vrot.lane.b32.xlu1 %v536_v0, %s2742_s10 }
  0x38   : > { %580 = vrot.lane.b32.xlu2 %v536_v0, %s2743_s11 }
  0x3f   : > { %259 = vrot.lane.b32.xlu0 %v2801_v1, %s2732_s22  ;;  %262 = vrot.lane.b32.xlu1 %v2801_v1, %s2735_s26 }
  0x40   : > { %565 = vrot.lane.b32.xlu2 %v536_v0, %s2744_s12 }
  0x47   : > { %568 = vrot.lane.b32.xlu0 %v536_v0, %s2745_s13  ;;  %277 = vrot.lane.b32.xlu1 %v2801_v1, %s2744_s12 }
  0x48   : > { %280 = vrot.lane.b32.xlu2 %v2801_v1, %s2745_s13 }
  0x4f   : > { %271 = vrot.lane.b32.xlu0 %v2801_v1, %s2740_s8  ;;  %274 = vrot.lane.b32.xlu1 %v2801_v1, %s2741_s9 }
  0x50   : > { %289 = vrot.lane.b32.xlu2 %v2801_v1, %s2742_s10 }
  0x57   : > { %292 = vrot.lane.b32.xlu0 %v2801_v1, %s2743_s11  ;;  %283 = vrot.lane.b32.xlu1 %v2801_v1, %s2738_s6 }
  0x58   : > { %286 = vrot.lane.b32.xlu2 %v2801_v1, %s2739_s7 }
  0x6a   : > { %v557_v2 = vpop.permute.xlu2 %556 }
  0x6b   : > { %v617_v28 = vrot.slane %v557_v2, 4 }
  0x72   : > { %v542_v3 = vpop.permute.xlu2 %541 }
  0x7a   : > { %v2842_v4 = vpop.permute.xlu2 %256 }
  0x7b   : > { %v304_v48 = vrot.slane %v2842_v4, 4 }
  0x81   : > { %v539_v5 = vpop.permute.xlu1 %538  ;;  %v548_v8 = vpop.permute.xlu0 %547 }
  0x82   : > { %v583_v9 = vrot.slane %v548_v8, 4  ;;  %v2848_v19 = vpop.permute.xlu2 %574 }
  0x83   : > { %v667_v6 = vrot.slane %v2848_v19, 4 }
  0x84   : > { %v584_v11 = vsel %vm296_vm0, %v583_v9, %v536_v0 }
  0x85   : > { %v588_v14 = vperm.slane %v584_v11, %v2844_v10 }
  0x87   : > { %v597_v23 = vrot.slane %v588_v14, 4 }
  0x89   : > { %v554_v15 = vpop.permute.xlu1 %553  ;;  %v551_v16 = vpop.permute.xlu0 %550 }
  0x8a   : > { %v589_v17 = vrot.slane %v554_v15, 4  ;;  %v611_v18 = vrot.slane %v551_v16, 4  ;;  %v560_v39 = vpop.permute.xlu2 %559 }
  0x8c   : > { %v590_v21 = vsel %vm296_vm0, %v589_v17, %v542_v3  ;;  %v612_v22 = vsel %vm296_vm0, %v611_v18, %v539_v5 }
  0x8d   : > { %v594_v24 = vperm.slane %v590_v21, %v2844_v10  ;;  %v616_v27 = vperm.slane %v612_v22, %v2844_v10 }
  0x8f   : > { %v595_v25 = vrot.slane %v594_v24, 4  ;;  %v598_v26 = vsel %vm296_vm0, %v594_v24, %v597_v23  ;;  %v625_v36 = vrot.slane %v616_v27, 4 }
  0x90   : > { %v606_v29 = vperm.slane %v598_v26, %v2850_v20 }
  0x91   : > { %v596_v30 = vsel %vm296_vm0, %v595_v25, %v588_v14  ;;  %v545_v31 = vpop.permute.xlu0 %544  ;;  %v254_v32 = vpop.permute.xlu1 %253 }
  0x92   : > { %v602_v33 = vperm.slane %v596_v30, %v2850_v20  ;;  %v609_v34 = vrot.slane %v606_v29, 4  ;;  %v618_v35 = vsel %vm296_vm0, %v617_v28, %v545_v31  ;;  %v295_v38 = vrot.slane %v254_v32, 4  ;;  %v2880_v17 = vpop.permute.xlu2 %580 }
  0x93   : > { %v622_v37 = vperm.slane %v618_v35, %v2844_v10  ;;  %v715_v47 = vshrl.u32 %v606_v29, 16  ;;  %v673_v35 = vrot.slane %v2880_v17, 4 }
  0x94   : > { %v607_v40 = vrot.slane %v602_v33, 4  ;;  %v297_v43 = vsel %vm296_vm0, %v295_v38, %v2801_v1  ;;  %v610_v44 = vsel %vm296_vm0, 0, %v609_v34  ;;  %v699_v54 = vshrl.u32 %v602_v33, 16 }
  0x95   : > { %v623_v41 = vrot.slane %v622_v37, 4  ;;  %v626_v42 = vsel %vm296_vm0, %v622_v37, %v625_v36  ;;  %v2868_v46 = vperm.slane %v297_v43, %v2850_v20  ;;  %v723_v56 = vshrl.u32 %v610_v44, 16 }
  0x96   : > { %v634_v45 = vperm.slane %v626_v42, %v2850_v20  ;;  %v608_v55 = vsel %vm296_vm0, 0, %v607_v40 }
  0x97   : > { %v624_v49 = vsel %vm296_vm0, %v623_v41, %v616_v27  ;;  %v302_v57 = vrot.slane %v2868_v46, 4  ;;  %v707_v13 = vshrl.u32 %v608_v55, 16  ;;  %v364_v18 = vshrl.u32 %v2868_v46, 16 }
  0x98   : > { %v630_v50 = vperm.slane %v624_v49, %v2850_v20  ;;  %v637_v51 = vrot.slane %v634_v45, 4  ;;  %v713_v52 = vpack.i.b16 %v634_v45, %v606_v29  ;;  %v716_v53 = vshrl.u32 %v634_v45, 16 }
  0x99   : > { %v251_v58 = vpop.permute.xlu0 %250  ;;  %v572_v59 = vpop.permute.xlu1 %571  ;;  %v303_v21 = vsel %vm296_vm0, 0, %v302_v57 }
  0x9a   : > { %v635_v60 = vrot.slane %v630_v50, 4  ;;  %v638_v61 = vsel %vm296_vm0, 0, %v637_v51  ;;  %v697_v62 = vpack.i.b16 %v630_v50, %v602_v33  ;;  %v700_v63 = vshrl.u32 %v630_v50, 16  ;;  %v566_v57 = vpop.permute.xlu2 %565 }
  0x9b   : > { %v717_v0 = vpack.i.b16 %v716_v53, %v715_v47  ;;  %v721_v1 = vpack.i.b16 %v638_v61, %v610_v44  ;;  %v724_v2 = vshrl.u32 %v638_v61, 16  ;;  %v759_v3 = vrot.slane %v713_v52, 4 }
  0x9c   : > { %v636_v4 = vsel %vm296_vm0, 0, %v635_v60  ;;  %v701_v5 = vpack.i.b16 %v700_v63, %v699_v54  ;;  %v305_v7 = vsel %vm296_vm0, %v304_v48, %v251_v58  ;;  %v639_v16 = vrot.slane %v572_v59, 4 }
  0x9d   : > { %v705_v8 = vpack.i.b16 %v636_v4, %v608_v55  ;;  %v708_v9 = vshrl.u32 %v636_v4, 16  ;;  %v725_v11 = vpack.i.b16 %v724_v2, %v723_v56  ;;  %v765_v12 = vrot.slane %v721_v1, 4 }
  0x9e   : > { %v787_v14 = vrot.slane %v717_v0, 4  ;;  %v309_v15 = vperm.slane %v305_v7, %v2850_v20  ;;  %v760_v22 = vsel %vm296_vm0, %v759_v3, %v697_v62  ;;  %v640_v25 = vsel %vm296_vm0, %v639_v16, %v560_v39 }
  0x9f   : > { %v766_v19 = vsel %vm296_vm0, %v765_v12, %v705_v8  ;;  %v793_v23 = vrot.slane %v725_v11, 4  ;;  %v709_v26 = vpack.i.b16 %v708_v9, %v707_v13  ;;  %v764_v30 = vperm.slane %v760_v22, %v2844_v10 }
  0xa0   : > { %v310_v24 = vrot.slane %v309_v15, 4  ;;  %v365_v27 = vshrl.u32 %v309_v15, 16  ;;  %v770_v31 = vperm.slane %v766_v19, %v2844_v10  ;;  %v788_v32 = vsel %vm296_vm0, %v787_v14, %v701_v5 }
  0xa1   : > { %v2887_v28 = vpop.permute.xlu0 %265  ;;  %v2889_v29 = vpop.permute.xlu1 %268  ;;  %v372_v34 = vshrl.u32 %v303_v21, 16  ;;  %v362_v36 = vpack.i.b16 %v309_v15, %v2868_v46  ;;  %v644_v38 = vperm.slane %v640_v25, %v2844_v10  ;;  %v792_v41 = vperm.slane %v788_v32, %v2844_v10 }
  0xa2   : > { %v311_v33 = vsel %vm296_vm0, 0, %v310_v24  ;;  %v771_v39 = vrot.slane %v770_v31, 4  ;;  %v794_v42 = vsel %vm296_vm0, %v793_v23, %v709_v26  ;;  %v773_v43 = vrot.slane %v764_v30, 4 }
  0xa3   : > { %v370_v37 = vpack.i.b16 %v311_v33, %v303_v21  ;;  %v373_v40 = vshrl.u32 %v311_v33, 16  ;;  %v2900_v44 = vpack.i.b16 %v365_v27, %v364_v18  ;;  %v798_v48 = vperm.slane %v794_v42, %v2844_v10 }
  0xa4   : > { %v772_v47 = vsel %vm296_vm0, %v771_v39, %v764_v30  ;;  %v312_v49 = vrot.slane %v2887_v28, 4  ;;  %v774_v50 = vsel %vm296_vm0, %v770_v31, %v773_v43  ;;  %v801_v51 = vrot.slane %v792_v41, 4 }
  0xa5   : > { %v424_v45 = vrot.slane %v370_v37, 4  ;;  %v778_v46 = vperm.slane %v772_v47, %v2850_v20  ;;  %v653_v52 = vrot.slane %v644_v38, 4  ;;  %v320_v53 = vrot.slane %v2889_v29, 4 }
  0xa6   : > { %v799_v54 = vrot.slane %v798_v48, 4  ;;  %v782_v55 = vperm.slane %v774_v50, %v2850_v20  ;;  %v2909_v56 = vpack.i.b16 %v373_v40, %v372_v34  ;;  %v802_v58 = vsel %vm296_vm0, %v798_v48, %v801_v51 }
  0xa7   : > { %v783_v59 = vrot.slane %v778_v46, 4  ;;  %v425_v60 = vsel %vm296_vm0, %v424_v45, %v362_v36  ;;  %v810_v0 = vperm.slane %v802_v58, %v2850_v20  ;;  %v874_v1 = vshrl.u32 %v778_v46, 16 }
  0xa8   : > { %v800_v63 = vsel %vm296_vm0, %v799_v54, %v792_v41  ;;  %v785_v2 = vrot.slane %v782_v55, 4  ;;  %v886_v7 = vshrl.u32 %v782_v55, 16  ;;  %v432_v42 = vrot.slane %v2909_v56, 4 }
  0xa9   : > { %v563_v61 = vpop.permute.xlu0 %562  ;;  %v578_v62 = vpop.permute.xlu1 %577  ;;  %v806_v5 = vperm.slane %v800_v63, %v2850_v20  ;;  %v885_v9 = vpack.i.b16 %v810_v0, %v782_v55  ;;  %v784_v11 = vsel %vm296_vm0, 0, %v783_v59  ;;  %v887_v12 = vshrl.u32 %v810_v0, 16 }
  0xaa   : > { %v668_v3 = vsel %vm296_vm0, %v667_v6, %v563_v61  ;;  %v645_v4 = vrot.slane %v578_v62, 4  ;;  %v786_v22 = vsel %vm296_vm0, 0, %v785_v2  ;;  %v813_v25 = vrot.slane %v810_v0, 4 }
  0xab   : > { %v2918_v8 = vperm.slane %v668_v3, %v2844_v10  ;;  %v873_v14 = vpack.i.b16 %v806_v5, %v778_v46  ;;  %v875_v15 = vshrl.u32 %v806_v5, 16  ;;  %v811_v16 = vrot.slane %v806_v5, 4 }
  0xac   : > { %v646_v13 = vsel %vm296_vm0, %v645_v4, %v566_v57  ;;  %v1383_v6 = vsel %vm1302_vm1, %v885_v9, 0  ;;  %v888_v21 = vpack.i.b16 %v887_v12, %v886_v7  ;;  %v814_v32 = vsel %vm296_vm0, 0, %v813_v25 }
  0xad   : > { %v650_v18 = vperm.slane %v646_v13, %v2844_v10  ;;  %v1307_v19 = vsel %vm1302_vm1, %v873_v14, 0  ;;  %v876_v23 = vpack.i.b16 %v875_v15, %v874_v1  ;;  %v812_v24 = vsel %vm296_vm0, 0, %v811_v16 }
  0xae   : > { %1316 = vmatpush.bf16.xpose.msra.mxu0 %v1307_v19  ;;  %v879_v28 = vpack.i.b16 %v812_v24, %v784_v11  ;;  %v1402_v29 = vsel %vm1302_vm1, %v888_v21, 0  ;;  %v880_v33 = vshrl.u32 %v784_v11, 16  ;;  %v891_v37 = vpack.i.b16 %v814_v32, %v786_v22 }
  0xaf   : > { %v651_v26 = vrot.slane %v650_v18, 4  ;;  %v654_v27 = vsel %vm296_vm0, %v650_v18, %v653_v52  ;;  %v1326_v31 = vsel %vm1302_vm1, %v876_v23, 0  ;;  %v881_v39 = vshrl.u32 %v812_v24, 16 }
  0xb0   : > { %v2930_v30 = vperm.slane %v654_v27, %v2850_v20  ;;  %1335 = vmatpush.bf16.xpose.msra.mxu1 %v1326_v31  ;;  %v1345_v36 = vsel %vm1302_vm1, %v879_v28, 0  ;;  %v681_v51 = vrot.slane %v2918_v8, 4  ;;  %v429_v55 = vperm.slane %v425_v60, %v2850_v20 }
  0xb1   : > { %v652_v34 = vsel %vm296_vm0, %v651_v26, %v644_v38  ;;  %v260_v40 = vpop.permute.xlu0 %259  ;;  %v263_v41 = vpop.permute.xlu1 %262  ;;  %1354 = vmatpush.bf16.xpose.msra.mxu2 %v1345_v36  ;;  %v1421_v38 = vsel %vm1302_vm1, %v891_v37, 0  ;;  %v882_v48 = vpack.i.b16 %v881_v39, %v880_v33  ;;  %v892_v60 = vshrl.u32 %v786_v22, 16 }
  0xb2   : > { %v2938_v43 = vperm.slane %v652_v34, %v2850_v20  ;;  %v665_v45 = vrot.slane %v2930_v30, 4  ;;  %v313_v47 = vsel %vm296_vm0, %v312_v49, %v260_v40  ;;  %v321_v50 = vsel %vm296_vm0, %v320_v53, %v263_v41  ;;  %v281_v39 = vpop.permute.xlu2 %280 }
  0xb3   : > { %v317_v46 = vperm.slane %v313_v47, %v2850_v20  ;;  %v325_v54 = vperm.slane %v321_v50, %v2850_v20  ;;  %v747_v49 = vshrl.u32 %v2930_v30, 16  ;;  %v1364_v57 = vsel %vm1302_vm1, %v882_v48, 0 }
  0xb4   : > { %v663_v52 = vrot.slane %v2938_v43, 4  ;;  %v2950_v56 = vsel %vm296_vm0, 0, %v665_v45  ;;  %v731_v59 = vshrl.u32 %v2938_v43, 16  ;;  %1373 = vmatpush.bf16.xpose.msra.mxu3 %v1364_v57  ;;  %v893_v1 = vshrl.u32 %v814_v32, 16 }
  0xb5   : > { %v318_v58 = vrot.slane %v317_v46, 4  ;;  %v380_v53 = vshrl.u32 %v317_v46, 16  ;;  %v326_v61 = vrot.slane %v325_v54, 4  ;;  %v381_v62 = vshrl.u32 %v325_v54, 16 }
  0xb6   : > { %1392 = vmatpush.bf16.xpose.msrb.mxu0 %v1383_v6  ;;  %v2956_v63 = vsel %vm296_vm0, 0, %v663_v52  ;;  %v378_v4 = vpack.i.b16 %v325_v54, %v317_v46  ;;  %v433_v5 = vsel %vm296_vm0, %v432_v42, %v2900_v44  ;;  %v894_v11 = vpack.i.b16 %v893_v1, %v892_v60 }
  0xb7   : > { %v319_v0 = vsel %vm296_vm0, 0, %v318_v58  ;;  %v327_v3 = vsel %vm296_vm0, 0, %v326_v61  ;;  %v437_v12 = vperm.slane %v433_v5, %v2850_v20  ;;  %v382_v14 = vpack.i.b16 %v381_v62, %v380_v53 }
  0xb8   : > { %1411 = vmatpush.bf16.xpose.msrb.mxu1 %v1402_v29  ;;  %v388_v2 = vshrl.u32 %v319_v0, 16  ;;  %v386_v7 = vpack.i.b16 %v327_v3, %v319_v0  ;;  %v389_v9 = vshrl.u32 %v327_v3, 16  ;;  %v491_v15 = vshrl.u32 %v429_v55, 16 }
  0xb9   : > { %1430 = vmatpush.bf16.xpose.msrb.mxu2 %v1421_v38  ;;  %v569_v13 = vpop.permute.xlu0 %568  ;;  %v430_v16 = vrot.slane %v429_v55, 4  ;;  %v1440_v22 = vsel %vm1302_vm1, %v894_v11, 0  ;;  %v490_v19 = vpack.i.b16 %v437_v12, %v429_v55  ;;  %v278_v23 = vpop.permute.xlu1 %277  ;;  %v492_v44 = vshrl.u32 %v437_v12, 16 }
  0xba   : > { %v674_v18 = vsel %vm296_vm0, %v673_v35, %v569_v13  ;;  %v390_v6 = vpack.i.b16 %v389_v9, %v388_v2  ;;  %v440_v21 = vrot.slane %v386_v7, 4  ;;  %v438_v25 = vrot.slane %v437_v12, 4 }
  0xbb   : > { %v431_v24 = vsel %vm296_vm0, 0, %v430_v16  ;;  %v678_v26 = vperm.slane %v674_v18, %v2844_v10  ;;  %2599 = vmatmul.msk.bf16.vlgmr.msra.gmra.mxu0 %vm1302_vm1, %v490_v19  ;;  %v328_v35 = vrot.slane %v278_v23, 4  ;;  %v493_v29 = vpack.i.b16 %v492_v44, %v491_v15 }
  0xbc   : > { %1449 = vmatpush.bf16.xpose.msrb.mxu3 %v1440_v22  ;;  %v441_v27 = vsel %vm296_vm0, %v440_v21, %v378_v4  ;;  %v448_v28 = vrot.slane %v390_v6, 4  ;;  %v497_v17 = vshrl.u32 %v431_v24, 16  ;;  %v439_v31 = vsel %vm296_vm0, 0, %v438_v25 }
  0xbd   : > { %v679_v32 = vrot.slane %v678_v26, 4  ;;  %v682_v33 = vsel %vm296_vm0, %v678_v26, %v681_v51  ;;  %v496_v34 = vpack.i.b16 %v439_v31, %v431_v24  ;;  %v498_v36 = vshrl.u32 %v439_v31, 16  ;;  %2600 = vmatmul.msk.bf16.vlgmr.msra.gmra.mxu1 %vm1302_vm1, %v493_v29 }
  0xbe   : > { %v690_v37 = vperm.slane %v682_v33, %v2850_v20  ;;  %v2975_v40 = vperm.slane %v441_v27, %v2850_v20  ;;  %v739_v41 = vshrl.u32 %v2956_v63, 16  ;;  %v755_v42 = vshrl.u32 %v2950_v56, 16 }
  0xbf   : > { %v680_v45 = vsel %vm296_vm0, %v679_v32, %v2918_v8  ;;  %v449_v47 = vsel %vm296_vm0, %v448_v28, %v382_v14  ;;  %2601 = vmatmul.msk.bf16.vlgmr.msra.gmra.mxu2 %vm1302_vm1, %v496_v34  ;;  %v499_v38 = vpack.i.b16 %v498_v36, %v497_v17  ;;  %v336_v54 = vrot.slane %v281_v39, 4 }
  0xc0   : > { %v686_v48 = vperm.slane %v680_v45, %v2850_v20  ;;  %v693_v46 = vrot.slane %v690_v37, 4  ;;  %v745_v50 = vpack.i.b16 %v690_v37, %v2930_v30  ;;  %v748_v52 = vshrl.u32 %v690_v37, 16  ;;  %v3007_v30 = vld [vmem:[%s237_s19] sm:$0xf] }
  0xc1   : > { %v272_v51 = vpop.permute.xlu0 %271  ;;  %v453_v55 = vperm.slane %v449_v47, %v2850_v20  ;;  %2602 = vmatmul.msk.bf16.vlgmr.msra.gmra.mxu3 %vm1302_vm1, %v499_v38  ;;  %v503_v61 = vshrl.u32 %v2975_v40, 16  ;;  %v275_v7 = vpop.permute.xlu1 %274  ;;  %930 = vrot.lane.b32.xlu1 %v3007_v30, %s2732_s22  ;;  %v446_v16 = vrot.slane %v2975_v40, 4 }
  0xc2   : > { %v329_v57 = vsel %vm296_vm0, %v328_v35, %v272_v51  ;;  %v691_v8 = vrot.slane %v686_v48, 4  ;;  %v694_v58 = vsel %vm296_vm0, 0, %v693_v46  ;;  %v732_v53 = vshrl.u32 %v686_v48, 16  ;;  %921 = vrot.lane.b32.xlu0 %v3007_v30, %s2731_s21  ;;  %933 = vrot.lane.b32.xlu2 %v3007_v30, %s2735_s26 }
  0xc3   : > { %v729_v62 = vpack.i.b16 %v686_v48, %v2938_v43  ;;  %v749_v0 = vpack.i.b16 %v748_v52, %v747_v49  ;;  %v753_v60 = vpack.i.b16 %v694_v58, %v2950_v56  ;;  %v756_v1 = vshrl.u32 %v694_v58, 16 }
  0xc4   : > { %v692_v2 = vsel %vm296_vm0, 0, %v691_v8  ;;  %v733_v3 = vpack.i.b16 %v732_v53, %v731_v59  ;;  %v815_v4 = vrot.slane %v745_v50, 4  ;;  %v3004_v5 = vperm.slane %v329_v57, %v2850_v20 }
  0xc5   : > { %v737_v9 = vpack.i.b16 %v692_v2, %v2956_v63  ;;  %v740_v11 = vshrl.u32 %v692_v2, 16  ;;  %v757_v12 = vpack.i.b16 %v756_v1, %v755_v42  ;;  %v821_v13 = vrot.slane %v753_v60, 4  ;;  %v290_v42 = vpop.permute.xlu2 %289 }
  0xc6   : > { %v843_v49 = vrot.slane %v749_v0, 4  ;;  %v502_v56 = vpack.i.b16 %v453_v55, %v2975_v40  ;;  %v334_v14 = vrot.slane %v3004_v5, 4  ;;  %v504_v15 = vshrl.u32 %v453_v55, 16 }
  0xc7   : > { %v741_v43 = vpack.i.b16 %v740_v11, %v739_v41  ;;  %v396_v59 = vshrl.u32 %v3004_v5, 16  ;;  %v337_v63 = vsel %vm296_vm0, %v336_v54, %v275_v7  ;;  %v849_v18 = vrot.slane %v757_v12, 4 }
  0xc8   : > { %v335_v6 = vsel %vm296_vm0, 0, %v334_v14  ;;  %v341_v21 = vperm.slane %v337_v63, %v2850_v20  ;;  %v454_v22 = vrot.slane %v453_v55, 4  ;;  %v505_v19 = vpack.i.b16 %v504_v15, %v503_v61 }
  0xc9   : > { %v447_v23 = vsel %vm296_vm0, 0, %v446_v16  ;;  %v816_v44 = vsel %vm296_vm0, %v815_v4, %v729_v62  ;;  %v822_v24 = vsel %vm296_vm0, %v821_v13, %v737_v9  ;;  %v404_v25 = vshrl.u32 %v335_v6, 16  ;;  %936 = vrot.lane.b32.xlu1 %v3007_v30, %s2734_s25  ;;  %v293_v54 = vpop.permute.xlu0 %292  ;;  %v284_v55 = vpop.permute.xlu1 %283 }
  0xca   : > { %v342_v26 = vrot.slane %v341_v21, 4  ;;  %v394_v27 = vpack.i.b16 %v341_v21, %v3004_v5  ;;  %v455_v28 = vsel %vm296_vm0, 0, %v454_v22  ;;  %v397_v17 = vshrl.u32 %v341_v21, 16  ;;  %939 = vrot.lane.b32.xlu0 %v3007_v30, %s2733_s23  ;;  %924 = vrot.lane.b32.xlu2 %v3007_v30, %s2736_s27 }
  0xcb   : > { %v509_v35 = vshrl.u32 %v447_v23, 16  ;;  %v510_v29 = vshrl.u32 %v455_v28, 16  ;;  %v820_v31 = vperm.slane %v816_v44, %v2844_v10  ;;  %2603 = vmatmul.msk.bf16.vlgmr.msrb.gmra.mxu0 %vm1302_vm1, %v502_v56  ;;  %v508_v33 = vpack.i.b16 %v455_v28, %v447_v23 }
  0xcc   : > { %v343_v32 = vsel %vm296_vm0, 0, %v342_v26  ;;  %v826_v34 = vperm.slane %v822_v24, %v2844_v10  ;;  %v844_v36 = vsel %vm296_vm0, %v843_v49, %v733_v3  ;;  %v850_v47 = vsel %vm296_vm0, %v849_v18, %v741_v43 }
  0xcd   : > { %v402_v37 = vpack.i.b16 %v343_v32, %v335_v6  ;;  %v405_v39 = vshrl.u32 %v343_v32, 16  ;;  %v511_v40 = vpack.i.b16 %v510_v29, %v509_v35  ;;  %v848_v41 = vperm.slane %v844_v36, %v2844_v10  ;;  %2604 = vmatmul.msk.bf16.vlgmr.msrb.gmra.mxu1 %vm1302_vm1, %v505_v19  ;;  %v287_v23 = vpop.permute.xlu2 %286 }
  0xce   : > { %v827_v45 = vrot.slane %v826_v34, 4  ;;  %v829_v38 = vrot.slane %v820_v31, 4  ;;  %v344_v48 = vrot.slane %v290_v42, 4  ;;  %v854_v51 = vperm.slane %v850_v47, %v2844_v10 }
  0xcf   : > { %v406_v46 = vpack.i.b16 %v405_v39, %v404_v25  ;;  %v456_v50 = vrot.slane %v402_v37, 4  ;;  %v857_v52 = vrot.slane %v848_v41, 4  ;;  %v398_v57 = vpack.i.b16 %v397_v17, %v396_v59  ;;  %2605 = vmatmul.msk.bf16.vlgmr.msrb.gmra.mxu2 %vm1302_vm1, %v508_v33 }
  0xd0   : > { %v828_v8 = vsel %vm296_vm0, %v827_v45, %v820_v31  ;;  %v830_v58 = vsel %vm296_vm0, %v826_v34, %v829_v38  ;;  %v855_v0 = vrot.slane %v854_v51, 4  ;;  %v352_v2 = vrot.slane %v293_v54, 4 }
  0xd1   : > { %v457_v53 = vsel %vm296_vm0, %v456_v50, %v394_v27  ;;  %v464_v61 = vrot.slane %v406_v46, 4  ;;  %v834_v62 = vperm.slane %v828_v8, %v2850_v20  ;;  %2606 = vmatmul.msk.bf16.vlgmr.msrb.gmra.mxu3 %vm1302_vm1, %v511_v40  ;;  %v838_v60 = vperm.slane %v830_v58, %v2850_v20  ;;  %927 = vrot.lane.b32.xlu1 %v3007_v30, %s2737_s5 }
  0xd2   : > { %v858_v1 = vsel %vm296_vm0, %v854_v51, %v857_v52  ;;  %v345_v3 = vsel %vm296_vm0, %v344_v48, %v284_v55  ;;  %v3052_v4 = vperm.slane %v457_v53, %v2850_v20  ;;  %v856_v7 = vsel %vm296_vm0, %v855_v0, %v848_v41  ;;  %942 = vrot.lane.b32.xlu0 %v3007_v30, %s2740_s8 }
  0xd3   : > { %v465_v5 = vsel %vm296_vm0, %v464_v61, %v398_v57  ;;  %v866_v9 = vperm.slane %v858_v1, %v2850_v20  ;;  %v862_v11 = vperm.slane %v856_v7, %v2850_v20  ;;  %v898_v12 = vshrl.u32 %v834_v62, 16  ;;  %954 = vrot.lane.b32.xlu2 %v3007_v30, %s2738_s6 }
  0xd4   : > { %v839_v13 = vrot.slane %v834_v62, 4  ;;  %v910_v49 = vshrl.u32 %v838_v60, 16  ;;  %v841_v15 = vrot.slane %v838_v60, 4  ;;  %v469_v6 = vperm.slane %v465_v5, %v2850_v20 }
  0xd5   : > { %v909_v56 = vpack.i.b16 %v866_v9, %v838_v60  ;;  %v911_v14 = vshrl.u32 %v866_v9, 16  ;;  %v869_v43 = vrot.slane %v866_v9, 4  ;;  %v897_v59 = vpack.i.b16 %v862_v11, %v834_v62 }
  0xd6   : > { %v899_v63 = vshrl.u32 %v862_v11, 16  ;;  %v840_v16 = vsel %vm296_vm0, 0, %v839_v13  ;;  %v867_v18 = vrot.slane %v862_v11, 4  ;;  %v842_v22 = vsel %vm296_vm0, 0, %v841_v15 }
  0xd7   : > { %v912_v21 = vpack.i.b16 %v911_v14, %v910_v49  ;;  %v870_v19 = vsel %vm296_vm0, 0, %v869_v43  ;;  %v1459_v44 = vsel %vm1302_vm1, %v897_v59, 0  ;;  %v1535_v27 = vsel %vm1302_vm1, %v909_v56, 0 }
  0xd8   : > { %v900_v24 = vpack.i.b16 %v899_v63, %v898_v12  ;;  %v868_v25 = vsel %vm296_vm0, 0, %v867_v18  ;;  %v915_v26 = vpack.i.b16 %v870_v19, %v842_v22  ;;  %1468 = vmatpush.bf16.xpose.msra.mxu0 %v1459_v44  ;;  %v904_v17 = vshrl.u32 %v840_v16, 16 }
  0xd9   : > { %v903_v28 = vpack.i.b16 %v868_v25, %v840_v16  ;;  %v905_v35 = vshrl.u32 %v868_v25, 16  ;;  %v916_v31 = vshrl.u32 %v842_v22, 16  ;;  %v917_v32 = vshrl.u32 %v870_v19, 16  ;;  %957 = vrot.lane.b32.xlu1 %v3007_v30, %s2739_s7  ;;  %v1607_v25 = vld [vmem:[%s242_s29] sm:$0x3] }
  0xda   : > { %v1478_v29 = vsel %vm1302_vm1, %v900_v24, 0  ;;  %v353_v33 = vsel %vm296_vm0, %v352_v2, %v287_v23  ;;  %v1554_v36 = vsel %vm1302_vm1, %v912_v21, 0  ;;  %v1573_v37 = vsel %vm1302_vm1, %v915_v26, 0 }
  0xdb   : > { %1487 = vmatpush.bf16.xpose.msra.mxu1 %v1478_v29  ;;  %v1497_v34 = vsel %vm1302_vm1, %v903_v28, 0  ;;  %v906_v39 = vpack.i.b16 %v905_v35, %v904_v17  ;;  %v918_v40 = vpack.i.b16 %v917_v32, %v916_v31  ;;  %v516_v41 = vshrl.u32 %v469_v6, 16  ;;  %v1608_v28 = vld [vmem:[%s242_s29 + $0x2] sm:$0x3]  ;;  %v1609_v32 = vld [vmem:[%s242_s29 + $0x4] sm:$0x3] }
  0xdc   : > { %1506 = vmatpush.bf16.xpose.msra.mxu2 %v1497_v34  ;;  %v462_v42 = vrot.slane %v3052_v4, 4  ;;  %v470_v45 = vrot.slane %v469_v6, 4  ;;  %v514_v38 = vpack.i.b16 %v469_v6, %v3052_v4  ;;  %v357_v48 = vperm.slane %v353_v33, %v2850_v20  ;;  %v1610_v33 = vld [vmem:[%s242_s29 + $0x6] sm:$0x3] }
  0xdd   : > { %v1516_v47 = vsel %vm1302_vm1, %v906_v39, 0  ;;  %v349_v46 = vperm.slane %v345_v3, %v2850_v20  ;;  %v1592_v50 = vsel %vm1302_vm1, %v918_v40, 0  ;;  %v515_v51 = vshrl.u32 %v3052_v4, 16 }
  0xde   : > { %1525 = vmatpush.bf16.xpose.msra.mxu3 %v1516_v47  ;;  %v463_v52 = vsel %vm296_vm0, 0, %v462_v42  ;;  %v471_v54 = vsel %vm296_vm0, 0, %v470_v45  ;;  %v358_v57 = vrot.slane %v357_v48, 4  ;;  %v413_v0 = vshrl.u32 %v357_v48, 16 }
  0xdf   : > { %v522_v55 = vshrl.u32 %v471_v54, 16  ;;  %2607 = vmatmul.msk.bf16.vlgmr.msra.gmra.mxu0 %vm1302_vm1, %v514_v38  ;;  %v517_v8 = vpack.i.b16 %v516_v41, %v515_v51  ;;  %v520_v58 = vpack.i.b16 %v471_v54, %v463_v52  ;;  %v350_v53 = vrot.slane %v349_v46, 4 }
  0xe0   : > { %1544 = vmatpush.bf16.xpose.msrb.mxu0 %v1535_v27  ;;  %v521_v61 = vshrl.u32 %v463_v52, 16  ;;  %v359_v62 = vsel %vm296_vm0, 0, %v358_v57  ;;  %v412_v60 = vshrl.u32 %v349_v46, 16  ;;  %v410_v4 = vpack.i.b16 %v357_v48, %v349_v46 }
  0xe1   : > { %v421_v1 = vshrl.u32 %v359_v62, 16  ;;  %v351_v2 = vsel %vm296_vm0, 0, %v350_v53  ;;  %v3107_v26 = vunpack.c.l.bf16 %v1607_v25  ;;  %v3112_v29 = vunpack.c.l.bf16 %v1608_v28 }
  0xe2   : > { %2608 = vmatmul.msk.bf16.vlgmr.msra.gmra.mxu1 %vm1302_vm1, %v517_v8  ;;  %v523_v3 = vpack.i.b16 %v522_v55, %v521_v61  ;;  %v418_v5 = vpack.i.b16 %v359_v62, %v351_v2  ;;  %v420_v7 = vshrl.u32 %v351_v2, 16  ;;  %v414_v9 = vpack.i.b16 %v413_v0, %v412_v60 }
  0xe3   : > { %1563 = vmatpush.bf16.xpose.msrb.mxu1 %v1554_v36  ;;  %2609 = vmatmul.msk.bf16.vlgmr.msra.gmra.mxu2 %vm1302_vm1, %v520_v58  ;;  %v3119_v36 = vunpack.c.l.bf16 %v1609_v32  ;;  %v3121_v39 = vunpack.c.l.bf16 %v1610_v33 }
  0xe4   : > { %1582 = vmatpush.bf16.xpose.msrb.mxu2 %v1573_v37  ;;  %v422_v11 = vpack.i.b16 %v421_v1, %v420_v7  ;;  %v472_v12 = vrot.slane %v418_v5, 4 }
  0xe5   : > { %2610 = vmatmul.msk.bf16.vlgmr.msra.gmra.mxu3 %vm1302_vm1, %v523_v3 }
  0xe6   : > { %1601 = vmatpush.bf16.xpose.msrb.mxu3 %v1592_v50  ;;  %v473_v13 = vsel %vm296_vm0, %v472_v12, %v410_v4  ;;  %v480_v49 = vrot.slane %v422_v11, 4 }
  0xe7   : > { %v477_v56 = vperm.slane %v473_v13, %v2850_v20 }
  0xe8   : > { %v481_v14 = vsel %vm296_vm0, %v480_v49, %v414_v9 }
  0xe9   : > { %v485_v15 = vperm.slane %v481_v14, %v2850_v20  ;;  %v527_v43 = vshrl.u32 %v477_v56, 16  ;;  %v478_v59 = vrot.slane %v477_v56, 4 }
  0xeb   : > { %v526_v63 = vpack.i.b16 %v485_v15, %v477_v56  ;;  %v528_v16 = vshrl.u32 %v485_v15, 16  ;;  %v479_v18 = vsel %vm296_vm0, 0, %v478_v59  ;;  %v486_v6 = vrot.slane %v485_v15, 4 }
  0xec   : > { %v533_v21 = vshrl.u32 %v479_v18, 16 }
  0xed   : > { %v529_v22 = vpack.i.b16 %v528_v16, %v527_v43  ;;  %v487_v19 = vsel %vm296_vm0, 0, %v486_v6 }
  0xee   : > { %v532_v23 = vpack.i.b16 %v487_v19, %v479_v18  ;;  %v534_v44 = vshrl.u32 %v487_v19, 16 }
  0xef   : > { %2611 = vmatmul.msk.bf16.vlgmr.msrb.gmra.mxu0 %vm1302_vm1, %v526_v63 }
  0xf0   : > { %v535_v24 = vpack.i.b16 %v534_v44, %v533_v21 }
  0xf2   : > { %2612 = vmatmul.msk.bf16.vlgmr.msrb.gmra.mxu1 %vm1302_vm1, %v529_v22 }
  0xf3   : > { %2613 = vmatmul.msk.bf16.vlgmr.msrb.gmra.mxu2 %vm1302_vm1, %v532_v23 }
  0xf5   : > { %2614 = vmatmul.msk.bf16.vlgmr.msrb.gmra.mxu3 %vm1302_vm1, %v535_v24 }
 0x11c   : > { %v934_v62 = vpop.permute.xlu2 %933 }
 0x11d   : > { %v994_v1 = vrot.slane %v934_v62, 4 }
 0x124   : > { %v925_v63 = vpop.permute.xlu2 %924 }
 0x133   : > { %v931_v46 = vpop.permute.xlu1 %930 }
 0x134   : > { %v966_v55 = vrot.slane %v931_v46, 4  ;;  %v922_v58 = vpop.permute.xlu0 %921 }
 0x135   : > { %v995_v4 = vsel %vm296_vm0, %v994_v1, %v922_v58 }
 0x136   : > { %v967_v60 = vsel %vm296_vm0, %v966_v55, %v3007_v30  ;;  %v999_v9 = vperm.slane %v995_v4, %v2844_v10 }
 0x137   : > { %v971_v5 = vperm.slane %v967_v60, %v2844_v10 }
 0x138   : > { %v1318_v27 = vpop.f32.mrf.mxu0  ;;  %v1008_v16 = vrot.slane %v999_v9, 4 }
 0x139   : > { %v3110_v17 = vadd.f32 %v3107_v26, %v1318_v27  ;;  %v980_v59 = vrot.slane %v971_v5, 4 }
 0x13a   : > { %v1337_v35 = vpop.f32.mrf.mxu1 }
 0x13b   : > { %v1632_v31 = vsel %vm1631_vm2, %v3110_v17, -inf  ;;  %v3117_v34 = vadd.f32 %v3112_v29, %v1337_v35  ;;  %v937_v2 = vpop.permute.xlu1 %936 }
 0x13c   : > { %1633 = vmax.xlane.f32.xlu2 %v1632_v31  ;;  %v972_v11 = vrot.slane %v937_v2, 4  ;;  %v940_v49 = vpop.permute.xlu0 %939 }
 0x13d   : > { %v1635_v45 = vsel %vm1631_vm2, %v3117_v34, -inf  ;;  %v1000_v14 = vrot.slane %v940_v49, 4 }
 0x13e   : > { %v973_v18 = vsel %vm296_vm0, %v972_v11, %v925_v63 }
 0x13f   : > { %v977_v22 = vperm.slane %v973_v18, %v2844_v10 }
 0x140   : > { %v1320_v37 = vpop.f32.mrf.mxu0 }
 0x141   : > { %v978_v44 = vrot.slane %v977_v22, 4  ;;  %v981_v24 = vsel %vm296_vm0, %v977_v22, %v980_v59 }
 0x142   : > { %v1356_v40 = vpop.f32.mrf.mxu2  ;;  %v1339_v42 = vpop.f32.mrf.mxu1  ;;  %v989_v27 = vperm.slane %v981_v24, %v2850_v20 }
 0x143   : > { %v3124_v41 = vadd.f32 %v3119_v36, %v1356_v40  ;;  %v928_v6 = vpop.permute.xlu1 %927  ;;  %v979_v31 = vsel %vm296_vm0, %v978_v44, %v971_v5 }
 0x144   : > { %v1375_v47 = vpop.f32.mrf.mxu3  ;;  %1636 = vmax.xlane.f32.xlu2 %v1635_v45  ;;  %v1001_v19 = vsel %vm296_vm0, %v1000_v14, %v928_v6  ;;  %v985_v40 = vperm.slane %v979_v31, %v2850_v20  ;;  %v992_v42 = vrot.slane %v989_v27, 4  ;;  %v1098_v45 = vshrl.u32 %v989_v27, 16 }
 0x145   : > { %v3129_v38 = vadd.f32 %v3121_v39, %v1375_v47  ;;  %v1638_v48 = vsel %vm1631_vm2, %v3124_v41, -inf  ;;  %v1005_v23 = vperm.slane %v1001_v19, %v2844_v10 }
 0x146   : > { %1639 = vmax.xlane.f32.xlu0 %v1638_v48  ;;  %v990_v55 = vrot.slane %v985_v40, 4 }
 0x147   : > { %v1641_v50 = vsel %vm1631_vm2, %v3129_v38, -inf  ;;  %v1006_v28 = vrot.slane %v1005_v23, 4  ;;  %v1009_v35 = vsel %vm296_vm0, %v1005_v23, %v1008_v16 }
 0x148   : > { %1642 = vmax.xlane.f32.xlu1 %v1641_v50  ;;  %v1394_v51 = vpop.f32.mrf.mxu0  ;;  %v1017_v32 = vperm.slane %v1009_v35, %v2850_v20  ;;  %v991_v1 = vsel %vm296_vm0, 0, %v990_v55 }
 0x149   : > { %v3136_v52 = vadd.f32 %v3107_v26, %v1394_v51  ;;  %v1007_v47 = vsel %vm296_vm0, %v1006_v28, %v999_v9 }
 0x14a   : > { %v1358_v54 = vpop.f32.mrf.mxu2  ;;  %v1413_v57 = vpop.f32.mrf.mxu1  ;;  %v1013_v46 = vperm.slane %v1007_v47, %v2850_v20  ;;  %v1020_v50 = vrot.slane %v1017_v32, 4  ;;  %v1096_v51 = vpack.i.b16 %v1017_v32, %v989_v27  ;;  %v1099_v58 = vshrl.u32 %v1017_v32, 16 }
 0x14b   : > { %v1644_v8 = vsel %vm1631_vm2, %v3136_v52, -inf  ;;  %v3141_v53 = vadd.f32 %v3112_v29, %v1413_v57  ;;  %v993_v57 = vsel %vm296_vm0, 0, %v992_v42 }
 0x14c   : > { %v1377_v61 = vpop.f32.mrf.mxu3  ;;  %1645 = vmax.xlane.f32.xlu2 %v1644_v8  ;;  %v1082_v8 = vshrl.u32 %v985_v40, 16  ;;  %v1018_v60 = vrot.slane %v1013_v46, 4  ;;  %v1021_v2 = vsel %vm296_vm0, 0, %v1020_v50  ;;  %v1083_v4 = vshrl.u32 %v1013_v46, 16 }
 0x14d   : > { %v1647_v0 = vsel %vm1631_vm2, %v3141_v53, -inf  ;;  %v1100_v11 = vpack.i.b16 %v1099_v58, %v1098_v45  ;;  %v1104_v14 = vpack.i.b16 %v1021_v2, %v993_v57  ;;  %v1142_v59 = vrot.slane %v1096_v51, 4 }
 0x14e   : > { %1648 = vmax.xlane.f32.xlu0 %v1647_v0  ;;  %v1106_v0 = vshrl.u32 %v993_v57, 16  ;;  %v1019_v9 = vsel %vm296_vm0, 0, %v1018_v60 }
 0x14f   : > { %v1088_v49 = vpack.i.b16 %v1019_v9, %v991_v1  ;;  %v1170_v63 = vrot.slane %v1100_v11, 4  ;;  %v1148_v18 = vrot.slane %v1104_v14, 4 }
 0x150   : > { %v1396_v3 = vpop.f32.mrf.mxu0 }
 0x151   : > { %v1080_v3 = vpack.i.b16 %v1013_v46, %v985_v40  ;;  %v1149_v27 = vsel %vm296_vm0, %v1148_v18, %v1088_v49 }
 0x152   : > { %v1432_v7 = vpop.f32.mrf.mxu2  ;;  %v1415_v13 = vpop.f32.mrf.mxu1  ;;  %v1153_v31 = vperm.slane %v1149_v27, %v2844_v10 }
 0x153   : > { %v3151_v12 = vadd.f32 %v3119_v36, %v1432_v7  ;;  %v1090_v7 = vshrl.u32 %v991_v1, 16  ;;  %v1084_v13 = vpack.i.b16 %v1083_v4, %v1082_v8  ;;  %v1143_v19 = vsel %vm296_vm0, %v1142_v59, %v1080_v3 }
 0x154   : > { %v1451_v56 = vpop.f32.mrf.mxu3  ;;  %v1154_v42 = vrot.slane %v1153_v31, 4 }
 0x155   : > { %v3154_v15 = vadd.f32 %v3121_v39, %v1451_v56  ;;  %v1650_v43 = vsel %vm1631_vm2, %v3151_v12, -inf  ;;  %v1091_v56 = vshrl.u32 %v1019_v9, 16  ;;  %v1171_v23 = vsel %vm296_vm0, %v1170_v63, %v1084_v13 }
 0x156   : > { %1651 = vmax.xlane.f32.xlu0 %v1650_v43  ;;  %v1107_v43 = vshrl.u32 %v1021_v2, 16  ;;  %v1175_v32 = vperm.slane %v1171_v23, %v2844_v10 }
 0x157   : > { %v1653_v21 = vsel %vm1631_vm2, %v3154_v15, -inf }
 0x158   : > { %1654 = vmax.xlane.f32.xlu1 %v1653_v21  ;;  %v1092_v21 = vpack.i.b16 %v1091_v56, %v1090_v7  ;;  %v1108_v22 = vpack.i.b16 %v1107_v43, %v1106_v0  ;;  %v1184_v47 = vrot.slane %v1175_v32, 4 }
 0x15a   : > { %v1434_v25 = vpop.f32.mrf.mxu2  ;;  %v1176_v35 = vrot.slane %v1108_v22, 4 }
 0x15b   : > { %v1147_v25 = vperm.slane %v1143_v19, %v2844_v10 }
 0x15c   : > { %v1453_v33 = vpop.f32.mrf.mxu3  ;;  %v1470_v37 = vpop.f32.mrf.mxu0  ;;  %v1177_v45 = vsel %vm296_vm0, %v1176_v35, %v1092_v21 }
 0x15d   : > { %v3172_v48 = vadd.f32 %v3107_v26, %v1470_v37  ;;  %v1156_v40 = vrot.slane %v1147_v25, 4  ;;  %v1181_v50 = vperm.slane %v1177_v45, %v2844_v10 }
 0x15f   : > { %v1489_v54 = vpop.f32.mrf.mxu1  ;;  %v1656_v62 = vsel %vm1631_vm2, %v3172_v48, -inf  ;;  %v1157_v51 = vsel %vm296_vm0, %v1153_v31, %v1156_v40  ;;  %v1182_v58 = vrot.slane %v1181_v50, 4 }
 0x160   : > { %v3177_v61 = vadd.f32 %v3112_v29, %v1489_v54  ;;  %1657 = vmax.xlane.f32.xlu1 %v1656_v62  ;;  %v1155_v54 = vsel %vm296_vm0, %v1154_v42, %v1147_v25  ;;  %v1165_v55 = vperm.slane %v1157_v51, %v2850_v20  ;;  %v1185_v62 = vsel %vm296_vm0, %v1181_v50, %v1184_v47 }
 0x161   : > { %v1161_v8 = vperm.slane %v1155_v54, %v2850_v20  ;;  %v1193_v60 = vperm.slane %v1185_v62, %v2850_v20  ;;  %v1183_v2 = vsel %vm296_vm0, %v1182_v58, %v1175_v32 }
 0x162   : > { %v1659_v5 = vsel %vm1631_vm2, %v3177_v61, -inf  ;;  %v1168_v1 = vrot.slane %v1165_v55, 4  ;;  %v1189_v9 = vperm.slane %v1183_v2, %v2850_v20 }
 0x163   : > { %1660 = vmax.xlane.f32.xlu0 %v1659_v5  ;;  %v1166_v4 = vrot.slane %v1161_v8, 4  ;;  %v1269_v5 = vshrl.u32 %v1165_v55, 16  ;;  %v1257_v11 = vshrl.u32 %v1161_v8, 16  ;;  %v1268_v13 = vpack.i.b16 %v1193_v60, %v1165_v55 }
 0x164   : > { %v1472_v16 = vpop.f32.mrf.mxu0  ;;  %v1270_v49 = vshrl.u32 %v1193_v60, 16  ;;  %v1169_v14 = vsel %vm296_vm0, 0, %v1168_v1  ;;  %v1196_v43 = vrot.slane %v1193_v60, 4  ;;  %v1256_v59 = vpack.i.b16 %v1189_v9, %v1161_v8 }
 0x165   : > { %v1167_v56 = vsel %vm296_vm0, 0, %v1166_v4  ;;  %v1258_v63 = vshrl.u32 %v1189_v9, 16  ;;  %v1905_v16 = vsel %vm1827_vm3, %v1268_v13, 0  ;;  %v1194_v18 = vrot.slane %v1189_v9, 4  ;;  %v3241_v4 = vpop.permute.xlu2 %954 }
 0x166   : > { %v1508_v6 = vpop.f32.mrf.mxu2  ;;  %v1263_v21 = vshrl.u32 %v1167_v56, 16  ;;  %v1197_v22 = vsel %vm296_vm0, 0, %v1196_v43  ;;  %v1275_v19 = vshrl.u32 %v1169_v14, 16  ;;  %v1829_v23 = vsel %vm1827_vm3, %v1256_v59, 0 }
 0x167   : > { %v3189_v44 = vadd.f32 %v3119_v36, %v1508_v6  ;;  %v1491_v24 = vpop.f32.mrf.mxu1  ;;  %v1271_v6 = vpack.i.b16 %v1270_v49, %v1269_v5  ;;  %v1195_v25 = vsel %vm296_vm0, 0, %v1194_v18  ;;  %v1274_v27 = vpack.i.b16 %v1197_v22, %v1169_v14  ;;  %1838 = vmatpush.bf16.msra.mxu0 %v1829_v23 }
 0x168   : > { %v1527_v28 = vpop.f32.mrf.mxu3  ;;  %v1259_v24 = vpack.i.b16 %v1258_v63, %v1257_v11  ;;  %v1264_v31 = vshrl.u32 %v1195_v25, 16  ;;  %v1276_v32 = vshrl.u32 %v1197_v22, 16 }
 0x169   : > { %v3196_v33 = vadd.f32 %v3121_v39, %v1527_v28  ;;  %v1662_v37 = vsel %vm1631_vm2, %v3189_v44, -inf  ;;  %v1262_v28 = vpack.i.b16 %v1195_v25, %v1167_v56  ;;  %v1924_v35 = vsel %vm1827_vm3, %v1271_v6, 0 }
 0x16a   : > { %v1848_v40 = vsel %vm1827_vm3, %v1259_v24, 0  ;;  %v1943_v42 = vsel %vm1827_vm3, %v1274_v27, 0  ;;  %v1277_v50 = vpack.i.b16 %v1276_v32, %v1275_v19 }
 0x16b   : > { %1663 = vmax.xlane.f32.xlu0 %v1662_v37  ;;  %v1665_v46 = vsel %vm1631_vm2, %v3196_v33, -inf  ;;  %1914 = vmatpush.bf16.msrb.mxu0 %v1905_v16  ;;  %v1867_v47 = vsel %vm1827_vm3, %v1262_v28, 0 }
 0x16c   : > { %1666 = vmax.xlane.f32.xlu2 %v1665_v46  ;;  %v1546_v57 = vpop.f32.mrf.mxu0  ;;  %1857 = vmatpush.bf16.msra.mxu1 %v1848_v40  ;;  %v1265_v46 = vpack.i.b16 %v1264_v31, %v1263_v21  ;;  %v1962_v8 = vsel %vm1827_vm3, %v1277_v50, 0 }
 0x16d   : > { %1876 = vmatpush.bf16.msra.mxu2 %v1867_v47 }
 0x16e   : > { %v1510_v0 = vpop.f32.mrf.mxu2  ;;  %v1886_v55 = vsel %vm1827_vm3, %v1265_v46, 0 }
 0x16f   : > { %v1565_v3 = vpop.f32.mrf.mxu1  ;;  %1895 = vmatpush.bf16.msra.mxu3 %v1886_v55  ;;  %v3231_v0 = vadd.f32 %v3107_v26, %v1546_v57 }
 0x170   : > { %v1529_v7 = vpop.f32.mrf.mxu3  ;;  %1933 = vmatpush.bf16.msrb.mxu1 %v1924_v35  ;;  %v3236_v1 = vadd.f32 %v3112_v29, %v1565_v3  ;;  %v3254_v3 = vpop.permute.xlu1 %957 }
 0x171   : > { %1952 = vmatpush.bf16.msrb.mxu2 %v1943_v42  ;;  %v1668_v60 = vsel %vm1631_vm2, %v3231_v0, -inf }
 0x172   : > { %v1671_v7 = vsel %vm1631_vm2, %v3236_v1, -inf }
 0x173   : > { %1971 = vmatpush.bf16.msrb.mxu3 %v1962_v8 }
 0x174   : > { %v1548_v37 = vpop.f32.mrf.mxu0 }
 0x176   : > { %v1584_v45 = vpop.f32.mrf.mxu2 }
 0x177   : > { %v1567_v51 = vpop.f32.mrf.mxu1  ;;  %v3244_v5 = vadd.f32 %v3119_v36, %v1584_v45 }
 0x178   : > { %v1603_v54 = vpop.f32.mrf.mxu3 }
 0x179   : > { %963 = vrot.lane.b32.xlu1 %v3007_v30, %s2743_s11  ;;  %v3239_v2 = vadd.f32 %v3121_v39, %v1603_v54  ;;  %v1674_v29 = vsel %vm1631_vm2, %v3244_v5, -inf  ;;  %v3252_v39 = vpop.permute.xlu0 %942 }
 0x17b   : > { %v1677_v26 = vsel %vm1631_vm2, %v3239_v2, -inf }
 0x17e   : > { %v1586_v58 = vpop.f32.mrf.mxu2 }
 0x17f   : > { %960 = vrot.lane.b32.xlu0 %v3007_v30, %s2742_s10 }
 0x180   : > { %v1605_v62 = vpop.f32.mrf.mxu3 }
 0x184   : > { %945 = vrot.lane.b32.xlu2 %v3007_v30, %s2741_s9 }
 0x1a3   : > { %1669 = vmax.xlane.f32.xlu1 %v1668_v60 }
 0x1a9   : > { %1672 = vmax.xlane.f32.xlu0 %v1671_v7 }
 0x1ab   : > { %1678 = vmax.xlane.f32.xlu1 %v1677_v26 }
 0x1ad   : > { %1675 = vmax.xlane.f32.xlu2 %v1674_v29 }
 0x1af   : > { %v1634_v57 = vpop.xlane.xlu2 %1633 }
 0x1b0   : > { %v1680_v43 = vsub.f32 %v3110_v17, %v1634_v57 }
 0x1b2   : > { %v1696_v18 = vmul.f32 1.442695, %v1680_v43 }
 0x1b7   : > { %v1637_v9 = vpop.xlane.xlu2 %1636 }
 0x1b8   : > { %v1681_v49 = vsub.f32 %v3117_v34, %v1637_v9 }
 0x1b9   : > { %v1640_v36 = vpop.xlane.xlu0 %1639 }
 0x1ba   : > { %v1682_v11 = vsub.f32 %v3124_v41, %v1640_v36  ;;  %v1698_v63 = vmul.f32 1.442695, %v1681_v49 }
 0x1bb   : > { %v1643_v13 = vpop.xlane.xlu1 %1642 }
 0x1bc   : > { %v1700_v56 = vmul.f32 1.442695, %v1682_v11  ;;  %v1683_v14 = vsub.f32 %v3129_v38, %v1643_v13 }
 0x1be   : > { %2659 = vpow2.f32 %v1700_v56  ;;  %v1702_v59 = vmul.f32 1.442695, %v1683_v14 }
 0x1bf   : > { %v1646_v16 = vpop.xlane.xlu2 %1645 }
 0x1c0   : > { %2661 = vpow2.f32 %v1702_v59  ;;  %v1684_v41 = vsub.f32 %v3136_v52, %v1646_v16 }
 0x1c1   : > { %v1649_v6 = vpop.xlane.xlu0 %1648  ;;  %2663 = vpow2.f32 %v1698_v63 }
 0x1c2   : > { %2665 = vpow2.f32 %v1696_v18  ;;  %v1704_v22 = vmul.f32 1.442695, %v1684_v41  ;;  %v1685_v28 = vsub.f32 %v3141_v53, %v1649_v6 }
 0x1c4   : > { %v3260_v21 = vpop.eup %2659  ;;  %948 = vrot.lane.b32.xlu1 %v3007_v30, %s2744_s12  ;;  %2667 = vpow2.f32 %v1704_v22  ;;  %v1706_v37 = vmul.f32 1.442695, %v1685_v28 }
 0x1c5   : > { %v1734_v34 = vsel %vm1631_vm2, %v3260_v21, 0.0 }
 0x1c6   : > { %v3267_v38 = vpop.eup %2661  ;;  %1735 = vadd.xlane.f32.xlu0 %v1734_v34 }
 0x1c7   : > { %v1737_v17 = vsel %vm1631_vm2, %v3267_v38, 0.0  ;;  %v3271_v19 = vpop.eup %2663 }
 0x1c8   : > { %1738 = vadd.xlane.f32.xlu2 %v1737_v17  ;;  %v3273_v24 = vpop.eup %2665  ;;  %v1731_v27 = vsel %vm1631_vm2, %v3271_v19, 0.0 }
 0x1c9   : > { %v1652_v25 = vpop.xlane.xlu0 %1651  ;;  %v1728_v31 = vsel %vm1631_vm2, %v3273_v24, 0.0 }
 0x1ca   : > { %v3283_v32 = vpop.eup %2667  ;;  %v1686_v62 = vsub.f32 %v3151_v12, %v1652_v25 }
 0x1cb   : > { %v1655_v23 = vpop.xlane.xlu1 %1654 }
 0x1cc   : > { %v1687_v52 = vsub.f32 %v3154_v15, %v1655_v23  ;;  %951 = vrot.lane.b32.xlu1 %v3007_v30, %s2745_s13  ;;  %v1740_v15 = vsel %vm1631_vm2, %v3283_v32, 0.0  ;;  %v1708_v26 = vmul.f32 1.442695, %v1686_v62 }
 0x1ce   : > { %v1710_v35 = vmul.f32 1.442695, %v1687_v52  ;;  %1732 = vadd.xlane.f32.xlu0 %v1731_v27 }
 0x1d0   : > { %2669 = vpow2.f32 %v1710_v35  ;;  %1729 = vadd.xlane.f32.xlu2 %v1728_v31 }
 0x1d1   : > { %2671 = vpow2.f32 %v1706_v37 }
 0x1d3   : > { %v1658_v45 = vpop.xlane.xlu1 %1657 }
 0x1d4   : > { %v1688_v55 = vsub.f32 %v3172_v48, %v1658_v45  ;;  %v1050_v45 = vrot.slane %v3254_v3, 4 }
 0x1d6   : > { %v1661_v30 = vpop.xlane.xlu0 %1660  ;;  %v3287_v40 = vpop.eup %2669  ;;  %1741 = vadd.xlane.f32.xlu0 %v1740_v15  ;;  %v1712_v60 = vmul.f32 1.442695, %v1688_v55 }
 0x1d7   : > { %v1749_v53 = vsel %vm1631_vm2, %v3287_v40, 0.0  ;;  %v3291_v42 = vpop.eup %2671 }
 0x1d8   : > { %1750 = vadd.xlane.f32.xlu2 %v1749_v53  ;;  %v1743_v51 = vsel %vm1631_vm2, %v3291_v42, 0.0 }
 0x1de   : > { %v1664_v47 = vpop.xlane.xlu0 %1663 }
 0x1df   : > { %v1690_v46 = vsub.f32 %v3189_v44, %v1664_v47  ;;  %v1667_v50 = vpop.xlane.xlu2 %1666 }
 0x1e0   : > { %v1691_v54 = vsub.f32 %v3196_v33, %v1667_v50  ;;  %1744 = vadd.xlane.f32.xlu2 %v1743_v51  ;;  %v1689_v33 = vsub.f32 %v3177_v61, %v1661_v30 }
 0x1e1   : > { %v1716_v8 = vmul.f32 1.442695, %v1690_v46 }
 0x1e2   : > { %v1718_v58 = vmul.f32 1.442695, %v1691_v54  ;;  %v1714_v12 = vmul.f32 1.442695, %v1689_v33 }
 0x1e3   : > { %2673 = vpow2.f32 %v1716_v8 }
 0x1e4   : > { %2675 = vpow2.f32 %v1718_v58 }
 0x1e5   : > { %2677 = vpow2.f32 %v1712_v60 }
 0x1e6   : > { %2679 = vpow2.f32 %v1708_v26 }
 0x1e7   : > { %2681 = vpow2.f32 %v1714_v12  ;;  %v946_v14 = vpop.permute.xlu2 %945 }
 0x1e8   : > { %v1051_v50 = vsel %vm296_vm0, %v1050_v45, %v946_v14 }
 0x1e9   : > { %v3299_v7 = vpop.eup %2673  ;;  %v1055_v58 = vperm.slane %v1051_v50, %v2844_v10 }
 0x1ea   : > { %v3301_v44 = vpop.eup %2675  ;;  %v1758_v29 = vsel %vm1631_vm2, %v3299_v7, 0.0 }
 0x1eb   : > { %1759 = vadd.xlane.f32.xlu0 %v1758_v29  ;;  %v1761_v48 = vsel %vm1631_vm2, %v3301_v44, 0.0  ;;  %v3308_v57 = vpop.eup %2677  ;;  %v964_v61 = vpop.permute.xlu1 %963  ;;  %v1064_v12 = vrot.slane %v1055_v58, 4 }
 0x1ec   : > { %1762 = vadd.xlane.f32.xlu2 %v1761_v48  ;;  %v1752_v9 = vsel %vm1631_vm2, %v3308_v57, 0.0  ;;  %v3312_v36 = vpop.eup %2679  ;;  %v1056_v62 = vrot.slane %v964_v61, 4 }
 0x1ed   : > { %v1746_v11 = vsel %vm1631_vm2, %v3312_v36, 0.0  ;;  %v3316_v13 = vpop.eup %2681 }
 0x1ee   : > { %v1755_v49 = vsel %vm1631_vm2, %v3316_v13, 0.0 }
 0x1f1   : > { %v961_v43 = vpop.permute.xlu0 %960 }
 0x1f2   : > { %v1028_v30 = vrot.slane %v961_v43, 4 }
 0x1f3   : > { %1753 = vadd.xlane.f32.xlu0 %v1752_v9 }
 0x1f6   : > { %1747 = vadd.xlane.f32.xlu1 %v1746_v11 }
 0x1fe   : > { %1756 = vadd.xlane.f32.xlu1 %v1755_v49 }
 0x216   : > { %v1670_v56 = vpop.xlane.xlu1 %1669 }
 0x217   : > { %v1692_v59 = vsub.f32 %v3231_v0, %v1670_v56 }
 0x219   : > { %v1720_v63 = vmul.f32 1.442695, %v1692_v59 }
 0x21b   : > { %2683 = vpow2.f32 %v1720_v63 }
 0x21c   : > { %v1673_v18 = vpop.xlane.xlu0 %1672 }
 0x21d   : > { %v1693_v23 = vsub.f32 %v3236_v1, %v1673_v18 }
 0x21e   : > { %v1679_v16 = vpop.xlane.xlu1 %1678 }
 0x21f   : > { %v1695_v6 = vsub.f32 %v3239_v2, %v1679_v16  ;;  %v1722_v0 = vmul.f32 1.442695, %v1693_v23 }
 0x220   : > { %v1676_v41 = vpop.xlane.xlu2 %1675 }
 0x221   : > { %v1694_v34 = vsub.f32 %v3244_v5, %v1676_v41  ;;  %v3323_v17 = vpop.eup %2683  ;;  %v1726_v22 = vmul.f32 1.442695, %v1695_v6  ;;  %v1022_v5 = vrot.slane %v3241_v4, 4 }
 0x222   : > { %v1764_v25 = vsel %vm1631_vm2, %v3323_v17, 0.0 }
 0x223   : > { %v1724_v52 = vmul.f32 1.442695, %v1694_v34  ;;  %2685 = vpow2.f32 %v1726_v22  ;;  %1765 = vadd.xlane.f32.xlu1 %v1764_v25  ;;  %v1023_v31 = vsel %vm296_vm0, %v1022_v5, %v3252_v39 }
 0x224   : > { %v1027_v15 = vperm.slane %v1023_v31, %v2844_v10 }
 0x225   : > { %2687 = vpow2.f32 %v1724_v52 }
 0x226   : > { %2689 = vpow2.f32 %v1722_v0  ;;  %v1036_v46 = vrot.slane %v1027_v15, 4 }
 0x229   : > { %v3328_v27 = vpop.eup %2685 }
 0x22a   : > { %v1773_v2 = vsel %vm1631_vm2, %v3328_v27, 0.0 }
 0x22b   : > { %v3330_v28 = vpop.eup %2687  ;;  %1774 = vadd.xlane.f32.xlu0 %v1773_v2 }
 0x22c   : > { %v1770_v1 = vsel %vm1631_vm2, %v3330_v28, 0.0  ;;  %v3337_v35 = vpop.eup %2689 }
 0x22d   : > { %1771 = vadd.xlane.f32.xlu2 %v1770_v1  ;;  %v1767_v37 = vsel %vm1631_vm2, %v3337_v35, 0.0 }
 0x235   : > { %1768 = vadd.xlane.f32.xlu2 %v1767_v37 }
 0x236   : > { %v949_v53 = vpop.permute.xlu1 %948 }
 0x237   : > { %v1029_v47 = vsel %vm296_vm0, %v1028_v30, %v949_v53 }
 0x238   : > { %v1033_v4 = vperm.slane %v1029_v47, %v2844_v10 }
 0x239   : > { %v1736_v51 = vpop.xlane.xlu0 %1735 }
 0x23a   : > { %2691 = vrcp.f32 %v1736_v51  ;;  %v1034_v39 = vrot.slane %v1033_v4, 4  ;;  %v1037_v54 = vsel %vm296_vm0, %v1033_v4, %v1036_v46 }
 0x23b   : > { %v1739_v55 = vpop.xlane.xlu2 %1738  ;;  %v1045_v8 = vperm.slane %v1037_v54, %v2850_v20 }
 0x23c   : > { %2693 = vrcp.f32 %v1739_v55  ;;  %v1035_v3 = vsel %vm296_vm0, %v1034_v39, %v1027_v15 }
 0x23d   : > { %v1041_v60 = vperm.slane %v1035_v3, %v2850_v20  ;;  %v1048_v29 = vrot.slane %v1045_v8, 4  ;;  %v1130_v41 = vshrl.u32 %v1045_v8, 16 }
 0x23e   : > { %v952_v26 = vpop.permute.xlu1 %951 }
 0x23f   : > { %v1057_v48 = vsel %vm296_vm0, %v1056_v62, %v952_v26  ;;  %v1046_v14 = vrot.slane %v1041_v60, 4  ;;  %v1049_v16 = vsel %vm296_vm0, 0, %v1048_v29  ;;  %v1114_v0 = vshrl.u32 %v1041_v60, 16 }
 0x240   : > { %v2692_v33 = vpop.eup %2691  ;;  %v1061_v9 = vperm.slane %v1057_v48, %v2844_v10 }
 0x241   : > { %v1794_v11 = vmul.f32 %v2692_v33, %v3260_v21  ;;  %v1733_v49 = vpop.xlane.xlu0 %1732  ;;  %v1047_v25 = vsel %vm296_vm0, 0, %v1046_v14 }
 0x242   : > { %v2694_v56 = vpop.eup %2693  ;;  %2695 = vrcp.f32 %v1733_v49  ;;  %v1062_v43 = vrot.slane %v1061_v9, 4  ;;  %v1065_v59 = vsel %vm296_vm0, %v1061_v9, %v1064_v12  ;;  %v1122_v46 = vshrl.u32 %v1047_v25, 16 }
 0x243   : > { %v1810_v61 = vpack.c.bf16 %v1794_v11, %v1794_v11  ;;  %v1795_v63 = vmul.f32 %v2694_v56, %v3267_v38  ;;  %v1730_v18 = vpop.xlane.xlu2 %1729  ;;  %v1073_v6 = vperm.slane %v1065_v59, %v2850_v20  ;;  %v1138_v38 = vshrl.u32 %v1049_v16, 16 }
 0x244   : > { %2697 = vrcp.f32 %v1730_v18  ;;  %v1063_v34 = vsel %vm296_vm0, %v1062_v43, %v1055_v58 }
 0x245   : > { %v1811_v21 = vpack.c.bf16 %v1795_v63, %v1795_v63  ;;  %v1069_v22 = vperm.slane %v1063_v34, %v2850_v20  ;;  %v1076_v23 = vrot.slane %v1073_v6, 4  ;;  %v1128_v52 = vpack.i.b16 %v1073_v6, %v1045_v8  ;;  %2617 = vmatmul.msk.bf16.vlgmr.msra.gmra.mxu2 %vm1302_vm1, %v1810_v61 }
 0x246   : > { %v1131_v2 = vshrl.u32 %v1073_v6, 16 }
 0x247   : > { %v1074_v1 = vrot.slane %v1069_v22, 4  ;;  %v1077_v5 = vsel %vm296_vm0, 0, %v1076_v23  ;;  %v1112_v31 = vpack.i.b16 %v1069_v22, %v1041_v60  ;;  %v1115_v37 = vshrl.u32 %v1069_v22, 16  ;;  %2618 = vmatmul.msk.bf16.vlgmr.msra.gmra.mxu3 %vm1302_vm1, %v1811_v21 }
 0x248   : > { %v2696_v15 = vpop.eup %2695  ;;  %v1132_v30 = vpack.i.b16 %v1131_v2, %v1130_v41  ;;  %v1136_v53 = vpack.i.b16 %v1077_v5, %v1049_v16  ;;  %v1139_v45 = vshrl.u32 %v1077_v5, 16  ;;  %v1198_v47 = vrot.slane %v1128_v52, 4 }
 0x249   : > { %v1793_v4 = vmul.f32 %v2696_v15, %v3271_v19  ;;  %v1075_v50 = vsel %vm296_vm0, 0, %v1074_v1  ;;  %v1116_v51 = vpack.i.b16 %v1115_v37, %v1114_v0  ;;  %v1742_v39 = vpop.xlane.xlu0 %1741 }
 0x24a   : > { %v2698_v54 = vpop.eup %2697  ;;  %v1120_v55 = vpack.i.b16 %v1075_v50, %v1047_v25  ;;  %v1123_v8 = vshrl.u32 %v1075_v50, 16  ;;  %v1140_v58 = vpack.i.b16 %v1139_v45, %v1138_v38  ;;  %v1204_v3 = vrot.slane %v1136_v53, 4 }
 0x24b   : > { %v1809_v62 = vpack.c.bf16 %v1793_v4, %v1793_v4  ;;  %v1792_v60 = vmul.f32 %v2698_v54, %v3273_v24  ;;  %v1226_v26 = vrot.slane %v1132_v30, 4  ;;  %2699 = vrcp.f32 %v1742_v39  ;;  %v1751_v29 = vpop.xlane.xlu2 %1750 }
 0x24c   : > { %v1124_v48 = vpack.i.b16 %v1123_v8, %v1122_v46  ;;  %v1232_v33 = vrot.slane %v1140_v58, 4  ;;  %2701 = vrcp.f32 %v1751_v29  ;;  %v1199_v19 = vsel %vm296_vm0, %v1198_v47, %v1112_v31 }
 0x24d   : > { %v1808_v12 = vpack.c.bf16 %v1792_v60, %v1792_v60  ;;  %2616 = vmatmul.msk.bf16.vlgmr.msra.gmra.mxu1 %vm1302_vm1, %v1809_v62  ;;  %v1203_v9 = vperm.slane %v1199_v19, %v2844_v10  ;;  %v1205_v11 = vsel %vm296_vm0, %v1204_v3, %v1120_v55  ;;  %v1227_v49 = vsel %vm296_vm0, %v1226_v26, %v1116_v51 }
 0x24e   : > { %v1209_v56 = vperm.slane %v1205_v11, %v2844_v10  ;;  %v1231_v24 = vperm.slane %v1227_v49, %v2844_v10  ;;  %v1233_v14 = vsel %vm296_vm0, %v1232_v33, %v1124_v48 }
 0x24f   : > { %2615 = vmatmul.msk.bf16.vlgmr.msra.gmra.mxu0 %vm1302_vm1, %v1808_v12  ;;  %v1237_v43 = vperm.slane %v1233_v14, %v2844_v10  ;;  %v1212_v59 = vrot.slane %v1203_v9, 4 }
 0x250   : > { %v1210_v61 = vrot.slane %v1209_v56, 4  ;;  %v1240_v63 = vrot.slane %v1231_v24, 4 }
 0x251   : > { %v2700_v16 = vpop.eup %2699  ;;  %v1238_v18 = vrot.slane %v1237_v43, 4  ;;  %v1213_v6 = vsel %vm296_vm0, %v1209_v56, %v1212_v59 }
 0x252   : > { %v2702_v41 = vpop.eup %2701  ;;  %v1211_v34 = vsel %vm296_vm0, %v1210_v61, %v1203_v9  ;;  %v1221_v21 = vperm.slane %v1213_v6, %v2850_v20  ;;  %v1241_v22 = vsel %vm296_vm0, %v1237_v43, %v1240_v63  ;;  %v1796_v1 = vmul.f32 %v2700_v16, %v3283_v32 }
 0x253   : > { %v1799_v23 = vmul.f32 %v2702_v41, %v3287_v40  ;;  %v1745_v52 = vpop.xlane.xlu2 %1744  ;;  %v1217_v25 = vperm.slane %v1211_v34, %v2850_v20  ;;  %v1239_v0 = vsel %vm296_vm0, %v1238_v18, %v1231_v24  ;;  %v1249_v38 = vperm.slane %v1241_v22, %v2850_v20 }
 0x254   : > { %2703 = vrcp.f32 %v1745_v52  ;;  %v1245_v2 = vperm.slane %v1239_v0, %v2850_v20  ;;  %v1293_v47 = vshrl.u32 %v1221_v21, 16  ;;  %v1224_v46 = vrot.slane %v1221_v21, 4 }
 0x255   : > { %v1815_v5 = vpack.c.bf16 %v1799_v23, %v1799_v23  ;;  %v1281_v31 = vshrl.u32 %v1217_v25, 16  ;;  %v1222_v37 = vrot.slane %v1217_v25, 4  ;;  %v1294_v45 = vshrl.u32 %v1249_v38, 16 }
 0x256   : > { %v1280_v15 = vpack.i.b16 %v1245_v2, %v1217_v25  ;;  %v1282_v30 = vshrl.u32 %v1245_v2, 16  ;;  %v1250_v53 = vrot.slane %v1245_v2, 4  ;;  %v1252_v4 = vrot.slane %v1249_v38, 4 }
 0x257   : > { %2622 = vmatmul.msk.bf16.vlgmr.msrb.gmra.mxu3 %vm1302_vm1, %v1815_v5  ;;  %v1223_v40 = vsel %vm296_vm0, 0, %v1222_v37  ;;  %v1292_v51 = vpack.i.b16 %v1249_v38, %v1221_v21  ;;  %v1225_v58 = vsel %vm296_vm0, 0, %v1224_v46  ;;  %v1295_v60 = vpack.i.b16 %v1294_v45, %v1293_v47 }
 0x258   : > { %v1981_v50 = vsel %vm1827_vm3, %v1280_v15, 0  ;;  %v1283_v39 = vpack.i.b16 %v1282_v30, %v1281_v31  ;;  %v1251_v32 = vsel %vm296_vm0, 0, %v1250_v53  ;;  %v1287_v55 = vshrl.u32 %v1223_v40, 16 }
 0x259   : > { %1990 = vmatpush.bf16.msra.mxu0 %v1981_v50  ;;  %v1286_v54 = vpack.i.b16 %v1251_v32, %v1223_v40  ;;  %v1288_v8 = vshrl.u32 %v1251_v32, 16  ;;  %v1253_v26 = vsel %vm296_vm0, 0, %v1252_v4  ;;  %v1299_v29 = vshrl.u32 %v1225_v58, 16 }
 0x25a   : > { %v2704_v3 = vpop.eup %2703  ;;  %v2000_v62 = vsel %vm1827_vm3, %v1283_v39, 0  ;;  %v1300_v12 = vshrl.u32 %v1253_v26, 16  ;;  %v1812_v9 = vpack.c.bf16 %v1796_v1, %v1796_v1  ;;  %v2076_v43 = vsel %vm1827_vm3, %v1295_v60, 0 }
 0x25b   : > { %v1797_v48 = vmul.f32 %v2704_v3, %v3291_v42  ;;  %2009 = vmatpush.bf16.msra.mxu1 %v2000_v62  ;;  %v2019_v33 = vsel %vm1827_vm3, %v1286_v54, 0  ;;  %v1289_v19 = vpack.i.b16 %v1288_v8, %v1287_v55  ;;  %v2057_v42 = vsel %vm1827_vm3, %v1292_v51, 0 }
 0x25c   : > { %2028 = vmatpush.bf16.msra.mxu2 %v2019_v33  ;;  %v1301_v24 = vpack.i.b16 %v1300_v12, %v1299_v29  ;;  %v1298_v25 = vpack.i.b16 %v1253_v26, %v1225_v58 }
 0x25d   : > { %v1813_v11 = vpack.c.bf16 %v1797_v48, %v1797_v48  ;;  %v2038_v56 = vsel %vm1827_vm3, %v1289_v19, 0 }
 0x25e   : > { %v1760_v49 = vpop.xlane.xlu0 %1759  ;;  %2047 = vmatpush.bf16.msra.mxu3 %v2038_v56  ;;  %v2114_v59 = vsel %vm1827_vm3, %v1301_v24, 0 }
 0x25f   : > { %v1763_v14 = vpop.xlane.xlu2 %1762  ;;  %2619 = vmatmul.msk.bf16.vlgmr.msrb.gmra.mxu0 %vm1302_vm1, %v1812_v9  ;;  %2620 = vmatmul.msk.bf16.vlgmr.msrb.gmra.mxu1 %vm1302_vm1, %v1813_v11 }
 0x260   : > { %2705 = vrcp.f32 %v1763_v14  ;;  %2066 = vmatpush.bf16.msrb.mxu0 %v2057_v42  ;;  %2085 = vmatpush.bf16.msrb.mxu1 %v2076_v43 }
 0x262   : > { %2123 = vmatpush.bf16.msrb.mxu3 %v2114_v59 }
 0x266   : > { %v2706_v61 = vpop.eup %2705  ;;  %v1754_v63 = vpop.xlane.xlu0 %1753 }
 0x267   : > { %v1803_v16 = vmul.f32 %v2706_v61, %v3301_v44  ;;  %2707 = vrcp.f32 %v1754_v63  ;;  %v2095_v44 = vsel %vm1827_vm3, %v1298_v25, 0 }
 0x269   : > { %v1819_v18 = vpack.c.bf16 %v1803_v16, %v1803_v16  ;;  %v1748_v6 = vpop.xlane.xlu1 %1747 }
 0x26a   : > { %2709 = vrcp.f32 %v1748_v6 }
 0x26b   : > { %2626 = vmatmul.msk.bf16.vlgmr.msra.gmra.mxu3 %vm1302_vm1, %v1819_v18 }
 0x26d   : > { %v2708_v41 = vpop.eup %2707 }
 0x26e   : > { %v1800_v34 = vmul.f32 %v2708_v41, %v3308_v57 }
 0x270   : > { %v1816_v21 = vpack.c.bf16 %v1800_v34, %v1800_v34  ;;  %v2710_v22 = vpop.eup %2709 }
 0x271   : > { %v1798_v23 = vmul.f32 %v2710_v22, %v3312_v36  ;;  %v1757_v52 = vpop.xlane.xlu1 %1756 }
 0x272   : > { %2623 = vmatmul.msk.bf16.vlgmr.msra.gmra.mxu0 %vm1302_vm1, %v1816_v21  ;;  %2711 = vrcp.f32 %v1757_v52 }
 0x273   : > { %v1814_v0 = vpack.c.bf16 %v1798_v23, %v1798_v23  ;;  %2713 = vrcp.f32 %v1760_v49 }
 0x275   : > { %2621 = vmatmul.msk.bf16.vlgmr.msrb.gmra.mxu2 %vm1302_vm1, %v1814_v0 }
 0x276   : > { %2104 = vmatpush.bf16.msrb.mxu2 %v2095_v44 }
 0x278   : > { %v2712_v38 = vpop.eup %2711 }
 0x279   : > { %v1801_v2 = vmul.f32 %v2712_v38, %v3316_v13  ;;  %v2714_v1 = vpop.eup %2713 }
 0x27a   : > { %v1802_v36 = vmul.f32 %v2714_v1, %v3299_v7 }
 0x27b   : > { %v1817_v57 = vpack.c.bf16 %v1801_v2, %v1801_v2 }
 0x27c   : > { %v1818_v5 = vpack.c.bf16 %v1802_v36, %v1802_v36 }
 0x27d   : > { %2624 = vmatmul.msk.bf16.vlgmr.msra.gmra.mxu1 %vm1302_vm1, %v1817_v57 }
 0x285   : > { %2625 = vmatmul.msk.bf16.vlgmr.msra.gmra.mxu2 %vm1302_vm1, %v1818_v5 }
 0x296   : > { %v1766_v31 = vpop.xlane.xlu1 %1765 }
 0x297   : > { %2715 = vrcp.f32 %v1766_v31 }
 0x29d   : > { %v2716_v37 = vpop.eup %2715 }
 0x29e   : > { %v1804_v15 = vmul.f32 %v2716_v37, %v3323_v17  ;;  %v1775_v30 = vpop.xlane.xlu0 %1774 }
 0x29f   : > { %2717 = vrcp.f32 %v1775_v30 }
 0x2a0   : > { %v1772_v53 = vpop.xlane.xlu2 %1771  ;;  %v1820_v45 = vpack.c.bf16 %v1804_v15, %v1804_v15 }
 0x2a1   : > { %2719 = vrcp.f32 %v1772_v53 }
 0x2a2   : > { %2627 = vmatmul.msk.bf16.vlgmr.msrb.gmra.mxu0 %vm1302_vm1, %v1820_v45 }
 0x2a5   : > { %v2718_v13 = vpop.eup %2717 }
 0x2a6   : > { %v1807_v47 = vmul.f32 %v2718_v13, %v3328_v27 }
 0x2a7   : > { %v2720_v40 = vpop.eup %2719 }
 0x2a8   : > { %v1806_v7 = vmul.f32 %v2720_v40, %v3330_v28  ;;  %v1769_v46 = vpop.xlane.xlu2 %1768  ;;  %v1823_v4 = vpack.c.bf16 %v1807_v47, %v1807_v47 }
 0x2a9   : > { %2721 = vrcp.f32 %v1769_v46 }
 0x2aa   : > { %v1822_v50 = vpack.c.bf16 %v1806_v7, %v1806_v7  ;;  %2630 = vmatmul.msk.bf16.vlgmr.msrb.gmra.mxu3 %vm1302_vm1, %v1823_v4 }
 0x2ac   : > { %2629 = vmatmul.msk.bf16.vlgmr.msrb.gmra.mxu2 %vm1302_vm1, %v1822_v50 }
 0x2af   : > { %v2722_v17 = vpop.eup %2721 }
 0x2b0   : > { %v1805_v51 = vmul.f32 %v2722_v17, %v3337_v35 }
 0x2b2   : > { %v1821_v39 = vpack.c.bf16 %v1805_v51, %v1805_v51 }
 0x2b4   : > { %2628 = vmatmul.msk.bf16.vlgmr.msrb.gmra.mxu1 %vm1302_vm1, %v1821_v39 }
 0x2c8   : > { %v1878_v32 = vpop.f32.mrf.mxu2 }
 0x2c9   : > { %v2131_v23 = vpack.c.bf16 %v1878_v32, %v1878_v32 }
 0x2ca   : > { %v1859_v54 = vpop.f32.mrf.mxu1  ;;  %v1897_v55 = vpop.f32.mrf.mxu3 }
 0x2cb   : > { %v2132_v9 = vpack.c.bf16 %v1897_v55, %v1897_v55  ;;  %v2130_v14 = vpack.c.bf16 %v1859_v54, %v1859_v54 }
 0x2cc   : > { %v1840_v27 = vpop.f32.mrf.mxu0 }
 0x2cd   : > { %v2129_v52 = vpack.c.bf16 %v1840_v27, %v1840_v27 }
 0x2d0   : > { %v1880_v8 = vpop.f32.mrf.mxu2 }
 0x2d2   : > { %v1861_v28 = vpop.f32.mrf.mxu1  ;;  %v1899_v58 = vpop.f32.mrf.mxu3 }
 0x2d4   : > { %v1842_v3 = vpop.f32.mrf.mxu0 }
 0x2da   : > { %v1973_v62 = vpop.f32.mrf.mxu3 }
 0x2db   : > { %v2136_v19 = vpack.c.bf16 %v1973_v62, %v1973_v62 }
 0x2dc   : > { %v1916_v60 = vpop.f32.mrf.mxu0  ;;  %v1935_v26 = vpop.f32.mrf.mxu1 }
 0x2dd   : > { %v2171_v12 = vrot.slane %v2136_v19, 4  ;;  %v2134_v35 = vpack.c.bf16 %v1935_v26, %v1935_v26  ;;  %v2133_v59 = vpack.c.bf16 %v1916_v60, %v1916_v60 }
 0x2df   : > { %v2172_v56 = vsel %vm296_vm0, %v2171_v12, %v2132_v9  ;;  %v2165_v24 = vrot.slane %v2134_v35, 4  ;;  %v2145_v41 = vrot.slane %v2133_v59, 4 }
 0x2e0   : > { %v2176_v42 = vperm.slane %v2172_v56, %v2844_v10 }
 0x2e1   : > { %v2166_v43 = vsel %vm296_vm0, %v2165_v24, %v2130_v14  ;;  %v2146_v0 = vsel %vm296_vm0, %v2145_v41, %v2129_v52 }
 0x2e2   : > { %v1975_v29 = vpop.f32.mrf.mxu3  ;;  %v2177_v63 = vrot.slane %v2176_v42, 4  ;;  %v2170_v16 = vperm.slane %v2166_v43, %v2844_v10  ;;  %v2150_v57 = vperm.slane %v2146_v0, %v2844_v10 }
 0x2e4   : > { %v1918_v48 = vpop.f32.mrf.mxu0  ;;  %v1937_v33 = vpop.f32.mrf.mxu1  ;;  %v2178_v21 = vsel %vm296_vm0, %v2177_v63, %v2170_v16 }
 0x2e5   : > { %v2182_v44 = vperm.slane %v2178_v21, %v2850_v20 }
 0x2e7   : > { %v2183_v5 = vrot.slane %v2182_v44, 4  ;;  %v2229_v30 = vshrl.u32 %v2182_v44, 16 }
 0x2e9   : > { %v2184_v40 = vsel %vm296_vm0, 0, %v2183_v5 }
 0x2ea   : > { %v2235_v17 = vshrl.u32 %v2184_v40, 16 }
 0x2ee   : > { %v3423_v11 = vpop.f32.mrf.mxu3 }
 0x2ef   : > { %v3425_v49 = vpop.f32.mrf.mxu0 }
 0x2f6   : > { %v2051_v61 = vpop.f32.mrf.mxu3 }
 0x2f7   : > { %v1994_v18 = vpop.f32.mrf.mxu0 }
 0x2f8   : > { %v1954_v6 = vpop.f32.mrf.mxu2 }
 0x2f9   : > { %v2135_v34 = vpack.c.bf16 %v1954_v6, %v1954_v6 }
 0x2fa   : > { %v3432_v22 = vpop.f32.mrf.mxu1 }
 0x2fb   : > { %v2151_v25 = vrot.slane %v2135_v34, 4 }
 0x2fd   : > { %v2152_v38 = vsel %vm296_vm0, %v2151_v25, %v2131_v23 }
 0x2fe   : > { %v2156_v2 = vperm.slane %v2152_v38, %v2844_v10 }
 0x300   : > { %v2157_v1 = vrot.slane %v2156_v2, 4  ;;  %v1956_v36 = vpop.f32.mrf.mxu2 }
 0x302   : > { %v2158_v31 = vsel %vm296_vm0, %v2157_v1, %v2150_v57  ;;  %v2013_v37 = vpop.f32.mrf.mxu1 }
 0x303   : > { %v2162_v15 = vperm.slane %v2158_v31, %v2850_v20 }
 0x305   : > { %v2163_v53 = vrot.slane %v2162_v15, 4  ;;  %v2227_v45 = vpack.i.b16 %v2182_v44, %v2162_v15  ;;  %v2228_v13 = vshrl.u32 %v2162_v15, 16 }
 0x307   : > { %v2164_v47 = vsel %vm296_vm0, 0, %v2163_v53  ;;  %v2230_v7 = vpack.i.b16 %v2229_v30, %v2228_v13  ;;  %v2252_v39 = vshrl.u32 %v2227_v45, 16 }
 0x308   : > { %v3443_v46 = vpop.f32.mrf.mxu2  ;;  %v2233_v4 = vpack.i.b16 %v2184_v40, %v2164_v47  ;;  %v2234_v50 = vshrl.u32 %v2164_v47, 16 }
 0x309   : > { %v2251_v51 = vpack.i.b16 %v2230_v7, %v2227_v45  ;;  %v2253_v32 = vshrl.u32 %v2230_v7, 16 }
 0x30a   : > { %v2236_v54 = vpack.i.b16 %v2235_v17, %v2234_v50  ;;  %v2258_v28 = vshrl.u32 %v2233_v4, 16  ;;  %v2140_v50 = vpack.c.bf16 %v3423_v11, %v3423_v11 }
 0x30b   : > { %v2277_v55 = vperm.slane %v2251_v51, %v2844_v10  ;;  %v2254_v27 = vpack.i.b16 %v2253_v32, %v2252_v39  ;;  %v2137_v39 = vpack.c.bf16 %v3425_v49, %v3425_v49  ;;  %v2139_v32 = vpack.c.bf16 %v3443_v46, %v3443_v46 }
 0x30c   : > { %v2257_v8 = vpack.i.b16 %v2236_v54, %v2233_v4  ;;  %v2259_v58 = vshrl.u32 %v2236_v54, 16 }
 0x30d   : > { %v2285_v3 = vrot.slane %v2277_v55, 4  ;;  %v2303_v62 = vperm.slane %v2254_v27, %v2844_v10  ;;  %v2138_v27 = vpack.c.bf16 %v3432_v22, %v3432_v22 }
 0x30e   : > { %v2282_v60 = vperm.slane %v2257_v8, %v2844_v10  ;;  %v2260_v26 = vpack.i.b16 %v2259_v58, %v2258_v28 }
 0x30f   : > { %v2311_v29 = vrot.slane %v2303_v62, 4 }
 0x310   : > { %v2032_v48 = vpop.f32.mrf.mxu2  ;;  %v2286_v33 = vsel %vm296_vm0, %v2282_v60, %v2285_v3  ;;  %v2283_v19 = vrot.slane %v2282_v60, 4  ;;  %v2308_v12 = vperm.slane %v2260_v26, %v2844_v10 }
 0x311   : > { %v2294_v35 = vperm.slane %v2286_v33, %v2850_v20 }
 0x312   : > { %v2312_v9 = vsel %vm296_vm0, %v2308_v12, %v2311_v29  ;;  %v2309_v56 = vrot.slane %v2308_v12, 4  ;;  %v2284_v24 = vsel %vm296_vm0, %v2283_v19, %v2277_v55 }
 0x313   : > { %v2393_v14 = vunpack.c.l.b16 %v2294_v35  ;;  %v2320_v42 = vperm.slane %v2312_v9, %v2850_v20  ;;  %v2297_v43 = vrot.slane %v2294_v35, 4  ;;  %v3455_v59 = vperm.slane %v2284_v24, %v2850_v20 }
 0x314   : > { %v2310_v61 = vsel %vm296_vm0, %v2309_v56, %v2303_v62 }
 0x315   : > { %v2394_v63 = vpack.c.b16 %v2393_v14, %v2393_v14  ;;  %v2398_v16 = vunpack.c.l.b16 %v2320_v42  ;;  %v2323_v18 = vrot.slane %v2320_v42, 4  ;;  %v2298_v6 = vsel %vm296_vm0, 0, %v2297_v43 }
 0x316   : > { %v2295_v41 = vrot.slane %v3455_v59, 4  ;;  %v2316_v34 = vperm.slane %v2310_v61, %v2850_v20  ;;  %v2403_v44 = vunpack.c.l.b16 %v2298_v6 }
 0x317   : > { %2395 = vrot.lane.b32.xlu0 %v2394_v63, %s2738_s6  ;;  %v2399_v21 = vpack.c.b16 %v2398_v16, %v2398_v16  ;;  %v2324_v23 = vsel %vm296_vm0, 0, %v2323_v18 }
 0x318   : > { %v2408_v52 = vunpack.c.l.b16 %v2324_v23  ;;  %v2296_v25 = vsel %vm296_vm0, 0, %v2295_v41  ;;  %v2321_v0 = vrot.slane %v2316_v34, 4  ;;  %v2404_v1 = vpack.c.b16 %v2403_v44, %v2403_v44 }
 0x319   : > { %2400 = vrot.lane.b32.xlu1 %v2399_v21, %s2745_s13  ;;  %v2383_v2 = vunpack.c.l.b16 %v2296_v25  ;;  %v2378_v37 = vunpack.c.l.b16 %v2316_v34 }
 0x31a   : > { %v2409_v38 = vpack.c.b16 %v2408_v52, %v2408_v52  ;;  %v2322_v57 = vsel %vm296_vm0, 0, %v2321_v0 }
 0x31b   : > { %v2388_v36 = vunpack.c.l.b16 %v2322_v57  ;;  %v2384_v31 = vpack.c.b16 %v2383_v2, %v2383_v2  ;;  %v2379_v30 = vpack.c.b16 %v2378_v37, %v2378_v37 }
 0x31c   : > { %2410 = vrot.lane.b32.xlu2 %v2409_v38, %s2741_s9 }
 0x31d   : > { %v2389_v15 = vpack.c.b16 %v2388_v36, %v2388_v36 }
 0x31f   : > { %2405 = vrot.lane.b32.xlu0 %v2404_v1, %s2744_s12  ;;  %v2068_v5 = vpop.f32.mrf.mxu0 }
 0x320   : > { %v2141_v45 = vpack.c.bf16 %v2068_v5, %v2068_v5 }
 0x321   : > { %2385 = vrot.lane.b32.xlu1 %v2384_v31, %s2742_s10 }
 0x322   : > { %v2185_v7 = vrot.slane %v2141_v45, 4 }
 0x324   : > { %2390 = vrot.lane.b32.xlu2 %v2389_v15, %s2739_s7  ;;  %v2186_v28 = vsel %vm296_vm0, %v2185_v7, %v2137_v39 }
 0x325   : > { %v2190_v26 = vperm.slane %v2186_v28, %v2844_v10 }
 0x327   : > { %2380 = vrot.lane.b32.xlu0 %v2379_v30, %s2743_s11  ;;  %v2070_v53 = vpop.f32.mrf.mxu0 }
 0x32d   : > { %v2125_v13 = vpop.f32.mrf.mxu3 }
 0x32e   : > { %v2144_v40 = vpack.c.bf16 %v2125_v13, %v2125_v13 }
 0x32f   : > { %v2106_v47 = vpop.f32.mrf.mxu2 }
 0x330   : > { %v2143_v4 = vpack.c.bf16 %v2106_v47, %v2106_v47  ;;  %v2211_v17 = vrot.slane %v2144_v40, 4 }
 0x331   : > { %v2087_v51 = vpop.f32.mrf.mxu1 }
 0x332   : > { %v2191_v54 = vrot.slane %v2143_v4, 4  ;;  %v2142_v55 = vpack.c.bf16 %v2087_v51, %v2087_v51  ;;  %v2212_v8 = vsel %vm296_vm0, %v2211_v17, %v2140_v50 }
 0x333   : > { %v2216_v58 = vperm.slane %v2212_v8, %v2844_v10 }
 0x334   : > { %v2192_v11 = vsel %vm296_vm0, %v2191_v54, %v2139_v32  ;;  %v2205_v3 = vrot.slane %v2142_v55, 4 }
 0x335   : > { %v2196_v62 = vperm.slane %v2192_v11, %v2844_v10  ;;  %v2217_v49 = vrot.slane %v2216_v58, 4  ;;  %v2127_v46 = vpop.f32.mrf.mxu3 }
 0x336   : > { %v2206_v60 = vsel %vm296_vm0, %v2205_v3, %v2138_v27 }
 0x337   : > { %v2197_v29 = vrot.slane %v2196_v62, 4  ;;  %v2210_v22 = vperm.slane %v2206_v60, %v2844_v10  ;;  %v2108_v48 = vpop.f32.mrf.mxu2 }
 0x339   : > { %v2198_v33 = vsel %vm296_vm0, %v2197_v29, %v2190_v26  ;;  %v2218_v19 = vsel %vm296_vm0, %v2217_v49, %v2210_v22  ;;  %v2089_v12 = vpop.f32.mrf.mxu1 }
 0x33a   : > { %v2202_v35 = vperm.slane %v2198_v33, %v2850_v20  ;;  %v2222_v9 = vperm.slane %v2218_v19, %v2850_v20 }
 0x33c   : > { %v2203_v56 = vrot.slane %v2202_v35, 4  ;;  %v2240_v24 = vshrl.u32 %v2202_v35, 16  ;;  %v2223_v14 = vrot.slane %v2222_v9, 4  ;;  %v2239_v42 = vpack.i.b16 %v2222_v9, %v2202_v35 }
 0x33d   : > { %v2241_v43 = vshrl.u32 %v2222_v9, 16 }
 0x33e   : > { %v2204_v61 = vsel %vm296_vm0, 0, %v2203_v56  ;;  %v2224_v63 = vsel %vm296_vm0, 0, %v2223_v14  ;;  %v2264_v23 = vshrl.u32 %v2239_v42, 16 }
 0x33f   : > { %v2242_v16 = vpack.i.b16 %v2241_v43, %v2240_v24  ;;  %v2245_v18 = vpack.i.b16 %v2224_v63, %v2204_v61  ;;  %v2246_v6 = vshrl.u32 %v2204_v61, 16  ;;  %v2247_v41 = vshrl.u32 %v2224_v63, 16 }
 0x341   : > { %v2248_v34 = vpack.i.b16 %v2247_v41, %v2246_v6  ;;  %v2263_v21 = vpack.i.b16 %v2242_v16, %v2239_v42  ;;  %v2265_v52 = vshrl.u32 %v2242_v16, 16  ;;  %v2270_v25 = vshrl.u32 %v2245_v18, 16 }
 0x343   : > { %v2269_v0 = vpack.i.b16 %v2248_v34, %v2245_v18  ;;  %v2329_v44 = vperm.slane %v2263_v21, %v2844_v10  ;;  %v2266_v38 = vpack.i.b16 %v2265_v52, %v2264_v23  ;;  %v2271_v2 = vshrl.u32 %v2248_v34, 16 }
 0x345   : > { %v2334_v57 = vperm.slane %v2269_v0, %v2844_v10  ;;  %v2337_v1 = vrot.slane %v2329_v44, 4  ;;  %v2272_v36 = vpack.i.b16 %v2271_v2, %v2270_v25  ;;  %v2355_v5 = vperm.slane %v2266_v38, %v2844_v10 }
 0x347   : > { %v2338_v31 = vsel %vm296_vm0, %v2334_v57, %v2337_v1  ;;  %v2335_v37 = vrot.slane %v2334_v57, 4  ;;  %v2360_v15 = vperm.slane %v2272_v36, %v2844_v10  ;;  %v2363_v30 = vrot.slane %v2355_v5, 4 }
 0x348   : > { %v2346_v53 = vperm.slane %v2338_v31, %v2850_v20 }
 0x349   : > { %v2336_v45 = vsel %vm296_vm0, %v2335_v37, %v2329_v44  ;;  %v2361_v13 = vrot.slane %v2360_v15, 4  ;;  %v2364_v40 = vsel %vm296_vm0, %v2360_v15, %v2363_v30 }
 0x34a   : > { %v2433_v47 = vunpack.c.l.b16 %v2346_v53  ;;  %v2342_v7 = vperm.slane %v2336_v45, %v2850_v20  ;;  %v2372_v10 = vperm.slane %v2364_v40, %v2850_v20  ;;  %v2349_v62 = vrot.slane %v2346_v53, 4 }
 0x34b   : > { %v2362_v4 = vsel %vm296_vm0, %v2361_v13, %v2355_v5 }
 0x34c   : > { %v2434_v50 = vpack.c.b16 %v2433_v47, %v2433_v47  ;;  %v2413_v17 = vunpack.c.l.b16 %v2342_v7  ;;  %v2347_v51 = vrot.slane %v2342_v7, 4  ;;  %v2368_v39 = vperm.slane %v2362_v4, %v2850_v20 }
 0x34d   : > { %v2375_v11 = vrot.slane %v2372_v10, 4  ;;  %v2438_v20 = vunpack.c.l.b16 %v2372_v10  ;;  %v2350_v26 = vsel %vm296_vm0, 0, %v2349_v62 }
 0x34e   : > { %2435 = vrot.lane.b32.xlu0 %v2434_v50, %s2732_s22  ;;  %v2414_v32 = vpack.c.b16 %v2413_v17, %v2413_v17  ;;  %v2348_v54 = vsel %vm296_vm0, 0, %v2347_v51  ;;  %v2373_v55 = vrot.slane %v2368_v39, 4  ;;  %v2418_v8 = vunpack.c.l.b16 %v2368_v39 }
 0x34f   : > { %v2423_v27 = vunpack.c.l.b16 %v2348_v54  ;;  %v2376_v60 = vsel %vm296_vm0, 0, %v2375_v11  ;;  %v2439_v22 = vpack.c.b16 %v2438_v20, %v2438_v20  ;;  %v2443_v48 = vunpack.c.l.b16 %v2350_v26 }
 0x350   : > { %2415 = vrot.lane.b32.xlu1 %v2414_v32, %s2740_s8  ;;  %v2374_v28 = vsel %vm296_vm0, 0, %v2373_v55  ;;  %v2419_v49 = vpack.c.b16 %v2418_v8, %v2418_v8  ;;  %v2448_v29 = vunpack.c.l.b16 %v2376_v60  ;;  %vm2491_vm0 = vcmask 916480  }
 0x351   : > { %v2424_v58 = vpack.c.b16 %v2423_v27, %v2423_v27  ;;  %v2428_v3 = vunpack.c.l.b16 %v2374_v28  ;;  %v2444_v19 = vpack.c.b16 %v2443_v48, %v2443_v48 }
 0x352   : > { %v2449_v33 = vpack.c.b16 %v2448_v29, %v2448_v29 }
 0x353   : > { %2425 = vrot.lane.b32.xlu2 %v2424_v58, %s2734_s25  ;;  %v2429_v46 = vpack.c.b16 %v2428_v3, %v2428_v3 }
 0x356   : > { %2420 = vrot.lane.b32.xlu0 %v2419_v49, %s2733_s23  ;;  %s246_s23 = scalar_lea.vmem %s3531_s4, %s2593_s24 }
 0x358   : > { %2430 = vrot.lane.b32.xlu1 %v2429_v46, %s2735_s26 }
 0x35b   : > { %2440 = vrot.lane.b32.xlu2 %v2439_v22, %s2737_s5 }
 0x35e   : > { %2450 = vrot.lane.b32.xlu0 %v2449_v33, %s2731_s21 }
 0x360   : > { %2445 = vrot.lane.b32.xlu1 %v2444_v19, %s2736_s27 }
 0x376   : > { %v2411_v56 = vpop.permute.xlu2 %2410 }
 0x37e   : > { %v2391_v61 = vpop.permute.xlu2 %2390 }
 0x389   : > { %v2396_v12 = vpop.permute.xlu0 %2395 }
 0x38b   : > { %v2401_v9 = vpop.permute.xlu1 %2400 }
 0x391   : > { %v2406_v35 = vpop.permute.xlu0 %2405 }
 0x393   : > { %v2386_v42 = vpop.permute.xlu1 %2385 }
 0x399   : > { %v2381_v24 = vpop.permute.xlu0 %2380 }
 0x39a   : > { %v2454_v14 = vsel %vm1302_vm1, %v3455_v59, %v2381_v24  ;;  %vm2494_vm1 = vcmask 982016  }
 0x39b   : > { %v2457_v43 = vsel %vm2455_vm4, %v2454_v14, %v2386_v42 }
 0x39c   : > { %v2460_v63 = vsel %vm2458_vm5, %v2457_v43, %v2391_v61 }
 0x39d   : > { %v2463_v16 = vsel %vm2461_vm6, %v2460_v63, %v2396_v12 }
 0x39e   : > { %v2466_v6 = vsel %vm2464_vm7, %v2463_v16, %v2401_v9 }
 0x39f   : > { %v2469_v34 = vsel %vm2467_vm8, %v2466_v6, %v2406_v35 }
 0x3a0   : > { %v2472_v23 = vsel %vm2470_vm9, %v2469_v34, %v2411_v56 }
 0x3ad   : > { %v2426_v21 = vpop.permute.xlu2 %2425 }
 0x3b5   : > { %v2441_v57 = vpop.permute.xlu2 %2440 }
 0x3c0   : > { %v2436_v18 = vpop.permute.xlu0 %2435 }
 0x3c2   : > { %v2416_v41 = vpop.permute.xlu1 %2415 }
 0x3c3   : > { %v2475_v59 = vsel %vm2473_vm10, %v2472_v23, %v2416_v41 }
 0x3c8   : > { %v2421_v52 = vpop.permute.xlu0 %2420 }
 0x3c9   : > { %v2478_v25 = vsel %vm2476_vm11, %v2475_v59, %v2421_v52 }
 0x3ca   : > { %v2481_v0 = vsel %vm2479_vm12, %v2478_v25, %v2426_v21  ;;  %v2431_v44 = vpop.permute.xlu1 %2430 }
 0x3cb   : > { %v2484_v38 = vsel %vm2482_vm13, %v2481_v0, %v2431_v44 }
 0x3cc   : > { %v2487_v2 = vsel %vm2485_vm14, %v2484_v38, %v2436_v18 }
 0x3cd   : > { %v2490_v1 = vsel %vm2488_vm15, %v2487_v2, %v2441_v57 }
 0x3d0   : > { %v2451_v5 = vpop.permute.xlu0 %2450 }
 0x3d2   : > { %v2446_v36 = vpop.permute.xlu1 %2445 }
 0x3d3   : > { %v2493_v31 = vsel %vm2491_vm0, %v2490_v1, %v2446_v36 }
 0x3d4   : > { %v2496_v37 = vsel %vm2494_vm1, %v2493_v31, %v2451_v5 }
 0x3d5   : > { %2498 = vst [vmem:[%s246_s23] sm:$0x3] %v2496_v37 }
 0x3d6 PF: > { %s14_s15 = sadd.s32 1, %s2729_s15  }
 0x3d7   : > { %p11_p4 = scmp.ge.s32.totalorder %s14_s15, 4  }
 0x3d9   :  { %13 = sbr.rel (!%p11_p4) target bundleno = 1 (0x1), region = 75 }

// kernel: fusionnet_forward.11
= control target key start
LH: loop header
LB: loop body
LE: loop exit
PB: predicated region body
PF: predicated region fallthrough
CT: control target
= control target key end

     0   :  { %s2582_s15 = smov 0   ;;  %s3240_s0 = inlined_call_operand.vmem [shape: bf16[2,4,128], index: 0, kind: input, shape index: {}]   ;;  %s3241_s1 = inlined_call_operand.vmem [shape: bf16[2,4,128], index: 1, kind: input, shape index: {}]   ;;  %s3242_s2 = inlined_call_operand.vmem [shape: bf16[2,4,128], index: 2, kind: input, shape index: {}]   ;;  %s3243_s3 = inlined_call_operand.vmem [shape: bf16[2,4,4,4], index: 3, kind: input, shape index: {}]   ;;  %s3244_s4 = inlined_call_operand.vmem [shape: bf16[2,4,128], index: 4, kind: output, shape index: {}]  }
   0x1 LB: > { %s2397_s16 = sadd.s32 4294967295, %s2538_s15   ;;  %p2401_p0 = scmp.ge.s32.totalorder %s2538_s15, 1  ;;  %s2538_s15 = sphi %s2582_s15, %s14_s15  }
   0x2   : > { %p189_p1 = scmp.lt.s32.totalorder %s2538_s15, 3 }
   0x4   : > { %p190_p2 = pnand %p2401_p0, %p189_p1 }
   0x5   : > { %p226_p3 = scmp.lt.s32.totalorder (!%p190_p2), %s2397_s16, 1  ;;  %s2540_s24 = smov (!%p190_p2), 120  }
   0x6   : > { %193 = sbr.rel (%p190_p2) target bundleno = 961 (0x3c1), region = 36  ;;  %s2541_s25 = smov (!%p190_p2), 112  }
   0x7   : > { %s2542_s26 = smov (!%p190_p2), 104   ;;  %s2543_s27 = smov (!%p190_p2), 80  }
   0x8   : > { %s2544_s28 = smov (!%p190_p2), 72   ;;  %s2545_s29 = smov (!%p190_p2), 96  }
   0x9   : > { %s2546_s30 = smov (!%p190_p2), 88   ;;  %s2547_s5 = smov (!%p190_p2), 48  }
   0xa   : > { %s2548_s6 = smov (!%p190_p2), 40   ;;  %s2549_s7 = smov (!%p190_p2), 64  }
   0xb   : > { %s3246_s16 = smov (!%p226_p3, %s2397_s16), 1  ;;  %s2550_s8 = smov 56   ;;  %v2555_v5 = vmov 1934713408   ;;  %vm296_vm0 = vcmask 1047556   ;;  %vm1110_vm1 = vcmask 64512  }
   0xc   : > { %s2593_s17 = sshll.u32 %s3246_s16, 1  ;;  %s2551_s9 = smov 16   ;;  %v299_v6 = vunpack.c.l.s4 %v2555_v5  ;;  %vm1439_vm2 = vcmask 27648   ;;  %vm1636_vm3 = vcmask 1041408   ;;  %vm1632_vm4 = vcmask 31744  }
   0xd   : > { %s233_s20 = scalar_lea.vmem %s3241_s1, %s2593_s17  ;;  %s229_s23 = scalar_lea.vmem %s3240_s0, %s2593_s17  ;;  %vm2264_vm5 = vcmask 130048   ;;  %vm2267_vm6 = vcmask 195584   ;;  %vm2270_vm7 = vcmask 261120   ;;  %vm2273_vm8 = vcmask 326656  }
   0xe   : > { %v536_v0 = vld [vmem:[%s233_s20] sm:$0x3]  ;;  %s2552_s10 = smov 8   ;;  %s2553_s11 = smov 32   ;;  %v2651_v12 = vunpack.c.0.s8 %v299_v6  ;;  %vm2276_vm9 = vcmask 392192   ;;  %vm2279_vm10 = vcmask 457728  }
   0xf   : > { %538 = vrot.lane.b32.xlu1 %v536_v0, %s2540_s24  ;;  %541 = vrot.lane.b32.xlu0 %v536_v0, %s2541_s25  ;;  %v2605_v1 = vld [vmem:[%s229_s23] sm:$0x3]  ;;  %s2554_s12 = smov 24   ;;  %s237_s18 = scalar_lea.vmem %s3242_s2, %s2593_s17  ;;  %vm2282_vm11 = vcmask 523264   ;;  %vm2285_vm12 = vcmask 588800   ;;  %vm2288_vm13 = vcmask 654336  }
  0x10   : > { %256 = vrot.lane.b32.xlu2 %v2605_v1, %s2542_s26  ;;  %s2442_s19 = sshll.u32 %s3246_s16, 3  ;;  %vm2291_vm14 = vcmask 719872   ;;  %vm2294_vm15 = vcmask 785408  }
  0x11   : > { %s2848_s22 = scalar_lea.vmem %s3243_s3, %s2442_s19 }
  0x17   : > { %544 = vrot.lane.b32.xlu0 %v536_v0, %s2542_s26  ;;  %253 = vrot.lane.b32.xlu1 %v2605_v1, %s2541_s25 }
  0x18   : > { %250 = vrot.lane.b32.xlu2 %v2605_v1, %s2540_s24 }
  0x1f   : > { %553 = vrot.lane.b32.xlu0 %v536_v0, %s2543_s27  ;;  %556 = vrot.lane.b32.xlu1 %v536_v0, %s2544_s28 }
  0x20   : > { %547 = vrot.lane.b32.xlu2 %v536_v0, %s2545_s29 }
  0x27   : > { %550 = vrot.lane.b32.xlu0 %v536_v0, %s2546_s30  ;;  %265 = vrot.lane.b32.xlu1 %v2605_v1, %s2543_s27 }
  0x28   : > { %268 = vrot.lane.b32.xlu2 %v2605_v1, %s2544_s28 }
  0x2f   : > { %259 = vrot.lane.b32.xlu0 %v2605_v1, %s2545_s29  ;;  %262 = vrot.lane.b32.xlu1 %v2605_v1, %s2546_s30 }
  0x30   : > { %565 = vrot.lane.b32.xlu2 %v536_v0, %s2547_s5 }
  0x37   : > { %568 = vrot.lane.b32.xlu0 %v536_v0, %s2548_s6  ;;  %559 = vrot.lane.b32.xlu1 %v536_v0, %s2549_s7 }
  0x38   : > { %562 = vrot.lane.b32.xlu2 %v536_v0, %s2550_s8 }
  0x3f   : > { %277 = vrot.lane.b32.xlu0 %v2605_v1, %s2547_s5  ;;  %280 = vrot.lane.b32.xlu1 %v2605_v1, %s2548_s6 }
  0x40   : > { %271 = vrot.lane.b32.xlu2 %v2605_v1, %s2549_s7 }
  0x47   : > { %274 = vrot.lane.b32.xlu0 %v2605_v1, %s2550_s8  ;;  %577 = vrot.lane.b32.xlu1 %v536_v0, %s2551_s9 }
  0x48   : > { %580 = vrot.lane.b32.xlu2 %v536_v0, %s2552_s10 }
  0x4f   : > { %571 = vrot.lane.b32.xlu0 %v536_v0, %s2553_s11  ;;  %574 = vrot.lane.b32.xlu1 %v536_v0, %s2554_s12 }
  0x50   : > { %289 = vrot.lane.b32.xlu2 %v2605_v1, %s2551_s9 }
  0x57   : > { %292 = vrot.lane.b32.xlu0 %v2605_v1, %s2552_s10  ;;  %283 = vrot.lane.b32.xlu1 %v2605_v1, %s2553_s11 }
  0x58   : > { %286 = vrot.lane.b32.xlu2 %v2605_v1, %s2554_s12 }
  0x6a   : > { %v257_v2 = vpop.permute.xlu2 %256 }
  0x6b   : > { %v304_v4 = vrot.slane %v257_v2, 4 }
  0x72   : > { %v251_v3 = vpop.permute.xlu2 %250 }
  0x73   : > { %v305_v10 = vsel %vm296_vm0, %v304_v4, %v251_v3 }
  0x74   : > { %v309_v14 = vperm.slane %v305_v10, %v2651_v12 }
  0x76   : > { %v310_v18 = vrot.slane %v309_v14, 4  ;;  %v365_v31 = vshrl.u32 %v309_v14, 16 }
  0x78   : > { %v311_v27 = vsel %vm296_vm0, 0, %v310_v18 }
  0x79   : > { %v373_v32 = vshrl.u32 %v311_v27, 16 }
  0x7a   : > { %v548_v11 = vpop.permute.xlu2 %547 }
  0x81   : > { %v539_v7 = vpop.permute.xlu1 %538  ;;  %v542_v8 = vpop.permute.xlu0 %541 }
  0x82   : > { %v583_v9 = vrot.slane %v542_v8, 4  ;;  %v2659_v24 = vpop.permute.xlu2 %268 }
  0x83   : > { %v320_v5 = vrot.slane %v2659_v24, 4 }
  0x84   : > { %v584_v13 = vsel %vm296_vm0, %v583_v9, %v536_v0 }
  0x85   : > { %v588_v15 = vperm.slane %v584_v13, %v2651_v12 }
  0x87   : > { %v589_v21 = vrot.slane %v588_v15, 4  ;;  %v651_v33 = vshrl.u32 %v588_v15, 16 }
  0x89   : > { %v545_v16 = vpop.permute.xlu0 %544  ;;  %v254_v17 = vpop.permute.xlu1 %253  ;;  %v590_v28 = vsel %vm296_vm0, 0, %v589_v21 }
  0x8a   : > { %v591_v19 = vrot.slane %v545_v16, 4  ;;  %v295_v20 = vrot.slane %v254_v17, 4  ;;  %v659_v39 = vshrl.u32 %v590_v28, 16  ;;  %v2671_v58 = vpop.permute.xlu2 %565 }
  0x8c   : > { %v592_v22 = vsel %vm296_vm0, %v591_v19, %v539_v7  ;;  %v297_v23 = vsel %vm296_vm0, %v295_v20, %v2605_v1  ;;  %v615_v7 = vrot.slane %v2671_v58, 4 }
  0x8d   : > { %v596_v25 = vperm.slane %v592_v22, %v2651_v12  ;;  %v301_v26 = vperm.slane %v297_v23, %v2651_v12 }
  0x8f   : > { %v597_v29 = vrot.slane %v596_v25, 4  ;;  %v302_v30 = vrot.slane %v301_v26, 4  ;;  %v652_v35 = vshrl.u32 %v596_v25, 16  ;;  %v649_v43 = vpack.i.b16 %v596_v25, %v588_v15 }
  0x90   : > { %v364_v44 = vshrl.u32 %v301_v26, 16  ;;  %v362_v47 = vpack.i.b16 %v309_v14, %v301_v26 }
  0x91   : > { %v598_v34 = vsel %vm296_vm0, 0, %v597_v29  ;;  %v303_v36 = vsel %vm296_vm0, 0, %v302_v30  ;;  %v554_v37 = vpop.permute.xlu0 %553  ;;  %v557_v38 = vpop.permute.xlu1 %556  ;;  %v653_v53 = vpack.i.b16 %v652_v35, %v651_v33 }
  0x92   : > { %v660_v40 = vshrl.u32 %v598_v34, 16  ;;  %v370_v41 = vpack.i.b16 %v311_v27, %v303_v36  ;;  %v372_v42 = vshrl.u32 %v303_v36, 16  ;;  %v599_v45 = vrot.slane %v554_v37, 4  ;;  %v563_v37 = vpop.permute.xlu2 %562 }
  0x93   : > { %v657_v46 = vpack.i.b16 %v598_v34, %v590_v28  ;;  %v607_v51 = vrot.slane %v557_v38, 4  ;;  %v366_v62 = vpack.i.b16 %v365_v31, %v364_v44 }
  0x94   : > { %v374_v48 = vpack.i.b16 %v373_v32, %v372_v42  ;;  %v424_v49 = vrot.slane %v370_v41, 4  ;;  %v661_v50 = vpack.i.b16 %v660_v40, %v659_v39  ;;  %v600_v52 = vsel %vm296_vm0, %v599_v45, %v548_v11 }
  0x95   : > { %v711_v54 = vrot.slane %v657_v46, 4  ;;  %v2669_v56 = vperm.slane %v600_v52, %v2651_v12 }
  0x96   : > { %v432_v55 = vrot.slane %v374_v48, 4  ;;  %v719_v57 = vrot.slane %v661_v50, 4  ;;  %v425_v59 = vsel %vm296_vm0, %v424_v49, %v362_v47 }
  0x97   : > { %v712_v60 = vsel %vm296_vm0, %v711_v54, %v649_v43  ;;  %v2676_v61 = vperm.slane %v425_v59, %v2651_v12  ;;  %v605_v63 = vrot.slane %v2669_v56, 4  ;;  %v667_v2 = vshrl.u32 %v2669_v56, 16 }
  0x98   : > { %v716_v0 = vperm.slane %v712_v60, %v2651_v12  ;;  %v720_v1 = vsel %vm296_vm0, %v719_v57, %v653_v53  ;;  %v433_v10 = vsel %vm296_vm0, %v432_v55, %v366_v62 }
  0x99   : > { %v551_v3 = vpop.permute.xlu0 %550  ;;  %v266_v4 = vpop.permute.xlu1 %265  ;;  %v724_v6 = vperm.slane %v720_v1, %v2651_v12  ;;  %v606_v8 = vsel %vm296_vm0, 0, %v605_v63  ;;  %v430_v11 = vrot.slane %v2676_v61, 4  ;;  %v491_v16 = vshrl.u32 %v2676_v61, 16 }
  0x9a   : > { %v608_v9 = vsel %vm296_vm0, %v607_v51, %v551_v3  ;;  %v312_v17 = vrot.slane %v266_v4, 4  ;;  %v778_v18 = vshrl.u32 %v716_v0, 16  ;;  %v717_v19 = vrot.slane %v716_v0, 4 }
  0x9b   : > { %v612_v13 = vperm.slane %v608_v9, %v2651_v12  ;;  %v777_v14 = vpack.i.b16 %v724_v6, %v716_v0  ;;  %v779_v15 = vshrl.u32 %v724_v6, 16  ;;  %v725_v20 = vrot.slane %v724_v6, 4 }
  0x9c   : > { %v675_v21 = vshrl.u32 %v606_v8, 16  ;;  %v437_v24 = vperm.slane %v433_v10, %v2651_v12  ;;  %v718_v26 = vsel %vm296_vm0, 0, %v717_v19  ;;  %v2696_v28 = vsel %vm296_vm0, 0, %v430_v11 }
  0x9d   : > { %v613_v22 = vrot.slane %v612_v13, 4  ;;  %v1115_v23 = vsel %vm1110_vm1, %v777_v14, 0  ;;  %v780_v25 = vpack.i.b16 %v779_v15, %v778_v18  ;;  %v726_v27 = vsel %vm296_vm0, 0, %v725_v20 }
  0x9e   : > { %1124 = vmatpush.bf16.xpose.msra.mxu0 %v1115_v23  ;;  %v665_v30 = vpack.i.b16 %v612_v13, %v2669_v56  ;;  %v668_v31 = vshrl.u32 %v612_v13, 16  ;;  %v783_v32 = vpack.i.b16 %v726_v27, %v718_v26  ;;  %v785_v36 = vshrl.u32 %v726_v27, 16 }
  0x9f   : > { %v614_v29 = vsel %vm296_vm0, 0, %v613_v22  ;;  %v1134_v35 = vsel %vm1110_vm1, %v780_v25, 0  ;;  %v784_v41 = vshrl.u32 %v718_v26, 16  ;;  %v492_v42 = vshrl.u32 %v437_v24, 16 }
  0xa0   : > { %v673_v33 = vpack.i.b16 %v614_v29, %v606_v8  ;;  %v676_v34 = vshrl.u32 %v614_v29, 16  ;;  %1143 = vmatpush.bf16.xpose.msra.mxu1 %v1134_v35  ;;  %v1153_v38 = vsel %vm1110_vm1, %v783_v32, 0  ;;  %v438_v43 = vrot.slane %v437_v24, 4 }
  0xa1   : > { %v260_v39 = vpop.permute.xlu0 %259  ;;  %v263_v40 = vpop.permute.xlu1 %262  ;;  %1162 = vmatpush.bf16.xpose.msra.mxu2 %v1153_v38  ;;  %v786_v50 = vpack.i.b16 %v785_v36, %v784_v41  ;;  %v490_v51 = vpack.i.b16 %v437_v24, %v2676_v61  ;;  %v669_v52 = vpack.i.b16 %v668_v31, %v667_v2  ;;  %v493_v60 = vpack.i.b16 %v492_v42, %v491_v16 }
  0xa2   : > { %v677_v44 = vpack.i.b16 %v676_v34, %v675_v21  ;;  %v727_v45 = vrot.slane %v673_v33, 4  ;;  %v313_v46 = vsel %vm296_vm0, %v312_v17, %v260_v39  ;;  %v321_v47 = vsel %vm296_vm0, %v320_v5, %v263_v40  ;;  %v272_v21 = vpop.permute.xlu2 %271 }
  0xa3   : > { %v317_v48 = vperm.slane %v313_v46, %v2651_v12  ;;  %v325_v49 = vperm.slane %v321_v47, %v2651_v12  ;;  %v439_v53 = vsel %vm296_vm0, 0, %v438_v43  ;;  %v1172_v63 = vsel %vm1110_vm1, %v786_v50, 0 }
  0xa4   : > { %v728_v54 = vsel %vm296_vm0, %v727_v45, %v665_v30  ;;  %v735_v55 = vrot.slane %v677_v44, 4  ;;  %v496_v0 = vpack.i.b16 %v439_v53, %v2696_v28  ;;  %v498_v1 = vshrl.u32 %v439_v53, 16  ;;  %1181 = vmatpush.bf16.xpose.msra.mxu3 %v1172_v63  ;;  %v2732_v30 = vld [vmem:[%s237_s18] sm:$0x3] }
  0xa5   : > { %v318_v56 = vrot.slane %v317_v48, 4  ;;  %v380_v57 = vshrl.u32 %v317_v48, 16  ;;  %v326_v59 = vrot.slane %v325_v49, 4  ;;  %2408 = vmatmul.msk.bf16.vlgmr.msra.gmra.mxu0 %vm1110_vm1, %v490_v51  ;;  %v381_v62 = vshrl.u32 %v325_v49, 16  ;;  %828 = vrot.lane.b32.xlu0 %v2732_v30, %s2541_s25 }
  0xa6   : > { %v732_v3 = vperm.slane %v728_v54, %v2651_v12  ;;  %v736_v4 = vsel %vm296_vm0, %v735_v55, %v669_v52  ;;  %v497_v9 = vshrl.u32 %v2696_v28, 16  ;;  %v378_v10 = vpack.i.b16 %v325_v49, %v317_v48  ;;  %831 = vrot.lane.b32.xlu1 %v2732_v30, %s2542_s26  ;;  %825 = vrot.lane.b32.xlu2 %v2732_v30, %s2540_s24 }
  0xa7   : > { %v319_v61 = vsel %vm296_vm0, 0, %v318_v56  ;;  %v327_v2 = vsel %vm296_vm0, 0, %v326_v59  ;;  %2409 = vmatmul.msk.bf16.vlgmr.msra.gmra.mxu1 %vm1110_vm1, %v493_v60  ;;  %v382_v11 = vpack.i.b16 %v381_v62, %v380_v57  ;;  %v740_v15 = vperm.slane %v736_v4, %v2651_v12 }
  0xa8   : > { %v388_v5 = vshrl.u32 %v319_v61, 16  ;;  %v386_v6 = vpack.i.b16 %v327_v2, %v319_v61  ;;  %v389_v8 = vshrl.u32 %v327_v2, 16  ;;  %2410 = vmatmul.msk.bf16.vlgmr.msra.gmra.mxu2 %vm1110_vm1, %v496_v0  ;;  %v733_v16 = vrot.slane %v732_v3, 4 }
  0xa9   : > { %v569_v13 = vpop.permute.xlu0 %568  ;;  %v560_v14 = vpop.permute.xlu1 %559  ;;  %v499_v22 = vpack.i.b16 %v498_v1, %v497_v9  ;;  %v789_v24 = vpack.i.b16 %v740_v15, %v732_v3  ;;  %v791_v25 = vshrl.u32 %v740_v15, 16  ;;  %v790_v28 = vshrl.u32 %v732_v3, 16 }
  0xaa   : > { %v390_v17 = vpack.i.b16 %v389_v8, %v388_v5  ;;  %v440_v18 = vrot.slane %v386_v6, 4  ;;  %v623_v19 = vrot.slane %v569_v13, 4  ;;  %v616_v20 = vsel %vm296_vm0, %v615_v7, %v560_v14  ;;  %v2756_v1 = vpop.permute.xlu2 %580 }
  0xab   : > { %v2728_v23 = vperm.slane %v616_v20, %v2651_v12  ;;  %v741_v29 = vrot.slane %v740_v15, 4  ;;  %v1191_v32 = vsel %vm1110_vm1, %v789_v24, 0  ;;  %2411 = vmatmul.msk.bf16.vlgmr.msra.gmra.mxu3 %vm1110_vm1, %v499_v22  ;;  %v792_v34 = vpack.i.b16 %v791_v25, %v790_v28 }
  0xac   : > { %v441_v26 = vsel %vm296_vm0, %v440_v18, %v378_v10  ;;  %v624_v27 = vsel %vm296_vm0, %v623_v19, %v563_v37  ;;  %v448_v31 = vrot.slane %v390_v17, 4  ;;  %1200 = vmatpush.bf16.xpose.msrb.mxu0 %v1191_v32  ;;  %v734_v35 = vsel %vm296_vm0, 0, %v733_v16 }
  0xad   : > { %v628_v58 = vperm.slane %v624_v27, %v2651_v12  ;;  %v621_v7 = vrot.slane %v2728_v23, 4  ;;  %v683_v33 = vshrl.u32 %v2728_v23, 16  ;;  %v742_v36 = vsel %vm296_vm0, 0, %v741_v29  ;;  %843 = vrot.lane.b32.xlu0 %v2732_v30, %s2544_s28 }
  0xae   : > { %v445_v40 = vperm.slane %v441_v26, %v2651_v12  ;;  %v1210_v42 = vsel %vm1110_vm1, %v792_v34, 0  ;;  %v795_v43 = vpack.i.b16 %v742_v36, %v734_v35  ;;  %v797_v44 = vshrl.u32 %v742_v36, 16  ;;  %840 = vrot.lane.b32.xlu1 %v2732_v30, %s2543_s27  ;;  %834 = vrot.lane.b32.xlu2 %v2732_v30, %s2545_s29 }
  0xaf   : > { %v629_v37 = vrot.slane %v628_v58, 4  ;;  %v684_v38 = vshrl.u32 %v628_v58, 16  ;;  %v622_v39 = vsel %vm296_vm0, 0, %v621_v7  ;;  %v681_v46 = vpack.i.b16 %v628_v58, %v2728_v23  ;;  %1219 = vmatpush.bf16.xpose.msrb.mxu1 %v1210_v42 }
  0xb0   : > { %v691_v41 = vshrl.u32 %v622_v39, 16  ;;  %v796_v48 = vshrl.u32 %v734_v35, 16  ;;  %v449_v50 = vsel %vm296_vm0, %v448_v31, %v382_v11  ;;  %v1229_v53 = vsel %vm1110_vm1, %v795_v43, 0 }
  0xb1   : > { %v630_v45 = vsel %vm296_vm0, 0, %v629_v37  ;;  %v278_v47 = vpop.permute.xlu0 %277  ;;  %v281_v49 = vpop.permute.xlu1 %280  ;;  %v685_v55 = vpack.i.b16 %v684_v38, %v683_v33  ;;  %1238 = vmatpush.bf16.xpose.msrb.mxu2 %v1229_v53  ;;  %v453_v57 = vperm.slane %v449_v50, %v2651_v12  ;;  %v446_v59 = vrot.slane %v445_v40, 4 }
  0xb2   : > { %v692_v51 = vshrl.u32 %v630_v45, 16  ;;  %v689_v52 = vpack.i.b16 %v630_v45, %v622_v39  ;;  %v328_v54 = vrot.slane %v278_v47, 4  ;;  %v798_v56 = vpack.i.b16 %v797_v44, %v796_v48  ;;  %v290_v38 = vpop.permute.xlu2 %289 }
  0xb3   : > { %v503_v0 = vshrl.u32 %v445_v40, 16  ;;  %v502_v3 = vpack.i.b16 %v453_v57, %v445_v40  ;;  %v504_v4 = vshrl.u32 %v453_v57, 16  ;;  %v336_v6 = vrot.slane %v281_v49, 4 }
  0xb4   : > { %v693_v60 = vpack.i.b16 %v692_v51, %v691_v41  ;;  %v743_v62 = vrot.slane %v689_v52, 4  ;;  %v329_v63 = vsel %vm296_vm0, %v328_v54, %v272_v21  ;;  %v1248_v61 = vsel %vm1110_vm1, %v798_v56, 0 }
  0xb5   : > { %v2760_v2 = vperm.slane %v329_v63, %v2651_v12  ;;  %1257 = vmatpush.bf16.xpose.msrb.mxu3 %v1248_v61  ;;  %v454_v8 = vrot.slane %v453_v57, 4  ;;  %2412 = vmatmul.msk.bf16.vlgmr.msrb.gmra.mxu0 %vm1110_vm1, %v502_v3  ;;  %v505_v10 = vpack.i.b16 %v504_v4, %v503_v0  ;;  %v447_v11 = vsel %vm296_vm0, 0, %v446_v59 }
  0xb6   : > { %v751_v5 = vrot.slane %v693_v60, 4  ;;  %v639_v14 = vrot.slane %v2756_v1, 4  ;;  %v744_v15 = vsel %vm296_vm0, %v743_v62, %v681_v46  ;;  %v509_v25 = vshrl.u32 %v447_v11, 16  ;;  %837 = vrot.lane.b32.xlu0 %v2732_v30, %s2546_s30  ;;  %855 = vrot.lane.b32.xlu1 %v2732_v30, %s2548_s6 }
  0xb7   : > { %v334_v9 = vrot.slane %v2760_v2, 4  ;;  %v455_v13 = vsel %vm296_vm0, 0, %v454_v8  ;;  %2413 = vmatmul.msk.bf16.vlgmr.msrb.gmra.mxu1 %vm1110_vm1, %v505_v10  ;;  %v748_v22 = vperm.slane %v744_v15, %v2651_v12  ;;  %v396_v23 = vshrl.u32 %v2760_v2, 16  ;;  %846 = vrot.lane.b32.xlu2 %v2732_v30, %s2549_s7 }
  0xb8   : > { %v752_v16 = vsel %vm296_vm0, %v751_v5, %v685_v55  ;;  %v508_v18 = vpack.i.b16 %v455_v13, %v447_v11  ;;  %v510_v20 = vshrl.u32 %v455_v13, 16 }
  0xb9   : > { %v335_v17 = vsel %vm296_vm0, 0, %v334_v9  ;;  %v275_v19 = vpop.permute.xlu0 %274  ;;  %v578_v21 = vpop.permute.xlu1 %577  ;;  %v756_v26 = vperm.slane %v752_v16, %v2651_v12  ;;  %v802_v29 = vshrl.u32 %v748_v22, 16  ;;  %v749_v31 = vrot.slane %v748_v22, 4 }
  0xba   : > { %v337_v24 = vsel %vm296_vm0, %v336_v6, %v275_v19  ;;  %v404_v27 = vshrl.u32 %v335_v17, 16  ;;  %2414 = vmatmul.msk.bf16.vlgmr.msrb.gmra.mxu2 %vm1110_vm1, %v508_v18  ;;  %v511_v58 = vpack.i.b16 %v510_v20, %v509_v25  ;;  %v631_v36 = vrot.slane %v578_v21, 4  ;;  %v287_v19 = vpop.permute.xlu2 %286 }
  0xbb   : > { %v341_v28 = vperm.slane %v337_v24, %v2651_v12  ;;  %v801_v7 = vpack.i.b16 %v756_v26, %v748_v22  ;;  %v803_v32 = vshrl.u32 %v756_v26, 16  ;;  %v757_v33 = vrot.slane %v756_v26, 4 }
  0xbc   : > { %v750_v37 = vsel %vm296_vm0, 0, %v749_v31  ;;  %2415 = vmatmul.msk.bf16.vlgmr.msrb.gmra.mxu3 %vm1110_vm1, %v511_v58  ;;  %v344_v6 = vrot.slane %v290_v38, 4 }
  0xbd   : > { %v342_v34 = vrot.slane %v341_v28, 4  ;;  %v397_v35 = vshrl.u32 %v341_v28, 16  ;;  %v1267_v39 = vsel %vm1110_vm1, %v801_v7, 0  ;;  %v804_v40 = vpack.i.b16 %v803_v32, %v802_v29 }
  0xbe   : > { %v758_v41 = vsel %vm296_vm0, 0, %v757_v33  ;;  %v808_v42 = vshrl.u32 %v750_v37, 16  ;;  %1276 = vmatpush.bf16.xpose.msra.mxu0 %v1267_v39  ;;  %v394_v46 = vpack.i.b16 %v341_v28, %v2760_v2  ;;  %852 = vrot.lane.b32.xlu0 %v2732_v30, %s2547_s5 }
  0xbf   : > { %v343_v43 = vsel %vm296_vm0, 0, %v342_v34  ;;  %v807_v44 = vpack.i.b16 %v758_v41, %v750_v37  ;;  %v809_v45 = vshrl.u32 %v758_v41, 16  ;;  %v1286_v49 = vsel %vm1110_vm1, %v804_v40, 0  ;;  %849 = vrot.lane.b32.xlu1 %v2732_v30, %s2550_s8 }
  0xc0   : > { %v402_v47 = vpack.i.b16 %v343_v43, %v335_v17  ;;  %v405_v48 = vshrl.u32 %v343_v43, 16  ;;  %v398_v50 = vpack.i.b16 %v397_v35, %v396_v23  ;;  %1295 = vmatpush.bf16.xpose.msra.mxu1 %v1286_v49 }
  0xc1   : > { %v572_v51 = vpop.permute.xlu0 %571  ;;  %v575_v52 = vpop.permute.xlu1 %574  ;;  %v1305_v53 = vsel %vm1110_vm1, %v807_v44, 0  ;;  %v810_v54 = vpack.i.b16 %v809_v45, %v808_v42 }
  0xc2   : > { %v406_v55 = vpack.i.b16 %v405_v48, %v404_v27  ;;  %v456_v56 = vrot.slane %v402_v47, 4  ;;  %v632_v57 = vsel %vm296_vm0, %v631_v36, %v572_v51  ;;  %v640_v59 = vsel %vm296_vm0, %v639_v14, %v575_v52  ;;  %1314 = vmatpush.bf16.xpose.msra.mxu2 %v1305_v53 }
  0xc3   : > { %v636_v60 = vperm.slane %v632_v57, %v2651_v12  ;;  %v644_v62 = vperm.slane %v640_v59, %v2651_v12  ;;  %v1324_v63 = vsel %vm1110_vm1, %v810_v54, 0 }
  0xc4   : > { %v457_v0 = vsel %vm296_vm0, %v456_v56, %v394_v46  ;;  %v464_v1 = vrot.slane %v406_v55, 4  ;;  %1333 = vmatpush.bf16.xpose.msra.mxu3 %v1324_v63 }
  0xc5   : > { %v461_v61 = vperm.slane %v457_v0, %v2651_v12  ;;  %v637_v2 = vrot.slane %v636_v60, 4  ;;  %v699_v3 = vshrl.u32 %v636_v60, 16  ;;  %v645_v4 = vrot.slane %v644_v62, 4 }
  0xc6   : > { %v465_v5 = vsel %vm296_vm0, %v464_v1, %v398_v50  ;;  %v697_v8 = vpack.i.b16 %v644_v62, %v636_v60  ;;  %v700_v9 = vshrl.u32 %v644_v62, 16 }
  0xc7   : > { %v469_v10 = vperm.slane %v465_v5, %v2651_v12  ;;  %v638_v11 = vsel %vm296_vm0, 0, %v637_v2  ;;  %v646_v13 = vsel %vm296_vm0, 0, %v645_v4  ;;  %v515_v14 = vshrl.u32 %v461_v61, 16 }
  0xc8   : > { %v707_v15 = vshrl.u32 %v638_v11, 16  ;;  %v701_v16 = vpack.i.b16 %v700_v9, %v699_v3  ;;  %v705_v17 = vpack.i.b16 %v646_v13, %v638_v11  ;;  %v708_v18 = vshrl.u32 %v646_v13, 16 }
  0xc9   : > { %v293_v20 = vpop.permute.xlu0 %292  ;;  %v514_v21 = vpack.i.b16 %v469_v10, %v461_v61  ;;  %v284_v22 = vpop.permute.xlu1 %283  ;;  %v516_v23 = vshrl.u32 %v469_v10, 16  ;;  %v462_v24 = vrot.slane %v461_v61, 4  ;;  %v470_v25 = vrot.slane %v469_v10, 4 }
  0xca   : > { %v709_v26 = vpack.i.b16 %v708_v18, %v707_v15  ;;  %v759_v27 = vrot.slane %v705_v17, 4  ;;  %v352_v28 = vrot.slane %v293_v20, 4  ;;  %v345_v29 = vsel %vm296_vm0, %v344_v6, %v284_v22 }
  0xcb   : > { %2416 = vmatmul.msk.bf16.vlgmr.msra.gmra.mxu0 %vm1110_vm1, %v514_v21  ;;  %v349_v31 = vperm.slane %v345_v29, %v2651_v12  ;;  %v517_v58 = vpack.i.b16 %v516_v23, %v515_v14  ;;  %v463_v7 = vsel %vm296_vm0, 0, %v462_v24  ;;  %v471_v32 = vsel %vm296_vm0, 0, %v470_v25  ;;  %v1415_v29 = vld [vmem:[%s2848_s22] sm:$0x3] }
  0xcc   : > { %v767_v33 = vrot.slane %v709_v26, 4  ;;  %v353_v34 = vsel %vm296_vm0, %v352_v28, %v287_v19  ;;  %v520_v35 = vpack.i.b16 %v471_v32, %v463_v7  ;;  %v521_v36 = vshrl.u32 %v463_v7, 16 }
  0xcd   : > { %v357_v37 = vperm.slane %v353_v34, %v2651_v12  ;;  %v350_v38 = vrot.slane %v349_v31, 4  ;;  %2417 = vmatmul.msk.bf16.vlgmr.msra.gmra.mxu1 %vm1110_vm1, %v517_v58  ;;  %v522_v39 = vshrl.u32 %v471_v32, 16  ;;  %v760_v40 = vsel %vm296_vm0, %v759_v27, %v697_v8 }
  0xce   : > { %2418 = vmatmul.msk.bf16.vlgmr.msra.gmra.mxu2 %vm1110_vm1, %v520_v35  ;;  %v768_v41 = vsel %vm296_vm0, %v767_v33, %v701_v16  ;;  %v412_v45 = vshrl.u32 %v349_v31, 16  ;;  %v764_v48 = vperm.slane %v760_v40, %v2651_v12  ;;  %v1416_v35 = vld [vmem:[%s2848_s22 + $0x2] sm:$0x3] }
  0xcf   : > { %v358_v42 = vrot.slane %v357_v37, 4  ;;  %v413_v43 = vshrl.u32 %v357_v37, 16  ;;  %v351_v44 = vsel %vm296_vm0, 0, %v350_v38  ;;  %v523_v47 = vpack.i.b16 %v522_v39, %v521_v36 }
  0xd0   : > { %v420_v46 = vshrl.u32 %v351_v44, 16  ;;  %v772_v49 = vperm.slane %v768_v41, %v2651_v12  ;;  %v410_v51 = vpack.i.b16 %v357_v37, %v349_v31  ;;  %v814_v55 = vshrl.u32 %v764_v48, 16 }
  0xd1   : > { %v359_v50 = vsel %vm296_vm0, 0, %v358_v42  ;;  %2419 = vmatmul.msk.bf16.vlgmr.msra.gmra.mxu3 %vm1110_vm1, %v523_v47  ;;  %v765_v57 = vrot.slane %v764_v48, 4  ;;  %v414_v60 = vpack.i.b16 %v413_v43, %v412_v45  ;;  %v2851_v31 = vunpack.c.l.bf16 %v1415_v29 }
  0xd2   : > { %v421_v52 = vshrl.u32 %v359_v50, 16  ;;  %v418_v53 = vpack.i.b16 %v359_v50, %v351_v44  ;;  %v813_v54 = vpack.i.b16 %v772_v49, %v764_v48  ;;  %v815_v56 = vshrl.u32 %v772_v49, 16 }
  0xd3   : > { %v773_v59 = vrot.slane %v772_v49, 4  ;;  %v766_v61 = vsel %vm296_vm0, 0, %v765_v57  ;;  %v2862_v43 = vunpack.c.l.bf16 %v1416_v35 }
  0xd4   : > { %v422_v62 = vpack.i.b16 %v421_v52, %v420_v46  ;;  %v472_v63 = vrot.slane %v418_v53, 4  ;;  %v1343_v0 = vsel %vm1110_vm1, %v813_v54, 0  ;;  %v816_v1 = vpack.i.b16 %v815_v56, %v814_v55  ;;  %v1417_v46 = vld [vmem:[%s2848_s22 + $0x4] sm:$0x3] }
  0xd5   : > { %1352 = vmatpush.bf16.xpose.msrb.mxu0 %v1343_v0  ;;  %v774_v2 = vsel %vm296_vm0, 0, %v773_v59  ;;  %v820_v6 = vshrl.u32 %v766_v61, 16  ;;  %v2872_v53 = vunpack.c.l.bf16 %v1417_v46 }
  0xd6   : > { %v473_v3 = vsel %vm296_vm0, %v472_v63, %v410_v51  ;;  %v480_v4 = vrot.slane %v422_v62, 4  ;;  %v819_v5 = vpack.i.b16 %v774_v2, %v766_v61  ;;  %v1362_v9 = vsel %vm1110_vm1, %v816_v1, 0 }
  0xd7   : > { %v477_v8 = vperm.slane %v473_v3, %v2651_v12  ;;  %v821_v10 = vshrl.u32 %v774_v2, 16  ;;  %1371 = vmatpush.bf16.xpose.msrb.mxu1 %v1362_v9 }
  0xd8   : > { %v481_v11 = vsel %vm296_vm0, %v480_v4, %v414_v60  ;;  %v1381_v13 = vsel %vm1110_vm1, %v819_v5, 0  ;;  %v1418_v60 = vld [vmem:[%s2848_s22 + $0x6] sm:$0x3] }
  0xd9   : > { %v485_v14 = vperm.slane %v481_v11, %v2651_v12  ;;  %1390 = vmatpush.bf16.xpose.msrb.mxu2 %v1381_v13  ;;  %v822_v15 = vpack.i.b16 %v821_v10, %v820_v6  ;;  %v527_v16 = vshrl.u32 %v477_v8, 16  ;;  %v478_v17 = vrot.slane %v477_v8, 4 }
  0xda   : > { %v2884_v6 = vunpack.c.l.bf16 %v1418_v60 }
  0xdb   : > { %v1400_v18 = vsel %vm1110_vm1, %v822_v15, 0  ;;  %v526_v19 = vpack.i.b16 %v485_v14, %v477_v8  ;;  %v528_v20 = vshrl.u32 %v485_v14, 16  ;;  %v479_v21 = vsel %vm296_vm0, 0, %v478_v17 }
  0xdc   : > { %1409 = vmatpush.bf16.xpose.msrb.mxu3 %v1400_v18  ;;  %v486_v22 = vrot.slane %v485_v14, 4  ;;  %v533_v24 = vshrl.u32 %v479_v21, 16 }
  0xdd   : > { %2420 = vmatmul.msk.bf16.vlgmr.msrb.gmra.mxu0 %vm1110_vm1, %v526_v19  ;;  %v529_v23 = vpack.i.b16 %v528_v20, %v527_v16 }
  0xde   : > { %v487_v25 = vsel %vm296_vm0, 0, %v486_v22 }
  0xdf   : > { %2421 = vmatmul.msk.bf16.vlgmr.msrb.gmra.mxu1 %vm1110_vm1, %v529_v23  ;;  %v532_v26 = vpack.i.b16 %v487_v25, %v479_v21  ;;  %v534_v27 = vshrl.u32 %v487_v25, 16 }
  0xe1   : > { %2422 = vmatmul.msk.bf16.vlgmr.msrb.gmra.mxu2 %vm1110_vm1, %v532_v26  ;;  %v535_v28 = vpack.i.b16 %v534_v27, %v533_v24 }
  0xe3   : > { %2423 = vmatmul.msk.bf16.vlgmr.msrb.gmra.mxu3 %vm1110_vm1, %v535_v28 }
 0x100   : > { %v826_v37 = vpop.permute.xlu2 %825 }
 0x108   : > { %v835_v59 = vpop.permute.xlu2 %834 }
 0x117   : > { %v829_v58 = vpop.permute.xlu0 %828 }
 0x118   : > { %v832_v7 = vpop.permute.xlu1 %831  ;;  %v870_v32 = vrot.slane %v829_v58, 4 }
 0x119   : > { %v878_v33 = vrot.slane %v832_v7, 4 }
 0x11a   : > { %v871_v36 = vsel %vm296_vm0, %v870_v32, %v2732_v30 }
 0x11b   : > { %v875_v39 = vperm.slane %v871_v36, %v2651_v12  ;;  %v879_v40 = vsel %vm296_vm0, %v878_v33, %v826_v37 }
 0x11c   : > { %v883_v41 = vperm.slane %v879_v40, %v2651_v12 }
 0x11d   : > { %v876_v45 = vrot.slane %v875_v39, 4  ;;  %v938_v4 = vshrl.u32 %v875_v39, 16 }
 0x11e   : > { %v884_v47 = vrot.slane %v883_v41, 4  ;;  %v939_v5 = vshrl.u32 %v883_v41, 16  ;;  %v936_v16 = vpack.i.b16 %v883_v41, %v875_v39 }
 0x11f   : > { %v844_v48 = vpop.permute.xlu0 %843  ;;  %v877_v49 = vsel %vm296_vm0, 0, %v876_v45 }
 0x120   : > { %v885_v50 = vsel %vm296_vm0, 0, %v884_v47  ;;  %v841_v51 = vpop.permute.xlu1 %840  ;;  %v946_v56 = vshrl.u32 %v877_v49, 16  ;;  %v894_v0 = vrot.slane %v844_v48, 4  ;;  %v940_v17 = vpack.i.b16 %v939_v5, %v938_v4 }
 0x121   : > { %v886_v54 = vrot.slane %v841_v51, 4  ;;  %v947_v57 = vshrl.u32 %v885_v50, 16  ;;  %v944_v8 = vpack.i.b16 %v885_v50, %v877_v49 }
 0x122   : > { %v1126_v34 = vpop.f32.mrf.mxu0 }
 0x123   : > { %v2857_v38 = vadd.f32 %v2851_v31, %v1126_v34  ;;  %v887_v62 = vsel %vm296_vm0, %v886_v54, %v835_v59  ;;  %v948_v9 = vpack.i.b16 %v947_v57, %v946_v56  ;;  %v998_v20 = vrot.slane %v944_v8, 4 }
 0x124   : > { %v1145_v42 = vpop.f32.mrf.mxu1  ;;  %v2877_v1 = vperm.slane %v887_v62, %v2651_v12 }
 0x125   : > { %v1440_v44 = vsel %vm1439_vm2, %v2857_v38, -inf  ;;  %v2870_v52 = vadd.f32 %v2862_v43, %v1145_v42  ;;  %v1006_v21 = vrot.slane %v948_v9, 4  ;;  %v999_v32 = vsel %vm296_vm0, %v998_v20, %v936_v16 }
 0x126   : > { %1441 = vmax.xlane.f32.xlu2 %v1440_v44  ;;  %v892_v10 = vrot.slane %v2877_v1, 4  ;;  %v1003_v36 = vperm.slane %v999_v32, %v2651_v12  ;;  %v954_v40 = vshrl.u32 %v2877_v1, 16 }
 0x127   : > { %v1443_v3 = vsel %vm1439_vm2, %v2870_v52, -inf  ;;  %v1007_v33 = vsel %vm296_vm0, %v1006_v21, %v940_v17 }
 0x128   : > { %v838_v13 = vpop.permute.xlu0 %837  ;;  %v893_v22 = vsel %vm296_vm0, 0, %v892_v10  ;;  %v1011_v37 = vperm.slane %v1007_v33, %v2651_v12  ;;  %v1065_v47 = vshrl.u32 %v1003_v36, 16  ;;  %v1004_v54 = vrot.slane %v1003_v36, 4 }
 0x129   : > { %v895_v14 = vsel %vm296_vm0, %v894_v0, %v838_v13  ;;  %v962_v29 = vshrl.u32 %v893_v22, 16 }
 0x12a   : > { %v1128_v55 = vpop.f32.mrf.mxu0  ;;  %v899_v18 = vperm.slane %v895_v14, %v2651_v12  ;;  %v1064_v46 = vpack.i.b16 %v1011_v37, %v1003_v36  ;;  %v1066_v48 = vshrl.u32 %v1011_v37, 16 }
 0x12b   : > { %v1164_v63 = vpop.f32.mrf.mxu2  ;;  %v1012_v55 = vrot.slane %v1011_v37, 4 }
 0x12c   : > { %v2880_v61 = vadd.f32 %v2872_v53, %v1164_v63  ;;  %v1147_v2 = vpop.f32.mrf.mxu1  ;;  %v900_v23 = vrot.slane %v899_v18, 4  ;;  %v955_v39 = vshrl.u32 %v899_v18, 16  ;;  %v1638_v49 = vsel %vm1636_vm3, %v1064_v46, 0 }
 0x12d   : > { %1647 = vmatpush.bf16.msra.mxu0 %v1638_v49  ;;  %v1067_v51 = vpack.i.b16 %v1066_v48, %v1065_v47  ;;  %v952_v56 = vpack.i.b16 %v899_v18, %v2877_v1  ;;  %v1005_v2 = vsel %vm296_vm0, 0, %v1004_v54 }
 0x12e   : > { %1444 = vmax.xlane.f32.xlu2 %v1443_v3  ;;  %v1446_v11 = vsel %vm1439_vm2, %v2880_v61, -inf  ;;  %v1183_v15 = vpop.f32.mrf.mxu3  ;;  %v901_v28 = vsel %vm296_vm0, 0, %v900_v23  ;;  %v956_v57 = vpack.i.b16 %v955_v39, %v954_v40  ;;  %v1013_v3 = vsel %vm296_vm0, 0, %v1012_v55 }
 0x12f   : > { %1447 = vmax.xlane.f32.xlu0 %v1446_v11  ;;  %v2892_v19 = vadd.f32 %v2884_v6, %v1183_v15  ;;  %v963_v7 = vshrl.u32 %v901_v28, 16  ;;  %v960_v41 = vpack.i.b16 %v901_v28, %v893_v22  ;;  %v1657_v0 = vsel %vm1636_vm3, %v1067_v51, 0 }
 0x130   : > { %1666 = vmatpush.bf16.msra.mxu1 %v1657_v0  ;;  %v1070_v5 = vpack.i.b16 %v1013_v3, %v1005_v2  ;;  %v1071_v8 = vshrl.u32 %v1005_v2, 16  ;;  %v1072_v9 = vshrl.u32 %v1013_v3, 16 }
 0x131   : > { %v1449_v24 = vsel %vm1439_vm2, %v2892_v19, -inf  ;;  %v964_v45 = vpack.i.b16 %v963_v7, %v962_v29  ;;  %v1014_v59 = vrot.slane %v960_v41, 4 }
 0x132   : > { %v1202_v25 = vpop.f32.mrf.mxu0  ;;  %1450 = vmax.xlane.f32.xlu1 %v1449_v24  ;;  %v1676_v11 = vsel %vm1636_vm3, %v1070_v5, 0  ;;  %v1073_v16 = vpack.i.b16 %v1072_v9, %v1071_v8 }
 0x133   : > { %v1166_v26 = vpop.f32.mrf.mxu2  ;;  %v2898_v27 = vadd.f32 %v2851_v31, %v1202_v25  ;;  %v1022_v60 = vrot.slane %v964_v45, 4  ;;  %v1015_v13 = vsel %vm296_vm0, %v1014_v59, %v952_v56  ;;  %1685 = vmatpush.bf16.msra.mxu2 %v1676_v11 }
 0x134   : > { %v1221_v58 = vpop.f32.mrf.mxu1  ;;  %v1019_v17 = vperm.slane %v1015_v13, %v2651_v12  ;;  %v1695_v21 = vsel %vm1636_vm3, %v1073_v16, 0 }
 0x135   : > { %v2904_v34 = vadd.f32 %v2862_v43, %v1221_v58  ;;  %v1452_v35 = vsel %vm1439_vm2, %v2898_v27, -inf  ;;  %v1023_v14 = vsel %vm296_vm0, %v1022_v60, %v956_v57  ;;  %1704 = vmatpush.bf16.msra.mxu3 %v1695_v21 }
 0x136   : > { %1453 = vmax.xlane.f32.xlu2 %v1452_v35  ;;  %v1185_v42 = vpop.f32.mrf.mxu3  ;;  %v1027_v18 = vperm.slane %v1023_v14, %v2651_v12  ;;  %v1077_v23 = vshrl.u32 %v1019_v17, 16  ;;  %v1020_v25 = vrot.slane %v1019_v17, 4 }
 0x137   : > { %v1455_v44 = vsel %vm1439_vm2, %v2904_v34, -inf }
 0x138   : > { %1456 = vmax.xlane.f32.xlu0 %v1455_v44  ;;  %v1076_v22 = vpack.i.b16 %v1027_v18, %v1019_v17  ;;  %v1078_v24 = vshrl.u32 %v1027_v18, 16  ;;  %v1028_v28 = vrot.slane %v1027_v18, 4  ;;  %v1021_v7 = vsel %vm296_vm0, 0, %v1020_v25 }
 0x139   : > { %v1083_v35 = vshrl.u32 %v1021_v7, 16 }
 0x13a   : > { %v1204_v50 = vpop.f32.mrf.mxu0  ;;  %v1714_v29 = vsel %vm1636_vm3, %v1076_v22, 0  ;;  %v1079_v58 = vpack.i.b16 %v1078_v24, %v1077_v23  ;;  %v1029_v33 = vsel %vm296_vm0, 0, %v1028_v28  ;;  %v2989_v22 = vpop.permute.xlu0 %852 }
 0x13b   : > { %1723 = vmatpush.bf16.msrb.mxu0 %v1714_v29  ;;  %v1082_v40 = vpack.i.b16 %v1029_v33, %v1021_v7  ;;  %v1084_v41 = vshrl.u32 %v1029_v33, 16 }
 0x13c   : > { %v1223_v63 = vpop.f32.mrf.mxu1  ;;  %v1733_v39 = vsel %vm1636_vm3, %v1079_v58, 0 }
 0x13d   : > { %v1240_v62 = vpop.f32.mrf.mxu2  ;;  %1742 = vmatpush.bf16.msrb.mxu1 %v1733_v39  ;;  %v1752_v46 = vsel %vm1636_vm3, %v1082_v40, 0  ;;  %v1085_v47 = vpack.i.b16 %v1084_v41, %v1083_v35 }
 0x13e   : > { %v2919_v4 = vadd.f32 %v2872_v53, %v1240_v62  ;;  %1761 = vmatpush.bf16.msrb.mxu2 %v1752_v46 }
 0x13f   : > { %v1259_v10 = vpop.f32.mrf.mxu3  ;;  %v1771_v49 = vsel %vm1636_vm3, %v1085_v47, 0 }
 0x140   : > { %v1458_v1 = vsel %vm1439_vm2, %v2919_v4, -inf  ;;  %v2927_v15 = vadd.f32 %v2884_v6, %v1259_v10  ;;  %1780 = vmatpush.bf16.msrb.mxu3 %v1771_v49 }
 0x141   : > { %1459 = vmax.xlane.f32.xlu0 %v1458_v1 }
 0x142   : > { %v1461_v20 = vsel %vm1439_vm2, %v2927_v15, -inf }
 0x143   : > { %1462 = vmax.xlane.f32.xlu1 %v1461_v20 }
 0x145   : > { %v1242_v26 = vpop.f32.mrf.mxu2 }
 0x147   : > { %v1261_v36 = vpop.f32.mrf.mxu3 }
 0x148   : > { %v1278_v32 = vpop.f32.mrf.mxu0 }
 0x149   : > { %v2938_v37 = vadd.f32 %v2851_v31, %v1278_v32 }
 0x14a   : > { %v1297_v42 = vpop.f32.mrf.mxu1 }
 0x14b   : > { %v2942_v44 = vadd.f32 %v2862_v43, %v1297_v42  ;;  %v1464_v45 = vsel %vm1439_vm2, %v2938_v37, -inf }
 0x14c   : > { %1465 = vmax.xlane.f32.xlu0 %v1464_v45 }
 0x14d   : > { %v1467_v48 = vsel %vm1439_vm2, %v2942_v44, -inf }
 0x14e   : > { %1468 = vmax.xlane.f32.xlu1 %v1467_v48 }
 0x150   : > { %v1280_v50 = vpop.f32.mrf.mxu0 }
 0x151   : > { %v1316_v51 = vpop.f32.mrf.mxu2 }
 0x152   : > { %v2951_v54 = vadd.f32 %v2872_v53, %v1316_v51  ;;  %v1299_v55 = vpop.f32.mrf.mxu1 }
 0x154   : > { %v1470_v56 = vsel %vm1439_vm2, %v2951_v54, -inf  ;;  %v1335_v57 = vpop.f32.mrf.mxu3 }
 0x155   : > { %v2956_v59 = vadd.f32 %v2884_v6, %v1335_v57 }
 0x156   : > { %1471 = vmax.xlane.f32.xlu1 %v1470_v56 }
 0x157   : > { %v1473_v60 = vsel %vm1439_vm2, %v2956_v59, -inf }
 0x158   : > { %1474 = vmax.xlane.f32.xlu2 %v1473_v60 }
 0x159   : > { %v1318_v62 = vpop.f32.mrf.mxu2 }
 0x15a   : > { %v1354_v63 = vpop.f32.mrf.mxu0 }
 0x15b   : > { %v2961_v0 = vadd.f32 %v2851_v31, %v1354_v63 }
 0x15c   : > { %v1373_v2 = vpop.f32.mrf.mxu1  ;;  %v1337_v5 = vpop.f32.mrf.mxu3 }
 0x15d   : > { %v2964_v3 = vadd.f32 %v2862_v43, %v1373_v2  ;;  %v1476_v8 = vsel %vm1439_vm2, %v2961_v0, -inf }
 0x15e   : > { %1477 = vmax.xlane.f32.xlu1 %v1476_v8 }
 0x15f   : > { %v1479_v9 = vsel %vm1439_vm2, %v2964_v3, -inf }
 0x160   : > { %1480 = vmax.xlane.f32.xlu0 %v1479_v9 }
 0x162   : > { %v1356_v10 = vpop.f32.mrf.mxu0 }
 0x164   : > { %v1392_v1 = vpop.f32.mrf.mxu2  ;;  %v1375_v11 = vpop.f32.mrf.mxu1 }
 0x165   : > { %v2971_v13 = vadd.f32 %v2872_v53, %v1392_v1  ;;  %v2984_v53 = vpop.permute.xlu2 %846 }
 0x166   : > { %v1411_v31 = vpop.f32.mrf.mxu3 }
 0x167   : > { %v2974_v14 = vadd.f32 %v2884_v6, %v1411_v31  ;;  %v1482_v43 = vsel %vm1439_vm2, %v2971_v13, -inf  ;;  %v2986_v6 = vpop.permute.xlu1 %855 }
 0x168   : > { %1483 = vmax.xlane.f32.xlu2 %v1482_v43 }
 0x169   : > { %v1485_v16 = vsel %vm1439_vm2, %v2974_v14, -inf }
 0x16a   : > { %1486 = vmax.xlane.f32.xlu0 %v1485_v16 }
 0x16c   : > { %v1394_v17 = vpop.f32.mrf.mxu2 }
 0x16e   : > { %v1413_v18 = vpop.f32.mrf.mxu3 }
 0x16f   : > { %v2991_v24 = vpop.permute.xlu1 %849 }
 0x177   : > { %867 = vrot.lane.b32.xlu1 %v2732_v30, %s2552_s10 }
 0x17e   : > { %864 = vrot.lane.b32.xlu0 %v2732_v30, %s2551_s9 }
 0x199   : > { %v1442_v20 = vpop.xlane.xlu2 %1441 }
 0x19a   : > { %v1488_v21 = vsub.f32 %v2857_v38, %v1442_v20 }
 0x19c   : > { %v1504_v23 = vmul.f32 1.442695, %v1488_v21 }
 0x19e   : > { %2468 = vpow2.f32 %v1504_v23 }
 0x1a1   : > { %v1445_v25 = vpop.xlane.xlu2 %1444 }
 0x1a2   : > { %v1489_v26 = vsub.f32 %v2870_v52, %v1445_v25  ;;  %v1448_v28 = vpop.xlane.xlu0 %1447 }
 0x1a3   : > { %v1490_v7 = vsub.f32 %v2880_v61, %v1448_v28 }
 0x1a4   : > { %v2994_v29 = vpop.eup %2468  ;;  %v1506_v58 = vmul.f32 1.442695, %v1489_v26 }
 0x1a5   : > { %v1536_v32 = vsel %vm1439_vm2, %v2994_v29, 0.0  ;;  %v1508_v38 = vmul.f32 1.442695, %v1490_v7  ;;  %v1451_v33 = vpop.xlane.xlu1 %1450 }
 0x1a6   : > { %2470 = vpow2.f32 %v1506_v58  ;;  %1537 = vadd.xlane.f32.xlu2 %v1536_v32  ;;  %v1491_v35 = vsub.f32 %v2892_v19, %v1451_v33 }
 0x1a7   : > { %2472 = vpow2.f32 %v1508_v38 }
 0x1a8   : > { %v1510_v36 = vmul.f32 1.442695, %v1491_v35 }
 0x1a9   : > { %v1454_v39 = vpop.xlane.xlu2 %1453 }
 0x1aa   : > { %v1492_v52 = vsub.f32 %v2898_v27, %v1454_v39  ;;  %2474 = vpow2.f32 %v1510_v36 }
 0x1ab   : > { %v1457_v41 = vpop.xlane.xlu0 %1456 }
 0x1ac   : > { %v3000_v40 = vpop.eup %2470  ;;  %v1512_v45 = vmul.f32 1.442695, %v1492_v52  ;;  %v1493_v46 = vsub.f32 %v2904_v34, %v1457_v41 }
 0x1ad   : > { %v1539_v61 = vsel %vm1439_vm2, %v3000_v40, 0.0  ;;  %v3005_v42 = vpop.eup %2472 }
 0x1ae   : > { %1540 = vadd.xlane.f32.xlu1 %v1539_v61  ;;  %v1542_v19 = vsel %vm1439_vm2, %v3005_v42, 0.0  ;;  %2476 = vpow2.f32 %v1512_v45  ;;  %v1514_v47 = vmul.f32 1.442695, %v1493_v46  ;;  %v910_v45 = vrot.slane %v2986_v6, 4 }
 0x1af   : > { %1543 = vadd.xlane.f32.xlu2 %v1542_v19  ;;  %v902_v46 = vrot.slane %v2989_v22, 4 }
 0x1b0   : > { %v3010_v48 = vpop.eup %2474  ;;  %2478 = vpow2.f32 %v1514_v47 }
 0x1b1   : > { %v1545_v34 = vsel %vm1439_vm2, %v3010_v48, 0.0  ;;  %v903_v47 = vsel %vm296_vm0, %v902_v46, %v2984_v53 }
 0x1b4   : > { %v1460_v27 = vpop.xlane.xlu0 %1459  ;;  %v3012_v49 = vpop.eup %2476 }
 0x1b5   : > { %v1494_v50 = vsub.f32 %v2919_v4, %v1460_v27  ;;  %v1548_v51 = vsel %vm1439_vm2, %v3012_v49, 0.0  ;;  %v907_v27 = vperm.slane %v903_v47, %v2651_v12 }
 0x1b6   : > { %v1463_v55 = vpop.xlane.xlu1 %1462  ;;  %1549 = vadd.xlane.f32.xlu1 %v1548_v51  ;;  %v3020_v62 = vpop.eup %2478 }
 0x1b7   : > { %1546 = vadd.xlane.f32.xlu2 %v1545_v34  ;;  %v1495_v56 = vsub.f32 %v2927_v15, %v1463_v55  ;;  %v1516_v57 = vmul.f32 1.442695, %v1494_v50  ;;  %v1551_v4 = vsel %vm1439_vm2, %v3020_v62, 0.0  ;;  %v908_v55 = vrot.slane %v907_v27, 4 }
 0x1b9   : > { %v1518_v60 = vmul.f32 1.442695, %v1495_v56  ;;  %v909_v22 = vsel %vm296_vm0, 0, %v908_v55 }
 0x1bb   : > { %2480 = vpow2.f32 %v1518_v60 }
 0x1bc   : > { %2482 = vpow2.f32 %v1516_v57 }
 0x1bf   : > { %1552 = vadd.xlane.f32.xlu2 %v1551_v4  ;;  %v1466_v1 = vpop.xlane.xlu0 %1465  ;;  %v970_v4 = vshrl.u32 %v907_v27, 16 }
 0x1c0   : > { %v1496_v33 = vsub.f32 %v2938_v37, %v1466_v1 }
 0x1c1   : > { %v1469_v63 = vpop.xlane.xlu1 %1468  ;;  %v3024_v2 = vpop.eup %2480 }
 0x1c2   : > { %v3026_v5 = vpop.eup %2482  ;;  %v1557_v8 = vsel %vm1439_vm2, %v3024_v2, 0.0  ;;  %v1497_v19 = vsub.f32 %v2942_v44, %v1469_v63 }
 0x1c3   : > { %1558 = vadd.xlane.f32.xlu0 %v1557_v8  ;;  %v1554_v15 = vsel %vm1439_vm2, %v3026_v5, 0.0 }
 0x1c4   : > { %v1522_v51 = vmul.f32 1.442695, %v1497_v19 }
 0x1c7   : > { %1555 = vadd.xlane.f32.xlu2 %v1554_v15 }
 0x1c9   : > { %v1472_v9 = vpop.xlane.xlu1 %1471 }
 0x1ca   : > { %v1498_v10 = vsub.f32 %v2951_v54, %v1472_v9 }
 0x1cb   : > { %v1475_v16 = vpop.xlane.xlu2 %1474 }
 0x1cc   : > { %v1524_v11 = vmul.f32 1.442695, %v1498_v10  ;;  %v1499_v52 = vsub.f32 %v2956_v59, %v1475_v16  ;;  %v911_v59 = vsel %vm296_vm0, %v910_v45, %v2991_v24  ;;  %v978_v24 = vshrl.u32 %v909_v22, 16 }
 0x1cd   : > { %v915_v50 = vperm.slane %v911_v59, %v2651_v12 }
 0x1ce   : > { %2484 = vpow2.f32 %v1524_v11  ;;  %v1526_v61 = vmul.f32 1.442695, %v1499_v52 }
 0x1cf   : > { %861 = vrot.lane.b32.xlu1 %v2732_v30, %s2554_s12  ;;  %v916_v6 = vrot.slane %v915_v50, 4  ;;  %v971_v63 = vshrl.u32 %v915_v50, 16  ;;  %v968_v9 = vpack.i.b16 %v915_v50, %v907_v27 }
 0x1d1   : > { %v1478_v31 = vpop.xlane.xlu1 %1477  ;;  %v917_v53 = vsel %vm296_vm0, 0, %v916_v6  ;;  %v972_v10 = vpack.i.b16 %v971_v63, %v970_v4 }
 0x1d2   : > { %v1500_v43 = vsub.f32 %v2961_v0, %v1478_v31  ;;  %v979_v57 = vshrl.u32 %v917_v53, 16  ;;  %v976_v8 = vpack.i.b16 %v917_v53, %v909_v22 }
 0x1d3   : > { %v1481_v17 = vpop.xlane.xlu0 %1480 }
 0x1d4   : > { %v3036_v18 = vpop.eup %2484  ;;  %v1528_v20 = vmul.f32 1.442695, %v1500_v43  ;;  %v1501_v38 = vsub.f32 %v2964_v3, %v1481_v17  ;;  %v980_v15 = vpack.i.b16 %v979_v57, %v978_v24  ;;  %v1030_v1 = vrot.slane %v976_v8, 4 }
 0x1d5   : > { %v1566_v21 = vsel %vm1439_vm2, %v3036_v18, 0.0 }
 0x1d6   : > { %2486 = vpow2.f32 %v1528_v20  ;;  %1567 = vadd.xlane.f32.xlu0 %v1566_v21  ;;  %v1530_v35 = vmul.f32 1.442695, %v1501_v38  ;;  %v1038_v11 = vrot.slane %v980_v15, 4  ;;  %v1031_v16 = vsel %vm296_vm0, %v1030_v1, %v968_v9 }
 0x1d7   : > { %v1035_v20 = vperm.slane %v1031_v16, %v2651_v12 }
 0x1d8   : > { %v1039_v17 = vsel %vm296_vm0, %v1038_v11, %v972_v10 }
 0x1d9   : > { %v1043_v21 = vperm.slane %v1039_v17, %v2651_v12 }
 0x1db   : > { %v1484_v54 = vpop.xlane.xlu2 %1483  ;;  %v1044_v38 = vrot.slane %v1043_v21, 4 }
 0x1dc   : > { %v3040_v23 = vpop.eup %2486  ;;  %v1502_v25 = vsub.f32 %v2971_v13, %v1484_v54 }
 0x1dd   : > { %v1487_v26 = vpop.xlane.xlu0 %1486  ;;  %v1572_v28 = vsel %vm1439_vm2, %v3040_v23, 0.0 }
 0x1de   : > { %v1532_v0 = vmul.f32 1.442695, %v1502_v25  ;;  %v1503_v58 = vsub.f32 %v2974_v14, %v1487_v26  ;;  %1573 = vadd.xlane.f32.xlu0 %v1572_v28  ;;  %v1520_v14 = vmul.f32 1.442695, %v1496_v33  ;;  %v1088_v28 = vpack.i.b16 %v1043_v21, %v1035_v20 }
 0x1df   : > { %858 = vrot.lane.b32.xlu2 %v2732_v30, %s2553_s11  ;;  %v1089_v33 = vshrl.u32 %v1035_v20, 16 }
 0x1e0   : > { %2488 = vpow2.f32 %v1532_v0  ;;  %v1534_v7 = vmul.f32 1.442695, %v1503_v58 }
 0x1e2   : > { %2490 = vpow2.f32 %v1534_v7  ;;  %v1036_v7 = vrot.slane %v1035_v20, 4 }
 0x1e3   : > { %2492 = vpow2.f32 %v1530_v35  ;;  %v1090_v35 = vshrl.u32 %v1043_v21, 16 }
 0x1e4   : > { %2494 = vpow2.f32 %v1520_v14 }
 0x1e5   : > { %2496 = vpow2.f32 %v1526_v61 }
 0x1e6   : > { %v3048_v32 = vpop.eup %2488  ;;  %2498 = vpow2.f32 %v1522_v51 }
 0x1e7   : > { %v1578_v13 = vsel %vm1439_vm2, %v3048_v32, 0.0 }
 0x1e8   : > { %1579 = vadd.xlane.f32.xlu0 %v1578_v13  ;;  %v3054_v36 = vpop.eup %2490  ;;  %v1790_v13 = vsel %vm1636_vm3, %v1088_v28, 0 }
 0x1e9   : > { %v1581_v30 = vsel %vm1439_vm2, %v3054_v36, 0.0  ;;  %v3058_v39 = vpop.eup %2492  ;;  %v3086_v31 = vpop.permute.xlu1 %867 }
 0x1ea   : > { %v3060_v3 = vpop.eup %2494  ;;  %v1575_v41 = vsel %vm1439_vm2, %v3058_v39, 0.0  ;;  %v926_v11 = vrot.slane %v3086_v31, 4 }
 0x1eb   : > { %v1560_v37 = vsel %vm1439_vm2, %v3060_v3, 0.0  ;;  %v3076_v34 = vpop.eup %2496 }
 0x1ec   : > { %v1569_v44 = vsel %vm1439_vm2, %v3076_v34, 0.0  ;;  %v3082_v56 = vpop.eup %2498 }
 0x1ed   : > { %v1563_v60 = vsel %vm1439_vm2, %v3082_v56, 0.0  ;;  %vm2303_vm2 = vcmask 982016  }
 0x1f0   : > { %1582 = vadd.xlane.f32.xlu0 %v1581_v30  ;;  %v1037_v30 = vsel %vm296_vm0, 0, %v1036_v7  ;;  %v865_v50 = vpop.permute.xlu0 %864 }
 0x1f1   : > { %v1095_v51 = vshrl.u32 %v1037_v30, 16  ;;  %v918_v10 = vrot.slane %v865_v50, 4 }
 0x1f8   : > { %1576 = vadd.xlane.f32.xlu0 %v1575_v41  ;;  %v1091_v41 = vpack.i.b16 %v1090_v35, %v1089_v33 }
 0x1f9   : > { %1561 = vadd.xlane.f32.xlu1 %v1560_v37 }
 0x1fa   : > { %v1809_v27 = vsel %vm1636_vm3, %v1091_v41, 0 }
 0x208   : > { %1570 = vadd.xlane.f32.xlu2 %v1569_v44 }
 0x210   : > { %1564 = vadd.xlane.f32.xlu2 %v1563_v60 }
 0x219   : > { %v1538_v43 = vpop.xlane.xlu2 %1537 }
 0x21a   : > { %2500 = vrcp.f32 %v1538_v43 }
 0x220   : > { %v2501_v54 = vpop.eup %2500 }
 0x221   : > { %v1600_v25 = vmul.f32 %v2501_v54, %v2994_v29  ;;  %v1541_v26 = vpop.xlane.xlu1 %1540  ;;  %v1045_v29 = vsel %vm296_vm0, 0, %v1044_v38 }
 0x222   : > { %2502 = vrcp.f32 %v1541_v26  ;;  %v1544_v58 = vpop.xlane.xlu2 %1543  ;;  %v1094_v47 = vpack.i.b16 %v1045_v29, %v1037_v30  ;;  %v1096_v55 = vshrl.u32 %v1045_v29, 16 }
 0x223   : > { %v1616_v0 = vpack.c.bf16 %v1600_v25, %v1600_v25  ;;  %2504 = vrcp.f32 %v1544_v58 }
 0x224   : > { %v1097_v24 = vpack.i.b16 %v1096_v55, %v1095_v51 }
 0x225   : > { %2424 = vmatmul.msk.bf16.vlgmr.msra.gmra.mxu0 %vm1632_vm4, %v1616_v0 }
 0x226   : > { %1799 = vmatpush.bf16.msra.mxu0 %v1790_v13  ;;  %v1847_v63 = vsel %vm1636_vm3, %v1097_v24, 0 }
 0x228   : > { %v2503_v14 = vpop.eup %2502 }
 0x229   : > { %v1601_v52 = vmul.f32 %v2503_v14, %v3000_v40  ;;  %v2505_v37 = vpop.eup %2504  ;;  %v1550_v46 = vpop.xlane.xlu1 %1549  ;;  %v1828_v40 = vsel %vm1636_vm3, %v1094_v47, 0 }
 0x22a   : > { %v1602_v45 = vmul.f32 %v2505_v37, %v3005_v42  ;;  %v1547_v19 = vpop.xlane.xlu2 %1546  ;;  %2506 = vrcp.f32 %v1550_v46 }
 0x22b   : > { %v1617_v61 = vpack.c.bf16 %v1601_v52, %v1601_v52  ;;  %2508 = vrcp.f32 %v1547_v19 }
 0x22c   : > { %v1618_v59 = vpack.c.bf16 %v1602_v45, %v1602_v45 }
 0x22d   : > { %2425 = vmatmul.msk.bf16.vlgmr.msra.gmra.mxu1 %vm1632_vm4, %v1617_v61 }
 0x22e   : > { %1818 = vmatpush.bf16.msra.mxu1 %v1809_v27  ;;  %2426 = vmatmul.msk.bf16.vlgmr.msra.gmra.mxu2 %vm1632_vm4, %v1618_v59 }
 0x22f   : > { %1837 = vmatpush.bf16.msra.mxu2 %v1828_v40 }
 0x230   : > { %v2507_v42 = vpop.eup %2506 }
 0x231   : > { %v2509_v6 = vpop.eup %2508  ;;  %v1604_v44 = vmul.f32 %v2507_v42, %v3012_v49 }
 0x232   : > { %v1553_v22 = vpop.xlane.xlu2 %1552  ;;  %v1603_v53 = vmul.f32 %v2509_v6, %v3010_v48 }
 0x233   : > { %2510 = vrcp.f32 %v1553_v22  ;;  %v1620_v57 = vpack.c.bf16 %v1604_v44, %v1604_v44 }
 0x234   : > { %v1619_v60 = vpack.c.bf16 %v1603_v53, %v1603_v53 }
 0x235   : > { %2428 = vmatmul.msk.bf16.vlgmr.msrb.gmra.mxu0 %vm1632_vm4, %v1620_v57 }
 0x236   : > { %v1559_v4 = vpop.xlane.xlu0 %1558  ;;  %2427 = vmatmul.msk.bf16.vlgmr.msra.gmra.mxu3 %vm1632_vm4, %v1619_v60 }
 0x237   : > { %2512 = vrcp.f32 %v1559_v4  ;;  %1856 = vmatpush.bf16.msra.mxu3 %v1847_v63 }
 0x239   : > { %v2511_v8 = vpop.eup %2510 }
 0x23a   : > { %v1605_v15 = vmul.f32 %v2511_v8, %v3020_v62  ;;  %v1556_v49 = vpop.xlane.xlu2 %1555 }
 0x23b   : > { %2514 = vrcp.f32 %v1556_v49 }
 0x23c   : > { %v1621_v9 = vpack.c.bf16 %v1605_v15, %v1605_v15 }
 0x23d   : > { %v2513_v48 = vpop.eup %2512 }
 0x23e   : > { %2429 = vmatmul.msk.bf16.vlgmr.msrb.gmra.mxu1 %vm1632_vm4, %v1621_v9  ;;  %v1607_v43 = vmul.f32 %v2513_v48, %v3024_v2 }
 0x240   : > { %v1623_v28 = vpack.c.bf16 %v1607_v43, %v1607_v43 }
 0x241   : > { %v2515_v1 = vpop.eup %2514  ;;  %v862_v17 = vpop.permute.xlu1 %861 }
 0x242   : > { %v1606_v16 = vmul.f32 %v2515_v1, %v3026_v5  ;;  %v859_v20 = vpop.permute.xlu2 %858  ;;  %v927_v21 = vsel %vm296_vm0, %v926_v11, %v862_v17 }
 0x243   : > { %v919_v62 = vsel %vm296_vm0, %v918_v10, %v859_v20  ;;  %v931_v25 = vperm.slane %v927_v21, %v2651_v12 }
 0x244   : > { %v1622_v54 = vpack.c.bf16 %v1606_v16, %v1606_v16  ;;  %v923_v26 = vperm.slane %v919_v62, %v2651_v12 }
 0x245   : > { %v932_v0 = vrot.slane %v931_v25, 4  ;;  %v987_v5 = vshrl.u32 %v931_v25, 16 }
 0x246   : > { %v924_v58 = vrot.slane %v923_v26, 4  ;;  %2430 = vmatmul.msk.bf16.vlgmr.msrb.gmra.mxu2 %vm1632_vm4, %v1622_v54  ;;  %2431 = vmatmul.msk.bf16.vlgmr.msrb.gmra.mxu3 %vm1632_vm4, %v1623_v28  ;;  %v986_v13 = vshrl.u32 %v923_v26, 16  ;;  %v984_v14 = vpack.i.b16 %v931_v25, %v923_v26 }
 0x247   : > { %v933_v2 = vsel %vm296_vm0, 0, %v932_v0 }
 0x248   : > { %v925_v31 = vsel %vm296_vm0, 0, %v924_v58  ;;  %v995_v38 = vshrl.u32 %v933_v2, 16  ;;  %v988_v52 = vpack.i.b16 %v987_v5, %v986_v13 }
 0x249   : > { %v1568_v7 = vpop.xlane.xlu0 %1567  ;;  %v992_v33 = vpack.i.b16 %v933_v2, %v925_v31  ;;  %v994_v35 = vshrl.u32 %v925_v31, 16 }
 0x24a   : > { %2516 = vrcp.f32 %v1568_v7 }
 0x24b   : > { %v996_v30 = vpack.i.b16 %v995_v38, %v994_v35  ;;  %v1046_v29 = vrot.slane %v992_v33, 4 }
 0x24d   : > { %v1054_v41 = vrot.slane %v996_v30, 4  ;;  %v1047_v37 = vsel %vm296_vm0, %v1046_v29, %v984_v14 }
 0x24e   : > { %v1051_v61 = vperm.slane %v1047_v37, %v2651_v12 }
 0x24f   : > { %v1055_v45 = vsel %vm296_vm0, %v1054_v41, %v988_v52 }
 0x250   : > { %v2517_v46 = vpop.eup %2516  ;;  %v1059_v47 = vperm.slane %v1055_v45, %v2651_v12  ;;  %v1052_v59 = vrot.slane %v1051_v61, 4  ;;  %v1101_v50 = vshrl.u32 %v1051_v61, 16 }
 0x251   : > { %v1574_v19 = vpop.xlane.xlu0 %1573  ;;  %v1610_v27 = vmul.f32 %v2517_v46, %v3036_v18  ;;  %v2556_v46 = vmov 1983009808  }
 0x252   : > { %v1100_v40 = vpack.i.b16 %v1059_v47, %v1051_v61  ;;  %v1102_v51 = vshrl.u32 %v1059_v47, 16  ;;  %v1053_v55 = vsel %vm296_vm0, 0, %v1052_v59  ;;  %v1060_v42 = vrot.slane %v1059_v47, 4 }
 0x253   : > { %v1626_v6 = vpack.c.bf16 %v1610_v27, %v1610_v27  ;;  %v1107_v57 = vshrl.u32 %v1053_v55, 16 }
 0x254   : > { %v1866_v44 = vsel %vm1636_vm3, %v1100_v40, 0  ;;  %v1103_v22 = vpack.i.b16 %v1102_v51, %v1101_v50  ;;  %v1061_v53 = vsel %vm296_vm0, 0, %v1060_v42 }
 0x255   : > { %1875 = vmatpush.bf16.msrb.mxu0 %v1866_v44  ;;  %v1106_v24 = vpack.i.b16 %v1061_v53, %v1053_v55  ;;  %v1108_v60 = vshrl.u32 %v1061_v53, 16 }
 0x256   : > { %2434 = vmatmul.msk.bf16.vlgmr.msra.gmra.mxu2 %vm1632_vm4, %v1626_v6  ;;  %v1885_v18 = vsel %vm1636_vm3, %v1103_v22, 0 }
 0x257   : > { %1894 = vmatpush.bf16.msrb.mxu1 %v1885_v18  ;;  %v1904_v4 = vsel %vm1636_vm3, %v1106_v24, 0  ;;  %v1109_v63 = vpack.i.b16 %v1108_v60, %v1107_v57 }
 0x258   : > { %1913 = vmatpush.bf16.msrb.mxu2 %v1904_v4 }
 0x259   : > { %v1923_v8 = vsel %vm1636_vm3, %v1109_v63, 0 }
 0x25a   : > { %1932 = vmatpush.bf16.msrb.mxu3 %v1923_v8 }
 0x25b   : > { %v1580_v15 = vpop.xlane.xlu0 %1579 }
 0x25c   : > { %2518 = vrcp.f32 %v1580_v15 }
 0x262   : > { %v2519_v49 = vpop.eup %2518 }
 0x263   : > { %v1614_v9 = vmul.f32 %v2519_v49, %v3048_v32  ;;  %v1583_v62 = vpop.xlane.xlu0 %1582 }
 0x265   : > { %v1630_v48 = vpack.c.bf16 %v1614_v9, %v1614_v9 }
 0x267   : > { %2438 = vmatmul.msk.bf16.vlgmr.msrb.gmra.mxu2 %vm1632_vm4, %v1630_v48 }
 0x26b   : > { %v1577_v0 = vpop.xlane.xlu0 %1576 }
 0x26c   : > { %v1562_v10 = vpop.xlane.xlu1 %1561 }
 0x26d   : > { %2520 = vrcp.f32 %v1562_v10 }
 0x26e   : > { %2522 = vrcp.f32 %v1574_v19  ;;  %v1957_v19 = vunpack.c.l.s4 %v2556_v46 }
 0x270   : > { %v3147_v44 = vunpack.c.0.s8 %v1957_v19 }
 0x273   : > { %v2521_v1 = vpop.eup %2520 }
 0x274   : > { %v1608_v11 = vmul.f32 %v2521_v1, %v3060_v3  ;;  %v2523_v17 = vpop.eup %2522 }
 0x275   : > { %v1612_v21 = vmul.f32 %v2523_v17, %v3040_v23 }
 0x276   : > { %v1624_v43 = vpack.c.bf16 %v1608_v11, %v1608_v11 }
 0x277   : > { %v1628_v26 = vpack.c.bf16 %v1612_v21, %v1612_v21 }
 0x278   : > { %2432 = vmatmul.msk.bf16.vlgmr.msra.gmra.mxu0 %vm1632_vm4, %v1624_v43 }
 0x27b   : > { %v1571_v16 = vpop.xlane.xlu2 %1570 }
 0x27c   : > { %2524 = vrcp.f32 %v1571_v16 }
 0x282   : > { %v2525_v20 = vpop.eup %2524 }
 0x283   : > { %v1611_v32 = vmul.f32 %v2525_v20, %v3076_v34  ;;  %v1565_v54 = vpop.xlane.xlu2 %1564 }
 0x284   : > { %2526 = vrcp.f32 %v1565_v54 }
 0x285   : > { %v1627_v25 = vpack.c.bf16 %v1611_v32, %v1611_v32  ;;  %2528 = vrcp.f32 %v1583_v62 }
 0x286   : > { %2530 = vrcp.f32 %v1577_v0 }
 0x287   : > { %2435 = vmatmul.msk.bf16.vlgmr.msra.gmra.mxu3 %vm1632_vm4, %v1627_v25 }
 0x288   : > { %2436 = vmatmul.msk.bf16.vlgmr.msrb.gmra.mxu0 %vm1632_vm4, %v1628_v26 }
 0x28a   : > { %v2527_v3 = vpop.eup %2526 }
 0x28b   : > { %v1609_v28 = vmul.f32 %v2527_v3, %v3082_v56  ;;  %v2529_v2 = vpop.eup %2528 }
 0x28c   : > { %v1615_v23 = vmul.f32 %v2529_v2, %v3054_v36  ;;  %v2531_v5 = vpop.eup %2530 }
 0x28d   : > { %v1625_v58 = vpack.c.bf16 %v1609_v28, %v1609_v28  ;;  %v1613_v31 = vmul.f32 %v2531_v5, %v3058_v39 }
 0x28e   : > { %v1631_v34 = vpack.c.bf16 %v1615_v23, %v1615_v23 }
 0x28f   : > { %2433 = vmatmul.msk.bf16.vlgmr.msra.gmra.mxu1 %vm1632_vm4, %v1625_v58  ;;  %v1629_v7 = vpack.c.bf16 %v1613_v31, %v1613_v31 }
 0x297   : > { %2439 = vmatmul.msk.bf16.vlgmr.msrb.gmra.mxu3 %vm1632_vm4, %v1631_v34 }
 0x29f   : > { %2437 = vmatmul.msk.bf16.vlgmr.msrb.gmra.mxu1 %vm1632_vm4, %v1629_v7 }
 0x2a2   : > { %v1649_v38 = vpop.f32.mrf.mxu0 }
 0x2a3   : > { %v1938_v51 = vpack.c.bf16 %v1649_v38, %v1649_v38 }
 0x2aa   : > { %v1651_v13 = vpop.f32.mrf.mxu0  ;;  %v1668_v56 = vpop.f32.mrf.mxu1 }
 0x2ab   : > { %v1939_v6 = vpack.c.bf16 %v1668_v56, %v1668_v56 }
 0x2b1   : > { %v1687_v33 = vpop.f32.mrf.mxu2 }
 0x2b2   : > { %v1670_v35 = vpop.f32.mrf.mxu1  ;;  %v1725_v14 = vpop.f32.mrf.mxu0  ;;  %v1940_v55 = vpack.c.bf16 %v1687_v33, %v1687_v33 }
 0x2b3   : > { %v1942_v61 = vpack.c.bf16 %v1725_v14, %v1725_v14 }
 0x2b5   : > { %v1954_v47 = vrot.slane %v1942_v61, 4 }
 0x2b7   : > { %v1955_v24 = vsel %vm296_vm0, %v1954_v47, %v1938_v51 }
 0x2b8   : > { %v1959_v8 = vperm.slane %v1955_v24, %v3147_v44 }
 0x2b9   : > { %v1689_v30 = vpop.f32.mrf.mxu2  ;;  %v1706_v29 = vpop.f32.mrf.mxu3 }
 0x2ba   : > { %v1727_v52 = vpop.f32.mrf.mxu0  ;;  %v1941_v22 = vpack.c.bf16 %v1706_v29, %v1706_v29 }
 0x2bb   : > { %v1744_v41 = vpop.f32.mrf.mxu1 }
 0x2bc   : > { %v1943_v45 = vpack.c.bf16 %v1744_v41, %v1744_v41 }
 0x2be   : > { %v1974_v50 = vrot.slane %v1943_v45, 4 }
 0x2c0   : > { %v1975_v60 = vsel %vm296_vm0, %v1974_v50, %v1939_v6 }
 0x2c1   : > { %v1708_v36 = vpop.f32.mrf.mxu3  ;;  %v1979_v9 = vperm.slane %v1975_v60, %v3147_v44 }
 0x2c3   : > { %v1746_v37 = vpop.f32.mrf.mxu1 }
 0x2c9   : > { %v1763_v39 = vpop.f32.mrf.mxu2  ;;  %v1782_v27 = vpop.f32.mrf.mxu3 }
 0x2ca   : > { %v1944_v59 = vpack.c.bf16 %v1763_v39, %v1763_v39  ;;  %v1945_v40 = vpack.c.bf16 %v1782_v27, %v1782_v27 }
 0x2cc   : > { %v1960_v42 = vrot.slane %v1944_v59, 4  ;;  %v1980_v53 = vrot.slane %v1945_v40, 4 }
 0x2ce   : > { %v1961_v57 = vsel %vm296_vm0, %v1960_v42, %v1940_v55  ;;  %v1981_v4 = vsel %vm296_vm0, %v1980_v53, %v1941_v22 }
 0x2cf   : > { %v1965_v18 = vperm.slane %v1961_v57, %v3147_v44  ;;  %v1985_v63 = vperm.slane %v1981_v4, %v3147_v44 }
 0x2d1   : > { %v1966_v15 = vrot.slane %v1965_v18, 4  ;;  %v1765_v49 = vpop.f32.mrf.mxu2  ;;  %v1986_v48 = vrot.slane %v1985_v63, 4  ;;  %v1784_v10 = vpop.f32.mrf.mxu3 }
 0x2d3   : > { %v1967_v1 = vsel %vm296_vm0, %v1966_v15, %v1959_v8  ;;  %v1987_v43 = vsel %vm296_vm0, %v1986_v48, %v1979_v9 }
 0x2d4   : > { %v1971_v11 = vperm.slane %v1967_v1, %v2651_v12  ;;  %v1991_v16 = vperm.slane %v1987_v43, %v2651_v12 }
 0x2d6   : > { %v1972_v17 = vrot.slane %v1971_v11, 4  ;;  %v2037_v20 = vshrl.u32 %v1971_v11, 16  ;;  %v1992_v21 = vrot.slane %v1991_v16, 4  ;;  %v2036_v62 = vpack.i.b16 %v1991_v16, %v1971_v11 }
 0x2d7   : > { %v2038_v32 = vshrl.u32 %v1991_v16, 16 }
 0x2d8   : > { %v1973_v54 = vsel %vm296_vm0, 0, %v1972_v17  ;;  %v1993_v26 = vsel %vm296_vm0, 0, %v1992_v21  ;;  %v2061_v23 = vshrl.u32 %v2036_v62, 16 }
 0x2d9   : > { %v3162_v25 = vpop.f32.mrf.mxu2  ;;  %v2039_v3 = vpack.i.b16 %v2038_v32, %v2037_v20  ;;  %v2043_v28 = vshrl.u32 %v1973_v54, 16  ;;  %v2042_v0 = vpack.i.b16 %v1993_v26, %v1973_v54  ;;  %v2044_v58 = vshrl.u32 %v1993_v26, 16 }
 0x2db   : > { %v2060_v2 = vpack.i.b16 %v2039_v3, %v2036_v62  ;;  %v2062_v34 = vshrl.u32 %v2039_v3, 16  ;;  %v2045_v5 = vpack.i.b16 %v2044_v58, %v2043_v28  ;;  %v2067_v13 = vshrl.u32 %v2042_v0, 16 }
 0x2dd   : > { %v2086_v31 = vperm.slane %v2060_v2, %v3147_v44  ;;  %v2063_v7 = vpack.i.b16 %v2062_v34, %v2061_v23  ;;  %v2066_v38 = vpack.i.b16 %v2045_v5, %v2042_v0  ;;  %v2068_v56 = vshrl.u32 %v2045_v5, 16 }
 0x2de   : > { %v1948_v0 = vpack.c.bf16 %v3162_v25, %v3162_v25 }
 0x2df   : > { %v2094_v33 = vrot.slane %v2086_v31, 4  ;;  %v2112_v35 = vperm.slane %v2063_v7, %v3147_v44  ;;  %v2091_v14 = vperm.slane %v2066_v38, %v3147_v44  ;;  %v2069_v30 = vpack.i.b16 %v2068_v56, %v2067_v13 }
 0x2e1   : > { %v1841_v29 = vpop.f32.mrf.mxu2  ;;  %v2120_v52 = vrot.slane %v2112_v35, 4  ;;  %v2095_v41 = vsel %vm296_vm0, %v2091_v14, %v2094_v33  ;;  %v2092_v36 = vrot.slane %v2091_v14, 4  ;;  %v2117_v37 = vperm.slane %v2069_v30, %v3147_v44 }
 0x2e2   : > { %v2103_v61 = vperm.slane %v2095_v41, %v2651_v12 }
 0x2e3   : > { %v2121_v45 = vsel %vm296_vm0, %v2117_v37, %v2120_v52  ;;  %v2093_v46 = vsel %vm296_vm0, %v2092_v36, %v2086_v31  ;;  %v2118_v19 = vrot.slane %v2117_v37, 4 }
 0x2e4   : > { %v2202_v39 = vunpack.c.l.b16 %v2103_v61  ;;  %v2129_v47 = vperm.slane %v2121_v45, %v2651_v12  ;;  %v2106_v59 = vrot.slane %v2103_v61, 4  ;;  %v3175_v27 = vperm.slane %v2093_v46, %v2651_v12 }
 0x2e5   : > { %v2119_v50 = vsel %vm296_vm0, %v2118_v19, %v2112_v35 }
 0x2e6   : > { %v2203_v40 = vpack.c.b16 %v2202_v39, %v2202_v39  ;;  %v2207_v51 = vunpack.c.l.b16 %v2129_v47  ;;  %v2107_v55 = vsel %vm296_vm0, 0, %v2106_v59  ;;  %v2104_v42 = vrot.slane %v3175_v27, 4 }
 0x2e7   : > { %v2212_v6 = vunpack.c.l.b16 %v2107_v55  ;;  %v2125_v22 = vperm.slane %v2119_v50, %v2651_v12  ;;  %v2132_v63 = vrot.slane %v2129_v47, 4 }
 0x2e8   : > { %2204 = vrot.lane.b32.xlu0 %v2203_v40, %s2553_s11  ;;  %v2208_v24 = vpack.c.b16 %v2207_v51, %v2207_v51  ;;  %v2105_v57 = vsel %vm296_vm0, 0, %v2104_v42 }
 0x2e9   : > { %v2213_v60 = vpack.c.b16 %v2212_v6, %v2212_v6  ;;  %v2192_v18 = vunpack.c.l.b16 %v2105_v57  ;;  %v2130_v4 = vrot.slane %v2125_v22, 4  ;;  %v2187_v8 = vunpack.c.l.b16 %v2125_v22 }
 0x2ea   : > { %v1915_v53 = vpop.f32.mrf.mxu2  ;;  %2209 = vrot.lane.b32.xlu1 %v2208_v24, %s2548_s6  ;;  %v2133_v48 = vsel %vm296_vm0, 0, %v2132_v63 }
 0x2eb   : > { %2214 = vrot.lane.b32.xlu2 %v2213_v60, %s2547_s5  ;;  %v2131_v15 = vsel %vm296_vm0, 0, %v2130_v4  ;;  %v2193_v9 = vpack.c.b16 %v2192_v18, %v2192_v18  ;;  %v2188_v1 = vpack.c.b16 %v2187_v8, %v2187_v8  ;;  %v2217_v43 = vunpack.c.l.b16 %v2133_v48 }
 0x2ec   : > { %v2197_v49 = vunpack.c.l.b16 %v2131_v15  ;;  %v1952_v32 = vpack.c.bf16 %v1915_v53, %v1915_v53 }
 0x2ed   : > { %v2218_v17 = vpack.c.b16 %v2217_v43, %v2217_v43 }
 0x2ee   : > { %v2198_v11 = vpack.c.b16 %v2197_v49, %v2197_v49  ;;  %v2000_v28 = vrot.slane %v1952_v32, 4 }
 0x2f0   : > { %2194 = vrot.lane.b32.xlu0 %v2193_v9, %s2551_s9  ;;  %v2001_v23 = vsel %vm296_vm0, %v2000_v28, %v1948_v0 }
 0x2f1   : > { %v2005_v7 = vperm.slane %v2001_v23, %v3147_v44 }
 0x2f2   : > { %v1917_v10 = vpop.f32.mrf.mxu2  ;;  %2189 = vrot.lane.b32.xlu1 %v2188_v1, %s2552_s10 }
 0x2f3   : > { %2199 = vrot.lane.b32.xlu2 %v2198_v11, %s2554_s12  ;;  %v2006_v13 = vrot.slane %v2005_v7, 4 }
 0x2f5   : > { %v1801_v16 = vpop.f32.mrf.mxu0 }
 0x2f6   : > { %v1946_v34 = vpack.c.bf16 %v1801_v16, %v1801_v16 }
 0x2f8   : > { %2219 = vrot.lane.b32.xlu0 %v2218_v17, %s2550_s8 }
 0x2fd   : > { %v1803_v20 = vpop.f32.mrf.mxu0 }
 0x305   : > { %v1877_v21 = vpop.f32.mrf.mxu0 }
 0x306   : > { %v1950_v26 = vpack.c.bf16 %v1877_v21, %v1877_v21 }
 0x308   : > { %v1994_v58 = vrot.slane %v1950_v26, 4 }
 0x30a   : > { %v1858_v62 = vpop.f32.mrf.mxu3  ;;  %v1995_v31 = vsel %vm296_vm0, %v1994_v58, %v1946_v34 }
 0x30b   : > { %v1999_v38 = vperm.slane %v1995_v31, %v3147_v44  ;;  %v1949_v30 = vpack.c.bf16 %v1858_v62, %v1858_v62 }
 0x30c   : > { %v1820_v54 = vpop.f32.mrf.mxu1 }
 0x30d   : > { %v1879_v3 = vpop.f32.mrf.mxu0  ;;  %v2007_v35 = vsel %vm296_vm0, %v2006_v13, %v1999_v38  ;;  %v1947_v41 = vpack.c.bf16 %v1820_v54, %v1820_v54 }
 0x30e   : > { %v2011_v52 = vperm.slane %v2007_v35, %v2651_v12 }
 0x310   : > { %v2012_v47 = vrot.slane %v2011_v52, 4  ;;  %v2049_v51 = vshrl.u32 %v2011_v52, 16 }
 0x312   : > { %v1860_v2 = vpop.f32.mrf.mxu3  ;;  %v2013_v22 = vsel %vm296_vm0, 0, %v2012_v47 }
 0x313   : > { %v2055_v60 = vshrl.u32 %v2013_v22, 16 }
 0x314   : > { %v1822_v5 = vpop.f32.mrf.mxu1 }
 0x31a   : > { %v1934_v56 = vpop.f32.mrf.mxu3 }
 0x31b   : > { %v1953_v33 = vpack.c.bf16 %v1934_v56, %v1934_v56 }
 0x31c   : > { %v1896_v14 = vpop.f32.mrf.mxu1 }
 0x31d   : > { %v2020_v25 = vrot.slane %v1953_v33, 4  ;;  %v1951_v29 = vpack.c.bf16 %v1896_v14, %v1896_v14 }
 0x31f   : > { %v2021_v36 = vsel %vm296_vm0, %v2020_v25, %v1949_v30  ;;  %v2014_v37 = vrot.slane %v1951_v29, 4 }
 0x320   : > { %v2025_v61 = vperm.slane %v2021_v36, %v3147_v44 }
 0x321   : > { %v2015_v45 = vsel %vm296_vm0, %v2014_v37, %v1947_v41 }
 0x322   : > { %v2026_v46 = vrot.slane %v2025_v61, 4  ;;  %v2019_v19 = vperm.slane %v2015_v45, %v3147_v44  ;;  %v1936_v39 = vpop.f32.mrf.mxu3 }
 0x324   : > { %v2027_v59 = vsel %vm296_vm0, %v2026_v46, %v2019_v19  ;;  %v1898_v50 = vpop.f32.mrf.mxu1 }
 0x325   : > { %v2031_v40 = vperm.slane %v2027_v59, %v2651_v12 }
 0x327   : > { %v2032_v55 = vrot.slane %v2031_v40, 4  ;;  %v2048_v42 = vpack.i.b16 %v2031_v40, %v2011_v52  ;;  %v2050_v6 = vshrl.u32 %v2031_v40, 16 }
 0x329   : > { %v2033_v53 = vsel %vm296_vm0, 0, %v2032_v55  ;;  %v2051_v24 = vpack.i.b16 %v2050_v6, %v2049_v51  ;;  %v2073_v63 = vshrl.u32 %v2048_v42, 16 }
 0x32a   : > { %v2054_v57 = vpack.i.b16 %v2033_v53, %v2013_v22  ;;  %v2056_v18 = vshrl.u32 %v2033_v53, 16 }
 0x32b   : > { %v2072_v4 = vpack.i.b16 %v2051_v24, %v2048_v42  ;;  %v2074_v8 = vshrl.u32 %v2051_v24, 16 }
 0x32c   : > { %v2057_v15 = vpack.i.b16 %v2056_v18, %v2055_v60  ;;  %v2079_v10 = vshrl.u32 %v2054_v57, 16 }
 0x32d   : > { %v2138_v49 = vperm.slane %v2072_v4, %v3147_v44  ;;  %v2075_v9 = vpack.i.b16 %v2074_v8, %v2073_v63 }
 0x32e   : > { %v2078_v48 = vpack.i.b16 %v2057_v15, %v2054_v57  ;;  %v2080_v1 = vshrl.u32 %v2057_v15, 16 }
 0x32f   : > { %v2146_v11 = vrot.slane %v2138_v49, 4  ;;  %v2164_v43 = vperm.slane %v2075_v9, %v3147_v44 }
 0x330   : > { %v2143_v16 = vperm.slane %v2078_v48, %v3147_v44  ;;  %v2081_v17 = vpack.i.b16 %v2080_v1, %v2079_v10 }
 0x331   : > { %v2172_v20 = vrot.slane %v2164_v43, 4 }
 0x332   : > { %v2147_v21 = vsel %vm296_vm0, %v2143_v16, %v2146_v11  ;;  %v2144_v62 = vrot.slane %v2143_v16, 4  ;;  %v2169_v32 = vperm.slane %v2081_v17, %v3147_v44 }
 0x333   : > { %v2155_v54 = vperm.slane %v2147_v21, %v2651_v12 }
 0x334   : > { %v2145_v26 = vsel %vm296_vm0, %v2144_v62, %v2138_v49  ;;  %v2170_v3 = vrot.slane %v2169_v32, 4  ;;  %v2173_v58 = vsel %vm296_vm0, %v2169_v32, %v2172_v20 }
 0x335   : > { %v2242_v28 = vunpack.c.l.b16 %v2155_v54  ;;  %v2151_v0 = vperm.slane %v2145_v26, %v2651_v12  ;;  %v2181_v7 = vperm.slane %v2173_v58, %v2651_v12  ;;  %v2158_v29 = vrot.slane %v2155_v54, 4 }
 0x336   : > { %v2171_v2 = vsel %vm296_vm0, %v2170_v3, %v2164_v43 }
 0x337   : > { %v2243_v23 = vpack.c.b16 %v2242_v28, %v2242_v28  ;;  %v2222_v34 = vunpack.c.l.b16 %v2151_v0  ;;  %v2156_v5 = vrot.slane %v2151_v0, 4  ;;  %v2177_v31 = vperm.slane %v2171_v2, %v2651_v12 }
 0x338   : > { %v2184_v30 = vrot.slane %v2181_v7, 4  ;;  %v2247_v12 = vunpack.c.l.b16 %v2181_v7  ;;  %v2159_v37 = vsel %vm296_vm0, 0, %v2158_v29 }
 0x339   : > { %2244 = vrot.lane.b32.xlu2 %v2243_v23, %s2545_s29  ;;  %v2223_v44 = vpack.c.b16 %v2222_v34, %v2222_v34  ;;  %v2157_v38 = vsel %vm296_vm0, 0, %v2156_v5  ;;  %v2182_v13 = vrot.slane %v2177_v31, 4  ;;  %v2227_v33 = vunpack.c.l.b16 %v2177_v31 }
 0x33a   : > { %v2232_v56 = vunpack.c.l.b16 %v2157_v38  ;;  %v2185_v41 = vsel %vm296_vm0, 0, %v2184_v30  ;;  %v2248_v45 = vpack.c.b16 %v2247_v12, %v2247_v12  ;;  %v2252_v46 = vunpack.c.l.b16 %v2159_v37 }
 0x33b   : > { %2224 = vrot.lane.b32.xlu1 %v2223_v44, %s2549_s7  ;;  %v2183_v35 = vsel %vm296_vm0, 0, %v2182_v13  ;;  %v2228_v52 = vpack.c.b16 %v2227_v33, %v2227_v33  ;;  %v2257_v61 = vunpack.c.l.b16 %v2185_v41  ;;  %vm2297_vm0 = vcmask 850944  }
 0x33c   : > { %v2233_v14 = vpack.c.b16 %v2232_v56, %v2232_v56  ;;  %v2237_v25 = vunpack.c.l.b16 %v2183_v35  ;;  %v2253_v39 = vpack.c.b16 %v2252_v46, %v2252_v46 }
 0x33d   : > { %v2258_v19 = vpack.c.b16 %v2257_v61, %v2257_v61 }
 0x33e   : > { %2234 = vrot.lane.b32.xlu0 %v2233_v14, %s2543_s27  ;;  %v2238_v36 = vpack.c.b16 %v2237_v25, %v2237_v25 }
 0x341   : > { %2229 = vrot.lane.b32.xlu2 %v2228_v52, %s2544_s28 }
 0x343   : > { %2239 = vrot.lane.b32.xlu1 %v2238_v36, %s2546_s30 }
 0x345   : > { %v2215_v50 = vpop.permute.xlu2 %2214 }
 0x346   : > { %2249 = vrot.lane.b32.xlu0 %v2248_v45, %s2542_s26 }
 0x349   : > { %2259 = vrot.lane.b32.xlu2 %v2258_v19, %s2540_s24  ;;  %s246_s24 = scalar_lea.vmem %s3244_s4, %s2593_s17 }
 0x34b   : > { %2254 = vrot.lane.b32.xlu1 %v2253_v39, %s2541_s25 }
 0x34d   : > { %v2200_v42 = vpop.permute.xlu2 %2199 }
 0x35a   : > { %v2205_v59 = vpop.permute.xlu0 %2204 }
 0x35c   : > { %v2210_v47 = vpop.permute.xlu1 %2209 }
 0x362   : > { %v2195_v55 = vpop.permute.xlu0 %2194 }
 0x364   : > { %v2190_v40 = vpop.permute.xlu1 %2189 }
 0x365   : > { %v2263_v51 = vsel %vm1110_vm1, %v3175_v27, %v2190_v40  ;;  %vm2300_vm1 = vcmask 916480  }
 0x366   : > { %v2266_v6 = vsel %vm2264_vm5, %v2263_v51, %v2195_v55 }
 0x367   : > { %v2269_v22 = vsel %vm2267_vm6, %v2266_v6, %v2200_v42 }
 0x368   : > { %v2272_v53 = vsel %vm2270_vm7, %v2269_v22, %v2205_v59 }
 0x369   : > { %v2275_v60 = vsel %vm2273_vm8, %v2272_v53, %v2210_v47 }
 0x36a   : > { %v2220_v24 = vpop.permute.xlu0 %2219  ;;  %v2278_v18 = vsel %vm2276_vm9, %v2275_v60, %v2215_v50 }
 0x36b   : > { %v2281_v63 = vsel %vm2279_vm10, %v2278_v18, %v2220_v24 }
 0x393   : > { %v2245_v57 = vpop.permute.xlu2 %2244 }
 0x39b   : > { %v2230_v15 = vpop.permute.xlu2 %2229 }
 0x3a3   : > { %v2260_v17 = vpop.permute.xlu2 %2259 }
 0x3ad   : > { %v2225_v4 = vpop.permute.xlu1 %2224 }
 0x3ae   : > { %v2284_v8 = vsel %vm2282_vm11, %v2281_v63, %v2225_v4 }
 0x3af   : > { %v2287_v49 = vsel %vm2285_vm12, %v2284_v8, %v2230_v15 }
 0x3b0   : > { %v2235_v27 = vpop.permute.xlu0 %2234 }
 0x3b1   : > { %v2290_v48 = vsel %vm2288_vm13, %v2287_v49, %v2235_v27 }
 0x3b5   : > { %v2240_v9 = vpop.permute.xlu1 %2239 }
 0x3b6   : > { %v2293_v10 = vsel %vm2291_vm14, %v2290_v48, %v2240_v9 }
 0x3b7   : > { %v2296_v11 = vsel %vm2294_vm15, %v2293_v10, %v2245_v57 }
 0x3b8   : > { %v2250_v1 = vpop.permute.xlu0 %2249 }
 0x3b9   : > { %v2299_v43 = vsel %vm2297_vm0, %v2296_v11, %v2250_v1 }
 0x3bd   : > { %v2255_v16 = vpop.permute.xlu1 %2254 }
 0x3be   : > { %v2302_v20 = vsel %vm2300_vm1, %v2299_v43, %v2255_v16 }
 0x3bf   : > { %v2305_v21 = vsel %vm2303_vm2, %v2302_v20, %v2260_v17 }
 0x3c0   : > { %2307 = vst [vmem:[%s246_s24] sm:$0x3] %v2305_v21 }
 0x3c1 PF: > { %s14_s15 = sadd.s32 1, %s2538_s15  }
 0x3c2   : > { %p11_p4 = scmp.ge.s32.totalorder %s14_s15, 4  }
 0x3c4   :  { %13 = sbr.rel (!%p11_p4) target bundleno = 1 (0x1), region = 75 }

</bundles_post_ra>
